<compile_context>
chip_gen: v6e
topology: v6e:2x2x1
jax: 0.10.0
libtpu: 0.0.40
codegen_flags: <defaults>
</compile_context>

<pallas_src>
import jax
import jax.numpy as jnp
from jax.experimental import pallas as pl
from jax.experimental.pallas import tpu as pltpu

H = W = 28          # spatial size forced by Linear(14*14*4, 10)
C1, C2 = 2, 4       # conv channel counts
NCLS = 10
PH = PW = 14        # pooled spatial size
NB = 128            # batch tile (lane axis)
CHUNK = 32          # per-(channel, pooled-row) feature chunk: 28 cols + 4 zero pad
KFC = C2 * PH * CHUNK   # 1792 = FC contraction length (padded / interleaved)


def _net_kernel(w1_ref, b1_ref, w2_ref, b2_ref, x_ref, wp_ref, bfc_ref,
                o_ref, h1p_ref, f_ref):
    f32 = jnp.float32

    # ---- hoisted SMEM scalars / broadcast constants (loop-invariant) --------
    w1 = [w1_ref[i] for i in range(C1 * 9)]
    w2 = [w2_ref[i] for i in range(C2 * C1 * 9)]
    b1b = [jnp.full((W, NB), b1_ref[c], f32) for c in range(C1)]
    b2b = [jnp.full((W, NB), b2_ref[c], f32) for c in range(C2)]
    zcol = jnp.zeros((1, NB), f32)
    zpad = jnp.zeros((CHUNK - W, NB), f32)
    zrow = jnp.zeros((W + 2, NB), f32)

    h1v = [h1p_ref.at[c] for c in range(C1)]          # per-channel (30, 30, NB) views
    # vertical halo rows of the conv1 activation scratch (halo cols written per row)
    for c in range(C1):
        h1v[c][0, :, :] = zrow
        h1v[c][H + 1, :, :] = zrow

    # ---- conv1 (1->C1, 3x3, pad 1) + ReLU: one output row per iteration -----
    @pl.loop(0, H)
    def _conv1_row(y):
        taps = [[x_ref[y + dy, pl.ds(dx, W), :] for dx in range(3)]
                for dy in range(3)]                   # 9 loads shared by both channels
        for co in range(C1):
            acc = b1b[co]
            for dy in range(3):
                for dx in range(3):
                    acc = acc + w1[co * 9 + dy * 3 + dx] * taps[dy][dx]
            h1v[co][y + 1, pl.ds(1, W), :] = jnp.maximum(acc, 0.0)
            h1v[co][y + 1, pl.ds(0, 1), :] = zcol      # left halo col
            h1v[co][y + 1, pl.ds(W + 1, 1), :] = zcol  # right halo col

    # ---- conv2 (C1->C2) + ReLU + 2x2 max-pool, one pooled row band per step --
    # Only the row-pair max and neighbour-column max are computed here; the
    # even-column selection of the pool is folded into the FC weights (odd and
    # pad columns carry zero weight).
    @pl.loop(0, PH)
    def _band(i):
        taps = [[[h1v[ci][2 * i + t, pl.ds(dx, W), :] for dx in range(3)]
                 for t in range(5)] for ci in range(C1)]   # 30 loads shared by 4 ch
        for co in range(C2):
            rows = []
            for r in range(2):
                acc = b2b[co]
                for ci in range(C1):
                    for dy in range(3):
                        for dx in range(3):
                            acc = acc + (w2[((co * C1 + ci) * 3 + dy) * 3 + dx]
                                         * taps[ci][r + dy][dx])
                rows.append(jnp.maximum(acc, 0.0))
            rmax = jnp.maximum(rows[0], rows[1])           # (W, NB) row-pair max
            chunk = co * PH + i
            f_ref[chunk, pl.ds(0, W), :] = rmax
            f_ref[chunk, pl.ds(W, CHUNK - W), :] = zpad    # zero-weighted pad cols
            left = f_ref[chunk, pl.ds(0, W - 1), :]        # rmax[x]
            right = f_ref[chunk, pl.ds(1, W - 1), :]       # rmax[x+1]
            f_ref[chunk, pl.ds(0, W - 1), :] = jnp.maximum(left, right)

    # ---- FC: one lane-dense MXU matmul over the whole batch tile ------------
    feats = f_ref[...].reshape(KFC, NB)                    # layout-preserving (32 % 8 == 0)
    logits = jnp.dot(wp_ref[...], feats, preferred_element_type=jnp.float32)
    o_ref[...] = logits + bfc_ref[...]                     # (NCLS, NB), lane-dense store


def net_forward(x, w1, b1, w2, b2, fcw, fcb):
    n = x.shape[0]
    n_pad = ((n + NB - 1) // NB) * NB

    # activations: batch on the lane (last) axis, 1-pixel zero halo on H/W
    xt = jnp.transpose(x[:, 0].astype(jnp.float32), (1, 2, 0))   # (28, 28, n)
    xt = jnp.pad(xt, ((1, 1), (1, 1), (0, n_pad - n)))           # (30, 30, n_pad)

    w1f = w1.reshape(-1).astype(jnp.float32)                     # (18,)
    w2f = w2.reshape(-1).astype(jnp.float32)                     # (72,)
    b1f = b1.astype(jnp.float32)
    b2f = b2.astype(jnp.float32)

    # FC weight: PyTorch flatten order (c, i, j); spread j over the even columns
    # of a 32-wide per-(c, i) chunk so pooled row bands are stored un-reshaped.
    wfc3 = fcw.astype(jnp.float32).reshape(NCLS, C2 * PH, PW)    # (10, 56, 14)
    wp = jnp.zeros((NCLS, C2 * PH, CHUNK), jnp.float32)
    wp = wp.at[:, :, 0:2 * PW:2].set(wfc3).reshape(NCLS, KFC)    # (10, 1792)
    bfc_col = fcb.astype(jnp.float32).reshape(NCLS, 1)

    out = pl.pallas_call(
        _net_kernel,
        out_shape=jax.ShapeDtypeStruct((NCLS, n_pad), jnp.float32),
        grid=(n_pad // NB,),
        in_specs=[
            pl.BlockSpec(memory_space=pltpu.MemorySpace.SMEM),       # w1 flat
            pl.BlockSpec(memory_space=pltpu.MemorySpace.SMEM),       # b1
            pl.BlockSpec(memory_space=pltpu.MemorySpace.SMEM),       # w2 flat
            pl.BlockSpec(memory_space=pltpu.MemorySpace.SMEM),       # b2
            pl.BlockSpec((H + 2, W + 2, NB), lambda b: (0, 0, b)),   # halo-padded input
            pl.BlockSpec((NCLS, KFC), lambda b: (0, 0)),             # fc weight (padded)
            pl.BlockSpec((NCLS, 1), lambda b: (0, 0)),               # fc bias
        ],
        out_specs=pl.BlockSpec((NCLS, NB), lambda b: (0, b)),
        scratch_shapes=[
            pltpu.VMEM((C1, H + 2, W + 2, NB), jnp.float32),         # padded conv1 act
            pltpu.VMEM((C2 * PH, CHUNK, NB), jnp.float32),           # pooled FC features
        ],
        compiler_params=pltpu.CompilerParams(
            dimension_semantics=("parallel",)),
    )(w1f, b1f, w2f, b2f, xt, wp, bfc_col)

    return out[:, :n].T                                              # (n, 10)


def net_reference(x, w1, b1, w2, b2, fcw, fcb):
    dn = ("NCHW", "OIHW", "NCHW")
    hp = jax.lax.Precision.HIGHEST
    y = jax.lax.conv_general_dilated(x, w1, (1, 1), "SAME",
                                     dimension_numbers=dn, precision=hp)
    y = jax.nn.relu(y + b1[None, :, None, None])
    y = jax.lax.conv_general_dilated(y, w2, (1, 1), "SAME",
                                     dimension_numbers=dn, precision=hp)
    y = jax.nn.relu(y + b2[None, :, None, None])
    n = y.shape[0]
    y = y.reshape(n, C2, PH, 2, PW, 2).max(axis=5).max(axis=3)
    y = y.reshape(n, -1)
    return jnp.dot(y, fcw.T, precision=hp) + fcb


if __name__ == "__main__":
    key = jax.random.PRNGKey(0)
    kx, k1, k2, k3, k4, k5, k6 = jax.random.split(key, 7)
    # batch=2, 1x28x28 input (28x28 is forced by Linear(14*14*4, 10))
    x = jax.random.normal(kx, (2, 1, 28, 28), jnp.float32)

    # deterministic synthetic parameters (shapes from Net.__init__)
    w1 = 0.30 * jax.random.normal(k1, (C1, 1, 3, 3), jnp.float32)
    b1 = 0.10 * jax.random.normal(k2, (C1,), jnp.float32)
    w2 = 0.20 * jax.random.normal(k3, (C2, C1, 3, 3), jnp.float32)
    b2 = 0.10 * jax.random.normal(k4, (C2,), jnp.float32)
    fcw = 0.05 * jax.random.normal(k5, (NCLS, PH * PW * C2), jnp.float32)
    fcb = 0.10 * jax.random.normal(k6, (NCLS,), jnp.float32)

    fwd = jax.jit(net_forward)
    logits = jax.block_until_ready(fwd(x, w1, b1, w2, b2, fcw, fcb))
    assert logits.shape == (2, NCLS)

    ref = net_reference(x, w1, b1, w2, b2, fcw, fcb)
    assert jnp.allclose(logits, ref, atol=2e-2, rtol=2e-2), (logits, ref)

    print("KERNEL_OK")
</pallas_src>

<mosaic_0001>
module attributes {stable_mosaic.version = 11 : i64} {
  func.func @_net_kernel(%arg0: i32, %arg1: memref<18xf32, #tpu.memory_space<smem>>, %arg2: memref<2xf32, #tpu.memory_space<smem>>, %arg3: memref<72xf32, #tpu.memory_space<smem>>, %arg4: memref<4xf32, #tpu.memory_space<smem>>, %arg5: memref<30x30x128xf32, #tpu.memory_space<vmem>>, %arg6: memref<10x1792xf32, #tpu.memory_space<vmem>>, %arg7: memref<10x1xf32, #tpu.memory_space<vmem>>, %arg8: memref<10x128xf32, #tpu.memory_space<vmem>>, %arg9: memref<2x30x30x128xf32, #tpu.memory_space<vmem>>, %arg10: memref<56x32x128xf32, #tpu.memory_space<vmem>>) attributes {dimension_semantics = [#tpu.dimension_semantics<parallel>], iteration_bounds = array<i64: 1>, scalar_prefetch = 0 : i64, scratch_operands = 2 : i64, tpu.core_type = #tpu.core_type<tc>, window_params = [{transform_indices = @transform_0, window_bounds = array<i64: 18>}, {transform_indices = @transform_1, window_bounds = array<i64: 2>}, {transform_indices = @transform_2, window_bounds = array<i64: 72>}, {transform_indices = @transform_3, window_bounds = array<i64: 4>}, {transform_indices = @transform_4, window_bounds = array<i64: 30, 30, 128>}, {pipeline_mode = #tpu.pipeline_mode<synchronous>, transform_indices = @transform_5, window_bounds = array<i64: 10, 1792>}, {pipeline_mode = #tpu.pipeline_mode<synchronous>, transform_indices = @transform_6, window_bounds = array<i64: 10, 1>}, {transform_indices = @transform_7, window_bounds = array<i64: 10, 128>}]} {
    %c0 = arith.constant 0 : index
    %0 = memref.load %arg1[%c0] : memref<18xf32, #tpu.memory_space<smem>>
    %c1 = arith.constant 1 : index
    %1 = memref.load %arg1[%c1] : memref<18xf32, #tpu.memory_space<smem>>
    %c2 = arith.constant 2 : index
    %2 = memref.load %arg1[%c2] : memref<18xf32, #tpu.memory_space<smem>>
    %c3 = arith.constant 3 : index
    %3 = memref.load %arg1[%c3] : memref<18xf32, #tpu.memory_space<smem>>
    %c4 = arith.constant 4 : index
    %4 = memref.load %arg1[%c4] : memref<18xf32, #tpu.memory_space<smem>>
    %c5 = arith.constant 5 : index
    %5 = memref.load %arg1[%c5] : memref<18xf32, #tpu.memory_space<smem>>
    %c6 = arith.constant 6 : index
    %6 = memref.load %arg1[%c6] : memref<18xf32, #tpu.memory_space<smem>>
    %c7 = arith.constant 7 : index
    %7 = memref.load %arg1[%c7] : memref<18xf32, #tpu.memory_space<smem>>
    %c8 = arith.constant 8 : index
    %8 = memref.load %arg1[%c8] : memref<18xf32, #tpu.memory_space<smem>>
    %c9 = arith.constant 9 : index
    %9 = memref.load %arg1[%c9] : memref<18xf32, #tpu.memory_space<smem>>
    %c10 = arith.constant 10 : index
    %10 = memref.load %arg1[%c10] : memref<18xf32, #tpu.memory_space<smem>>
    %c11 = arith.constant 11 : index
    %11 = memref.load %arg1[%c11] : memref<18xf32, #tpu.memory_space<smem>>
    %c12 = arith.constant 12 : index
    %12 = memref.load %arg1[%c12] : memref<18xf32, #tpu.memory_space<smem>>
    %c13 = arith.constant 13 : index
    %13 = memref.load %arg1[%c13] : memref<18xf32, #tpu.memory_space<smem>>
    %c14 = arith.constant 14 : index
    %14 = memref.load %arg1[%c14] : memref<18xf32, #tpu.memory_space<smem>>
    %c15 = arith.constant 15 : index
    %15 = memref.load %arg1[%c15] : memref<18xf32, #tpu.memory_space<smem>>
    %c16 = arith.constant 16 : index
    %16 = memref.load %arg1[%c16] : memref<18xf32, #tpu.memory_space<smem>>
    %c17 = arith.constant 17 : index
    %17 = memref.load %arg1[%c17] : memref<18xf32, #tpu.memory_space<smem>>
    %c0_0 = arith.constant 0 : index
    %18 = memref.load %arg3[%c0_0] : memref<72xf32, #tpu.memory_space<smem>>
    %c1_1 = arith.constant 1 : index
    %19 = memref.load %arg3[%c1_1] : memref<72xf32, #tpu.memory_space<smem>>
    %c2_2 = arith.constant 2 : index
    %20 = memref.load %arg3[%c2_2] : memref<72xf32, #tpu.memory_space<smem>>
    %c3_3 = arith.constant 3 : index
    %21 = memref.load %arg3[%c3_3] : memref<72xf32, #tpu.memory_space<smem>>
    %c4_4 = arith.constant 4 : index
    %22 = memref.load %arg3[%c4_4] : memref<72xf32, #tpu.memory_space<smem>>
    %c5_5 = arith.constant 5 : index
    %23 = memref.load %arg3[%c5_5] : memref<72xf32, #tpu.memory_space<smem>>
    %c6_6 = arith.constant 6 : index
    %24 = memref.load %arg3[%c6_6] : memref<72xf32, #tpu.memory_space<smem>>
    %c7_7 = arith.constant 7 : index
    %25 = memref.load %arg3[%c7_7] : memref<72xf32, #tpu.memory_space<smem>>
    %c8_8 = arith.constant 8 : index
    %26 = memref.load %arg3[%c8_8] : memref<72xf32, #tpu.memory_space<smem>>
    %c9_9 = arith.constant 9 : index
    %27 = memref.load %arg3[%c9_9] : memref<72xf32, #tpu.memory_space<smem>>
    %c10_10 = arith.constant 10 : index
    %28 = memref.load %arg3[%c10_10] : memref<72xf32, #tpu.memory_space<smem>>
    %c11_11 = arith.constant 11 : index
    %29 = memref.load %arg3[%c11_11] : memref<72xf32, #tpu.memory_space<smem>>
    %c12_12 = arith.constant 12 : index
    %30 = memref.load %arg3[%c12_12] : memref<72xf32, #tpu.memory_space<smem>>
    %c13_13 = arith.constant 13 : index
    %31 = memref.load %arg3[%c13_13] : memref<72xf32, #tpu.memory_space<smem>>
    %c14_14 = arith.constant 14 : index
    %32 = memref.load %arg3[%c14_14] : memref<72xf32, #tpu.memory_space<smem>>
    %c15_15 = arith.constant 15 : index
    %33 = memref.load %arg3[%c15_15] : memref<72xf32, #tpu.memory_space<smem>>
    %c16_16 = arith.constant 16 : index
    %34 = memref.load %arg3[%c16_16] : memref<72xf32, #tpu.memory_space<smem>>
    %c17_17 = arith.constant 17 : index
    %35 = memref.load %arg3[%c17_17] : memref<72xf32, #tpu.memory_space<smem>>
    %c18 = arith.constant 18 : index
    %36 = memref.load %arg3[%c18] : memref<72xf32, #tpu.memory_space<smem>>
    %c19 = arith.constant 19 : index
    %37 = memref.load %arg3[%c19] : memref<72xf32, #tpu.memory_space<smem>>
    %c20 = arith.constant 20 : index
    %38 = memref.load %arg3[%c20] : memref<72xf32, #tpu.memory_space<smem>>
    %c21 = arith.constant 21 : index
    %39 = memref.load %arg3[%c21] : memref<72xf32, #tpu.memory_space<smem>>
    %c22 = arith.constant 22 : index
    %40 = memref.load %arg3[%c22] : memref<72xf32, #tpu.memory_space<smem>>
    %c23 = arith.constant 23 : index
    %41 = memref.load %arg3[%c23] : memref<72xf32, #tpu.memory_space<smem>>
    %c24 = arith.constant 24 : index
    %42 = memref.load %arg3[%c24] : memref<72xf32, #tpu.memory_space<smem>>
    %c25 = arith.constant 25 : index
    %43 = memref.load %arg3[%c25] : memref<72xf32, #tpu.memory_space<smem>>
    %c26 = arith.constant 26 : index
    %44 = memref.load %arg3[%c26] : memref<72xf32, #tpu.memory_space<smem>>
    %c27 = arith.constant 27 : index
    %45 = memref.load %arg3[%c27] : memref<72xf32, #tpu.memory_space<smem>>
    %c28 = arith.constant 28 : index
    %46 = memref.load %arg3[%c28] : memref<72xf32, #tpu.memory_space<smem>>
    %c29 = arith.constant 29 : index
    %47 = memref.load %arg3[%c29] : memref<72xf32, #tpu.memory_space<smem>>
    %c30 = arith.constant 30 : index
    %48 = memref.load %arg3[%c30] : memref<72xf32, #tpu.memory_space<smem>>
    %c31 = arith.constant 31 : index
    %49 = memref.load %arg3[%c31] : memref<72xf32, #tpu.memory_space<smem>>
    %c32 = arith.constant 32 : index
    %50 = memref.load %arg3[%c32] : memref<72xf32, #tpu.memory_space<smem>>
    %c33 = arith.constant 33 : index
    %51 = memref.load %arg3[%c33] : memref<72xf32, #tpu.memory_space<smem>>
    %c34 = arith.constant 34 : index
    %52 = memref.load %arg3[%c34] : memref<72xf32, #tpu.memory_space<smem>>
    %c35 = arith.constant 35 : index
    %53 = memref.load %arg3[%c35] : memref<72xf32, #tpu.memory_space<smem>>
    %c36 = arith.constant 36 : index
    %54 = memref.load %arg3[%c36] : memref<72xf32, #tpu.memory_space<smem>>
    %c37 = arith.constant 37 : index
    %55 = memref.load %arg3[%c37] : memref<72xf32, #tpu.memory_space<smem>>
    %c38 = arith.constant 38 : index
    %56 = memref.load %arg3[%c38] : memref<72xf32, #tpu.memory_space<smem>>
    %c39 = arith.constant 39 : index
    %57 = memref.load %arg3[%c39] : memref<72xf32, #tpu.memory_space<smem>>
    %c40 = arith.constant 40 : index
    %58 = memref.load %arg3[%c40] : memref<72xf32, #tpu.memory_space<smem>>
    %c41 = arith.constant 41 : index
    %59 = memref.load %arg3[%c41] : memref<72xf32, #tpu.memory_space<smem>>
    %c42 = arith.constant 42 : index
    %60 = memref.load %arg3[%c42] : memref<72xf32, #tpu.memory_space<smem>>
    %c43 = arith.constant 43 : index
    %61 = memref.load %arg3[%c43] : memref<72xf32, #tpu.memory_space<smem>>
    %c44 = arith.constant 44 : index
    %62 = memref.load %arg3[%c44] : memref<72xf32, #tpu.memory_space<smem>>
    %c45 = arith.constant 45 : index
    %63 = memref.load %arg3[%c45] : memref<72xf32, #tpu.memory_space<smem>>
    %c46 = arith.constant 46 : index
    %64 = memref.load %arg3[%c46] : memref<72xf32, #tpu.memory_space<smem>>
    %c47 = arith.constant 47 : index
    %65 = memref.load %arg3[%c47] : memref<72xf32, #tpu.memory_space<smem>>
    %c48 = arith.constant 48 : index
    %66 = memref.load %arg3[%c48] : memref<72xf32, #tpu.memory_space<smem>>
    %c49 = arith.constant 49 : index
    %67 = memref.load %arg3[%c49] : memref<72xf32, #tpu.memory_space<smem>>
    %c50 = arith.constant 50 : index
    %68 = memref.load %arg3[%c50] : memref<72xf32, #tpu.memory_space<smem>>
    %c51 = arith.constant 51 : index
    %69 = memref.load %arg3[%c51] : memref<72xf32, #tpu.memory_space<smem>>
    %c52 = arith.constant 52 : index
    %70 = memref.load %arg3[%c52] : memref<72xf32, #tpu.memory_space<smem>>
    %c53 = arith.constant 53 : index
    %71 = memref.load %arg3[%c53] : memref<72xf32, #tpu.memory_space<smem>>
    %c54 = arith.constant 54 : index
    %72 = memref.load %arg3[%c54] : memref<72xf32, #tpu.memory_space<smem>>
    %c55 = arith.constant 55 : index
    %73 = memref.load %arg3[%c55] : memref<72xf32, #tpu.memory_space<smem>>
    %c56 = arith.constant 56 : index
    %74 = memref.load %arg3[%c56] : memref<72xf32, #tpu.memory_space<smem>>
    %c57 = arith.constant 57 : index
    %75 = memref.load %arg3[%c57] : memref<72xf32, #tpu.memory_space<smem>>
    %c58 = arith.constant 58 : index
    %76 = memref.load %arg3[%c58] : memref<72xf32, #tpu.memory_space<smem>>
    %c59 = arith.constant 59 : index
    %77 = memref.load %arg3[%c59] : memref<72xf32, #tpu.memory_space<smem>>
    %c60 = arith.constant 60 : index
    %78 = memref.load %arg3[%c60] : memref<72xf32, #tpu.memory_space<smem>>
    %c61 = arith.constant 61 : index
    %79 = memref.load %arg3[%c61] : memref<72xf32, #tpu.memory_space<smem>>
    %c62 = arith.constant 62 : index
    %80 = memref.load %arg3[%c62] : memref<72xf32, #tpu.memory_space<smem>>
    %c63 = arith.constant 63 : index
    %81 = memref.load %arg3[%c63] : memref<72xf32, #tpu.memory_space<smem>>
    %c64 = arith.constant 64 : index
    %82 = memref.load %arg3[%c64] : memref<72xf32, #tpu.memory_space<smem>>
    %c65 = arith.constant 65 : index
    %83 = memref.load %arg3[%c65] : memref<72xf32, #tpu.memory_space<smem>>
    %c66 = arith.constant 66 : index
    %84 = memref.load %arg3[%c66] : memref<72xf32, #tpu.memory_space<smem>>
    %c67 = arith.constant 67 : index
    %85 = memref.load %arg3[%c67] : memref<72xf32, #tpu.memory_space<smem>>
    %c68 = arith.constant 68 : index
    %86 = memref.load %arg3[%c68] : memref<72xf32, #tpu.memory_space<smem>>
    %c69 = arith.constant 69 : index
    %87 = memref.load %arg3[%c69] : memref<72xf32, #tpu.memory_space<smem>>
    %c70 = arith.constant 70 : index
    %88 = memref.load %arg3[%c70] : memref<72xf32, #tpu.memory_space<smem>>
    %c71 = arith.constant 71 : index
    %89 = memref.load %arg3[%c71] : memref<72xf32, #tpu.memory_space<smem>>
    %c0_18 = arith.constant 0 : index
    %90 = memref.load %arg2[%c0_18] : memref<2xf32, #tpu.memory_space<smem>>
    %91 = vector.broadcast %90 : f32 to vector<28x128xf32>
    %c1_19 = arith.constant 1 : index
    %92 = memref.load %arg2[%c1_19] : memref<2xf32, #tpu.memory_space<smem>>
    %93 = vector.broadcast %92 : f32 to vector<28x128xf32>
    %c0_20 = arith.constant 0 : index
    %94 = memref.load %arg4[%c0_20] : memref<4xf32, #tpu.memory_space<smem>>
    %95 = vector.broadcast %94 : f32 to vector<28x128xf32>
    %c1_21 = arith.constant 1 : index
    %96 = memref.load %arg4[%c1_21] : memref<4xf32, #tpu.memory_space<smem>>
    %97 = vector.broadcast %96 : f32 to vector<28x128xf32>
    %c2_22 = arith.constant 2 : index
    %98 = memref.load %arg4[%c2_22] : memref<4xf32, #tpu.memory_space<smem>>
    %99 = vector.broadcast %98 : f32 to vector<28x128xf32>
    %c3_23 = arith.constant 3 : index
    %100 = memref.load %arg4[%c3_23] : memref<4xf32, #tpu.memory_space<smem>>
    %101 = vector.broadcast %100 : f32 to vector<28x128xf32>
    %cst = arith.constant 0.000000e+00 : f32
    %102 = vector.broadcast %cst : f32 to vector<1x128xf32>
    %cst_24 = arith.constant 0.000000e+00 : f32
    %103 = vector.broadcast %cst_24 : f32 to vector<4x128xf32>
    %cst_25 = arith.constant 0.000000e+00 : f32
    %104 = vector.broadcast %cst_25 : f32 to vector<30x128xf32>
    %c0_i32 = arith.constant 0 : i32
    %c0_i32_26 = arith.constant 0 : i32
    %c0_i32_27 = arith.constant 0 : i32
    %c0_i32_28 = arith.constant 0 : i32
    %105 = tpu.memref_slice %arg9[%c0_i32, %c0_i32_26, %c0_i32_27, %c0_i32_28] : memref<2x30x30x128xf32, #tpu.memory_space<vmem>> -> memref<1x30x30x128xf32, #tpu.memory_space<vmem>>
    %106 = tpu.memref_squeeze %105 : memref<1x30x30x128xf32, #tpu.memory_space<vmem>> -> memref<30x30x128xf32, #tpu.memory_space<vmem>>
    %c0_29 = arith.constant 0 : index
    %c0_30 = arith.constant 0 : index
    %c0_31 = arith.constant 0 : index
    %107 = vector.load %106[%c0_29, %c0_30, %c0_31] : memref<30x30x128xf32, #tpu.memory_space<vmem>>, vector<1x30x128xf32>
    %108 = vector.shape_cast %107 : vector<1x30x128xf32> to vector<30x128xf32>
    %109 = vector.shape_cast %104 : vector<30x128xf32> to vector<1x30x128xf32>
    tpu.vector_store %106[%c0_29, %c0_30, %c0_31], %109 {strides = array<i32>} : memref<30x30x128xf32, #tpu.memory_space<vmem>>, vector<1x30x128xf32>,
    %c0_i32_32 = arith.constant 0 : i32
    %c0_i32_33 = arith.constant 0 : i32
    %c0_i32_34 = arith.constant 0 : i32
    %c0_i32_35 = arith.constant 0 : i32
    %110 = tpu.memref_slice %arg9[%c0_i32_32, %c0_i32_33, %c0_i32_34, %c0_i32_35] : memref<2x30x30x128xf32, #tpu.memory_space<vmem>> -> memref<1x30x30x128xf32, #tpu.memory_space<vmem>>
    %111 = tpu.memref_squeeze %110 : memref<1x30x30x128xf32, #tpu.memory_space<vmem>> -> memref<30x30x128xf32, #tpu.memory_space<vmem>>
    %c29_36 = arith.constant 29 : index
    %c0_37 = arith.constant 0 : index
    %c0_38 = arith.constant 0 : index
    %112 = vector.load %111[%c29_36, %c0_37, %c0_38] : memref<30x30x128xf32, #tpu.memory_space<vmem>>, vector<1x30x128xf32>
    %113 = vector.shape_cast %112 : vector<1x30x128xf32> to vector<30x128xf32>
    %114 = vector.shape_cast %104 : vector<30x128xf32> to vector<1x30x128xf32>
    tpu.vector_store %111[%c29_36, %c0_37, %c0_38], %114 {strides = array<i32>} : memref<30x30x128xf32, #tpu.memory_space<vmem>>, vector<1x30x128xf32>,
    %c1_i32 = arith.constant 1 : i32
    %c0_i32_39 = arith.constant 0 : i32
    %c0_i32_40 = arith.constant 0 : i32
    %c0_i32_41 = arith.constant 0 : i32
    %115 = tpu.memref_slice %arg9[%c1_i32, %c0_i32_39, %c0_i32_40, %c0_i32_41] : memref<2x30x30x128xf32, #tpu.memory_space<vmem>> -> memref<1x30x30x128xf32, #tpu.memory_space<vmem>>
    %116 = tpu.memref_squeeze %115 : memref<1x30x30x128xf32, #tpu.memory_space<vmem>> -> memref<30x30x128xf32, #tpu.memory_space<vmem>>
    %c0_42 = arith.constant 0 : index
    %c0_43 = arith.constant 0 : index
    %c0_44 = arith.constant 0 : index
    %117 = vector.load %116[%c0_42, %c0_43, %c0_44] : memref<30x30x128xf32, #tpu.memory_space<vmem>>, vector<1x30x128xf32>
    %118 = vector.shape_cast %117 : vector<1x30x128xf32> to vector<30x128xf32>
    %119 = vector.shape_cast %104 : vector<30x128xf32> to vector<1x30x128xf32>
    tpu.vector_store %116[%c0_42, %c0_43, %c0_44], %119 {strides = array<i32>} : memref<30x30x128xf32, #tpu.memory_space<vmem>>, vector<1x30x128xf32>,
    %c1_i32_45 = arith.constant 1 : i32
    %c0_i32_46 = arith.constant 0 : i32
    %c0_i32_47 = arith.constant 0 : i32
    %c0_i32_48 = arith.constant 0 : i32
    %120 = tpu.memref_slice %arg9[%c1_i32_45, %c0_i32_46, %c0_i32_47, %c0_i32_48] : memref<2x30x30x128xf32, #tpu.memory_space<vmem>> -> memref<1x30x30x128xf32, #tpu.memory_space<vmem>>
    %121 = tpu.memref_squeeze %120 : memref<1x30x30x128xf32, #tpu.memory_space<vmem>> -> memref<30x30x128xf32, #tpu.memory_space<vmem>>
    %c29_49 = arith.constant 29 : index
    %c0_50 = arith.constant 0 : index
    %c0_51 = arith.constant 0 : index
    %122 = vector.load %121[%c29_49, %c0_50, %c0_51] : memref<30x30x128xf32, #tpu.memory_space<vmem>>, vector<1x30x128xf32>
    %123 = vector.shape_cast %122 : vector<1x30x128xf32> to vector<30x128xf32>
    %124 = vector.shape_cast %104 : vector<30x128xf32> to vector<1x30x128xf32>
    tpu.vector_store %121[%c29_49, %c0_50, %c0_51], %124 {strides = array<i32>} : memref<30x30x128xf32, #tpu.memory_space<vmem>>, vector<1x30x128xf32>,
    %c0_i32_52 = arith.constant 0 : i32
    %c1_i32_53 = arith.constant 1 : i32
    %c0_i32_54 = arith.constant 0 : i32
    %c28_i32 = arith.constant 28 : i32
    %125 = arith.addi %c0_i32_54, %c28_i32 : i32
    %c1_i32_55 = arith.constant 1 : i32
    scf.for %arg11 = %c0_i32_54 to %125 step %c1_i32_55  : i32 {
      %c1_i32_72 = arith.constant 1 : i32
      %135 = arith.muli %arg11, %c1_i32_72 : i32
      %c0_i32_73 = arith.constant 0 : i32
      %136 = arith.addi %c0_i32_73, %135 : i32
      %c0_i32_74 = arith.constant 0 : i32
      %137 = arith.addi %136, %c0_i32_74 : i32
      %138 = arith.index_cast %137 : i32 to index
      %c0_75 = arith.constant 0 : index
      %c0_76 = arith.constant 0 : index
      %139 = vector.load %arg5[%138, %c0_75, %c0_76] : memref<30x30x128xf32, #tpu.memory_space<vmem>>, vector<1x28x128xf32>
      %140 = vector.shape_cast %139 : vector<1x28x128xf32> to vector<28x128xf32>
      %c0_i32_77 = arith.constant 0 : i32
      %141 = arith.addi %136, %c0_i32_77 : i32
      %142 = arith.index_cast %141 : i32 to index
      %c1_78 = arith.constant 1 : index
      %c0_79 = arith.constant 0 : index
      %143 = vector.load %arg5[%142, %c1_78, %c0_79] : memref<30x30x128xf32, #tpu.memory_space<vmem>>, vector<1x28x128xf32>
      %144 = vector.shape_cast %143 : vector<1x28x128xf32> to vector<28x128xf32>
      %c0_i32_80 = arith.constant 0 : i32
      %145 = arith.addi %136, %c0_i32_80 : i32
      %146 = arith.index_cast %145 : i32 to index
      %c2_81 = arith.constant 2 : index
      %c0_82 = arith.constant 0 : index
      %147 = vector.load %arg5[%146, %c2_81, %c0_82] : memref<30x30x128xf32, #tpu.memory_space<vmem>>, vector<1x28x128xf32>
      %148 = vector.shape_cast %147 : vector<1x28x128xf32> to vector<28x128xf32>
      %c1_i32_83 = arith.constant 1 : i32
      %149 = arith.addi %136, %c1_i32_83 : i32
      %150 = arith.index_cast %149 : i32 to index
      %c0_84 = arith.constant 0 : index
      %c0_85 = arith.constant 0 : index
      %151 = vector.load %arg5[%150, %c0_84, %c0_85] : memref<30x30x128xf32, #tpu.memory_space<vmem>>, vector<1x28x128xf32>
      %152 = vector.shape_cast %151 : vector<1x28x128xf32> to vector<28x128xf32>
      %c1_i32_86 = arith.constant 1 : i32
      %153 = arith.addi %136, %c1_i32_86 : i32
      %154 = arith.index_cast %153 : i32 to index
      %c1_87 = arith.constant 1 : index
      %c0_88 = arith.constant 0 : index
      %155 = vector.load %arg5[%154, %c1_87, %c0_88] : memref<30x30x128xf32, #tpu.memory_space<vmem>>, vector<1x28x128xf32>
      %156 = vector.shape_cast %155 : vector<1x28x128xf32> to vector<28x128xf32>
      %c1_i32_89 = arith.constant 1 : i32
      %157 = arith.addi %136, %c1_i32_89 : i32
      %158 = arith.index_cast %157 : i32 to index
      %c2_90 = arith.constant 2 : index
      %c0_91 = arith.constant 0 : index
      %159 = vector.load %arg5[%158, %c2_90, %c0_91] : memref<30x30x128xf32, #tpu.memory_space<vmem>>, vector<1x28x128xf32>
      %160 = vector.shape_cast %159 : vector<1x28x128xf32> to vector<28x128xf32>
      %c2_i32 = arith.constant 2 : i32
      %161 = arith.addi %136, %c2_i32 : i32
      %162 = arith.index_cast %161 : i32 to index
      %c0_92 = arith.constant 0 : index
      %c0_93 = arith.constant 0 : index
      %163 = vector.load %arg5[%162, %c0_92, %c0_93] : memref<30x30x128xf32, #tpu.memory_space<vmem>>, vector<1x28x128xf32>
      %164 = vector.shape_cast %163 : vector<1x28x128xf32> to vector<28x128xf32>
      %c2_i32_94 = arith.constant 2 : i32
      %165 = arith.addi %136, %c2_i32_94 : i32
      %166 = arith.index_cast %165 : i32 to index
      %c1_95 = arith.constant 1 : index
      %c0_96 = arith.constant 0 : index
      %167 = vector.load %arg5[%166, %c1_95, %c0_96] : memref<30x30x128xf32, #tpu.memory_space<vmem>>, vector<1x28x128xf32>
      %168 = vector.shape_cast %167 : vector<1x28x128xf32> to vector<28x128xf32>
      %c2_i32_97 = arith.constant 2 : i32
      %169 = arith.addi %136, %c2_i32_97 : i32
      %170 = arith.index_cast %169 : i32 to index
      %c2_98 = arith.constant 2 : index
      %c0_99 = arith.constant 0 : index
      %171 = vector.load %arg5[%170, %c2_98, %c0_99] : memref<30x30x128xf32, #tpu.memory_space<vmem>>, vector<1x28x128xf32>
      %172 = vector.shape_cast %171 : vector<1x28x128xf32> to vector<28x128xf32>
      %173 = vector.broadcast %0 : f32 to vector<28x128xf32>
      %174 = arith.mulf %173, %140 : vector<28x128xf32>
      %175 = arith.addf %91, %174 : vector<28x128xf32>
      %176 = vector.broadcast %1 : f32 to vector<28x128xf32>
      %177 = arith.mulf %176, %144 : vector<28x128xf32>
      %178 = arith.addf %175, %177 : vector<28x128xf32>
      %179 = vector.broadcast %2 : f32 to vector<28x128xf32>
      %180 = arith.mulf %179, %148 : vector<28x128xf32>
      %181 = arith.addf %178, %180 : vector<28x128xf32>
      %182 = vector.broadcast %3 : f32 to vector<28x128xf32>
      %183 = arith.mulf %182, %152 : vector<28x128xf32>
      %184 = arith.addf %181, %183 : vector<28x128xf32>
      %185 = vector.broadcast %4 : f32 to vector<28x128xf32>
      %186 = arith.mulf %185, %156 : vector<28x128xf32>
      %187 = arith.addf %184, %186 : vector<28x128xf32>
      %188 = vector.broadcast %5 : f32 to vector<28x128xf32>
      %189 = arith.mulf %188, %160 : vector<28x128xf32>
      %190 = arith.addf %187, %189 : vector<28x128xf32>
      %191 = vector.broadcast %6 : f32 to vector<28x128xf32>
      %192 = arith.mulf %191, %164 : vector<28x128xf32>
      %193 = arith.addf %190, %192 : vector<28x128xf32>
      %194 = vector.broadcast %7 : f32 to vector<28x128xf32>
      %195 = arith.mulf %194, %168 : vector<28x128xf32>
      %196 = arith.addf %193, %195 : vector<28x128xf32>
      %197 = vector.broadcast %8 : f32 to vector<28x128xf32>
      %198 = arith.mulf %197, %172 : vector<28x128xf32>
      %199 = arith.addf %196, %198 : vector<28x128xf32>
      %cst_100 = arith.constant 0.000000e+00 : f32
      %200 = vector.broadcast %cst_100 : f32 to vector<28x128xf32>
      %201 = arith.maximumf %199, %200 : vector<28x128xf32>
      %c1_i32_101 = arith.constant 1 : i32
      %202 = arith.addi %136, %c1_i32_101 : i32
      %c0_i32_102 = arith.constant 0 : i32
      %c0_i32_103 = arith.constant 0 : i32
      %c0_i32_104 = arith.constant 0 : i32
      %203 = tpu.memref_slice %arg9[%c0_i32_52, %c0_i32_102, %c0_i32_103, %c0_i32_104] : memref<2x30x30x128xf32, #tpu.memory_space<vmem>> -> memref<1x30x30x128xf32, #tpu.memory_space<vmem>>
      %204 = tpu.memref_squeeze %203 : memref<1x30x30x128xf32, #tpu.memory_space<vmem>> -> memref<30x30x128xf32, #tpu.memory_space<vmem>>
      %205 = arith.index_cast %202 : i32 to index
      %c1_105 = arith.constant 1 : index
      %c0_106 = arith.constant 0 : index
      %206 = vector.load %204[%205, %c1_105, %c0_106] : memref<30x30x128xf32, #tpu.memory_space<vmem>>, vector<1x28x128xf32>
      %207 = vector.shape_cast %206 : vector<1x28x128xf32> to vector<28x128xf32>
      %208 = vector.shape_cast %201 : vector<28x128xf32> to vector<1x28x128xf32>
      tpu.vector_store %204[%205, %c1_105, %c0_106], %208 {strides = array<i32>} : memref<30x30x128xf32, #tpu.memory_space<vmem>>, vector<1x28x128xf32>,
      %c1_i32_107 = arith.constant 1 : i32
      %209 = arith.addi %136, %c1_i32_107 : i32
      %c0_i32_108 = arith.constant 0 : i32
      %c0_i32_109 = arith.constant 0 : i32
      %c0_i32_110 = arith.constant 0 : i32
      %210 = tpu.memref_slice %arg9[%c0_i32_52, %c0_i32_108, %c0_i32_109, %c0_i32_110] : memref<2x30x30x128xf32, #tpu.memory_space<vmem>> -> memref<1x30x30x128xf32, #tpu.memory_space<vmem>>
      %211 = tpu.memref_squeeze %210 : memref<1x30x30x128xf32, #tpu.memory_space<vmem>> -> memref<30x30x128xf32, #tpu.memory_space<vmem>>
      %212 = arith.index_cast %209 : i32 to index
      %c0_111 = arith.constant 0 : index
      %c0_112 = arith.constant 0 : index
      %213 = vector.load %211[%212, %c0_111, %c0_112] : memref<30x30x128xf32, #tpu.memory_space<vmem>>, vector<1x1x128xf32>
      %214 = vector.shape_cast %213 : vector<1x1x128xf32> to vector<1x128xf32>
      %215 = vector.shape_cast %102 : vector<1x128xf32> to vector<1x1x128xf32>
      tpu.vector_store %211[%212, %c0_111, %c0_112], %215 {strides = array<i32>} : memref<30x30x128xf32, #tpu.memory_space<vmem>>, vector<1x1x128xf32>,
      %c1_i32_113 = arith.constant 1 : i32
      %216 = arith.addi %136, %c1_i32_113 : i32
      %c0_i32_114 = arith.constant 0 : i32
      %c0_i32_115 = arith.constant 0 : i32
      %c0_i32_116 = arith.constant 0 : i32
      %217 = tpu.memref_slice %arg9[%c0_i32_52, %c0_i32_114, %c0_i32_115, %c0_i32_116] : memref<2x30x30x128xf32, #tpu.memory_space<vmem>> -> memref<1x30x30x128xf32, #tpu.memory_space<vmem>>
      %218 = tpu.memref_squeeze %217 : memref<1x30x30x128xf32, #tpu.memory_space<vmem>> -> memref<30x30x128xf32, #tpu.memory_space<vmem>>
      %219 = arith.index_cast %216 : i32 to index
      %c29_117 = arith.constant 29 : index
      %c0_118 = arith.constant 0 : index
      %220 = vector.load %218[%219, %c29_117, %c0_118] : memref<30x30x128xf32, #tpu.memory_space<vmem>>, vector<1x1x128xf32>
      %221 = vector.shape_cast %220 : vector<1x1x128xf32> to vector<1x128xf32>
      %222 = vector.shape_cast %102 : vector<1x128xf32> to vector<1x1x128xf32>
      tpu.vector_store %218[%219, %c29_117, %c0_118], %222 {strides = array<i32>} : memref<30x30x128xf32, #tpu.memory_space<vmem>>, vector<1x1x128xf32>,
      %223 = vector.broadcast %9 : f32 to vector<28x128xf32>
      %224 = arith.mulf %223, %140 : vector<28x128xf32>
      %225 = arith.addf %93, %224 : vector<28x128xf32>
      %226 = vector.broadcast %10 : f32 to vector<28x128xf32>
      %227 = arith.mulf %226, %144 : vector<28x128xf32>
      %228 = arith.addf %225, %227 : vector<28x128xf32>
      %229 = vector.broadcast %11 : f32 to vector<28x128xf32>
      %230 = arith.mulf %229, %148 : vector<28x128xf32>
      %231 = arith.addf %228, %230 : vector<28x128xf32>
      %232 = vector.broadcast %12 : f32 to vector<28x128xf32>
      %233 = arith.mulf %232, %152 : vector<28x128xf32>
      %234 = arith.addf %231, %233 : vector<28x128xf32>
      %235 = vector.broadcast %13 : f32 to vector<28x128xf32>
      %236 = arith.mulf %235, %156 : vector<28x128xf32>
      %237 = arith.addf %234, %236 : vector<28x128xf32>
      %238 = vector.broadcast %14 : f32 to vector<28x128xf32>
      %239 = arith.mulf %238, %160 : vector<28x128xf32>
      %240 = arith.addf %237, %239 : vector<28x128xf32>
      %241 = vector.broadcast %15 : f32 to vector<28x128xf32>
      %242 = arith.mulf %241, %164 : vector<28x128xf32>
      %243 = arith.addf %240, %242 : vector<28x128xf32>
      %244 = vector.broadcast %16 : f32 to vector<28x128xf32>
      %245 = arith.mulf %244, %168 : vector<28x128xf32>
      %246 = arith.addf %243, %245 : vector<28x128xf32>
      %247 = vector.broadcast %17 : f32 to vector<28x128xf32>
      %248 = arith.mulf %247, %172 : vector<28x128xf32>
      %249 = arith.addf %246, %248 : vector<28x128xf32>
      %cst_119 = arith.constant 0.000000e+00 : f32
      %250 = vector.broadcast %cst_119 : f32 to vector<28x128xf32>
      %251 = arith.maximumf %249, %250 : vector<28x128xf32>
      %c1_i32_120 = arith.constant 1 : i32
      %252 = arith.addi %136, %c1_i32_120 : i32
      %c0_i32_121 = arith.constant 0 : i32
      %c0_i32_122 = arith.constant 0 : i32
      %c0_i32_123 = arith.constant 0 : i32
      %253 = tpu.memref_slice %arg9[%c1_i32_53, %c0_i32_121, %c0_i32_122, %c0_i32_123] : memref<2x30x30x128xf32, #tpu.memory_space<vmem>> -> memref<1x30x30x128xf32, #tpu.memory_space<vmem>>
      %254 = tpu.memref_squeeze %253 : memref<1x30x30x128xf32, #tpu.memory_space<vmem>> -> memref<30x30x128xf32, #tpu.memory_space<vmem>>
      %255 = arith.index_cast %252 : i32 to index
      %c1_124 = arith.constant 1 : index
      %c0_125 = arith.constant 0 : index
      %256 = vector.load %254[%255, %c1_124, %c0_125] : memref<30x30x128xf32, #tpu.memory_space<vmem>>, vector<1x28x128xf32>
      %257 = vector.shape_cast %256 : vector<1x28x128xf32> to vector<28x128xf32>
      %258 = vector.shape_cast %251 : vector<28x128xf32> to vector<1x28x128xf32>
      tpu.vector_store %254[%255, %c1_124, %c0_125], %258 {strides = array<i32>} : memref<30x30x128xf32, #tpu.memory_space<vmem>>, vector<1x28x128xf32>,
      %c1_i32_126 = arith.constant 1 : i32
      %259 = arith.addi %136, %c1_i32_126 : i32
      %c0_i32_127 = arith.constant 0 : i32
      %c0_i32_128 = arith.constant 0 : i32
      %c0_i32_129 = arith.constant 0 : i32
      %260 = tpu.memref_slice %arg9[%c1_i32_53, %c0_i32_127, %c0_i32_128, %c0_i32_129] : memref<2x30x30x128xf32, #tpu.memory_space<vmem>> -> memref<1x30x30x128xf32, #tpu.memory_space<vmem>>
      %261 = tpu.memref_squeeze %260 : memref<1x30x30x128xf32, #tpu.memory_space<vmem>> -> memref<30x30x128xf32, #tpu.memory_space<vmem>>
      %262 = arith.index_cast %259 : i32 to index
      %c0_130 = arith.constant 0 : index
      %c0_131 = arith.constant 0 : index
      %263 = vector.load %261[%262, %c0_130, %c0_131] : memref<30x30x128xf32, #tpu.memory_space<vmem>>, vector<1x1x128xf32>
      %264 = vector.shape_cast %263 : vector<1x1x128xf32> to vector<1x128xf32>
      %265 = vector.shape_cast %102 : vector<1x128xf32> to vector<1x1x128xf32>
      tpu.vector_store %261[%262, %c0_130, %c0_131], %265 {strides = array<i32>} : memref<30x30x128xf32, #tpu.memory_space<vmem>>, vector<1x1x128xf32>,
      %c1_i32_132 = arith.constant 1 : i32
      %266 = arith.addi %136, %c1_i32_132 : i32
      %c0_i32_133 = arith.constant 0 : i32
      %c0_i32_134 = arith.constant 0 : i32
      %c0_i32_135 = arith.constant 0 : i32
      %267 = tpu.memref_slice %arg9[%c1_i32_53, %c0_i32_133, %c0_i32_134, %c0_i32_135] : memref<2x30x30x128xf32, #tpu.memory_space<vmem>> -> memref<1x30x30x128xf32, #tpu.memory_space<vmem>>
      %268 = tpu.memref_squeeze %267 : memref<1x30x30x128xf32, #tpu.memory_space<vmem>> -> memref<30x30x128xf32, #tpu.memory_space<vmem>>
      %269 = arith.index_cast %266 : i32 to index
      %c29_136 = arith.constant 29 : index
      %c0_137 = arith.constant 0 : index
      %270 = vector.load %268[%269, %c29_136, %c0_137] : memref<30x30x128xf32, #tpu.memory_space<vmem>>, vector<1x1x128xf32>
      %271 = vector.shape_cast %270 : vector<1x1x128xf32> to vector<1x128xf32>
      %272 = vector.shape_cast %102 : vector<1x128xf32> to vector<1x1x128xf32>
      tpu.vector_store %268[%269, %c29_136, %c0_137], %272 {strides = array<i32>} : memref<30x30x128xf32, #tpu.memory_space<vmem>>, vector<1x1x128xf32>,
    }
    %c28_i32_56 = arith.constant 28 : i32
    %c0_i32_57 = arith.constant 0 : i32
    %c1_i32_58 = arith.constant 1 : i32
    %c0_i32_59 = arith.constant 0 : i32
    %c14_i32 = arith.constant 14 : i32
    %126 = arith.addi %c0_i32_59, %c14_i32 : i32
    %c1_i32_60 = arith.constant 1 : i32
    scf.for %arg11 = %c0_i32_59 to %126 step %c1_i32_60  : i32 {
      %c1_i32_72 = arith.constant 1 : i32
      %135 = arith.muli %arg11, %c1_i32_72 : i32
      %c0_i32_73 = arith.constant 0 : i32
      %136 = arith.addi %c0_i32_73, %135 : i32
      %c2_i32 = arith.constant 2 : i32
      %137 = arith.muli %c2_i32, %136 : i32
      %c0_i32_74 = arith.constant 0 : i32
      %138 = arith.addi %137, %c0_i32_74 : i32
      %c0_i32_75 = arith.constant 0 : i32
      %c0_i32_76 = arith.constant 0 : i32
      %c0_i32_77 = arith.constant 0 : i32
      %139 = tpu.memref_slice %arg9[%c0_i32_57, %c0_i32_75, %c0_i32_76, %c0_i32_77] : memref<2x30x30x128xf32, #tpu.memory_space<vmem>> -> memref<1x30x30x128xf32, #tpu.memory_space<vmem>>
      %140 = tpu.memref_squeeze %139 : memref<1x30x30x128xf32, #tpu.memory_space<vmem>> -> memref<30x30x128xf32, #tpu.memory_space<vmem>>
      %141 = arith.index_cast %138 : i32 to index
      %c0_78 = arith.constant 0 : index
      %c0_79 = arith.constant 0 : index
      %142 = vector.load %140[%141, %c0_78, %c0_79] : memref<30x30x128xf32, #tpu.memory_space<vmem>>, vector<1x28x128xf32>
      %143 = vector.shape_cast %142 : vector<1x28x128xf32> to vector<28x128xf32>
      %c2_i32_80 = arith.constant 2 : i32
      %144 = arith.muli %c2_i32_80, %136 : i32
      %c0_i32_81 = arith.constant 0 : i32
      %145 = arith.addi %144, %c0_i32_81 : i32
      %c0_i32_82 = arith.constant 0 : i32
      %c0_i32_83 = arith.constant 0 : i32
      %c0_i32_84 = arith.constant 0 : i32
      %146 = tpu.memref_slice %arg9[%c0_i32_57, %c0_i32_82, %c0_i32_83, %c0_i32_84] : memref<2x30x30x128xf32, #tpu.memory_space<vmem>> -> memref<1x30x30x128xf32, #tpu.memory_space<vmem>>
      %147 = tpu.memref_squeeze %146 : memref<1x30x30x128xf32, #tpu.memory_space<vmem>> -> memref<30x30x128xf32, #tpu.memory_space<vmem>>
      %148 = arith.index_cast %145 : i32 to index
      %c1_85 = arith.constant 1 : index
      %c0_86 = arith.constant 0 : index
      %149 = vector.load %147[%148, %c1_85, %c0_86] : memref<30x30x128xf32, #tpu.memory_space<vmem>>, vector<1x28x128xf32>
      %150 = vector.shape_cast %149 : vector<1x28x128xf32> to vector<28x128xf32>
      %c2_i32_87 = arith.constant 2 : i32
      %151 = arith.muli %c2_i32_87, %136 : i32
      %c0_i32_88 = arith.constant 0 : i32
      %152 = arith.addi %151, %c0_i32_88 : i32
      %c0_i32_89 = arith.constant 0 : i32
      %c0_i32_90 = arith.constant 0 : i32
      %c0_i32_91 = arith.constant 0 : i32
      %153 = tpu.memref_slice %arg9[%c0_i32_57, %c0_i32_89, %c0_i32_90, %c0_i32_91] : memref<2x30x30x128xf32, #tpu.memory_space<vmem>> -> memref<1x30x30x128xf32, #tpu.memory_space<vmem>>
      %154 = tpu.memref_squeeze %153 : memref<1x30x30x128xf32, #tpu.memory_space<vmem>> -> memref<30x30x128xf32, #tpu.memory_space<vmem>>
      %155 = arith.index_cast %152 : i32 to index
      %c2_92 = arith.constant 2 : index
      %c0_93 = arith.constant 0 : index
      %156 = vector.load %154[%155, %c2_92, %c0_93] : memref<30x30x128xf32, #tpu.memory_space<vmem>>, vector<1x28x128xf32>
      %157 = vector.shape_cast %156 : vector<1x28x128xf32> to vector<28x128xf32>
      %c2_i32_94 = arith.constant 2 : i32
      %158 = arith.muli %c2_i32_94, %136 : i32
      %c1_i32_95 = arith.constant 1 : i32
      %159 = arith.addi %158, %c1_i32_95 : i32
      %c0_i32_96 = arith.constant 0 : i32
      %c0_i32_97 = arith.constant 0 : i32
      %c0_i32_98 = arith.constant 0 : i32
      %160 = tpu.memref_slice %arg9[%c0_i32_57, %c0_i32_96, %c0_i32_97, %c0_i32_98] : memref<2x30x30x128xf32, #tpu.memory_space<vmem>> -> memref<1x30x30x128xf32, #tpu.memory_space<vmem>>
      %161 = tpu.memref_squeeze %160 : memref<1x30x30x128xf32, #tpu.memory_space<vmem>> -> memref<30x30x128xf32, #tpu.memory_space<vmem>>
      %162 = arith.index_cast %159 : i32 to index
      %c0_99 = arith.constant 0 : index
      %c0_100 = arith.constant 0 : index
      %163 = vector.load %161[%162, %c0_99, %c0_100] : memref<30x30x128xf32, #tpu.memory_space<vmem>>, vector<1x28x128xf32>
      %164 = vector.shape_cast %163 : vector<1x28x128xf32> to vector<28x128xf32>
      %c2_i32_101 = arith.constant 2 : i32
      %165 = arith.muli %c2_i32_101, %136 : i32
      %c1_i32_102 = arith.constant 1 : i32
      %166 = arith.addi %165, %c1_i32_102 : i32
      %c0_i32_103 = arith.constant 0 : i32
      %c0_i32_104 = arith.constant 0 : i32
      %c0_i32_105 = arith.constant 0 : i32
      %167 = tpu.memref_slice %arg9[%c0_i32_57, %c0_i32_103, %c0_i32_104, %c0_i32_105] : memref<2x30x30x128xf32, #tpu.memory_space<vmem>> -> memref<1x30x30x128xf32, #tpu.memory_space<vmem>>
      %168 = tpu.memref_squeeze %167 : memref<1x30x30x128xf32, #tpu.memory_space<vmem>> -> memref<30x30x128xf32, #tpu.memory_space<vmem>>
      %169 = arith.index_cast %166 : i32 to index
      %c1_106 = arith.constant 1 : index
      %c0_107 = arith.constant 0 : index
      %170 = vector.load %168[%169, %c1_106, %c0_107] : memref<30x30x128xf32, #tpu.memory_space<vmem>>, vector<1x28x128xf32>
      %171 = vector.shape_cast %170 : vector<1x28x128xf32> to vector<28x128xf32>
      %c2_i32_108 = arith.constant 2 : i32
      %172 = arith.muli %c2_i32_108, %136 : i32
      %c1_i32_109 = arith.constant 1 : i32
      %173 = arith.addi %172, %c1_i32_109 : i32
      %c0_i32_110 = arith.constant 0 : i32
      %c0_i32_111 = arith.constant 0 : i32
      %c0_i32_112 = arith.constant 0 : i32
      %174 = tpu.memref_slice %arg9[%c0_i32_57, %c0_i32_110, %c0_i32_111, %c0_i32_112] : memref<2x30x30x128xf32, #tpu.memory_space<vmem>> -> memref<1x30x30x128xf32, #tpu.memory_space<vmem>>
      %175 = tpu.memref_squeeze %174 : memref<1x30x30x128xf32, #tpu.memory_space<vmem>> -> memref<30x30x128xf32, #tpu.memory_space<vmem>>
      %176 = arith.index_cast %173 : i32 to index
      %c2_113 = arith.constant 2 : index
      %c0_114 = arith.constant 0 : index
      %177 = vector.load %175[%176, %c2_113, %c0_114] : memref<30x30x128xf32, #tpu.memory_space<vmem>>, vector<1x28x128xf32>
      %178 = vector.shape_cast %177 : vector<1x28x128xf32> to vector<28x128xf32>
      %c2_i32_115 = arith.constant 2 : i32
      %179 = arith.muli %c2_i32_115, %136 : i32
      %c2_i32_116 = arith.constant 2 : i32
      %180 = arith.addi %179, %c2_i32_116 : i32
      %c0_i32_117 = arith.constant 0 : i32
      %c0_i32_118 = arith.constant 0 : i32
      %c0_i32_119 = arith.constant 0 : i32
      %181 = tpu.memref_slice %arg9[%c0_i32_57, %c0_i32_117, %c0_i32_118, %c0_i32_119] : memref<2x30x30x128xf32, #tpu.memory_space<vmem>> -> memref<1x30x30x128xf32, #tpu.memory_space<vmem>>
      %182 = tpu.memref_squeeze %181 : memref<1x30x30x128xf32, #tpu.memory_space<vmem>> -> memref<30x30x128xf32, #tpu.memory_space<vmem>>
      %183 = arith.index_cast %180 : i32 to index
      %c0_120 = arith.constant 0 : index
      %c0_121 = arith.constant 0 : index
      %184 = vector.load %182[%183, %c0_120, %c0_121] : memref<30x30x128xf32, #tpu.memory_space<vmem>>, vector<1x28x128xf32>
      %185 = vector.shape_cast %184 : vector<1x28x128xf32> to vector<28x128xf32>
      %c2_i32_122 = arith.constant 2 : i32
      %186 = arith.muli %c2_i32_122, %136 : i32
      %c2_i32_123 = arith.constant 2 : i32
      %187 = arith.addi %186, %c2_i32_123 : i32
      %c0_i32_124 = arith.constant 0 : i32
      %c0_i32_125 = arith.constant 0 : i32
      %c0_i32_126 = arith.constant 0 : i32
      %188 = tpu.memref_slice %arg9[%c0_i32_57, %c0_i32_124, %c0_i32_125, %c0_i32_126] : memref<2x30x30x128xf32, #tpu.memory_space<vmem>> -> memref<1x30x30x128xf32, #tpu.memory_space<vmem>>
      %189 = tpu.memref_squeeze %188 : memref<1x30x30x128xf32, #tpu.memory_space<vmem>> -> memref<30x30x128xf32, #tpu.memory_space<vmem>>
      %190 = arith.index_cast %187 : i32 to index
      %c1_127 = arith.constant 1 : index
      %c0_128 = arith.constant 0 : index
      %191 = vector.load %189[%190, %c1_127, %c0_128] : memref<30x30x128xf32, #tpu.memory_space<vmem>>, vector<1x28x128xf32>
      %192 = vector.shape_cast %191 : vector<1x28x128xf32> to vector<28x128xf32>
      %c2_i32_129 = arith.constant 2 : i32
      %193 = arith.muli %c2_i32_129, %136 : i32
      %c2_i32_130 = arith.constant 2 : i32
      %194 = arith.addi %193, %c2_i32_130 : i32
      %c0_i32_131 = arith.constant 0 : i32
      %c0_i32_132 = arith.constant 0 : i32
      %c0_i32_133 = arith.constant 0 : i32
      %195 = tpu.memref_slice %arg9[%c0_i32_57, %c0_i32_131, %c0_i32_132, %c0_i32_133] : memref<2x30x30x128xf32, #tpu.memory_space<vmem>> -> memref<1x30x30x128xf32, #tpu.memory_space<vmem>>
      %196 = tpu.memref_squeeze %195 : memref<1x30x30x128xf32, #tpu.memory_space<vmem>> -> memref<30x30x128xf32, #tpu.memory_space<vmem>>
      %197 = arith.index_cast %194 : i32 to index
      %c2_134 = arith.constant 2 : index
      %c0_135 = arith.constant 0 : index
      %198 = vector.load %196[%197, %c2_134, %c0_135] : memref<30x30x128xf32, #tpu.memory_space<vmem>>, vector<1x28x128xf32>
      %199 = vector.shape_cast %198 : vector<1x28x128xf32> to vector<28x128xf32>
      %c2_i32_136 = arith.constant 2 : i32
      %200 = arith.muli %c2_i32_136, %136 : i32
      %c3_i32 = arith.constant 3 : i32
      %201 = arith.addi %200, %c3_i32 : i32
      %c0_i32_137 = arith.constant 0 : i32
      %c0_i32_138 = arith.constant 0 : i32
      %c0_i32_139 = arith.constant 0 : i32
      %202 = tpu.memref_slice %arg9[%c0_i32_57, %c0_i32_137, %c0_i32_138, %c0_i32_139] : memref<2x30x30x128xf32, #tpu.memory_space<vmem>> -> memref<1x30x30x128xf32, #tpu.memory_space<vmem>>
      %203 = tpu.memref_squeeze %202 : memref<1x30x30x128xf32, #tpu.memory_space<vmem>> -> memref<30x30x128xf32, #tpu.memory_space<vmem>>
      %204 = arith.index_cast %201 : i32 to index
      %c0_140 = arith.constant 0 : index
      %c0_141 = arith.constant 0 : index
      %205 = vector.load %203[%204, %c0_140, %c0_141] : memref<30x30x128xf32, #tpu.memory_space<vmem>>, vector<1x28x128xf32>
      %206 = vector.shape_cast %205 : vector<1x28x128xf32> to vector<28x128xf32>
      %c2_i32_142 = arith.constant 2 : i32
      %207 = arith.muli %c2_i32_142, %136 : i32
      %c3_i32_143 = arith.constant 3 : i32
      %208 = arith.addi %207, %c3_i32_143 : i32
      %c0_i32_144 = arith.constant 0 : i32
      %c0_i32_145 = arith.constant 0 : i32
      %c0_i32_146 = arith.constant 0 : i32
      %209 = tpu.memref_slice %arg9[%c0_i32_57, %c0_i32_144, %c0_i32_145, %c0_i32_146] : memref<2x30x30x128xf32, #tpu.memory_space<vmem>> -> memref<1x30x30x128xf32, #tpu.memory_space<vmem>>
      %210 = tpu.memref_squeeze %209 : memref<1x30x30x128xf32, #tpu.memory_space<vmem>> -> memref<30x30x128xf32, #tpu.memory_space<vmem>>
      %211 = arith.index_cast %208 : i32 to index
      %c1_147 = arith.constant 1 : index
      %c0_148 = arith.constant 0 : index
      %212 = vector.load %210[%211, %c1_147, %c0_148] : memref<30x30x128xf32, #tpu.memory_space<vmem>>, vector<1x28x128xf32>
      %213 = vector.shape_cast %212 : vector<1x28x128xf32> to vector<28x128xf32>
      %c2_i32_149 = arith.constant 2 : i32
      %214 = arith.muli %c2_i32_149, %136 : i32
      %c3_i32_150 = arith.constant 3 : i32
      %215 = arith.addi %214, %c3_i32_150 : i32
      %c0_i32_151 = arith.constant 0 : i32
      %c0_i32_152 = arith.constant 0 : i32
      %c0_i32_153 = arith.constant 0 : i32
      %216 = tpu.memref_slice %arg9[%c0_i32_57, %c0_i32_151, %c0_i32_152, %c0_i32_153] : memref<2x30x30x128xf32, #tpu.memory_space<vmem>> -> memref<1x30x30x128xf32, #tpu.memory_space<vmem>>
      %217 = tpu.memref_squeeze %216 : memref<1x30x30x128xf32, #tpu.memory_space<vmem>> -> memref<30x30x128xf32, #tpu.memory_space<vmem>>
      %218 = arith.index_cast %215 : i32 to index
      %c2_154 = arith.constant 2 : index
      %c0_155 = arith.constant 0 : index
      %219 = vector.load %217[%218, %c2_154, %c0_155] : memref<30x30x128xf32, #tpu.memory_space<vmem>>, vector<1x28x128xf32>
      %220 = vector.shape_cast %219 : vector<1x28x128xf32> to vector<28x128xf32>
      %c2_i32_156 = arith.constant 2 : i32
      %221 = arith.muli %c2_i32_156, %136 : i32
      %c0_i32_157 = arith.constant 0 : i32
      %222 = arith.addi %221, %c0_i32_157 : i32
      %c0_i32_158 = arith.constant 0 : i32
      %c0_i32_159 = arith.constant 0 : i32
      %c0_i32_160 = arith.constant 0 : i32
      %223 = tpu.memref_slice %arg9[%c1_i32_58, %c0_i32_158, %c0_i32_159, %c0_i32_160] : memref<2x30x30x128xf32, #tpu.memory_space<vmem>> -> memref<1x30x30x128xf32, #tpu.memory_space<vmem>>
      %224 = tpu.memref_squeeze %223 : memref<1x30x30x128xf32, #tpu.memory_space<vmem>> -> memref<30x30x128xf32, #tpu.memory_space<vmem>>
      %225 = arith.index_cast %222 : i32 to index
      %c0_161 = arith.constant 0 : index
      %c0_162 = arith.constant 0 : index
      %226 = vector.load %224[%225, %c0_161, %c0_162] : memref<30x30x128xf32, #tpu.memory_space<vmem>>, vector<1x28x128xf32>
      %227 = vector.shape_cast %226 : vector<1x28x128xf32> to vector<28x128xf32>
      %c2_i32_163 = arith.constant 2 : i32
      %228 = arith.muli %c2_i32_163, %136 : i32
      %c0_i32_164 = arith.constant 0 : i32
      %229 = arith.addi %228, %c0_i32_164 : i32
      %c0_i32_165 = arith.constant 0 : i32
      %c0_i32_166 = arith.constant 0 : i32
      %c0_i32_167 = arith.constant 0 : i32
      %230 = tpu.memref_slice %arg9[%c1_i32_58, %c0_i32_165, %c0_i32_166, %c0_i32_167] : memref<2x30x30x128xf32, #tpu.memory_space<vmem>> -> memref<1x30x30x128xf32, #tpu.memory_space<vmem>>
      %231 = tpu.memref_squeeze %230 : memref<1x30x30x128xf32, #tpu.memory_space<vmem>> -> memref<30x30x128xf32, #tpu.memory_space<vmem>>
      %232 = arith.index_cast %229 : i32 to index
      %c1_168 = arith.constant 1 : index
      %c0_169 = arith.constant 0 : index
      %233 = vector.load %231[%232, %c1_168, %c0_169] : memref<30x30x128xf32, #tpu.memory_space<vmem>>, vector<1x28x128xf32>
      %234 = vector.shape_cast %233 : vector<1x28x128xf32> to vector<28x128xf32>
      %c2_i32_170 = arith.constant 2 : i32
      %235 = arith.muli %c2_i32_170, %136 : i32
      %c0_i32_171 = arith.constant 0 : i32
      %236 = arith.addi %235, %c0_i32_171 : i32
      %c0_i32_172 = arith.constant 0 : i32
      %c0_i32_173 = arith.constant 0 : i32
      %c0_i32_174 = arith.constant 0 : i32
      %237 = tpu.memref_slice %arg9[%c1_i32_58, %c0_i32_172, %c0_i32_173, %c0_i32_174] : memref<2x30x30x128xf32, #tpu.memory_space<vmem>> -> memref<1x30x30x128xf32, #tpu.memory_space<vmem>>
      %238 = tpu.memref_squeeze %237 : memref<1x30x30x128xf32, #tpu.memory_space<vmem>> -> memref<30x30x128xf32, #tpu.memory_space<vmem>>
      %239 = arith.index_cast %236 : i32 to index
      %c2_175 = arith.constant 2 : index
      %c0_176 = arith.constant 0 : index
      %240 = vector.load %238[%239, %c2_175, %c0_176] : memref<30x30x128xf32, #tpu.memory_space<vmem>>, vector<1x28x128xf32>
      %241 = vector.shape_cast %240 : vector<1x28x128xf32> to vector<28x128xf32>
      %c2_i32_177 = arith.constant 2 : i32
      %242 = arith.muli %c2_i32_177, %136 : i32
      %c1_i32_178 = arith.constant 1 : i32
      %243 = arith.addi %242, %c1_i32_178 : i32
      %c0_i32_179 = arith.constant 0 : i32
      %c0_i32_180 = arith.constant 0 : i32
      %c0_i32_181 = arith.constant 0 : i32
      %244 = tpu.memref_slice %arg9[%c1_i32_58, %c0_i32_179, %c0_i32_180, %c0_i32_181] : memref<2x30x30x128xf32, #tpu.memory_space<vmem>> -> memref<1x30x30x128xf32, #tpu.memory_space<vmem>>
      %245 = tpu.memref_squeeze %244 : memref<1x30x30x128xf32, #tpu.memory_space<vmem>> -> memref<30x30x128xf32, #tpu.memory_space<vmem>>
      %246 = arith.index_cast %243 : i32 to index
      %c0_182 = arith.constant 0 : index
      %c0_183 = arith.constant 0 : index
      %247 = vector.load %245[%246, %c0_182, %c0_183] : memref<30x30x128xf32, #tpu.memory_space<vmem>>, vector<1x28x128xf32>
      %248 = vector.shape_cast %247 : vector<1x28x128xf32> to vector<28x128xf32>
      %c2_i32_184 = arith.constant 2 : i32
      %249 = arith.muli %c2_i32_184, %136 : i32
      %c1_i32_185 = arith.constant 1 : i32
      %250 = arith.addi %249, %c1_i32_185 : i32
      %c0_i32_186 = arith.constant 0 : i32
      %c0_i32_187 = arith.constant 0 : i32
      %c0_i32_188 = arith.constant 0 : i32
      %251 = tpu.memref_slice %arg9[%c1_i32_58, %c0_i32_186, %c0_i32_187, %c0_i32_188] : memref<2x30x30x128xf32, #tpu.memory_space<vmem>> -> memref<1x30x30x128xf32, #tpu.memory_space<vmem>>
      %252 = tpu.memref_squeeze %251 : memref<1x30x30x128xf32, #tpu.memory_space<vmem>> -> memref<30x30x128xf32, #tpu.memory_space<vmem>>
      %253 = arith.index_cast %250 : i32 to index
      %c1_189 = arith.constant 1 : index
      %c0_190 = arith.constant 0 : index
      %254 = vector.load %252[%253, %c1_189, %c0_190] : memref<30x30x128xf32, #tpu.memory_space<vmem>>, vector<1x28x128xf32>
      %255 = vector.shape_cast %254 : vector<1x28x128xf32> to vector<28x128xf32>
      %c2_i32_191 = arith.constant 2 : i32
      %256 = arith.muli %c2_i32_191, %136 : i32
      %c1_i32_192 = arith.constant 1 : i32
      %257 = arith.addi %256, %c1_i32_192 : i32
      %c0_i32_193 = arith.constant 0 : i32
      %c0_i32_194 = arith.constant 0 : i32
      %c0_i32_195 = arith.constant 0 : i32
      %258 = tpu.memref_slice %arg9[%c1_i32_58, %c0_i32_193, %c0_i32_194, %c0_i32_195] : memref<2x30x30x128xf32, #tpu.memory_space<vmem>> -> memref<1x30x30x128xf32, #tpu.memory_space<vmem>>
      %259 = tpu.memref_squeeze %258 : memref<1x30x30x128xf32, #tpu.memory_space<vmem>> -> memref<30x30x128xf32, #tpu.memory_space<vmem>>
      %260 = arith.index_cast %257 : i32 to index
      %c2_196 = arith.constant 2 : index
      %c0_197 = arith.constant 0 : index
      %261 = vector.load %259[%260, %c2_196, %c0_197] : memref<30x30x128xf32, #tpu.memory_space<vmem>>, vector<1x28x128xf32>
      %262 = vector.shape_cast %261 : vector<1x28x128xf32> to vector<28x128xf32>
      %c2_i32_198 = arith.constant 2 : i32
      %263 = arith.muli %c2_i32_198, %136 : i32
      %c2_i32_199 = arith.constant 2 : i32
      %264 = arith.addi %263, %c2_i32_199 : i32
      %c0_i32_200 = arith.constant 0 : i32
      %c0_i32_201 = arith.constant 0 : i32
      %c0_i32_202 = arith.constant 0 : i32
      %265 = tpu.memref_slice %arg9[%c1_i32_58, %c0_i32_200, %c0_i32_201, %c0_i32_202] : memref<2x30x30x128xf32, #tpu.memory_space<vmem>> -> memref<1x30x30x128xf32, #tpu.memory_space<vmem>>
      %266 = tpu.memref_squeeze %265 : memref<1x30x30x128xf32, #tpu.memory_space<vmem>> -> memref<30x30x128xf32, #tpu.memory_space<vmem>>
      %267 = arith.index_cast %264 : i32 to index
      %c0_203 = arith.constant 0 : index
      %c0_204 = arith.constant 0 : index
      %268 = vector.load %266[%267, %c0_203, %c0_204] : memref<30x30x128xf32, #tpu.memory_space<vmem>>, vector<1x28x128xf32>
      %269 = vector.shape_cast %268 : vector<1x28x128xf32> to vector<28x128xf32>
      %c2_i32_205 = arith.constant 2 : i32
      %270 = arith.muli %c2_i32_205, %136 : i32
      %c2_i32_206 = arith.constant 2 : i32
      %271 = arith.addi %270, %c2_i32_206 : i32
      %c0_i32_207 = arith.constant 0 : i32
      %c0_i32_208 = arith.constant 0 : i32
      %c0_i32_209 = arith.constant 0 : i32
      %272 = tpu.memref_slice %arg9[%c1_i32_58, %c0_i32_207, %c0_i32_208, %c0_i32_209] : memref<2x30x30x128xf32, #tpu.memory_space<vmem>> -> memref<1x30x30x128xf32, #tpu.memory_space<vmem>>
      %273 = tpu.memref_squeeze %272 : memref<1x30x30x128xf32, #tpu.memory_space<vmem>> -> memref<30x30x128xf32, #tpu.memory_space<vmem>>
      %274 = arith.index_cast %271 : i32 to index
      %c1_210 = arith.constant 1 : index
      %c0_211 = arith.constant 0 : index
      %275 = vector.load %273[%274, %c1_210, %c0_211] : memref<30x30x128xf32, #tpu.memory_space<vmem>>, vector<1x28x128xf32>
      %276 = vector.shape_cast %275 : vector<1x28x128xf32> to vector<28x128xf32>
      %c2_i32_212 = arith.constant 2 : i32
      %277 = arith.muli %c2_i32_212, %136 : i32
      %c2_i32_213 = arith.constant 2 : i32
      %278 = arith.addi %277, %c2_i32_213 : i32
      %c0_i32_214 = arith.constant 0 : i32
      %c0_i32_215 = arith.constant 0 : i32
      %c0_i32_216 = arith.constant 0 : i32
      %279 = tpu.memref_slice %arg9[%c1_i32_58, %c0_i32_214, %c0_i32_215, %c0_i32_216] : memref<2x30x30x128xf32, #tpu.memory_space<vmem>> -> memref<1x30x30x128xf32, #tpu.memory_space<vmem>>
      %280 = tpu.memref_squeeze %279 : memref<1x30x30x128xf32, #tpu.memory_space<vmem>> -> memref<30x30x128xf32, #tpu.memory_space<vmem>>
      %281 = arith.index_cast %278 : i32 to index
      %c2_217 = arith.constant 2 : index
      %c0_218 = arith.constant 0 : index
      %282 = vector.load %280[%281, %c2_217, %c0_218] : memref<30x30x128xf32, #tpu.memory_space<vmem>>, vector<1x28x128xf32>
      %283 = vector.shape_cast %282 : vector<1x28x128xf32> to vector<28x128xf32>
      %c2_i32_219 = arith.constant 2 : i32
      %284 = arith.muli %c2_i32_219, %136 : i32
      %c3_i32_220 = arith.constant 3 : i32
      %285 = arith.addi %284, %c3_i32_220 : i32
      %c0_i32_221 = arith.constant 0 : i32
      %c0_i32_222 = arith.constant 0 : i32
      %c0_i32_223 = arith.constant 0 : i32
      %286 = tpu.memref_slice %arg9[%c1_i32_58, %c0_i32_221, %c0_i32_222, %c0_i32_223] : memref<2x30x30x128xf32, #tpu.memory_space<vmem>> -> memref<1x30x30x128xf32, #tpu.memory_space<vmem>>
      %287 = tpu.memref_squeeze %286 : memref<1x30x30x128xf32, #tpu.memory_space<vmem>> -> memref<30x30x128xf32, #tpu.memory_space<vmem>>
      %288 = arith.index_cast %285 : i32 to index
      %c0_224 = arith.constant 0 : index
      %c0_225 = arith.constant 0 : index
      %289 = vector.load %287[%288, %c0_224, %c0_225] : memref<30x30x128xf32, #tpu.memory_space<vmem>>, vector<1x28x128xf32>
      %290 = vector.shape_cast %289 : vector<1x28x128xf32> to vector<28x128xf32>
      %c2_i32_226 = arith.constant 2 : i32
      %291 = arith.muli %c2_i32_226, %136 : i32
      %c3_i32_227 = arith.constant 3 : i32
      %292 = arith.addi %291, %c3_i32_227 : i32
      %c0_i32_228 = arith.constant 0 : i32
      %c0_i32_229 = arith.constant 0 : i32
      %c0_i32_230 = arith.constant 0 : i32
      %293 = tpu.memref_slice %arg9[%c1_i32_58, %c0_i32_228, %c0_i32_229, %c0_i32_230] : memref<2x30x30x128xf32, #tpu.memory_space<vmem>> -> memref<1x30x30x128xf32, #tpu.memory_space<vmem>>
      %294 = tpu.memref_squeeze %293 : memref<1x30x30x128xf32, #tpu.memory_space<vmem>> -> memref<30x30x128xf32, #tpu.memory_space<vmem>>
      %295 = arith.index_cast %292 : i32 to index
      %c1_231 = arith.constant 1 : index
      %c0_232 = arith.constant 0 : index
      %296 = vector.load %294[%295, %c1_231, %c0_232] : memref<30x30x128xf32, #tpu.memory_space<vmem>>, vector<1x28x128xf32>
      %297 = vector.shape_cast %296 : vector<1x28x128xf32> to vector<28x128xf32>
      %c2_i32_233 = arith.constant 2 : i32
      %298 = arith.muli %c2_i32_233, %136 : i32
      %c3_i32_234 = arith.constant 3 : i32
      %299 = arith.addi %298, %c3_i32_234 : i32
      %c0_i32_235 = arith.constant 0 : i32
      %c0_i32_236 = arith.constant 0 : i32
      %c0_i32_237 = arith.constant 0 : i32
      %300 = tpu.memref_slice %arg9[%c1_i32_58, %c0_i32_235, %c0_i32_236, %c0_i32_237] : memref<2x30x30x128xf32, #tpu.memory_space<vmem>> -> memref<1x30x30x128xf32, #tpu.memory_space<vmem>>
      %301 = tpu.memref_squeeze %300 : memref<1x30x30x128xf32, #tpu.memory_space<vmem>> -> memref<30x30x128xf32, #tpu.memory_space<vmem>>
      %302 = arith.index_cast %299 : i32 to index
      %c2_238 = arith.constant 2 : index
      %c0_239 = arith.constant 0 : index
      %303 = vector.load %301[%302, %c2_238, %c0_239] : memref<30x30x128xf32, #tpu.memory_space<vmem>>, vector<1x28x128xf32>
      %304 = vector.shape_cast %303 : vector<1x28x128xf32> to vector<28x128xf32>
      %305 = vector.broadcast %18 : f32 to vector<28x128xf32>
      %306 = arith.mulf %305, %143 : vector<28x128xf32>
      %307 = arith.addf %95, %306 : vector<28x128xf32>
      %308 = vector.broadcast %19 : f32 to vector<28x128xf32>
      %309 = arith.mulf %308, %150 : vector<28x128xf32>
      %310 = arith.addf %307, %309 : vector<28x128xf32>
      %311 = vector.broadcast %20 : f32 to vector<28x128xf32>
      %312 = arith.mulf %311, %157 : vector<28x128xf32>
      %313 = arith.addf %310, %312 : vector<28x128xf32>
      %314 = vector.broadcast %21 : f32 to vector<28x128xf32>
      %315 = arith.mulf %314, %164 : vector<28x128xf32>
      %316 = arith.addf %313, %315 : vector<28x128xf32>
      %317 = vector.broadcast %22 : f32 to vector<28x128xf32>
      %318 = arith.mulf %317, %171 : vector<28x128xf32>
      %319 = arith.addf %316, %318 : vector<28x128xf32>
      %320 = vector.broadcast %23 : f32 to vector<28x128xf32>
      %321 = arith.mulf %320, %178 : vector<28x128xf32>
      %322 = arith.addf %319, %321 : vector<28x128xf32>
      %323 = vector.broadcast %24 : f32 to vector<28x128xf32>
      %324 = arith.mulf %323, %185 : vector<28x128xf32>
      %325 = arith.addf %322, %324 : vector<28x128xf32>
      %326 = vector.broadcast %25 : f32 to vector<28x128xf32>
      %327 = arith.mulf %326, %192 : vector<28x128xf32>
      %328 = arith.addf %325, %327 : vector<28x128xf32>
      %329 = vector.broadcast %26 : f32 to vector<28x128xf32>
      %330 = arith.mulf %329, %199 : vector<28x128xf32>
      %331 = arith.addf %328, %330 : vector<28x128xf32>
      %332 = vector.broadcast %27 : f32 to vector<28x128xf32>
      %333 = arith.mulf %332, %227 : vector<28x128xf32>
      %334 = arith.addf %331, %333 : vector<28x128xf32>
      %335 = vector.broadcast %28 : f32 to vector<28x128xf32>
      %336 = arith.mulf %335, %234 : vector<28x128xf32>
      %337 = arith.addf %334, %336 : vector<28x128xf32>
      %338 = vector.broadcast %29 : f32 to vector<28x128xf32>
      %339 = arith.mulf %338, %241 : vector<28x128xf32>
      %340 = arith.addf %337, %339 : vector<28x128xf32>
      %341 = vector.broadcast %30 : f32 to vector<28x128xf32>
      %342 = arith.mulf %341, %248 : vector<28x128xf32>
      %343 = arith.addf %340, %342 : vector<28x128xf32>
      %344 = vector.broadcast %31 : f32 to vector<28x128xf32>
      %345 = arith.mulf %344, %255 : vector<28x128xf32>
      %346 = arith.addf %343, %345 : vector<28x128xf32>
      %347 = vector.broadcast %32 : f32 to vector<28x128xf32>
      %348 = arith.mulf %347, %262 : vector<28x128xf32>
      %349 = arith.addf %346, %348 : vector<28x128xf32>
      %350 = vector.broadcast %33 : f32 to vector<28x128xf32>
      %351 = arith.mulf %350, %269 : vector<28x128xf32>
      %352 = arith.addf %349, %351 : vector<28x128xf32>
      %353 = vector.broadcast %34 : f32 to vector<28x128xf32>
      %354 = arith.mulf %353, %276 : vector<28x128xf32>
      %355 = arith.addf %352, %354 : vector<28x128xf32>
      %356 = vector.broadcast %35 : f32 to vector<28x128xf32>
      %357 = arith.mulf %356, %283 : vector<28x128xf32>
      %358 = arith.addf %355, %357 : vector<28x128xf32>
      %cst_240 = arith.constant 0.000000e+00 : f32
      %359 = vector.broadcast %cst_240 : f32 to vector<28x128xf32>
      %360 = arith.maximumf %358, %359 : vector<28x128xf32>
      %361 = vector.broadcast %18 : f32 to vector<28x128xf32>
      %362 = arith.mulf %361, %164 : vector<28x128xf32>
      %363 = arith.addf %95, %362 : vector<28x128xf32>
      %364 = vector.broadcast %19 : f32 to vector<28x128xf32>
      %365 = arith.mulf %364, %171 : vector<28x128xf32>
      %366 = arith.addf %363, %365 : vector<28x128xf32>
      %367 = vector.broadcast %20 : f32 to vector<28x128xf32>
      %368 = arith.mulf %367, %178 : vector<28x128xf32>
      %369 = arith.addf %366, %368 : vector<28x128xf32>
      %370 = vector.broadcast %21 : f32 to vector<28x128xf32>
      %371 = arith.mulf %370, %185 : vector<28x128xf32>
      %372 = arith.addf %369, %371 : vector<28x128xf32>
      %373 = vector.broadcast %22 : f32 to vector<28x128xf32>
      %374 = arith.mulf %373, %192 : vector<28x128xf32>
      %375 = arith.addf %372, %374 : vector<28x128xf32>
      %376 = vector.broadcast %23 : f32 to vector<28x128xf32>
      %377 = arith.mulf %376, %199 : vector<28x128xf32>
      %378 = arith.addf %375, %377 : vector<28x128xf32>
      %379 = vector.broadcast %24 : f32 to vector<28x128xf32>
      %380 = arith.mulf %379, %206 : vector<28x128xf32>
      %381 = arith.addf %378, %380 : vector<28x128xf32>
      %382 = vector.broadcast %25 : f32 to vector<28x128xf32>
      %383 = arith.mulf %382, %213 : vector<28x128xf32>
      %384 = arith.addf %381, %383 : vector<28x128xf32>
      %385 = vector.broadcast %26 : f32 to vector<28x128xf32>
      %386 = arith.mulf %385, %220 : vector<28x128xf32>
      %387 = arith.addf %384, %386 : vector<28x128xf32>
      %388 = vector.broadcast %27 : f32 to vector<28x128xf32>
      %389 = arith.mulf %388, %248 : vector<28x128xf32>
      %390 = arith.addf %387, %389 : vector<28x128xf32>
      %391 = vector.broadcast %28 : f32 to vector<28x128xf32>
      %392 = arith.mulf %391, %255 : vector<28x128xf32>
      %393 = arith.addf %390, %392 : vector<28x128xf32>
      %394 = vector.broadcast %29 : f32 to vector<28x128xf32>
      %395 = arith.mulf %394, %262 : vector<28x128xf32>
      %396 = arith.addf %393, %395 : vector<28x128xf32>
      %397 = vector.broadcast %30 : f32 to vector<28x128xf32>
      %398 = arith.mulf %397, %269 : vector<28x128xf32>
      %399 = arith.addf %396, %398 : vector<28x128xf32>
      %400 = vector.broadcast %31 : f32 to vector<28x128xf32>
      %401 = arith.mulf %400, %276 : vector<28x128xf32>
      %402 = arith.addf %399, %401 : vector<28x128xf32>
      %403 = vector.broadcast %32 : f32 to vector<28x128xf32>
      %404 = arith.mulf %403, %283 : vector<28x128xf32>
      %405 = arith.addf %402, %404 : vector<28x128xf32>
      %406 = vector.broadcast %33 : f32 to vector<28x128xf32>
      %407 = arith.mulf %406, %290 : vector<28x128xf32>
      %408 = arith.addf %405, %407 : vector<28x128xf32>
      %409 = vector.broadcast %34 : f32 to vector<28x128xf32>
      %410 = arith.mulf %409, %297 : vector<28x128xf32>
      %411 = arith.addf %408, %410 : vector<28x128xf32>
      %412 = vector.broadcast %35 : f32 to vector<28x128xf32>
      %413 = arith.mulf %412, %304 : vector<28x128xf32>
      %414 = arith.addf %411, %413 : vector<28x128xf32>
      %cst_241 = arith.constant 0.000000e+00 : f32
      %415 = vector.broadcast %cst_241 : f32 to vector<28x128xf32>
      %416 = arith.maximumf %414, %415 : vector<28x128xf32>
      %417 = arith.maximumf %360, %416 : vector<28x128xf32>
      %c0_i32_242 = arith.constant 0 : i32
      %418 = arith.addi %c0_i32_242, %136 : i32
      %419 = arith.index_cast %418 : i32 to index
      %c0_243 = arith.constant 0 : index
      %c0_244 = arith.constant 0 : index
      %420 = vector.load %arg10[%419, %c0_243, %c0_244] : memref<56x32x128xf32, #tpu.memory_space<vmem>>, vector<1x28x128xf32>
      %421 = vector.shape_cast %420 : vector<1x28x128xf32> to vector<28x128xf32>
      %422 = vector.shape_cast %417 : vector<28x128xf32> to vector<1x28x128xf32>
      tpu.vector_store %arg10[%419, %c0_243, %c0_244], %422 {strides = array<i32>} : memref<56x32x128xf32, #tpu.memory_space<vmem>>, vector<1x28x128xf32>,
      %423 = arith.index_cast %418 : i32 to index
      %c28_245 = arith.constant 28 : index
      %c0_246 = arith.constant 0 : index
      %424 = vector.load %arg10[%423, %c28_245, %c0_246] : memref<56x32x128xf32, #tpu.memory_space<vmem>>, vector<1x4x128xf32>
      %425 = vector.shape_cast %424 : vector<1x4x128xf32> to vector<4x128xf32>
      %426 = vector.shape_cast %103 : vector<4x128xf32> to vector<1x4x128xf32>
      tpu.vector_store %arg10[%423, %c28_245, %c0_246], %426 {strides = array<i32>} : memref<56x32x128xf32, #tpu.memory_space<vmem>>, vector<1x4x128xf32>,
      %427 = arith.index_cast %418 : i32 to index
      %c0_247 = arith.constant 0 : index
      %c0_248 = arith.constant 0 : index
      %428 = vector.load %arg10[%427, %c0_247, %c0_248] : memref<56x32x128xf32, #tpu.memory_space<vmem>>, vector<1x27x128xf32>
      %429 = vector.shape_cast %428 : vector<1x27x128xf32> to vector<27x128xf32>
      %430 = arith.index_cast %418 : i32 to index
      %c1_249 = arith.constant 1 : index
      %c0_250 = arith.constant 0 : index
      %431 = vector.load %arg10[%430, %c1_249, %c0_250] : memref<56x32x128xf32, #tpu.memory_space<vmem>>, vector<1x27x128xf32>
      %432 = vector.shape_cast %431 : vector<1x27x128xf32> to vector<27x128xf32>
      %433 = arith.maximumf %429, %432 : vector<27x128xf32>
      %434 = arith.index_cast %418 : i32 to index
      %c0_251 = arith.constant 0 : index
      %c0_252 = arith.constant 0 : index
      %435 = vector.load %arg10[%434, %c0_251, %c0_252] : memref<56x32x128xf32, #tpu.memory_space<vmem>>, vector<1x27x128xf32>
      %436 = vector.shape_cast %435 : vector<1x27x128xf32> to vector<27x128xf32>
      %437 = vector.shape_cast %433 : vector<27x128xf32> to vector<1x27x128xf32>
      tpu.vector_store %arg10[%434, %c0_251, %c0_252], %437 {strides = array<i32>} : memref<56x32x128xf32, #tpu.memory_space<vmem>>, vector<1x27x128xf32>,
      %438 = vector.broadcast %36 : f32 to vector<28x128xf32>
      %439 = arith.mulf %438, %143 : vector<28x128xf32>
      %440 = arith.addf %97, %439 : vector<28x128xf32>
      %441 = vector.broadcast %37 : f32 to vector<28x128xf32>
      %442 = arith.mulf %441, %150 : vector<28x128xf32>
      %443 = arith.addf %440, %442 : vector<28x128xf32>
      %444 = vector.broadcast %38 : f32 to vector<28x128xf32>
      %445 = arith.mulf %444, %157 : vector<28x128xf32>
      %446 = arith.addf %443, %445 : vector<28x128xf32>
      %447 = vector.broadcast %39 : f32 to vector<28x128xf32>
      %448 = arith.mulf %447, %164 : vector<28x128xf32>
      %449 = arith.addf %446, %448 : vector<28x128xf32>
      %450 = vector.broadcast %40 : f32 to vector<28x128xf32>
      %451 = arith.mulf %450, %171 : vector<28x128xf32>
      %452 = arith.addf %449, %451 : vector<28x128xf32>
      %453 = vector.broadcast %41 : f32 to vector<28x128xf32>
      %454 = arith.mulf %453, %178 : vector<28x128xf32>
      %455 = arith.addf %452, %454 : vector<28x128xf32>
      %456 = vector.broadcast %42 : f32 to vector<28x128xf32>
      %457 = arith.mulf %456, %185 : vector<28x128xf32>
      %458 = arith.addf %455, %457 : vector<28x128xf32>
      %459 = vector.broadcast %43 : f32 to vector<28x128xf32>
      %460 = arith.mulf %459, %192 : vector<28x128xf32>
      %461 = arith.addf %458, %460 : vector<28x128xf32>
      %462 = vector.broadcast %44 : f32 to vector<28x128xf32>
      %463 = arith.mulf %462, %199 : vector<28x128xf32>
      %464 = arith.addf %461, %463 : vector<28x128xf32>
      %465 = vector.broadcast %45 : f32 to vector<28x128xf32>
      %466 = arith.mulf %465, %227 : vector<28x128xf32>
      %467 = arith.addf %464, %466 : vector<28x128xf32>
      %468 = vector.broadcast %46 : f32 to vector<28x128xf32>
      %469 = arith.mulf %468, %234 : vector<28x128xf32>
      %470 = arith.addf %467, %469 : vector<28x128xf32>
      %471 = vector.broadcast %47 : f32 to vector<28x128xf32>
      %472 = arith.mulf %471, %241 : vector<28x128xf32>
      %473 = arith.addf %470, %472 : vector<28x128xf32>
      %474 = vector.broadcast %48 : f32 to vector<28x128xf32>
      %475 = arith.mulf %474, %248 : vector<28x128xf32>
      %476 = arith.addf %473, %475 : vector<28x128xf32>
      %477 = vector.broadcast %49 : f32 to vector<28x128xf32>
      %478 = arith.mulf %477, %255 : vector<28x128xf32>
      %479 = arith.addf %476, %478 : vector<28x128xf32>
      %480 = vector.broadcast %50 : f32 to vector<28x128xf32>
      %481 = arith.mulf %480, %262 : vector<28x128xf32>
      %482 = arith.addf %479, %481 : vector<28x128xf32>
      %483 = vector.broadcast %51 : f32 to vector<28x128xf32>
      %484 = arith.mulf %483, %269 : vector<28x128xf32>
      %485 = arith.addf %482, %484 : vector<28x128xf32>
      %486 = vector.broadcast %52 : f32 to vector<28x128xf32>
      %487 = arith.mulf %486, %276 : vector<28x128xf32>
      %488 = arith.addf %485, %487 : vector<28x128xf32>
      %489 = vector.broadcast %53 : f32 to vector<28x128xf32>
      %490 = arith.mulf %489, %283 : vector<28x128xf32>
      %491 = arith.addf %488, %490 : vector<28x128xf32>
      %cst_253 = arith.constant 0.000000e+00 : f32
      %492 = vector.broadcast %cst_253 : f32 to vector<28x128xf32>
      %493 = arith.maximumf %491, %492 : vector<28x128xf32>
      %494 = vector.broadcast %36 : f32 to vector<28x128xf32>
      %495 = arith.mulf %494, %164 : vector<28x128xf32>
      %496 = arith.addf %97, %495 : vector<28x128xf32>
      %497 = vector.broadcast %37 : f32 to vector<28x128xf32>
      %498 = arith.mulf %497, %171 : vector<28x128xf32>
      %499 = arith.addf %496, %498 : vector<28x128xf32>
      %500 = vector.broadcast %38 : f32 to vector<28x128xf32>
      %501 = arith.mulf %500, %178 : vector<28x128xf32>
      %502 = arith.addf %499, %501 : vector<28x128xf32>
      %503 = vector.broadcast %39 : f32 to vector<28x128xf32>
      %504 = arith.mulf %503, %185 : vector<28x128xf32>
      %505 = arith.addf %502, %504 : vector<28x128xf32>
      %506 = vector.broadcast %40 : f32 to vector<28x128xf32>
      %507 = arith.mulf %506, %192 : vector<28x128xf32>
      %508 = arith.addf %505, %507 : vector<28x128xf32>
      %509 = vector.broadcast %41 : f32 to vector<28x128xf32>
      %510 = arith.mulf %509, %199 : vector<28x128xf32>
      %511 = arith.addf %508, %510 : vector<28x128xf32>
      %512 = vector.broadcast %42 : f32 to vector<28x128xf32>
      %513 = arith.mulf %512, %206 : vector<28x128xf32>
      %514 = arith.addf %511, %513 : vector<28x128xf32>
      %515 = vector.broadcast %43 : f32 to vector<28x128xf32>
      %516 = arith.mulf %515, %213 : vector<28x128xf32>
      %517 = arith.addf %514, %516 : vector<28x128xf32>
      %518 = vector.broadcast %44 : f32 to vector<28x128xf32>
      %519 = arith.mulf %518, %220 : vector<28x128xf32>
      %520 = arith.addf %517, %519 : vector<28x128xf32>
      %521 = vector.broadcast %45 : f32 to vector<28x128xf32>
      %522 = arith.mulf %521, %248 : vector<28x128xf32>
      %523 = arith.addf %520, %522 : vector<28x128xf32>
      %524 = vector.broadcast %46 : f32 to vector<28x128xf32>
      %525 = arith.mulf %524, %255 : vector<28x128xf32>
      %526 = arith.addf %523, %525 : vector<28x128xf32>
      %527 = vector.broadcast %47 : f32 to vector<28x128xf32>
      %528 = arith.mulf %527, %262 : vector<28x128xf32>
      %529 = arith.addf %526, %528 : vector<28x128xf32>
      %530 = vector.broadcast %48 : f32 to vector<28x128xf32>
      %531 = arith.mulf %530, %269 : vector<28x128xf32>
      %532 = arith.addf %529, %531 : vector<28x128xf32>
      %533 = vector.broadcast %49 : f32 to vector<28x128xf32>
      %534 = arith.mulf %533, %276 : vector<28x128xf32>
      %535 = arith.addf %532, %534 : vector<28x128xf32>
      %536 = vector.broadcast %50 : f32 to vector<28x128xf32>
      %537 = arith.mulf %536, %283 : vector<28x128xf32>
      %538 = arith.addf %535, %537 : vector<28x128xf32>
      %539 = vector.broadcast %51 : f32 to vector<28x128xf32>
      %540 = arith.mulf %539, %290 : vector<28x128xf32>
      %541 = arith.addf %538, %540 : vector<28x128xf32>
      %542 = vector.broadcast %52 : f32 to vector<28x128xf32>
      %543 = arith.mulf %542, %297 : vector<28x128xf32>
      %544 = arith.addf %541, %543 : vector<28x128xf32>
      %545 = vector.broadcast %53 : f32 to vector<28x128xf32>
      %546 = arith.mulf %545, %304 : vector<28x128xf32>
      %547 = arith.addf %544, %546 : vector<28x128xf32>
      %cst_254 = arith.constant 0.000000e+00 : f32
      %548 = vector.broadcast %cst_254 : f32 to vector<28x128xf32>
      %549 = arith.maximumf %547, %548 : vector<28x128xf32>
      %550 = arith.maximumf %493, %549 : vector<28x128xf32>
      %c14_i32_255 = arith.constant 14 : i32
      %551 = arith.addi %c14_i32_255, %136 : i32
      %552 = arith.index_cast %551 : i32 to index
      %c0_256 = arith.constant 0 : index
      %c0_257 = arith.constant 0 : index
      %553 = vector.load %arg10[%552, %c0_256, %c0_257] : memref<56x32x128xf32, #tpu.memory_space<vmem>>, vector<1x28x128xf32>
      %554 = vector.shape_cast %553 : vector<1x28x128xf32> to vector<28x128xf32>
      %555 = vector.shape_cast %550 : vector<28x128xf32> to vector<1x28x128xf32>
      tpu.vector_store %arg10[%552, %c0_256, %c0_257], %555 {strides = array<i32>} : memref<56x32x128xf32, #tpu.memory_space<vmem>>, vector<1x28x128xf32>,
      %556 = arith.index_cast %551 : i32 to index
      %c28_258 = arith.constant 28 : index
      %c0_259 = arith.constant 0 : index
      %557 = vector.load %arg10[%556, %c28_258, %c0_259] : memref<56x32x128xf32, #tpu.memory_space<vmem>>, vector<1x4x128xf32>
      %558 = vector.shape_cast %557 : vector<1x4x128xf32> to vector<4x128xf32>
      %559 = vector.shape_cast %103 : vector<4x128xf32> to vector<1x4x128xf32>
      tpu.vector_store %arg10[%556, %c28_258, %c0_259], %559 {strides = array<i32>} : memref<56x32x128xf32, #tpu.memory_space<vmem>>, vector<1x4x128xf32>,
      %560 = arith.index_cast %551 : i32 to index
      %c0_260 = arith.constant 0 : index
      %c0_261 = arith.constant 0 : index
      %561 = vector.load %arg10[%560, %c0_260, %c0_261] : memref<56x32x128xf32, #tpu.memory_space<vmem>>, vector<1x27x128xf32>
      %562 = vector.shape_cast %561 : vector<1x27x128xf32> to vector<27x128xf32>
      %563 = arith.index_cast %551 : i32 to index
      %c1_262 = arith.constant 1 : index
      %c0_263 = arith.constant 0 : index
      %564 = vector.load %arg10[%563, %c1_262, %c0_263] : memref<56x32x128xf32, #tpu.memory_space<vmem>>, vector<1x27x128xf32>
      %565 = vector.shape_cast %564 : vector<1x27x128xf32> to vector<27x128xf32>
      %566 = arith.maximumf %562, %565 : vector<27x128xf32>
      %567 = arith.index_cast %551 : i32 to index
      %c0_264 = arith.constant 0 : index
      %c0_265 = arith.constant 0 : index
      %568 = vector.load %arg10[%567, %c0_264, %c0_265] : memref<56x32x128xf32, #tpu.memory_space<vmem>>, vector<1x27x128xf32>
      %569 = vector.shape_cast %568 : vector<1x27x128xf32> to vector<27x128xf32>
      %570 = vector.shape_cast %566 : vector<27x128xf32> to vector<1x27x128xf32>
      tpu.vector_store %arg10[%567, %c0_264, %c0_265], %570 {strides = array<i32>} : memref<56x32x128xf32, #tpu.memory_space<vmem>>, vector<1x27x128xf32>,
      %571 = vector.broadcast %54 : f32 to vector<28x128xf32>
      %572 = arith.mulf %571, %143 : vector<28x128xf32>
      %573 = arith.addf %99, %572 : vector<28x128xf32>
      %574 = vector.broadcast %55 : f32 to vector<28x128xf32>
      %575 = arith.mulf %574, %150 : vector<28x128xf32>
      %576 = arith.addf %573, %575 : vector<28x128xf32>
      %577 = vector.broadcast %56 : f32 to vector<28x128xf32>
      %578 = arith.mulf %577, %157 : vector<28x128xf32>
      %579 = arith.addf %576, %578 : vector<28x128xf32>
      %580 = vector.broadcast %57 : f32 to vector<28x128xf32>
      %581 = arith.mulf %580, %164 : vector<28x128xf32>
      %582 = arith.addf %579, %581 : vector<28x128xf32>
      %583 = vector.broadcast %58 : f32 to vector<28x128xf32>
      %584 = arith.mulf %583, %171 : vector<28x128xf32>
      %585 = arith.addf %582, %584 : vector<28x128xf32>
      %586 = vector.broadcast %59 : f32 to vector<28x128xf32>
      %587 = arith.mulf %586, %178 : vector<28x128xf32>
      %588 = arith.addf %585, %587 : vector<28x128xf32>
      %589 = vector.broadcast %60 : f32 to vector<28x128xf32>
      %590 = arith.mulf %589, %185 : vector<28x128xf32>
      %591 = arith.addf %588, %590 : vector<28x128xf32>
      %592 = vector.broadcast %61 : f32 to vector<28x128xf32>
      %593 = arith.mulf %592, %192 : vector<28x128xf32>
      %594 = arith.addf %591, %593 : vector<28x128xf32>
      %595 = vector.broadcast %62 : f32 to vector<28x128xf32>
      %596 = arith.mulf %595, %199 : vector<28x128xf32>
      %597 = arith.addf %594, %596 : vector<28x128xf32>
      %598 = vector.broadcast %63 : f32 to vector<28x128xf32>
      %599 = arith.mulf %598, %227 : vector<28x128xf32>
      %600 = arith.addf %597, %599 : vector<28x128xf32>
      %601 = vector.broadcast %64 : f32 to vector<28x128xf32>
      %602 = arith.mulf %601, %234 : vector<28x128xf32>
      %603 = arith.addf %600, %602 : vector<28x128xf32>
      %604 = vector.broadcast %65 : f32 to vector<28x128xf32>
      %605 = arith.mulf %604, %241 : vector<28x128xf32>
      %606 = arith.addf %603, %605 : vector<28x128xf32>
      %607 = vector.broadcast %66 : f32 to vector<28x128xf32>
      %608 = arith.mulf %607, %248 : vector<28x128xf32>
      %609 = arith.addf %606, %608 : vector<28x128xf32>
      %610 = vector.broadcast %67 : f32 to vector<28x128xf32>
      %611 = arith.mulf %610, %255 : vector<28x128xf32>
      %612 = arith.addf %609, %611 : vector<28x128xf32>
      %613 = vector.broadcast %68 : f32 to vector<28x128xf32>
      %614 = arith.mulf %613, %262 : vector<28x128xf32>
      %615 = arith.addf %612, %614 : vector<28x128xf32>
      %616 = vector.broadcast %69 : f32 to vector<28x128xf32>
      %617 = arith.mulf %616, %269 : vector<28x128xf32>
      %618 = arith.addf %615, %617 : vector<28x128xf32>
      %619 = vector.broadcast %70 : f32 to vector<28x128xf32>
      %620 = arith.mulf %619, %276 : vector<28x128xf32>
      %621 = arith.addf %618, %620 : vector<28x128xf32>
      %622 = vector.broadcast %71 : f32 to vector<28x128xf32>
      %623 = arith.mulf %622, %283 : vector<28x128xf32>
      %624 = arith.addf %621, %623 : vector<28x128xf32>
      %cst_266 = arith.constant 0.000000e+00 : f32
      %625 = vector.broadcast %cst_266 : f32 to vector<28x128xf32>
      %626 = arith.maximumf %624, %625 : vector<28x128xf32>
      %627 = vector.broadcast %54 : f32 to vector<28x128xf32>
      %628 = arith.mulf %627, %164 : vector<28x128xf32>
      %629 = arith.addf %99, %628 : vector<28x128xf32>
      %630 = vector.broadcast %55 : f32 to vector<28x128xf32>
      %631 = arith.mulf %630, %171 : vector<28x128xf32>
      %632 = arith.addf %629, %631 : vector<28x128xf32>
      %633 = vector.broadcast %56 : f32 to vector<28x128xf32>
      %634 = arith.mulf %633, %178 : vector<28x128xf32>
      %635 = arith.addf %632, %634 : vector<28x128xf32>
      %636 = vector.broadcast %57 : f32 to vector<28x128xf32>
      %637 = arith.mulf %636, %185 : vector<28x128xf32>
      %638 = arith.addf %635, %637 : vector<28x128xf32>
      %639 = vector.broadcast %58 : f32 to vector<28x128xf32>
      %640 = arith.mulf %639, %192 : vector<28x128xf32>
      %641 = arith.addf %638, %640 : vector<28x128xf32>
      %642 = vector.broadcast %59 : f32 to vector<28x128xf32>
      %643 = arith.mulf %642, %199 : vector<28x128xf32>
      %644 = arith.addf %641, %643 : vector<28x128xf32>
      %645 = vector.broadcast %60 : f32 to vector<28x128xf32>
      %646 = arith.mulf %645, %206 : vector<28x128xf32>
      %647 = arith.addf %644, %646 : vector<28x128xf32>
      %648 = vector.broadcast %61 : f32 to vector<28x128xf32>
      %649 = arith.mulf %648, %213 : vector<28x128xf32>
      %650 = arith.addf %647, %649 : vector<28x128xf32>
      %651 = vector.broadcast %62 : f32 to vector<28x128xf32>
      %652 = arith.mulf %651, %220 : vector<28x128xf32>
      %653 = arith.addf %650, %652 : vector<28x128xf32>
      %654 = vector.broadcast %63 : f32 to vector<28x128xf32>
      %655 = arith.mulf %654, %248 : vector<28x128xf32>
      %656 = arith.addf %653, %655 : vector<28x128xf32>
      %657 = vector.broadcast %64 : f32 to vector<28x128xf32>
      %658 = arith.mulf %657, %255 : vector<28x128xf32>
      %659 = arith.addf %656, %658 : vector<28x128xf32>
      %660 = vector.broadcast %65 : f32 to vector<28x128xf32>
      %661 = arith.mulf %660, %262 : vector<28x128xf32>
      %662 = arith.addf %659, %661 : vector<28x128xf32>
      %663 = vector.broadcast %66 : f32 to vector<28x128xf32>
      %664 = arith.mulf %663, %269 : vector<28x128xf32>
      %665 = arith.addf %662, %664 : vector<28x128xf32>
      %666 = vector.broadcast %67 : f32 to vector<28x128xf32>
      %667 = arith.mulf %666, %276 : vector<28x128xf32>
      %668 = arith.addf %665, %667 : vector<28x128xf32>
      %669 = vector.broadcast %68 : f32 to vector<28x128xf32>
      %670 = arith.mulf %669, %283 : vector<28x128xf32>
      %671 = arith.addf %668, %670 : vector<28x128xf32>
      %672 = vector.broadcast %69 : f32 to vector<28x128xf32>
      %673 = arith.mulf %672, %290 : vector<28x128xf32>
      %674 = arith.addf %671, %673 : vector<28x128xf32>
      %675 = vector.broadcast %70 : f32 to vector<28x128xf32>
      %676 = arith.mulf %675, %297 : vector<28x128xf32>
      %677 = arith.addf %674, %676 : vector<28x128xf32>
      %678 = vector.broadcast %71 : f32 to vector<28x128xf32>
      %679 = arith.mulf %678, %304 : vector<28x128xf32>
      %680 = arith.addf %677, %679 : vector<28x128xf32>
      %cst_267 = arith.constant 0.000000e+00 : f32
      %681 = vector.broadcast %cst_267 : f32 to vector<28x128xf32>
      %682 = arith.maximumf %680, %681 : vector<28x128xf32>
      %683 = arith.maximumf %626, %682 : vector<28x128xf32>
      %c28_i32_268 = arith.constant 28 : i32
      %684 = arith.addi %c28_i32_268, %136 : i32
      %685 = arith.index_cast %684 : i32 to index
      %c0_269 = arith.constant 0 : index
      %c0_270 = arith.constant 0 : index
      %686 = vector.load %arg10[%685, %c0_269, %c0_270] : memref<56x32x128xf32, #tpu.memory_space<vmem>>, vector<1x28x128xf32>
      %687 = vector.shape_cast %686 : vector<1x28x128xf32> to vector<28x128xf32>
      %688 = vector.shape_cast %683 : vector<28x128xf32> to vector<1x28x128xf32>
      tpu.vector_store %arg10[%685, %c0_269, %c0_270], %688 {strides = array<i32>} : memref<56x32x128xf32, #tpu.memory_space<vmem>>, vector<1x28x128xf32>,
      %689 = arith.index_cast %684 : i32 to index
      %c28_271 = arith.constant 28 : index
      %c0_272 = arith.constant 0 : index
      %690 = vector.load %arg10[%689, %c28_271, %c0_272] : memref<56x32x128xf32, #tpu.memory_space<vmem>>, vector<1x4x128xf32>
      %691 = vector.shape_cast %690 : vector<1x4x128xf32> to vector<4x128xf32>
      %692 = vector.shape_cast %103 : vector<4x128xf32> to vector<1x4x128xf32>
      tpu.vector_store %arg10[%689, %c28_271, %c0_272], %692 {strides = array<i32>} : memref<56x32x128xf32, #tpu.memory_space<vmem>>, vector<1x4x128xf32>,
      %693 = arith.index_cast %684 : i32 to index
      %c0_273 = arith.constant 0 : index
      %c0_274 = arith.constant 0 : index
      %694 = vector.load %arg10[%693, %c0_273, %c0_274] : memref<56x32x128xf32, #tpu.memory_space<vmem>>, vector<1x27x128xf32>
      %695 = vector.shape_cast %694 : vector<1x27x128xf32> to vector<27x128xf32>
      %696 = arith.index_cast %684 : i32 to index
      %c1_275 = arith.constant 1 : index
      %c0_276 = arith.constant 0 : index
      %697 = vector.load %arg10[%696, %c1_275, %c0_276] : memref<56x32x128xf32, #tpu.memory_space<vmem>>, vector<1x27x128xf32>
      %698 = vector.shape_cast %697 : vector<1x27x128xf32> to vector<27x128xf32>
      %699 = arith.maximumf %695, %698 : vector<27x128xf32>
      %700 = arith.index_cast %684 : i32 to index
      %c0_277 = arith.constant 0 : index
      %c0_278 = arith.constant 0 : index
      %701 = vector.load %arg10[%700, %c0_277, %c0_278] : memref<56x32x128xf32, #tpu.memory_space<vmem>>, vector<1x27x128xf32>
      %702 = vector.shape_cast %701 : vector<1x27x128xf32> to vector<27x128xf32>
      %703 = vector.shape_cast %699 : vector<27x128xf32> to vector<1x27x128xf32>
      tpu.vector_store %arg10[%700, %c0_277, %c0_278], %703 {strides = array<i32>} : memref<56x32x128xf32, #tpu.memory_space<vmem>>, vector<1x27x128xf32>,
      %704 = vector.broadcast %72 : f32 to vector<28x128xf32>
      %705 = arith.mulf %704, %143 : vector<28x128xf32>
      %706 = arith.addf %101, %705 : vector<28x128xf32>
      %707 = vector.broadcast %73 : f32 to vector<28x128xf32>
      %708 = arith.mulf %707, %150 : vector<28x128xf32>
      %709 = arith.addf %706, %708 : vector<28x128xf32>
      %710 = vector.broadcast %74 : f32 to vector<28x128xf32>
      %711 = arith.mulf %710, %157 : vector<28x128xf32>
      %712 = arith.addf %709, %711 : vector<28x128xf32>
      %713 = vector.broadcast %75 : f32 to vector<28x128xf32>
      %714 = arith.mulf %713, %164 : vector<28x128xf32>
      %715 = arith.addf %712, %714 : vector<28x128xf32>
      %716 = vector.broadcast %76 : f32 to vector<28x128xf32>
      %717 = arith.mulf %716, %171 : vector<28x128xf32>
      %718 = arith.addf %715, %717 : vector<28x128xf32>
      %719 = vector.broadcast %77 : f32 to vector<28x128xf32>
      %720 = arith.mulf %719, %178 : vector<28x128xf32>
      %721 = arith.addf %718, %720 : vector<28x128xf32>
      %722 = vector.broadcast %78 : f32 to vector<28x128xf32>
      %723 = arith.mulf %722, %185 : vector<28x128xf32>
      %724 = arith.addf %721, %723 : vector<28x128xf32>
      %725 = vector.broadcast %79 : f32 to vector<28x128xf32>
      %726 = arith.mulf %725, %192 : vector<28x128xf32>
      %727 = arith.addf %724, %726 : vector<28x128xf32>
      %728 = vector.broadcast %80 : f32 to vector<28x128xf32>
      %729 = arith.mulf %728, %199 : vector<28x128xf32>
      %730 = arith.addf %727, %729 : vector<28x128xf32>
      %731 = vector.broadcast %81 : f32 to vector<28x128xf32>
      %732 = arith.mulf %731, %227 : vector<28x128xf32>
      %733 = arith.addf %730, %732 : vector<28x128xf32>
      %734 = vector.broadcast %82 : f32 to vector<28x128xf32>
      %735 = arith.mulf %734, %234 : vector<28x128xf32>
      %736 = arith.addf %733, %735 : vector<28x128xf32>
      %737 = vector.broadcast %83 : f32 to vector<28x128xf32>
      %738 = arith.mulf %737, %241 : vector<28x128xf32>
      %739 = arith.addf %736, %738 : vector<28x128xf32>
      %740 = vector.broadcast %84 : f32 to vector<28x128xf32>
      %741 = arith.mulf %740, %248 : vector<28x128xf32>
      %742 = arith.addf %739, %741 : vector<28x128xf32>
      %743 = vector.broadcast %85 : f32 to vector<28x128xf32>
      %744 = arith.mulf %743, %255 : vector<28x128xf32>
      %745 = arith.addf %742, %744 : vector<28x128xf32>
      %746 = vector.broadcast %86 : f32 to vector<28x128xf32>
      %747 = arith.mulf %746, %262 : vector<28x128xf32>
      %748 = arith.addf %745, %747 : vector<28x128xf32>
      %749 = vector.broadcast %87 : f32 to vector<28x128xf32>
      %750 = arith.mulf %749, %269 : vector<28x128xf32>
      %751 = arith.addf %748, %750 : vector<28x128xf32>
      %752 = vector.broadcast %88 : f32 to vector<28x128xf32>
      %753 = arith.mulf %752, %276 : vector<28x128xf32>
      %754 = arith.addf %751, %753 : vector<28x128xf32>
      %755 = vector.broadcast %89 : f32 to vector<28x128xf32>
      %756 = arith.mulf %755, %283 : vector<28x128xf32>
      %757 = arith.addf %754, %756 : vector<28x128xf32>
      %cst_279 = arith.constant 0.000000e+00 : f32
      %758 = vector.broadcast %cst_279 : f32 to vector<28x128xf32>
      %759 = arith.maximumf %757, %758 : vector<28x128xf32>
      %760 = vector.broadcast %72 : f32 to vector<28x128xf32>
      %761 = arith.mulf %760, %164 : vector<28x128xf32>
      %762 = arith.addf %101, %761 : vector<28x128xf32>
      %763 = vector.broadcast %73 : f32 to vector<28x128xf32>
      %764 = arith.mulf %763, %171 : vector<28x128xf32>
      %765 = arith.addf %762, %764 : vector<28x128xf32>
      %766 = vector.broadcast %74 : f32 to vector<28x128xf32>
      %767 = arith.mulf %766, %178 : vector<28x128xf32>
      %768 = arith.addf %765, %767 : vector<28x128xf32>
      %769 = vector.broadcast %75 : f32 to vector<28x128xf32>
      %770 = arith.mulf %769, %185 : vector<28x128xf32>
      %771 = arith.addf %768, %770 : vector<28x128xf32>
      %772 = vector.broadcast %76 : f32 to vector<28x128xf32>
      %773 = arith.mulf %772, %192 : vector<28x128xf32>
      %774 = arith.addf %771, %773 : vector<28x128xf32>
      %775 = vector.broadcast %77 : f32 to vector<28x128xf32>
      %776 = arith.mulf %775, %199 : vector<28x128xf32>
      %777 = arith.addf %774, %776 : vector<28x128xf32>
      %778 = vector.broadcast %78 : f32 to vector<28x128xf32>
      %779 = arith.mulf %778, %206 : vector<28x128xf32>
      %780 = arith.addf %777, %779 : vector<28x128xf32>
      %781 = vector.broadcast %79 : f32 to vector<28x128xf32>
      %782 = arith.mulf %781, %213 : vector<28x128xf32>
      %783 = arith.addf %780, %782 : vector<28x128xf32>
      %784 = vector.broadcast %80 : f32 to vector<28x128xf32>
      %785 = arith.mulf %784, %220 : vector<28x128xf32>
      %786 = arith.addf %783, %785 : vector<28x128xf32>
      %787 = vector.broadcast %81 : f32 to vector<28x128xf32>
      %788 = arith.mulf %787, %248 : vector<28x128xf32>
      %789 = arith.addf %786, %788 : vector<28x128xf32>
      %790 = vector.broadcast %82 : f32 to vector<28x128xf32>
      %791 = arith.mulf %790, %255 : vector<28x128xf32>
      %792 = arith.addf %789, %791 : vector<28x128xf32>
      %793 = vector.broadcast %83 : f32 to vector<28x128xf32>
      %794 = arith.mulf %793, %262 : vector<28x128xf32>
      %795 = arith.addf %792, %794 : vector<28x128xf32>
      %796 = vector.broadcast %84 : f32 to vector<28x128xf32>
      %797 = arith.mulf %796, %269 : vector<28x128xf32>
      %798 = arith.addf %795, %797 : vector<28x128xf32>
      %799 = vector.broadcast %85 : f32 to vector<28x128xf32>
      %800 = arith.mulf %799, %276 : vector<28x128xf32>
      %801 = arith.addf %798, %800 : vector<28x128xf32>
      %802 = vector.broadcast %86 : f32 to vector<28x128xf32>
      %803 = arith.mulf %802, %283 : vector<28x128xf32>
      %804 = arith.addf %801, %803 : vector<28x128xf32>
      %805 = vector.broadcast %87 : f32 to vector<28x128xf32>
      %806 = arith.mulf %805, %290 : vector<28x128xf32>
      %807 = arith.addf %804, %806 : vector<28x128xf32>
      %808 = vector.broadcast %88 : f32 to vector<28x128xf32>
      %809 = arith.mulf %808, %297 : vector<28x128xf32>
      %810 = arith.addf %807, %809 : vector<28x128xf32>
      %811 = vector.broadcast %89 : f32 to vector<28x128xf32>
      %812 = arith.mulf %811, %304 : vector<28x128xf32>
      %813 = arith.addf %810, %812 : vector<28x128xf32>
      %cst_280 = arith.constant 0.000000e+00 : f32
      %814 = vector.broadcast %cst_280 : f32 to vector<28x128xf32>
      %815 = arith.maximumf %813, %814 : vector<28x128xf32>
      %816 = arith.maximumf %759, %815 : vector<28x128xf32>
      %c42_i32 = arith.constant 42 : i32
      %817 = arith.addi %c42_i32, %136 : i32
      %818 = arith.index_cast %817 : i32 to index
      %c0_281 = arith.constant 0 : index
      %c0_282 = arith.constant 0 : index
      %819 = vector.load %arg10[%818, %c0_281, %c0_282] : memref<56x32x128xf32, #tpu.memory_space<vmem>>, vector<1x28x128xf32>
      %820 = vector.shape_cast %819 : vector<1x28x128xf32> to vector<28x128xf32>
      %821 = vector.shape_cast %816 : vector<28x128xf32> to vector<1x28x128xf32>
      tpu.vector_store %arg10[%818, %c0_281, %c0_282], %821 {strides = array<i32>} : memref<56x32x128xf32, #tpu.memory_space<vmem>>, vector<1x28x128xf32>,
      %822 = arith.index_cast %817 : i32 to index
      %c28_283 = arith.constant 28 : index
      %c0_284 = arith.constant 0 : index
      %823 = vector.load %arg10[%822, %c28_283, %c0_284] : memref<56x32x128xf32, #tpu.memory_space<vmem>>, vector<1x4x128xf32>
      %824 = vector.shape_cast %823 : vector<1x4x128xf32> to vector<4x128xf32>
      %825 = vector.shape_cast %103 : vector<4x128xf32> to vector<1x4x128xf32>
      tpu.vector_store %arg10[%822, %c28_283, %c0_284], %825 {strides = array<i32>} : memref<56x32x128xf32, #tpu.memory_space<vmem>>, vector<1x4x128xf32>,
      %826 = arith.index_cast %817 : i32 to index
      %c0_285 = arith.constant 0 : index
      %c0_286 = arith.constant 0 : index
      %827 = vector.load %arg10[%826, %c0_285, %c0_286] : memref<56x32x128xf32, #tpu.memory_space<vmem>>, vector<1x27x128xf32>
      %828 = vector.shape_cast %827 : vector<1x27x128xf32> to vector<27x128xf32>
      %829 = arith.index_cast %817 : i32 to index
      %c1_287 = arith.constant 1 : index
      %c0_288 = arith.constant 0 : index
      %830 = vector.load %arg10[%829, %c1_287, %c0_288] : memref<56x32x128xf32, #tpu.memory_space<vmem>>, vector<1x27x128xf32>
      %831 = vector.shape_cast %830 : vector<1x27x128xf32> to vector<27x128xf32>
      %832 = arith.maximumf %828, %831 : vector<27x128xf32>
      %833 = arith.index_cast %817 : i32 to index
      %c0_289 = arith.constant 0 : index
      %c0_290 = arith.constant 0 : index
      %834 = vector.load %arg10[%833, %c0_289, %c0_290] : memref<56x32x128xf32, #tpu.memory_space<vmem>>, vector<1x27x128xf32>
      %835 = vector.shape_cast %834 : vector<1x27x128xf32> to vector<27x128xf32>
      %836 = vector.shape_cast %832 : vector<27x128xf32> to vector<1x27x128xf32>
      tpu.vector_store %arg10[%833, %c0_289, %c0_290], %836 {strides = array<i32>} : memref<56x32x128xf32, #tpu.memory_space<vmem>>, vector<1x27x128xf32>,
    }
    %c14_i32_61 = arith.constant 14 : i32
    %c0_62 = arith.constant 0 : index
    %c0_63 = arith.constant 0 : index
    %c0_64 = arith.constant 0 : index
    %127 = vector.load %arg10[%c0_62, %c0_63, %c0_64] : memref<56x32x128xf32, #tpu.memory_space<vmem>>, vector<56x32x128xf32>
    %128 = vector.shape_cast %127 : vector<56x32x128xf32> to vector<1792x128xf32>
    %c0_65 = arith.constant 0 : index
    %c0_66 = arith.constant 0 : index
    %129 = vector.load %arg6[%c0_65, %c0_66] : memref<10x1792xf32, #tpu.memory_space<vmem>>, vector<10x1792xf32>
    %cst_67 = arith.constant dense<0.000000e+00> : vector<10x128xf32>
    %130 = tpu.matmul %129, %128, %cst_67 {dimension_numbers = #tpu.dot_dimension_numbers<[1], [0], [0], [1], [0, 0, 1, 1], [], []>} : vector<10x1792xf32>, vector<1792x128xf32>, vector<10x128xf32> -> vector<10x128xf32>
    %c0_68 = arith.constant 0 : index
    %c0_69 = arith.constant 0 : index
    %131 = vector.load %arg7[%c0_68, %c0_69] : memref<10x1xf32, #tpu.memory_space<vmem>>, vector<10x1xf32>
    %132 = vector.broadcast %131 : vector<10x1xf32> to vector<10x128xf32>
    %133 = arith.addf %130, %132 : vector<10x128xf32>
    %c0_70 = arith.constant 0 : index
    %c0_71 = arith.constant 0 : index
    %134 = vector.load %arg8[%c0_70, %c0_71] : memref<10x128xf32, #tpu.memory_space<vmem>>, vector<10x128xf32>
    tpu.vector_store %arg8[%c0_70, %c0_71], %133 {strides = array<i32>} : memref<10x128xf32, #tpu.memory_space<vmem>>, vector<10x128xf32>,
    return
  }
  func.func @transform_0(%arg0: i32) -> i32 {
    %c0_i32 = arith.constant 0 : i32
    %c0_i32_0 = arith.constant 0 : i32
    return %c0_i32 : i32
  }
  func.func @transform_1(%arg0: i32) -> i32 {
    %c0_i32 = arith.constant 0 : i32
    %c0_i32_0 = arith.constant 0 : i32
    return %c0_i32 : i32
  }
  func.func @transform_2(%arg0: i32) -> i32 {
    %c0_i32 = arith.constant 0 : i32
    %c0_i32_0 = arith.constant 0 : i32
    return %c0_i32 : i32
  }
  func.func @transform_3(%arg0: i32) -> i32 {
    %c0_i32 = arith.constant 0 : i32
    %c0_i32_0 = arith.constant 0 : i32
    return %c0_i32 : i32
  }
  func.func @transform_4(%arg0: i32) -> (i32, i32, i32) {
    %c0_i32 = arith.constant 0 : i32
    %c0_i32_0 = arith.constant 0 : i32
    %c0_i32_1 = arith.constant 0 : i32
    return %c0_i32, %c0_i32_0, %arg0 : i32, i32, i32
  }
  func.func @transform_5(%arg0: i32) -> (i32, i32) {
    %c0_i32 = arith.constant 0 : i32
    %c0_i32_0 = arith.constant 0 : i32
    %c0_i32_1 = arith.constant 0 : i32
    return %c0_i32, %c0_i32_0 : i32, i32
  }
  func.func @transform_6(%arg0: i32) -> (i32, i32) {
    %c0_i32 = arith.constant 0 : i32
    %c0_i32_0 = arith.constant 0 : i32
    %c0_i32_1 = arith.constant 0 : i32
    return %c0_i32, %c0_i32_0 : i32, i32
  }
  func.func @transform_7(%arg0: i32) -> (i32, i32) {
    %c0_i32 = arith.constant 0 : i32
    %c0_i32_0 = arith.constant 0 : i32
    return %c0_i32, %arg0 : i32, i32
  }
}

</mosaic_0001>

<bundles_post_ra>
// kernel: net_forward.1
= control target key start
LH: loop header
LB: loop body
LE: loop exit
PB: predicated region body
PF: predicated region fallthrough
CT: control target
= control target key end

     0   :  { %s6577_s0 = inlined_call_operand.vmem [shape: f32[18], index: 0, kind: input, shape index: {}]   ;;  %s6578_s1 = inlined_call_operand.vmem [shape: f32[2], index: 1, kind: input, shape index: {}]   ;;  %s6579_s2 = inlined_call_operand.vmem [shape: f32[72], index: 2, kind: input, shape index: {}]   ;;  %s6580_s3 = inlined_call_operand.vmem [shape: f32[4], index: 3, kind: input, shape index: {}]   ;;  %s6581_s4 = inlined_call_operand.vmem [shape: f32[30,30,128], index: 4, kind: input, shape index: {}]   ;;  %s6582_s5 = inlined_call_operand.vmem [shape: f32[10,1792], index: 5, kind: input, shape index: {}]   ;;  %s6583_s6 = inlined_call_operand.vmem [shape: f32[10,1], index: 6, kind: input, shape index: {}]   ;;  %s6584_s7 = inlined_call_operand.vmem [shape: f32[10,128], index: 7, kind: output, shape index: {}]  }
   0x1   :  { %6868 = sst [smem:[#allocation188_spill]] %s6582_s5 }
   0x2   :  { %6869 = sst [smem:[#allocation189_spill]] %s6583_s6 }
   0x3   :  { %6870 = sst [smem:[#allocation190_spill]] %s6584_s7 }
   0x4   :  { %12 = vsyncpa [#allocation5], 0 }
   0x5   :  { %13 = vsyncpa [#allocation7], 0  ;;  %s31_s26 = sshll.u32 %s6578_s1, 4  ;;  %s32_s26 = int_to_ptr.vmem [resolvable:$true] %s31_s26 }
   0x6   :  { %14 = vsyncpa [#allocation10], 0  ;;  %s21_s29 = sshll.u32 %s6577_s0, 4  ;;  %s3490_s30 = scalar_lea.vmem %s32_s26, 16  ;;  %s22_s29 = int_to_ptr.vmem [resolvable:$true] %s21_s29 }
   0x7   :  { %p3491_p0 = scmp.ne.s32.totalorder %s32_s26, %s3490_s30  ;;  %p3495_p1 = scmp.lt.s32.totalorder %s32_s26, %s32_s26 }
   0x8   :  { %p3496_p2 = scmp.lt.s32.totalorder %s3490_s30, %s3490_s30 }
   0xa   :  { %p3497_p3 = por %p3496_p2, %p3495_p1 }
   0xc   :  { %p3498_p4 = pnand %p3497_p3, %p3491_p0 }
   0xe   :  { %3501 = shalt.err (!%p3498_p4)
}
   0xf   :  { %s3560_s8 = smov [#allocation6]   ;;  %s3502_s9 = scalar_lea.vmem %s22_s29, 16 }
  0x10   :  { %34 = dma.vmem_to_smem %s32_s26, 16, %s3560_s8, [#allocation7]  }
  0x11   :  { %p3503_p5 = scmp.ne.s32.totalorder %s22_s29, %s3502_s9  ;;  %p3507_p6 = scmp.lt.s32.totalorder %s22_s29, %s22_s29 }
  0x12   :  { %p3508_p7 = scmp.lt.s32.totalorder %s3502_s9, %s3502_s9 }
  0x14   :  { %p3509_p8 = por %p3508_p7, %p3507_p6 }
  0x16   :  { %p3510_p9 = pnand %p3509_p8, %p3503_p5 }
  0x18   :  { %3513 = shalt.err (!%p3510_p9)
}
  0x19   :  { %s3561_s1 = smov [#allocation4]   ;;  %s41_s11 = sshll.u32 %s6579_s2, 4  ;;  %s42_s11 = int_to_ptr.vmem [resolvable:$true] %s41_s11 }
  0x1a   :  { %24 = dma.vmem_to_smem %s22_s29, 16, %s3561_s1, [#allocation5]  }
  0x1b   :  { %s51_s14 = sshll.u32 %s6580_s3, 4  ;;  %s3514_s15 = scalar_lea.vmem %s42_s11, 16  ;;  %s52_s14 = int_to_ptr.vmem [resolvable:$true] %s51_s14 }
  0x1c   :  { %p3515_p10 = scmp.ne.s32.totalorder %s42_s11, %s3514_s15  ;;  %p3519_p11 = scmp.lt.s32.totalorder %s42_s11, %s42_s11 }
  0x1d   :  { %p3520_p12 = scmp.lt.s32.totalorder %s3514_s15, %s3514_s15 }
  0x1f   :  { %p3521_p13 = por %p3520_p12, %p3519_p11 }
  0x21   :  { %p3522_p0 = pnand %p3521_p13, %p3515_p10 }
  0x23   :  { %3525 = shalt.err (!%p3522_p0)
}
  0x24   :  { %s3562_s16 = smov [#allocation8]   ;;  %s3526_s17 = scalar_lea.vmem %s52_s14, 16 }
  0x25   :  { %44 = dma.vmem_to_smem %s42_s11, 16, %s3562_s16, [#allocation7]  }
  0x26   :  { %p3527_p1 = scmp.ne.s32.totalorder %s52_s14, %s3526_s17  ;;  %p3531_p2 = scmp.lt.s32.totalorder %s52_s14, %s52_s14 }
  0x27   :  { %p3532_p3 = scmp.lt.s32.totalorder %s3526_s17, %s3526_s17 }
  0x29   :  { %p3533_p4 = por %p3532_p3, %p3531_p2 }
  0x2b   :  { %p3534_p5 = pnand %p3533_p4, %p3527_p1 }
  0x2d   :  { %3537 = shalt.err (!%p3534_p5)
}
  0x2e   :  { %s3563_s2 = smov [#allocation9]  }
  0x2f   :  { %54 = dma.vmem_to_smem %s52_s14, 16, %s3563_s2, [#allocation10]  }
  0x30   :  { %3546 = dma.done.wait [#allocation5], 16  }
  0x31   :  { %3547 = vsyncadd [#allocation5], 4294967280 }
  0x32   :  { %3548 = dma.done.wait [#allocation7], 32  }
  0x33   :  { %3549 = vsyncadd [#allocation7], 4294967264 }
  0x34   :  { %3550 = dma.done.wait [#allocation10], 16  }
  0x35   :  { %3551 = vsyncadd [#allocation10], 4294967280 }
  0x36   :  { %73 = sfence }
  0x37   :  { %s3620_s3 = sld [smem:[#allocation4]]  ;;  %v3564_v0 = vmov 0.0  }
  0x38   :  { %s3622_s18 = sld [smem:[#allocation4 + $0x1]]  ;;  %176 = vst [vmem:[#allocation2] sm:$0xff] %v3564_v0  ;;  %177 = vst [vmem:[#allocation2 + $0x8] sm:$0xff] %v3564_v0 }
  0x39   :  { %178 = vst [vmem:[#allocation2 + $0x10] sm:$0xff] %v3564_v0  ;;  %179 = vst [vmem:[#allocation2 + $0x18] sm:$0x3f] %v3564_v0  ;;  %s3624_s19 = sld [smem:[#allocation4 + $0x2]] }
  0x3a   :  { %181 = vst [vmem:[#allocation2 + $0x3a0] sm:$0xff] %v3564_v0  ;;  %182 = vst [vmem:[#allocation2 + $0x3a8] sm:$0xff] %v3564_v0  ;;  %s3626_s20 = sld [smem:[#allocation4 + $0x3]] }
  0x3b   :  { %183 = vst [vmem:[#allocation2 + $0x3b0] sm:$0xff] %v3564_v0  ;;  %184 = vst [vmem:[#allocation2 + $0x3b8] sm:$0x3f] %v3564_v0  ;;  %s3628_s21 = sld [smem:[#allocation4 + $0x4]] }
  0x3c   :  { %186 = vst [vmem:[#allocation2 + $0x3c0] sm:$0xff] %v3564_v0  ;;  %187 = vst [vmem:[#allocation2 + $0x3c8] sm:$0xff] %v3564_v0  ;;  %s3630_s22 = sld [smem:[#allocation4 + $0x5]] }
  0x3d   :  { %188 = vst [vmem:[#allocation2 + $0x3d0] sm:$0xff] %v3564_v0  ;;  %189 = vst [vmem:[#allocation2 + $0x3d8] sm:$0x3f] %v3564_v0  ;;  %s3632_s23 = sld [smem:[#allocation4 + $0x6]] }
  0x3e   :  { %191 = vst [vmem:[#allocation2 + $0x760] sm:$0xff] %v3564_v0  ;;  %192 = vst [vmem:[#allocation2 + $0x768] sm:$0xff] %v3564_v0  ;;  %s3634_s24 = sld [smem:[#allocation4 + $0x7]] }
  0x3f   :  { %193 = vst [vmem:[#allocation2 + $0x770] sm:$0xff] %v3564_v0  ;;  %194 = vst [vmem:[#allocation2 + $0x778] sm:$0x3f] %v3564_v0  ;;  %s3636_s25 = sld [smem:[#allocation4 + $0x8]] }
  0x40   :  { %s3638_s26 = sld [smem:[#allocation4 + $0x9]] }
  0x41   :  { %s3640_s27 = sld [smem:[#allocation4 + $0xa]] }
  0x42   :  { %s3642_s28 = sld [smem:[#allocation4 + $0xb]] }
  0x43   :  { %s3644_s29 = sld [smem:[#allocation4 + $0xc]] }
  0x44   :  { %s3646_s30 = sld [smem:[#allocation4 + $0xd]] }
  0x45   :  { %s3648_s8 = sld [smem:[#allocation4 + $0xe]] }
  0x46   :  { %s3650_s9 = sld [smem:[#allocation4 + $0xf]] }
  0x47   :  { %s3652_s1 = sld [smem:[#allocation4 + $0x10]] }
  0x48   :  { %s3654_s0 = sld [smem:[#allocation4 + $0x11]] }
  0x49   :  { %s3656_s10 = sld [smem:[#allocation8]] }
  0x4a   :  { %s3658_s11 = sld [smem:[#allocation8 + $0x1]] }
  0x4b   :  { %s3660_s12 = sld [smem:[#allocation8 + $0x2]] }
  0x4c   :  { %s3662_s13 = sld [smem:[#allocation8 + $0x3]] }
  0x4d   :  { %s3664_s14 = sld [smem:[#allocation8 + $0x4]] }
  0x4e   :  { %6871 = sst [smem:[#allocation14_spill]] %s3654_s0 }
  0x4f   :  { %6872 = sst [smem:[#allocation15_spill]] %s3656_s10 }
  0x50   :  { %6873 = sst [smem:[#allocation16_spill]] %s3658_s11 }
  0x51   :  { %6874 = sst [smem:[#allocation17_spill]] %s3660_s12 }
  0x52   :  { %6875 = sst [smem:[#allocation18_spill]] %s3662_s13 }
  0x53   :  { %6876 = sst [smem:[#allocation19_spill]] %s3664_s14 }
  0x54   :  { %s3666_s15 = sld [smem:[#allocation8 + $0x5]] }
  0x55   :  { %s3668_s16 = sld [smem:[#allocation8 + $0x6]] }
  0x56   :  { %s3670_s17 = sld [smem:[#allocation8 + $0x7]] }
  0x57   :  { %s3672_s2 = sld [smem:[#allocation8 + $0x8]] }
  0x58   :  { %s3674_s7 = sld [smem:[#allocation8 + $0x9]] }
  0x59   :  { %s3676_s6 = sld [smem:[#allocation8 + $0xa]] }
  0x5a   :  { %6877 = sst [smem:[#allocation20_spill]] %s3666_s15 }
  0x5b   :  { %6878 = sst [smem:[#allocation21_spill]] %s3668_s16 }
  0x5c   :  { %6879 = sst [smem:[#allocation22_spill]] %s3670_s17 }
  0x5d   :  { %6880 = sst [smem:[#allocation23_spill]] %s3672_s2 }
  0x5e   :  { %6881 = sst [smem:[#allocation24_spill]] %s3674_s7 }
  0x5f   :  { %6882 = sst [smem:[#allocation25_spill]] %s3676_s6 }
  0x60   :  { %s3678_s5 = sld [smem:[#allocation8 + $0xb]] }
  0x61   :  { %s3680_s11 = sld [smem:[#allocation8 + $0xc]] }
  0x62   :  { %s3682_s12 = sld [smem:[#allocation8 + $0xd]] }
  0x63   :  { %s3684_s13 = sld [smem:[#allocation8 + $0xe]] }
  0x64   :  { %s3686_s14 = sld [smem:[#allocation8 + $0xf]] }
  0x65   :  { %s3688_s15 = sld [smem:[#allocation8 + $0x10]] }
  0x66   :  { %6883 = sst [smem:[#allocation26_spill]] %s3678_s5 }
  0x67   :  { %6884 = sst [smem:[#allocation27_spill]] %s3680_s11 }
  0x68   :  { %6885 = sst [smem:[#allocation28_spill]] %s3682_s12 }
  0x69   :  { %6886 = sst [smem:[#allocation29_spill]] %s3684_s13 }
  0x6a   :  { %6887 = sst [smem:[#allocation30_spill]] %s3686_s14 }
  0x6b   :  { %6888 = sst [smem:[#allocation31_spill]] %s3688_s15 }
  0x6c   :  { %s3690_s16 = sld [smem:[#allocation8 + $0x11]] }
  0x6d   :  { %s3692_s17 = sld [smem:[#allocation8 + $0x12]] }
  0x6e   :  { %s3694_s2 = sld [smem:[#allocation8 + $0x13]] }
  0x6f   :  { %s3696_s7 = sld [smem:[#allocation8 + $0x14]] }
  0x70   :  { %s3698_s6 = sld [smem:[#allocation8 + $0x15]] }
  0x71   :  { %s3700_s5 = sld [smem:[#allocation8 + $0x16]] }
  0x72   :  { %6889 = sst [smem:[#allocation32_spill]] %s3690_s16 }
  0x73   :  { %6890 = sst [smem:[#allocation33_spill]] %s3692_s17 }
  0x74   :  { %6891 = sst [smem:[#allocation34_spill]] %s3694_s2 }
  0x75   :  { %6892 = sst [smem:[#allocation35_spill]] %s3696_s7 }
  0x76   :  { %6893 = sst [smem:[#allocation36_spill]] %s3698_s6 }
  0x77   :  { %6894 = sst [smem:[#allocation37_spill]] %s3700_s5 }
  0x78   :  { %s3702_s11 = sld [smem:[#allocation8 + $0x17]] }
  0x79   :  { %s3704_s12 = sld [smem:[#allocation8 + $0x18]] }
  0x7a   :  { %s3706_s13 = sld [smem:[#allocation8 + $0x19]] }
  0x7b   :  { %s3708_s14 = sld [smem:[#allocation8 + $0x1a]] }
  0x7c   :  { %s3710_s15 = sld [smem:[#allocation8 + $0x1b]] }
  0x7d   :  { %s3712_s16 = sld [smem:[#allocation8 + $0x1c]] }
  0x7e   :  { %6895 = sst [smem:[#allocation38_spill]] %s3702_s11 }
  0x7f   :  { %6896 = sst [smem:[#allocation39_spill]] %s3704_s12 }
  0x80   :  { %6897 = sst [smem:[#allocation40_spill]] %s3706_s13 }
  0x81   :  { %6898 = sst [smem:[#allocation41_spill]] %s3708_s14 }
  0x82   :  { %6899 = sst [smem:[#allocation42_spill]] %s3710_s15 }
  0x83   :  { %6900 = sst [smem:[#allocation43_spill]] %s3712_s16 }
  0x84   :  { %s3714_s17 = sld [smem:[#allocation8 + $0x1d]] }
  0x85   :  { %s3716_s2 = sld [smem:[#allocation8 + $0x1e]] }
  0x86   :  { %s3718_s7 = sld [smem:[#allocation8 + $0x1f]] }
  0x87   :  { %s3720_s6 = sld [smem:[#allocation8 + $0x20]] }
  0x88   :  { %s3722_s5 = sld [smem:[#allocation8 + $0x21]] }
  0x89   :  { %s3724_s11 = sld [smem:[#allocation8 + $0x22]] }
  0x8a   :  { %6901 = sst [smem:[#allocation44_spill]] %s3714_s17 }
  0x8b   :  { %6902 = sst [smem:[#allocation45_spill]] %s3716_s2 }
  0x8c   :  { %6903 = sst [smem:[#allocation46_spill]] %s3718_s7 }
  0x8d   :  { %6904 = sst [smem:[#allocation47_spill]] %s3720_s6 }
  0x8e   :  { %6905 = sst [smem:[#allocation48_spill]] %s3722_s5 }
  0x8f   :  { %6906 = sst [smem:[#allocation49_spill]] %s3724_s11 }
  0x90   :  { %s3726_s12 = sld [smem:[#allocation8 + $0x23]] }
  0x91   :  { %s3728_s13 = sld [smem:[#allocation8 + $0x24]] }
  0x92   :  { %s3730_s14 = sld [smem:[#allocation8 + $0x25]] }
  0x93   :  { %s3732_s15 = sld [smem:[#allocation8 + $0x26]] }
  0x94   :  { %s3734_s16 = sld [smem:[#allocation8 + $0x27]] }
  0x95   :  { %s3736_s17 = sld [smem:[#allocation8 + $0x28]] }
  0x96   :  { %6907 = sst [smem:[#allocation50_spill]] %s3726_s12 }
  0x97   :  { %6908 = sst [smem:[#allocation51_spill]] %s3728_s13 }
  0x98   :  { %6909 = sst [smem:[#allocation52_spill]] %s3730_s14 }
  0x99   :  { %6910 = sst [smem:[#allocation53_spill]] %s3732_s15 }
  0x9a   :  { %6911 = sst [smem:[#allocation54_spill]] %s3734_s16 }
  0x9b   :  { %6912 = sst [smem:[#allocation55_spill]] %s3736_s17 }
  0x9c   :  { %s3738_s2 = sld [smem:[#allocation8 + $0x29]] }
  0x9d   :  { %s3740_s7 = sld [smem:[#allocation8 + $0x2a]] }
  0x9e   :  { %s3742_s6 = sld [smem:[#allocation8 + $0x2b]] }
  0x9f   :  { %s3744_s5 = sld [smem:[#allocation8 + $0x2c]] }
  0xa0   :  { %s3746_s11 = sld [smem:[#allocation8 + $0x2d]] }
  0xa1   :  { %s3748_s12 = sld [smem:[#allocation8 + $0x2e]] }
  0xa2   :  { %6913 = sst [smem:[#allocation56_spill]] %s3738_s2 }
  0xa3   :  { %6914 = sst [smem:[#allocation57_spill]] %s3740_s7 }
  0xa4   :  { %6915 = sst [smem:[#allocation58_spill]] %s3742_s6 }
  0xa5   :  { %6916 = sst [smem:[#allocation59_spill]] %s3744_s5 }
  0xa6   :  { %6917 = sst [smem:[#allocation60_spill]] %s3746_s11 }
  0xa7   :  { %6918 = sst [smem:[#allocation61_spill]] %s3748_s12 }
  0xa8   :  { %s3750_s13 = sld [smem:[#allocation8 + $0x2f]] }
  0xa9   :  { %s3752_s14 = sld [smem:[#allocation8 + $0x30]] }
  0xaa   :  { %s3754_s15 = sld [smem:[#allocation8 + $0x31]] }
  0xab   :  { %s3756_s16 = sld [smem:[#allocation8 + $0x32]] }
  0xac   :  { %s3758_s17 = sld [smem:[#allocation8 + $0x33]] }
  0xad   :  { %s3760_s2 = sld [smem:[#allocation8 + $0x34]] }
  0xae   :  { %6919 = sst [smem:[#allocation62_spill]] %s3750_s13 }
  0xaf   :  { %6920 = sst [smem:[#allocation63_spill]] %s3752_s14 }
  0xb0   :  { %6921 = sst [smem:[#allocation64_spill]] %s3754_s15 }
  0xb1   :  { %6922 = sst [smem:[#allocation65_spill]] %s3756_s16 }
  0xb2   :  { %6923 = sst [smem:[#allocation66_spill]] %s3758_s17 }
  0xb3   :  { %6924 = sst [smem:[#allocation67_spill]] %s3760_s2 }
  0xb4   :  { %s3762_s7 = sld [smem:[#allocation8 + $0x35]] }
  0xb5   :  { %s3764_s6 = sld [smem:[#allocation8 + $0x36]] }
  0xb6   :  { %s3766_s5 = sld [smem:[#allocation8 + $0x37]] }
  0xb7   :  { %s3768_s11 = sld [smem:[#allocation8 + $0x38]] }
  0xb8   :  { %s3770_s12 = sld [smem:[#allocation8 + $0x39]] }
  0xb9   :  { %s3772_s13 = sld [smem:[#allocation8 + $0x3a]] }
  0xba   :  { %6925 = sst [smem:[#allocation68_spill]] %s3762_s7 }
  0xbb   :  { %6926 = sst [smem:[#allocation69_spill]] %s3764_s6 }
  0xbc   :  { %6927 = sst [smem:[#allocation70_spill]] %s3766_s5 }
  0xbd   :  { %6928 = sst [smem:[#allocation71_spill]] %s3768_s11 }
  0xbe   :  { %6929 = sst [smem:[#allocation72_spill]] %s3770_s12 }
  0xbf   :  { %6930 = sst [smem:[#allocation73_spill]] %s3772_s13 }
  0xc0   :  { %s3774_s14 = sld [smem:[#allocation8 + $0x3b]] }
  0xc1   :  { %s3776_s15 = sld [smem:[#allocation8 + $0x3c]] }
  0xc2   :  { %s3778_s16 = sld [smem:[#allocation8 + $0x3d]] }
  0xc3   :  { %s3780_s17 = sld [smem:[#allocation8 + $0x3e]] }
  0xc4   :  { %s3782_s2 = sld [smem:[#allocation8 + $0x3f]] }
  0xc5   :  { %s3784_s7 = sld [smem:[#allocation8 + $0x40]] }
  0xc6   :  { %6931 = sst [smem:[#allocation74_spill]] %s3774_s14 }
  0xc7   :  { %6932 = sst [smem:[#allocation75_spill]] %s3776_s15 }
  0xc8   :  { %6933 = sst [smem:[#allocation76_spill]] %s3778_s16 }
  0xc9   :  { %6934 = sst [smem:[#allocation77_spill]] %s3780_s17 }
  0xca   :  { %6935 = sst [smem:[#allocation78_spill]] %s3782_s2 }
  0xcb   :  { %6936 = sst [smem:[#allocation79_spill]] %s3784_s7 }
  0xcc   :  { %s3786_s6 = sld [smem:[#allocation8 + $0x41]] }
  0xcd   :  { %s3788_s5 = sld [smem:[#allocation8 + $0x42]] }
  0xce   :  { %s3790_s11 = sld [smem:[#allocation8 + $0x43]] }
  0xcf   :  { %s3792_s12 = sld [smem:[#allocation8 + $0x44]] }
  0xd0   :  { %s3794_s13 = sld [smem:[#allocation8 + $0x45]] }
  0xd1   :  { %s3796_s14 = sld [smem:[#allocation8 + $0x46]] }
  0xd2   :  { %s3798_s15 = sld [smem:[#allocation8 + $0x47]] }
  0xd3   :  { %s164_s16 = sld [smem:[#allocation6]] }
  0xd4   :  { %s2865_s17 = sld [smem:[#allocation6 + $0x1]] }
  0xd5   :  { %6937 = sst [smem:[#allocation80_spill]] %s3792_s12 }
  0xd6   :  { %6938 = sst [smem:[#allocation81_spill]] %s3794_s13 }
  0xd7   :  { %6939 = sst [smem:[#allocation82_spill]] %s3796_s14  ;;  %s3812_s14 = smov 0  }
  0xd8   :  { %6940 = sst [smem:[#allocation83_spill]] %s3798_s15 }
  0xd9   :  { %s168_s10 = sld [smem:[#allocation9]]  ;;  %v3800_v1 = vstv %s164_s16 }
  0xda   :  { %s2866_s2 = sld [smem:[#allocation9 + $0x1]]  ;;  %6941 = vst [vmem:[#allocation84_spill] sm:$0xff] %v3800_v1  ;;  %v3802_v2 = vstv %s2865_s17 }
  0xdb   :  { %s2867_s0 = sld [smem:[#allocation9 + $0x2]] }
  0xdc   :  { %s2868_s7 = sld [smem:[#allocation9 + $0x3]] }
  0xdf   :  { %v3804_v3 = vstv %s168_s10 }
  0xe0   :  { %6942 = vst [vmem:[#allocation85_spill] sm:$0xff] %v3804_v3  ;;  %v3806_v4 = vstv %s2866_s2 }
  0xe1   :  { %6943 = vst [vmem:[#allocation86_spill] sm:$0xff] %v3806_v4  ;;  %v3808_v5 = vstv %s2867_s0 }
  0xe2   :  { %6944 = vst [vmem:[#allocation87_spill] sm:$0xff] %v3808_v5  ;;  %v3810_v6 = vstv %s2868_s7 }
  0xe3   :  { %6945 = vst [vmem:[#allocation88_spill] sm:$0xff] %v3810_v6 }
  0xe4 LB: > { %v6946_v1 = vld [vmem:[#allocation84_spill] sm:$0xff]  ;;  %v3818_v7 = vstv %s3620_s3  ;;  %v3821_v8 = vstv %s3622_s18  ;;  %v3824_v9 = vstv %s3624_s19  ;;  %v3827_v10 = vstv %s3626_s20  ;;  %s2869_s7 = sshll.u32 %s3554_s14, 5  ;;  %s6963_s2 = sld [smem:[#allocation14_spill]]  ;;  %s3554_s14 = sphi %s3812_s14, %s200_s14  }
  0xe5   : > { %v3830_v11 = vstv %s3628_s21  ;;  %v3833_v12 = vstv %s3630_s22  ;;  %v3837_v13 = vstv %s3632_s23  ;;  %v3840_v14 = vstv %s3634_s24  ;;  %s3848_s16 = scalar_lea.vmem %s6581_s4, %s2869_s7  ;;  %s3867_s17 = scalar_lea.vmem [#allocation2], %s2869_s7 }
  0xe6   : > { %v3843_v15 = vstv %s3638_s26  ;;  %v3851_v16 = vstv %s3636_s25  ;;  %v3854_v17 = vstv %s3640_s27  ;;  %v3857_v18 = vstv %s3642_s28  ;;  %s200_s14 = sadd.s32 1, %s3554_s14  }
  0xe7   : > { %v3860_v19 = vstv %s3644_s29  ;;  %v203_v20 = vld [vmem:[%s3848_s16] sm:$0xff]  ;;  %v3565_v23 = vmov 0.0   ;;  %v3874_v24 = vstv %s3646_s30  ;;  %v3889_v31 = vstv %s3648_s8  ;;  %p197_p6 = scmp.ge.s32.totalorder %s200_s14, 28  }
  0xe8   : > { %v207_v21 = vld [vmem:[%s3848_s16 + $0x1] sm:$0xff]  ;;  %2901 = vst [vmem:[%s3867_s17 + $0x20] sm:$0x1] %v3565_v23  ;;  %2902 = vst [vmem:[%s3867_s17 + $0x3d] sm:$0x1] %v3565_v23  ;;  %v246_v28 = vmul.f32 %v3818_v7, %v203_v20  ;;  %v338_v30 = vmul.f32 %v3843_v15, %v203_v20  ;;  %v3905_v37 = vstv %s3650_s9  ;;  %s4161_s7 = smov (%p197_p6), 0  }
  0xe9   : > { %v3865_v22 = vld [vmem:[%s3848_s16 + $0x2] sm:$0xff]  ;;  %2908 = vst [vmem:[%s3867_s17 + $0x3e0] sm:$0x1] %v3565_v23  ;;  %2909 = vst [vmem:[%s3867_s17 + $0x3fd] sm:$0x1] %v3565_v23  ;;  %v255_v29 = vmul.f32 %v3821_v8, %v207_v21  ;;  %v3919_v43 = vld [vmem:[%s3848_s16 + $0xa] sm:$0xff]  ;;  %v3922_v44 = vmul.f32 %v3854_v17, %v207_v21 }
  0xea   : > { %v3877_v25 = vld [vmem:[%s3848_s16 + $0x20] sm:$0xff]  ;;  %v264_v35 = vmul.f32 %v3824_v9, %v3865_v22  ;;  %v250_v38 = vadd.f32 %v246_v28, %v6946_v1  ;;  %v3913_v41 = vld [vmem:[%s3848_s16 + $0x8] sm:$0xff]  ;;  %6949 = vst [vmem:[#allocation91_spill] sm:$0xff] %v3919_v43  ;;  %v265_v57 = vmul.f32 %v3824_v9, %v3919_v43  ;;  %v342_v58 = vadd.f32 %v338_v30, %v3802_v2  ;;  %v3969_v63 = vld [vmem:[%s3848_s16 + $0x10] sm:$0xff] }
  0xeb   : > { %v3880_v26 = vld [vmem:[%s3848_s16 + $0x21] sm:$0xff]  ;;  %v273_v36 = vmul.f32 %v3877_v25, %v3827_v10  ;;  %v3916_v42 = vld [vmem:[%s3848_s16 + $0x9] sm:$0xff]  ;;  %v247_v50 = vmul.f32 %v3818_v7, %v3913_v41  ;;  %6956 = vst [vmem:[#allocation98_spill] sm:$0xff] %v3969_v63  ;;  %v3972_v0 = vld [vmem:[%s3848_s16 + $0x11] sm:$0xff] }
  0xec   : > { %v3883_v27 = vld [vmem:[%s3848_s16 + $0x22] sm:$0xff]  ;;  %v282_v39 = vmul.f32 %v3880_v26, %v3830_v11  ;;  %v3939_v49 = vld [vmem:[%s3848_s16 + $0x2a] sm:$0xff]  ;;  %v256_v51 = vmul.f32 %v3821_v8, %v3916_v42  ;;  %v259_v52 = vadd.f32 %v255_v29, %v250_v38  ;;  %6957 = vst [vmem:[#allocation99_spill] sm:$0xff] %v3972_v0  ;;  %v3975_v20 = vld [vmem:[%s3848_s16 + $0x12] sm:$0xff]  ;;  %v248_v38 = vmul.f32 %v3818_v7, %v3969_v63 }
  0xed   : > { %v3892_v32 = vld [vmem:[%s3848_s16 + $0x40] sm:$0xff]  ;;  %v291_v40 = vmul.f32 %v3883_v27, %v3833_v12  ;;  %v3933_v47 = vld [vmem:[%s3848_s16 + $0x28] sm:$0xff]  ;;  %6952 = vst [vmem:[#allocation94_spill] sm:$0xff] %v3939_v49  ;;  %v251_v59 = vadd.f32 %v247_v50, %v6946_v1  ;;  %v292_v62 = vmul.f32 %v3939_v49, %v3833_v12  ;;  %6958 = vst [vmem:[#allocation100_spill] sm:$0xff] %v3975_v20 }
  0xee   : > { %v3895_v33 = vld [vmem:[%s3848_s16 + $0x41] sm:$0xff]  ;;  %v3926_v45 = vmul.f32 %v3892_v32, %v3837_v13  ;;  %6950 = vst [vmem:[#allocation92_spill] sm:$0xff] %v3933_v47  ;;  %v3936_v48 = vld [vmem:[%s3848_s16 + $0x29] sm:$0xff]  ;;  %v274_v60 = vmul.f32 %v3933_v47, %v3827_v10  ;;  %v268_v21 = vadd.f32 %v264_v35, %v259_v52  ;;  %v3983_v29 = vld [vmem:[%s3848_s16 + $0x31] sm:$0xff]  ;;  %v257_v50 = vmul.f32 %v3821_v8, %v3972_v0 }
  0xef   : > { %6947 = vst [vmem:[#allocation89_spill] sm:$0xff] %v3895_v33  ;;  %v3898_v34 = vld [vmem:[%s3848_s16 + $0x42] sm:$0xff]  ;;  %v3930_v46 = vmul.f32 %v3895_v33, %v3840_v14  ;;  %6951 = vst [vmem:[#allocation93_spill] sm:$0xff] %v3936_v48  ;;  %v3956_v56 = vld [vmem:[%s3848_s16 + $0x4a] sm:$0xff]  ;;  %v283_v61 = vmul.f32 %v3936_v48, %v3830_v11  ;;  %v260_v6 = vadd.f32 %v256_v51, %v251_v59 }
  0xf0   : > { %6948 = vst [vmem:[#allocation90_spill] sm:$0xff] %v3898_v34  ;;  %v3947_v53 = vmul.f32 %v3898_v34, %v3851_v16  ;;  %v3950_v54 = vld [vmem:[%s3848_s16 + $0x48] sm:$0xff]  ;;  %6955 = vst [vmem:[#allocation97_spill] sm:$0xff] %v3956_v56  ;;  %v3980_v28 = vld [vmem:[%s3848_s16 + $0x30] sm:$0xff]  ;;  %v3996_v52 = vmul.f32 %v3956_v56, %v3851_v16  ;;  %v277_v0 = vadd.f32 %v273_v36, %v268_v21 }
  0xf1   : > { %6953 = vst [vmem:[#allocation95_spill] sm:$0xff] %v3950_v54  ;;  %v3953_v55 = vld [vmem:[%s3848_s16 + $0x49] sm:$0xff]  ;;  %v301_v23 = vmul.f32 %v3950_v54, %v3837_v13  ;;  %6959 = vst [vmem:[#allocation101_spill] sm:$0xff] %v3980_v28  ;;  %v3986_v30 = vld [vmem:[%s3848_s16 + $0x32] sm:$0xff]  ;;  %v266_v54 = vmul.f32 %v3824_v9, %v3975_v20  ;;  %v252_v51 = vadd.f32 %v248_v38, %v6946_v1 }
  0xf2   : > { %6954 = vst [vmem:[#allocation96_spill] sm:$0xff] %v3953_v55  ;;  %6960 = vst [vmem:[#allocation102_spill] sm:$0xff] %v3983_v29  ;;  %v310_v35 = vmul.f32 %v3953_v55, %v3840_v14  ;;  %v3999_v5 = vld [vmem:[%s3848_s16 + $0x50] sm:$0xff]  ;;  %v275_v59 = vmul.f32 %v3980_v28, %v3827_v10  ;;  %v284_v56 = vmul.f32 %v3983_v29, %v3830_v11  ;;  %v4015_v55 = vld [vmem:[%s3848_s16 + $0x18] sm:$0xf] }
  0xf3   : > { %6961 = vst [vmem:[#allocation103_spill] sm:$0xff] %v3986_v30  ;;  %v4002_v4 = vld [vmem:[%s3848_s16 + $0x51] sm:$0xff]  ;;  %v4018_v49 = vld [vmem:[%s3848_s16 + $0x19] sm:$0xf]  ;;  %v269_v48 = vadd.f32 %v265_v57, %v260_v6  ;;  %v293_v20 = vmul.f32 %v3986_v30, %v3833_v12  ;;  %v249_v38 = vmul.f32 %v3818_v7, %v4015_v55  ;;  %v286_v28 = vadd.f32 %v282_v39, %v277_v0 }
  0xf4   : > { %6962 = vst [vmem:[#allocation104_spill] sm:$0xff] %v4002_v4  ;;  %v4005_v3 = vld [vmem:[%s3848_s16 + $0x52] sm:$0xff]  ;;  %v4021_v63 = vld [vmem:[%s3848_s16 + $0x1a] sm:$0xf]  ;;  %v258_v29 = vmul.f32 %v3821_v8, %v4018_v49  ;;  %v261_v34 = vadd.f32 %v257_v50, %v252_v51  ;;  %v302_v6 = vmul.f32 %v3999_v5, %v3837_v13  ;;  %v311_v57 = vmul.f32 %v4002_v4, %v3840_v14 }
  0xf5   : > { %v4026_v36 = vld [vmem:[%s3848_s16 + $0x38] sm:$0xf]  ;;  %v278_v47 = vadd.f32 %v274_v60, %v269_v48  ;;  %v320_v33 = vmul.f32 %v4005_v3, %v3851_v16  ;;  %v253_v43 = vadd.f32 %v249_v38, %v6946_v1  ;;  %v267_v7 = vmul.f32 %v3824_v9, %v4021_v63 }
  0xf6   : > { %v4029_v21 = vld [vmem:[%s3848_s16 + $0x39] sm:$0xf]  ;;  %v295_v8 = vadd.f32 %v291_v40, %v286_v28  ;;  %v270_v39 = vadd.f32 %v266_v54, %v261_v34  ;;  %v276_v51 = vmul.f32 %v4026_v36, %v3827_v10  ;;  %v351_v1 = vadd.f32 %v3922_v44, %v342_v58 }
  0xf7   : > { %v4040_v30 = vld [vmem:[%s3848_s16 + $0x3a] sm:$0xf]  ;;  %v285_v48 = vmul.f32 %v4029_v21, %v3830_v11  ;;  %v287_v60 = vadd.f32 %v283_v61, %v278_v47  ;;  %v262_v4 = vadd.f32 %v258_v29, %v253_v43  ;;  %v356_v40 = vmul.f32 %v3857_v18, %v3865_v22 }
  0xf8   : > { %v4048_v0 = vld [vmem:[%s3848_s16 + $0x58] sm:$0xf]  ;;  %v294_v38 = vmul.f32 %v4040_v30, %v3833_v12  ;;  %v304_v9 = vadd.f32 %v3926_v45, %v295_v8  ;;  %v279_v34 = vadd.f32 %v275_v59, %v270_v39  ;;  %v365_v54 = vmul.f32 %v3877_v25, %v3860_v19 }
  0xf9   : > { %v4051_v50 = vld [vmem:[%s3848_s16 + $0x59] sm:$0xf]  ;;  %v296_v10 = vadd.f32 %v292_v62, %v287_v60  ;;  %v271_v28 = vadd.f32 %v267_v7, %v262_v4  ;;  %v303_v11 = vmul.f32 %v4048_v0, %v3837_v13  ;;  %v360_v45 = vadd.f32 %v356_v40, %v351_v1 }
  0xfa   : > { %v312_v12 = vmul.f32 %v4051_v50, %v3840_v14  ;;  %v313_v43 = vadd.f32 %v3930_v46, %v304_v9  ;;  %v288_v44 = vadd.f32 %v284_v56, %v279_v34  ;;  %v374_v22 = vmul.f32 %v3880_v26, %v3874_v24  ;;  %v4081_v1 = vld [vmem:[%s3848_s16 + $0x5a] sm:$0xf] }
  0xfb   : > { %v305_v47 = vadd.f32 %v301_v23, %v296_v10  ;;  %v280_v25 = vadd.f32 %v276_v51, %v271_v28  ;;  %v383_v4 = vmul.f32 %v3883_v27, %v3889_v31  ;;  %v392_v58 = vmul.f32 %v3892_v32, %v3905_v37  ;;  %v6964_v7 = vld [vmem:[#allocation91_spill] sm:$0xff] }
  0xfc   : > { %v322_v13 = vadd.f32 %v3947_v53, %v313_v43  ;;  %v297_v61 = vadd.f32 %v293_v20, %v288_v44  ;;  %v369_v14 = vadd.f32 %v365_v54, %v360_v45  ;;  %v4078_v62 = vstv %s3652_s1  ;;  %v6967_v54 = vld [vmem:[#allocation90_spill] sm:$0xff] }
  0xfd   : > { %v314_v46 = vadd.f32 %v310_v35, %v305_v47  ;;  %v289_v56 = vadd.f32 %v285_v48, %v280_v25  ;;  %v4084_v26 = vstv %s6963_s2  ;;  %v339_v23 = vmul.f32 %v3843_v15, %v3913_v41  ;;  %v6969_v44 = vld [vmem:[#allocation98_spill] sm:$0xff] }
  0xfe   : > { %v326_v27 = vmax.f32 %v322_v13, 0.0  ;;  %v306_v29 = vadd.f32 %v302_v6, %v297_v61  ;;  %v378_v59 = vadd.f32 %v374_v22, %v369_v14  ;;  %v348_v32 = vmul.f32 %v3854_v17, %v3916_v42  ;;  %v6965_v6 = vld [vmem:[#allocation89_spill] sm:$0xff]  ;;  %v6970_v47 = vld [vmem:[#allocation94_spill] sm:$0xff]  ;;  %v6972_v61 = vld [vmem:[#allocation100_spill] sm:$0xff] }
  0xff   : > { %v323_v53 = vadd.f32 %v3996_v52, %v314_v46  ;;  %v298_v20 = vadd.f32 %v294_v38, %v289_v56  ;;  %v343_v35 = vadd.f32 %v339_v23, %v3802_v2  ;;  %v357_v8 = vmul.f32 %v3857_v18, %v6964_v7  ;;  %v6966_v52 = vld [vmem:[#allocation92_spill] sm:$0xff]  ;;  %v6973_v56 = vld [vmem:[#allocation95_spill] sm:$0xff] }
 0x100   : > { %2897 = vst [vmem:[%s3867_s17 + $0x21] sm:$0xff] %v326_v27  ;;  %v315_v39 = vadd.f32 %v311_v57, %v306_v29  ;;  %v321_v41 = vmul.f32 %v4081_v1, %v3851_v16  ;;  %v387_v51 = vadd.f32 %v383_v4, %v378_v59  ;;  %v401_v48 = vmul.f32 %v6965_v6, %v4078_v62  ;;  %v6968_v16 = vld [vmem:[#allocation93_spill] sm:$0xff]  ;;  %v6976_v6 = vld [vmem:[#allocation102_spill] sm:$0xff] }
 0x101   : > { %v327_v60 = vmax.f32 %v323_v53, 0.0  ;;  %v307_v42 = vadd.f32 %v303_v11, %v298_v20  ;;  %v352_v9 = vadd.f32 %v348_v32, %v343_v35  ;;  %v366_v38 = vmul.f32 %v6966_v52, %v3860_v19  ;;  %v6974_v32 = vld [vmem:[#allocation101_spill] sm:$0xff] }
 0x102   : > { %v324_v34 = vadd.f32 %v320_v33, %v315_v39  ;;  %v396_v40 = vadd.f32 %v392_v58, %v387_v51  ;;  %v410_v10 = vmul.f32 %v6967_v54, %v4084_v26  ;;  %v375_v43 = vmul.f32 %v6968_v16, %v3874_v24  ;;  %v6971_v33 = vld [vmem:[#allocation99_spill] sm:$0xff]  ;;  %v6975_v39 = vld [vmem:[#allocation96_spill] sm:$0xff] }
 0x103   : > { %2898 = vst [vmem:[%s3867_s17 + $0x29] sm:$0xff] %v327_v60  ;;  %v316_v57 = vadd.f32 %v312_v12, %v307_v42  ;;  %v361_v28 = vadd.f32 %v357_v8, %v352_v9  ;;  %v340_v45 = vmul.f32 %v3843_v15, %v6969_v44  ;;  %v384_v25 = vmul.f32 %v6970_v47, %v3889_v31  ;;  %v6979_v16 = vld [vmem:[#allocation104_spill] sm:$0xff] }
 0x104   : > { %v328_v11 = vmax.f32 %v324_v34, 0.0  ;;  %v405_v22 = vadd.f32 %v401_v48, %v396_v40  ;;  %v349_v4 = vmul.f32 %v3854_v17, %v6971_v33  ;;  %v358_v14 = vmul.f32 %v3857_v18, %v6972_v61 }
 0x105   : > { %v325_v58 = vadd.f32 %v321_v41, %v316_v57  ;;  %v370_v13 = vadd.f32 %v366_v38, %v361_v28  ;;  %v344_v12 = vadd.f32 %v340_v45, %v3802_v2  ;;  %v393_v23 = vmul.f32 %v6973_v56, %v3905_v37 }
 0x106   : > { %2899 = vst [vmem:[%s3867_s17 + $0x31] sm:$0xff] %v328_v11  ;;  %v414_v46 = vadd.f32 %v410_v10, %v405_v22  ;;  %v367_v53 = vmul.f32 %v6974_v32, %v3860_v19  ;;  %v341_v35 = vmul.f32 %v3843_v15, %v4015_v55  ;;  %v350_v7 = vmul.f32 %v3854_v17, %v4018_v49  ;;  %v6977_v15 = vld [vmem:[#allocation97_spill] sm:$0xff]  ;;  %v6978_v49 = vld [vmem:[#allocation103_spill] sm:$0xff] }
 0x107   : > { %v329_v27 = vmax.f32 %v325_v58, 0.0  ;;  %v379_v29 = vadd.f32 %v375_v43, %v370_v13  ;;  %v353_v59 = vadd.f32 %v349_v4, %v344_v12  ;;  %v402_v41 = vmul.f32 %v6975_v39, %v4078_v62 }
 0x108   : > { %v418_v20 = vmax.f32 %v414_v46, 0.0  ;;  %v376_v48 = vmul.f32 %v6976_v6, %v3874_v24  ;;  %v345_v60 = vadd.f32 %v341_v35, %v3802_v2  ;;  %v359_v42 = vmul.f32 %v3857_v18, %v4021_v63 }
 0x109   : > { %2900 = vst [vmem:[%s3867_s17 + $0x39] sm:$0xf] %v329_v27  ;;  %v388_v8 = vadd.f32 %v384_v25, %v379_v29  ;;  %v362_v51 = vadd.f32 %v358_v14, %v353_v59  ;;  %v411_v55 = vmul.f32 %v6977_v15, %v4084_v26  ;;  %v385_v52 = vmul.f32 %v6978_v49, %v3889_v31 }
 0x10a   : > { %2904 = vst [vmem:[%s3867_s17 + $0x3e1] sm:$0xff] %v418_v20  ;;  %v354_v38 = vadd.f32 %v350_v7, %v345_v60  ;;  %v368_v34 = vmul.f32 %v4026_v36, %v3860_v19  ;;  %v394_v10 = vmul.f32 %v3999_v5, %v3905_v37  ;;  %v377_v18 = vmul.f32 %v4029_v21, %v3874_v24 }
 0x10b   : > { %v397_v9 = vadd.f32 %v393_v23, %v388_v8  ;;  %v371_v17 = vadd.f32 %v367_v53, %v362_v51  ;;  %v403_v43 = vmul.f32 %v6979_v16, %v4078_v62  ;;  %v386_v19 = vmul.f32 %v4040_v30, %v3889_v31 }
 0x10c   : > { %v363_v57 = vadd.f32 %v359_v42, %v354_v38  ;;  %v412_v5 = vmul.f32 %v4005_v3, %v4084_v26  ;;  %v395_v24 = vmul.f32 %v4048_v0, %v3905_v37  ;;  %v404_v47 = vmul.f32 %v4051_v50, %v4078_v62 }
 0x10d   : > { %v406_v40 = vadd.f32 %v402_v41, %v397_v9  ;;  %v380_v54 = vadd.f32 %v376_v48, %v371_v17  ;;  %v413_v31 = vmul.f32 %v4081_v1, %v4084_v26 }
 0x10e   : > { %v372_v44 = vadd.f32 %v368_v34, %v363_v57 }
 0x10f   : > { %v415_v63 = vadd.f32 %v411_v55, %v406_v40  ;;  %v389_v28 = vadd.f32 %v385_v52, %v380_v54 }
 0x110   : > { %v381_v11 = vadd.f32 %v377_v18, %v372_v44 }
 0x111   : > { %v419_v36 = vmax.f32 %v415_v63, 0.0  ;;  %v398_v45 = vadd.f32 %v394_v10, %v389_v28 }
 0x112   : > { %v390_v22 = vadd.f32 %v386_v19, %v381_v11 }
 0x113   : > { %2905 = vst [vmem:[%s3867_s17 + $0x3e9] sm:$0xff] %v419_v36  ;;  %v407_v21 = vadd.f32 %v403_v43, %v398_v45 }
 0x114   : > { %v399_v33 = vadd.f32 %v395_v24, %v390_v22 }
 0x115   : > { %v416_v25 = vadd.f32 %v412_v5, %v407_v21 }
 0x116   : > { %v408_v4 = vadd.f32 %v404_v47, %v399_v33 }
 0x117   : > { %v420_v30 = vmax.f32 %v416_v25, 0.0 }
 0x118   : > { %v417_v58 = vadd.f32 %v413_v31, %v408_v4  ;;  %199 = sbr.rel (!%p197_p6) target bundleno = 228 (0xe4), region = 98 }
 0x119   : > { %2906 = vst [vmem:[%s3867_s17 + $0x3f1] sm:$0xff] %v420_v30 }
 0x11a   : > { %v421_v3 = vmax.f32 %v417_v58, 0.0 }
 0x11c   : > { %2907 = vst [vmem:[%s3867_s17 + $0x3f9] sm:$0xf] %v421_v3 }
 0x11d LB: > { %s6980_s0 = sld [smem:[#allocation15_spill]]  ;;  %s3064_s13 = sshll.u32 %s3558_s7, 6  ;;  %v7001_v20 = vld [vmem:[#allocation85_spill] sm:$0xff]  ;;  %s3558_s7 = sphi %s4161_s7, %s434_s7  }
 0x11e   : > { %s6981_s10 = sld [smem:[#allocation16_spill]]  ;;  %s4179_s3 = scalar_lea.vmem [#allocation2], %s3064_s13 }
 0x11f   : > { %s6982_s16 = sld [smem:[#allocation17_spill]]  ;;  %s3009_s27 = sshll.u32 %s3558_s7, 5 }
 0x120   : > { %s6983_s2 = sld [smem:[#allocation18_spill]]  ;;  %s4629_s28 = scalar_lea.vmem [#allocation3], %s3009_s27 }
 0x121   : > { %s6984_s15 = sld [smem:[#allocation19_spill]]  ;;  %s434_s7 = sadd.s32 1, %s3558_s7  }
 0x122   : > { %s6985_s17 = sld [smem:[#allocation20_spill]]  ;;  %p431_p7 = scmp.ge.s32.totalorder %s434_s7, 14  }
 0x123   : > { %s6986_s12 = sld [smem:[#allocation21_spill]]  ;;  %v4168_v37 = vstv %s6980_s0  ;;  %v4182_v62 = vld [vmem:[%s4179_s3] sm:$0xff]  ;;  %v4293_v24 = vld [vmem:[%s4179_s3 + $0x8] sm:$0xff] }
 0x124   : > { %s6987_s14 = sld [smem:[#allocation22_spill]]  ;;  %v4171_v0 = vstv %s6981_s10  ;;  %v4185_v1 = vld [vmem:[%s4179_s3 + $0x1] sm:$0xff]  ;;  %v548_v46 = vmul.f32 %v4168_v37, %v4182_v62  ;;  %7010 = vst [vmem:[#allocation116_spill] sm:$0xff] %v4293_v24  ;;  %v4310_v30 = vld [vmem:[%s4179_s3 + $0x9] sm:$0xff] }
 0x125   : > { %s6988_s4 = sld [smem:[#allocation23_spill]]  ;;  %v4174_v2 = vstv %s6982_s16  ;;  %v4188_v26 = vld [vmem:[%s4179_s3 + $0x2] sm:$0xff]  ;;  %v557_v56 = vmul.f32 %v4171_v0, %v4185_v1  ;;  %7013 = vst [vmem:[#allocation119_spill] sm:$0xff] %v4310_v30 }
 0x126   : > { %v4177_v50 = vstv %s6983_s2  ;;  %s6989_s18 = sld [smem:[#allocation24_spill]]  ;;  %6990 = vst [vmem:[#allocation105_spill] sm:$0xff] %v4188_v26  ;;  %v4194_v12 = vld [vmem:[%s4179_s3 + $0x20] sm:$0xff]  ;;  %v552_v35 = vadd.f32 %v548_v46, %v7001_v20  ;;  %v566_v7 = vmul.f32 %v4174_v2, %v4188_v26 }
 0x127   : > { %s6991_s19 = sld [smem:[#allocation25_spill]]  ;;  %v4191_v13 = vstv %s6984_s15  ;;  %6993 = vst [vmem:[#allocation106_spill] sm:$0xff] %v4194_v12  ;;  %v4197_v61 = vld [vmem:[%s4179_s3 + $0x21] sm:$0xff]  ;;  %v713_v32 = vmul.f32 %v4194_v12, %v4168_v37  ;;  %v575_v9 = vmul.f32 %v4194_v12, %v4177_v50 }
 0x128   : > { %s6992_s20 = sld [smem:[#allocation26_spill]]  ;;  %6994 = vst [vmem:[#allocation107_spill] sm:$0xff] %v4197_v61  ;;  %v4200_v14 = vld [vmem:[%s4179_s3 + $0x22] sm:$0xff]  ;;  %v4207_v23 = vstv %s6985_s17  ;;  %v721_v6 = vmul.f32 %v4197_v61, %v4171_v0  ;;  %v561_v42 = vadd.f32 %v557_v56, %v552_v35  ;;  %v584_v57 = vmul.f32 %v4197_v61, %v4191_v13  ;;  %v4331_v35 = vld [vmem:[%s4179_s3 + $0xa] sm:$0xff] }
 0x129   : > { %6995 = vst [vmem:[#allocation108_spill] sm:$0xff] %v4200_v14  ;;  %v4210_v27 = vstv %s6986_s12  ;;  %s6996_s21 = sld [smem:[#allocation27_spill]]  ;;  %v4221_v53 = vld [vmem:[%s4179_s3 + $0x40] sm:$0xff]  ;;  %v717_v51 = vadd.f32 %v713_v32, %v7001_v20  ;;  %v729_v48 = vmul.f32 %v4200_v14, %v4174_v2  ;;  %v593_v28 = vmul.f32 %v4200_v14, %v4207_v23  ;;  %7016 = vst [vmem:[#allocation122_spill] sm:$0xff] %v4331_v35  ;;  %v4469_v14 = vld [vmem:[%s4179_s3 + $0x3e9] sm:$0xff] }
 0x12a   : > { %v4213_v29 = vstv %s6987_s14  ;;  %s6997_s22 = sld [smem:[#allocation28_spill]]  ;;  %7000 = vst [vmem:[#allocation109_spill] sm:$0xff] %v4221_v53  ;;  %v4241_v60 = vld [vmem:[%s4179_s3 + $0x41] sm:$0xff]  ;;  %v737_v38 = vmul.f32 %v4221_v53, %v4177_v50  ;;  %v570_v10 = vadd.f32 %v566_v7, %v561_v42  ;;  %v602_v45 = vmul.f32 %v4221_v53, %v4210_v27 }
 0x12b   : > { %v4216_v59 = vstv %s6988_s4  ;;  %s6998_s23 = sld [smem:[#allocation29_spill]]  ;;  %7003 = vst [vmem:[#allocation110_spill] sm:$0xff] %v4241_v60  ;;  %v725_v52 = vadd.f32 %v721_v6, %v717_v51  ;;  %v4260_v34 = vld [vmem:[%s4179_s3 + $0x42] sm:$0xff]  ;;  %v745_v44 = vmul.f32 %v4241_v60, %v4191_v13  ;;  %v611_v5 = vmul.f32 %v4241_v60, %v4213_v29 }
 0x12c   : > { %s6999_s24 = sld [smem:[#allocation30_spill]]  ;;  %v4227_v8 = vstv %s6989_s18  ;;  %7005 = vst [vmem:[#allocation111_spill] sm:$0xff] %v4260_v34  ;;  %v4263_v40 = vld [vmem:[%s4179_s3 + $0x3c0] sm:$0xff]  ;;  %v579_v36 = vadd.f32 %v575_v9, %v570_v10  ;;  %v620_v11 = vmul.f32 %v4260_v34, %v4216_v59  ;;  %v753_v31 = vmul.f32 %v4260_v34, %v4207_v23  ;;  %v4437_v34 = vld [vmem:[%s4179_s3 + $0x3c8] sm:$0xff] }
 0x12d   : > { %v4230_v39 = vstv %s6991_s19  ;;  %s7002_s25 = sld [smem:[#allocation31_spill]]  ;;  %7006 = vst [vmem:[#allocation112_spill] sm:$0xff] %v4263_v40  ;;  %v4266_v54 = vld [vmem:[%s4179_s3 + $0x3c1] sm:$0xff]  ;;  %v733_v43 = vadd.f32 %v729_v48, %v725_v52  ;;  %v629_v47 = vmul.f32 %v4263_v40, %v4227_v8  ;;  %v549_v52 = vmul.f32 %v4168_v37, %v4293_v24  ;;  %7029 = vst [vmem:[#allocation135_spill] sm:$0xff] %v4437_v34 }
 0x12e   : > { %v4233_v41 = vstv %s6992_s20  ;;  %s7004_s26 = sld [smem:[#allocation32_spill]]  ;;  %7007 = vst [vmem:[#allocation113_spill] sm:$0xff] %v4266_v54  ;;  %v4274_v63 = vld [vmem:[%s4179_s3 + $0x3c2] sm:$0xff]  ;;  %v4305_v25 = vmul.f32 %v4266_v54, %v4230_v39  ;;  %v588_v3 = vadd.f32 %v584_v57, %v579_v36 }
 0x12f   : > { %v4246_v15 = vstv %s6996_s21  ;;  %7008 = vst [vmem:[#allocation114_spill] sm:$0xff] %v4274_v63  ;;  %v4284_v19 = vld [vmem:[%s4179_s3 + $0x60] sm:$0xff]  ;;  %v741_v33 = vadd.f32 %v737_v38, %v733_v43  ;;  %v4320_v46 = vmul.f32 %v4274_v63, %v4233_v41  ;;  %v558_v43 = vmul.f32 %v4171_v0, %v4310_v30  ;;  %s7080_s29 = sld [smem:[#allocation33_spill]] }
 0x130   : > { %v4249_v55 = vstv %s6997_s22  ;;  %7009 = vst [vmem:[#allocation115_spill] sm:$0xff] %v4284_v19  ;;  %v4296_v21 = vld [vmem:[%s4179_s3 + $0x3e0] sm:$0xff]  ;;  %v761_v9 = vmul.f32 %v4284_v19, %v4210_v27  ;;  %v597_v38 = vadd.f32 %v593_v28, %v588_v3  ;;  %v553_v19 = vadd.f32 %v549_v52, %v7001_v20  ;;  %s7081_s30 = sld [smem:[#allocation34_spill]] }
 0x131   : > { %v4252_v17 = vstv %s6998_s23  ;;  %7011 = vst [vmem:[#allocation117_spill] sm:$0xff] %v4296_v21  ;;  %v4299_v22 = vld [vmem:[%s4179_s3 + $0x3e1] sm:$0xff]  ;;  %v4324_v56 = vmul.f32 %v4296_v21, %v4246_v15  ;;  %v749_v42 = vadd.f32 %v745_v44, %v741_v33  ;;  %v567_v28 = vmul.f32 %v4174_v2, %v4331_v35  ;;  %s7082_s8 = sld [smem:[#allocation35_spill]] }
 0x132   : > { %v4255_v49 = vstv %s6999_s24  ;;  %7012 = vst [vmem:[#allocation118_spill] sm:$0xff] %v4299_v22  ;;  %v4313_v4 = vld [vmem:[%s4179_s3 + $0x61] sm:$0xff]  ;;  %v4328_v32 = vmul.f32 %v4299_v22, %v4249_v55  ;;  %v606_v3 = vadd.f32 %v602_v45, %v597_v38  ;;  %v793_v45 = vmul.f32 %v4299_v22, %v4230_v39  ;;  %s7084_s9 = sld [smem:[#allocation36_spill]] }
 0x133   : > { %v4271_v18 = vstv %s7002_s25  ;;  %7014 = vst [vmem:[#allocation120_spill] sm:$0xff] %v4313_v4  ;;  %v4316_v58 = vld [vmem:[%s4179_s3 + $0x3e2] sm:$0xff]  ;;  %v757_v36 = vadd.f32 %v753_v31, %v749_v42  ;;  %v769_v33 = vmul.f32 %v4313_v4, %v4213_v29  ;;  %v785_v31 = vmul.f32 %v4296_v21, %v4227_v8  ;;  %s7086_s1 = sld [smem:[#allocation37_spill]] }
 0x134   : > { %v4279_v16 = vstv %s7004_s26  ;;  %7015 = vst [vmem:[#allocation121_spill] sm:$0xff] %v4316_v58  ;;  %v4334_v7 = vld [vmem:[%s4179_s3 + $0x62] sm:$0xff]  ;;  %v4344_v48 = vmul.f32 %v4316_v58, %v4252_v17  ;;  %v562_v38 = vadd.f32 %v558_v43, %v553_v19  ;;  %v615_v54 = vadd.f32 %v611_v5, %v606_v3  ;;  %v4408_v43 = vld [vmem:[%s4179_s3 + $0x2a] sm:$0xff]  ;;  %s7087_s12 = sld [smem:[#allocation38_spill]] }
 0x135   : > { %7017 = vst [vmem:[#allocation123_spill] sm:$0xff] %v4334_v7  ;;  %v4337_v51 = vld [vmem:[%s4179_s3 + $0x400] sm:$0xff]  ;;  %v777_v30 = vmul.f32 %v4334_v7, %v4216_v59  ;;  %v4377_v42 = vld [vmem:[%s4179_s3 + $0x28] sm:$0xff]  ;;  %v765_v35 = vadd.f32 %v761_v9, %v757_v36  ;;  %v801_v7 = vmul.f32 %v4316_v58, %v4233_v41  ;;  %7026 = vst [vmem:[#allocation132_spill] sm:$0xff] %v4408_v43  ;;  %s7092_s13 = sld [smem:[#allocation39_spill]] }
 0x136   : > { %7018 = vst [vmem:[#allocation124_spill] sm:$0xff] %v4337_v51  ;;  %v4340_v6 = vld [vmem:[%s4179_s3 + $0x401] sm:$0xff]  ;;  %v4352_v10 = vmul.f32 %v4337_v51, %v4255_v49  ;;  %7021 = vst [vmem:[#allocation127_spill] sm:$0xff] %v4377_v42  ;;  %v576_v63 = vmul.f32 %v4377_v42, %v4177_v50  ;;  %v809_v21 = vmul.f32 %v4337_v51, %v4246_v15  ;;  %v4398_v9 = vld [vmem:[%s4179_s3 + $0x29] sm:$0xff]  ;;  %s7093_s15 = sld [smem:[#allocation40_spill]] }
 0x137   : > { %7019 = vst [vmem:[#allocation125_spill] sm:$0xff] %v4340_v6  ;;  %v4356_v57 = vmul.f32 %v4340_v6, %v4271_v18  ;;  %v4361_v44 = vld [vmem:[%s4179_s3 + $0x402] sm:$0xff]  ;;  %v4395_v40 = vmul.f32 %v4340_v6, %v4249_v55  ;;  %7024 = vst [vmem:[#allocation130_spill] sm:$0xff] %v4398_v9  ;;  %v773_v19 = vadd.f32 %v769_v33, %v765_v35  ;;  %s7096_s0 = sld [smem:[#allocation41_spill]] }
 0x138   : > { %7020 = vst [vmem:[#allocation126_spill] sm:$0xff] %v4361_v44  ;;  %v4370_v24 = vmul.f32 %v4361_v44, %v4279_v16  ;;  %v4380_v52 = vld [vmem:[%s4179_s3 + $0x420] sm:$0xff]  ;;  %v4405_v5 = vmul.f32 %v4361_v44, %v4252_v17  ;;  %v571_v3 = vadd.f32 %v567_v28, %v562_v38  ;;  %v585_v51 = vmul.f32 %v4398_v9, %v4191_v13  ;;  %v4423_v22 = vld [vmem:[%s4179_s3 + $0x48] sm:$0xff]  ;;  %s7097_s10 = sld [smem:[#allocation42_spill]] }
 0x139   : > { %7022 = vst [vmem:[#allocation128_spill] sm:$0xff] %v4380_v52  ;;  %v4383_v4 = vld [vmem:[%s4179_s3 + $0x421] sm:$0xff]  ;;  %v624_v6 = vadd.f32 %v620_v11, %v615_v54  ;;  %v4414_v58 = vmul.f32 %v4380_v52, %v4255_v49  ;;  %v714_v33 = vmul.f32 %v4377_v42, %v4168_v37  ;;  %v781_v44 = vadd.f32 %v777_v30, %v773_v19  ;;  %v4440_v42 = vld [vmem:[%s4179_s3 + $0x3c9] sm:$0xff]  ;;  %s7101_s16 = sld [smem:[#allocation43_spill]] }
 0x13a   : > { %7023 = vst [vmem:[#allocation129_spill] sm:$0xff] %v4383_v4  ;;  %v4401_v36 = vld [vmem:[%s4179_s3 + $0x422] sm:$0xff]  ;;  %v4418_v35 = vmul.f32 %v4383_v4, %v4271_v18  ;;  %7027 = vst [vmem:[#allocation133_spill] sm:$0xff] %v4423_v22  ;;  %v580_v28 = vadd.f32 %v576_v63, %v571_v3  ;;  %v594_v54 = vmul.f32 %v4408_v43, %v4207_v23  ;;  %v4446_v3 = vld [vmem:[%s4179_s3 + $0x4a] sm:$0xff]  ;;  %s7103_s2 = sld [smem:[#allocation44_spill]] }
 0x13b   : > { %7025 = vst [vmem:[#allocation131_spill] sm:$0xff] %v4401_v36  ;;  %v722_v11 = vmul.f32 %v4398_v9, %v4171_v0  ;;  %v633_v38 = vadd.f32 %v629_v47, %v624_v6  ;;  %v4431_v52 = vmul.f32 %v4401_v36, %v4279_v16  ;;  %v4434_v4 = vld [vmem:[%s4179_s3 + $0x49] sm:$0xff]  ;;  %7030 = vst [vmem:[#allocation136_spill] sm:$0xff] %v4440_v42  ;;  %s7105_s17 = sld [smem:[#allocation45_spill]] }
 0x13c   : > { %7028 = vst [vmem:[#allocation134_spill] sm:$0xff] %v4434_v4  ;;  %v718_v30 = vadd.f32 %v714_v33, %v7001_v20  ;;  %v730_v63 = vmul.f32 %v4408_v43, %v4174_v2  ;;  %v789_v19 = vadd.f32 %v785_v31, %v781_v44  ;;  %7031 = vst [vmem:[#allocation137_spill] sm:$0xff] %v4446_v3  ;;  %v4449_v47 = vld [vmem:[%s4179_s3 + $0x3ca] sm:$0xff]  ;;  %s7106_s14 = sld [smem:[#allocation46_spill]] }
 0x13d   : > { %7032 = vst [vmem:[#allocation138_spill] sm:$0xff] %v4449_v47  ;;  %v589_v6 = vadd.f32 %v585_v51, %v580_v28  ;;  %v603_v36 = vmul.f32 %v4423_v22, %v4210_v27  ;;  %v612_v9 = vmul.f32 %v4434_v4, %v4213_v29  ;;  %v642_v33 = vadd.f32 %v4305_v25, %v633_v38  ;;  %v4466_v38 = vld [vmem:[%s4179_s3 + $0x3e8] sm:$0xff]  ;;  %s7109_s4 = sld [smem:[#allocation47_spill]] }
 0x13e   : > { %v621_v43 = vmul.f32 %v4446_v3, %v4216_v59  ;;  %v726_v44 = vadd.f32 %v722_v11, %v718_v30  ;;  %v738_v31 = vmul.f32 %v4423_v22, %v4177_v50  ;;  %v797_v60 = vadd.f32 %v793_v45, %v789_v19  ;;  %v4476_v30 = vld [vmem:[%s4179_s3 + $0x10] sm:$0xff]  ;;  %s7110_s18 = sld [smem:[#allocation48_spill]] }
 0x13f   : > { %v598_v51 = vadd.f32 %v594_v54, %v589_v6  ;;  %v630_v28 = vmul.f32 %v4437_v34, %v4227_v8  ;;  %v639_v53 = vmul.f32 %v4440_v42, %v4230_v39  ;;  %v651_v25 = vadd.f32 %v4320_v46, %v642_v33  ;;  %7033 = vst [vmem:[#allocation139_spill] sm:$0xff] %v4476_v30  ;;  %v4479_v6 = vld [vmem:[%s4179_s3 + $0x68] sm:$0xff]  ;;  %s7111_s19 = sld [smem:[#allocation49_spill]] }
 0x140   : > { %v648_v11 = vmul.f32 %v4449_v47, %v4233_v41  ;;  %v734_v45 = vadd.f32 %v730_v63, %v726_v44  ;;  %v746_v54 = vmul.f32 %v4434_v4, %v4191_v13  ;;  %v805_v19 = vadd.f32 %v801_v7, %v797_v60  ;;  %7034 = vst [vmem:[#allocation140_spill] sm:$0xff] %v4479_v6  ;;  %v4482_v42 = vld [vmem:[%s4179_s3 + $0x3ea] sm:$0xff]  ;;  %s7114_s20 = sld [smem:[#allocation50_spill]] }
 0x141   : > { %v607_v46 = vadd.f32 %v603_v36, %v598_v51  ;;  %v657_v33 = vmul.f32 %v4466_v38, %v4246_v15  ;;  %v4488_v47 = vmul.f32 %v4469_v14, %v4249_v55  ;;  %v4491_v63 = vld [vmem:[%s4179_s3 + $0x11] sm:$0xff]  ;;  %v660_v44 = vadd.f32 %v4324_v56, %v651_v25  ;;  %v4495_v34 = vld [vmem:[%s4179_s3 + $0x408] sm:$0xff]  ;;  %s7184_s21 = sld [smem:[#allocation51_spill]] }
 0x142   : > { %7035 = vst [vmem:[#allocation141_spill] sm:$0xff] %v4491_v63  ;;  %v4499_v60 = vmul.f32 %v4482_v42, %v4252_v17  ;;  %v742_v7 = vadd.f32 %v738_v31, %v734_v45  ;;  %v754_v36 = vmul.f32 %v4446_v3, %v4207_v23  ;;  %v4504_v51 = vld [vmem:[%s4179_s3 + $0x12] sm:$0xff]  ;;  %v813_v4 = vadd.f32 %v809_v21, %v805_v19  ;;  %v4507_v22 = vld [vmem:[%s4179_s3 + $0x69] sm:$0xff]  ;;  %s7188_s22 = sld [smem:[#allocation52_spill]] }
 0x143   : > { %7036 = vst [vmem:[#allocation142_spill] sm:$0xff] %v4504_v51  ;;  %7037 = vst [vmem:[#allocation143_spill] sm:$0xff] %v4507_v22  ;;  %v616_v61 = vadd.f32 %v612_v9, %v607_v46  ;;  %v4511_v56 = vmul.f32 %v4495_v34, %v4255_v49  ;;  %v550_v25 = vmul.f32 %v4168_v37, %v4476_v30  ;;  %v4522_v19 = vld [vmem:[%s4179_s3 + $0x6a] sm:$0xff]  ;;  %s7189_s23 = sld [smem:[#allocation53_spill]] }
 0x144   : > { %v669_v12 = vadd.f32 %v4328_v32, %v660_v44  ;;  %v750_v31 = vadd.f32 %v746_v54, %v742_v7  ;;  %v762_v45 = vmul.f32 %v4479_v6, %v4210_v27  ;;  %v559_v21 = vmul.f32 %v4171_v0, %v4491_v63  ;;  %7038 = vst [vmem:[#allocation144_spill] sm:$0xff] %v4522_v19  ;;  %v4525_v46 = vld [vmem:[%s4179_s3 + $0x409] sm:$0xff]  ;;  %v4703_v63 = vld [vmem:[%s4179_s3 + $0x412] sm:$0xff]  ;;  %s7190_s24 = sld [smem:[#allocation54_spill]] }
 0x145   : > { %v821_v9 = vadd.f32 %v4395_v40, %v813_v4  ;;  %v625_v3 = vadd.f32 %v621_v43, %v616_v61  ;;  %v554_v26 = vadd.f32 %v550_v25, %v7001_v20  ;;  %v568_v32 = vmul.f32 %v4174_v2, %v4504_v51  ;;  %v4538_v4 = vld [vmem:[%s4179_s3 + $0x30] sm:$0xff]  ;;  %7061 = vst [vmem:[#allocation167_spill] sm:$0xff] %v4703_v63  ;;  %s7194_s25 = sld [smem:[#allocation55_spill]] }
 0x146   : > { %v678_v54 = vadd.f32 %v4344_v48, %v669_v12  ;;  %v4533_v44 = vmul.f32 %v4525_v46, %v4271_v18  ;;  %v758_v7 = vadd.f32 %v754_v36, %v750_v31  ;;  %v770_v40 = vmul.f32 %v4507_v22, %v4213_v29  ;;  %7039 = vst [vmem:[#allocation145_spill] sm:$0xff] %v4538_v4  ;;  %v4542_v43 = vld [vmem:[%s4179_s3 + $0x40a] sm:$0xff]  ;;  %s7198_s26 = sld [smem:[#allocation56_spill]] }
 0x147   : > { %v829_v61 = vadd.f32 %v4405_v5, %v821_v9  ;;  %7040 = vst [vmem:[#allocation146_spill] sm:$0xff] %v4542_v43  ;;  %v634_v25 = vadd.f32 %v630_v28, %v625_v3  ;;  %v563_v6 = vadd.f32 %v559_v21, %v554_v26  ;;  %v577_v12 = vmul.f32 %v4538_v4, %v4177_v50  ;;  %v4554_v22 = vld [vmem:[%s4179_s3 + $0x31] sm:$0xff]  ;;  %s7199_s27 = sld [smem:[#allocation57_spill]] }
 0x148   : > { %v687_v48 = vadd.f32 %v4352_v10, %v678_v54  ;;  %v4549_v36 = vmul.f32 %v4542_v43, %v4279_v16  ;;  %v766_v31 = vadd.f32 %v762_v45, %v758_v7  ;;  %v778_v51 = vmul.f32 %v4522_v19, %v4216_v59  ;;  %7041 = vst [vmem:[#allocation147_spill] sm:$0xff] %v4554_v22  ;;  %v4565_v54 = vld [vmem:[%s4179_s3 + $0x32] sm:$0xff]  ;;  %s7411_s7 = sld [smem:[#allocation190_spill]] (%p431_p7) }
 0x149   : > { %v837_v5 = vadd.f32 %v4414_v58, %v829_v61  ;;  %v643_v3 = vadd.f32 %v639_v53, %v634_v25  ;;  %v572_v26 = vadd.f32 %v568_v32, %v563_v6  ;;  %v586_v28 = vmul.f32 %v4554_v22, %v4191_v13  ;;  %7042 = vst [vmem:[#allocation148_spill] sm:$0xff] %v4565_v54  ;;  %v4576_v25 = vld [vmem:[%s4179_s3 + $0x50] sm:$0xff] }
 0x14a   : > { %v696_v10 = vadd.f32 %v4356_v57, %v687_v48  ;;  %v774_v21 = vadd.f32 %v770_v40, %v766_v31  ;;  %v786_v45 = vmul.f32 %v4466_v38, %v4227_v8  ;;  %v794_v9 = vmul.f32 %v4469_v14, %v4230_v39  ;;  %7043 = vst [vmem:[#allocation149_spill] sm:$0xff] %v4576_v25 }
 0x14b   : > { %v845_v53 = vadd.f32 %v4418_v35, %v837_v5  ;;  %v652_v58 = vadd.f32 %v648_v11, %v643_v3  ;;  %v581_v6 = vadd.f32 %v577_v12, %v572_v26  ;;  %v595_v32 = vmul.f32 %v4565_v54, %v4207_v23  ;;  %v4581_v12 = vld [vmem:[%s4179_s3 + $0x51] sm:$0xff]  ;;  %v4590_v26 = vld [vmem:[%s4179_s3 + $0x428] sm:$0xff] }
 0x14c   : > { %v705_v7 = vadd.f32 %v4370_v24, %v696_v10  ;;  %v782_v57 = vadd.f32 %v778_v51, %v774_v21  ;;  %v802_v40 = vmul.f32 %v4482_v42, %v4233_v41  ;;  %v810_v61 = vmul.f32 %v4495_v34, %v4246_v15  ;;  %7044 = vst [vmem:[#allocation150_spill] sm:$0xff] %v4581_v12  ;;  %v4597_v10 = vld [vmem:[%s4179_s3 + $0x3d0] sm:$0xff] }
 0x14d   : > { %v853_v35 = vadd.f32 %v4431_v52, %v845_v53  ;;  %v661_v11 = vadd.f32 %v657_v33, %v652_v58  ;;  %v590_v48 = vadd.f32 %v586_v28, %v581_v6  ;;  %v604_v24 = vmul.f32 %v4576_v25, %v4210_v27  ;;  %7045 = vst [vmem:[#allocation151_spill] sm:$0xff] %v4590_v26  ;;  %v4594_v28 = vld [vmem:[%s4179_s3 + $0x52] sm:$0xff] }
 0x14e   : > { %v709_v51 = vmax.f32 %v705_v7, 0.0  ;;  %v790_v31 = vadd.f32 %v786_v45, %v782_v57  ;;  %v818_v5 = vmul.f32 %v4525_v46, %v4249_v55  ;;  %v613_v3 = vmul.f32 %v4581_v12, %v4213_v29  ;;  %7046 = vst [vmem:[#allocation152_spill] sm:$0xff] %v4594_v28  ;;  %7047 = vst [vmem:[#allocation153_spill] sm:$0xff] %v4597_v10  ;;  %v4608_v57 = vld [vmem:[%s4179_s3 + $0x429] sm:$0xff] }
 0x14f   : > { %v857_v52 = vmax.f32 %v853_v35, 0.0  ;;  %v670_v33 = vadd.f32 %v4488_v47, %v661_v11  ;;  %v599_v21 = vadd.f32 %v595_v32, %v590_v48  ;;  %v715_v45 = vmul.f32 %v4538_v4, %v4168_v37  ;;  %7048 = vst [vmem:[#allocation154_spill] sm:$0xff] %v4608_v57  ;;  %v4611_v35 = vld [vmem:[%s4179_s3 + $0x42a] sm:$0xff] }
 0x150   : > { %v798_v53 = vadd.f32 %v794_v9, %v790_v31  ;;  %v622_v58 = vmul.f32 %v4594_v28, %v4216_v59  ;;  %v723_v6 = vmul.f32 %v4554_v22, %v4171_v0  ;;  %v731_v47 = vmul.f32 %v4565_v54, %v4174_v2  ;;  %7049 = vst [vmem:[#allocation155_spill] sm:$0xff] %v4611_v35  ;;  %v4615_v11 = vld [vmem:[%s4179_s3 + $0x3d1] sm:$0xff] }
 0x151   : > { %v861_v7 = vmax.f32 %v709_v51, %v857_v52  ;;  %v679_v32 = vadd.f32 %v4499_v60, %v670_v33  ;;  %7050 = vst [vmem:[#allocation156_spill] sm:$0xff] %v4615_v11  ;;  %v608_v9 = vadd.f32 %v604_v24, %v599_v21  ;;  %v719_v48 = vadd.f32 %v715_v45, %v7001_v20  ;;  %v4623_v52 = vld [vmem:[%s4179_s3 + $0x3d2] sm:$0xff] }
 0x152   : > { %v806_v31 = vadd.f32 %v802_v40, %v798_v53  ;;  %v826_v22 = vmul.f32 %v4542_v43, %v4252_v17  ;;  %v834_v51 = vmul.f32 %v4590_v26, %v4255_v49  ;;  %7051 = vst [vmem:[#allocation157_spill] sm:$0xff] %v4623_v52  ;;  %v631_v54 = vmul.f32 %v4597_v10, %v4227_v8  ;;  %v4656_v10 = vld [vmem:[%s4179_s3 + $0x70] sm:$0xff] }
 0x153   : > { %867 = vst [vmem:[%s4629_s28] sm:$0xff] %v861_v7  ;;  %v688_v60 = vadd.f32 %v4511_v56, %v679_v32  ;;  %v617_v40 = vadd.f32 %v613_v3, %v608_v9  ;;  %v727_v24 = vadd.f32 %v723_v6, %v719_v48  ;;  %v739_v33 = vmul.f32 %v4576_v25, %v4177_v50  ;;  %v4642_v56 = vld [vmem:[%s4179_s3 + $0x3f0] sm:$0xff]  ;;  %v4652_v48 = vld [vmem:[%s4179_s3 + $0x18] sm:$0xf] }
 0x154   : > { %v814_v21 = vadd.f32 %v810_v61, %v806_v31  ;;  %v842_v45 = vmul.f32 %v4608_v57, %v4271_v18  ;;  %v850_v53 = vmul.f32 %v4611_v35, %v4279_v16  ;;  %v640_v7 = vmul.f32 %v4615_v11, %v4230_v39  ;;  %v4645_v3 = vld [vmem:[%s4179_s3 + $0x3f1] sm:$0xff]  ;;  %7052 = vst [vmem:[#allocation158_spill] sm:$0xff] %v4652_v48 }
 0x155   : > { %v626_v6 = vadd.f32 %v622_v58, %v617_v40  ;;  %v649_v61 = vmul.f32 %v4623_v52, %v4233_v41  ;;  %v735_v32 = vadd.f32 %v731_v47, %v727_v24  ;;  %v747_v9 = vmul.f32 %v4581_v12, %v4191_v13  ;;  %7053 = vst [vmem:[#allocation159_spill] sm:$0xff] %v4656_v10  ;;  %v4659_v35 = vld [vmem:[%s4179_s3 + $0x3f2] sm:$0xff] }
 0x156   : > { %v697_v31 = vadd.f32 %v4533_v44, %v688_v60  ;;  %v822_v11 = vadd.f32 %v818_v5, %v814_v21  ;;  %7054 = vst [vmem:[#allocation160_spill] sm:$0xff] %v4659_v35  ;;  %v658_v58 = vmul.f32 %v4642_v56, %v4246_v15  ;;  %v667_v47 = vmul.f32 %v4645_v3, %v4249_v55  ;;  %v4666_v40 = vld [vmem:[%s4179_s3 + $0x19] sm:$0xf]  ;;  %v4669_v24 = vld [vmem:[%s4179_s3 + $0x410] sm:$0xff] }
 0x157   : > { %7055 = vst [vmem:[#allocation161_spill] sm:$0xff] %v4666_v40  ;;  %7056 = vst [vmem:[#allocation162_spill] sm:$0xff] %v4669_v24  ;;  %v4672_v52 = vld [vmem:[%s4179_s3 + $0x411] sm:$0xff]  ;;  %v635_v12 = vadd.f32 %v631_v54, %v626_v6  ;;  %v676_v44 = vmul.f32 %v4659_v35, %v4252_v17  ;;  %v743_v5 = vadd.f32 %v739_v33, %v735_v32  ;;  %v4679_v21 = vld [vmem:[%s4179_s3 + $0x1a] sm:$0xf] }
 0x158   : > { %7057 = vst [vmem:[#allocation163_spill] sm:$0xff] %v4672_v52  ;;  %v755_v60 = vmul.f32 %v4594_v28, %v4207_v23  ;;  %7058 = vst [vmem:[#allocation164_spill] sm:$0xff] %v4679_v21  ;;  %v830_v25 = vadd.f32 %v826_v22, %v822_v11  ;;  %v4682_v57 = vld [vmem:[%s4179_s3 + $0x71] sm:$0xff]  ;;  %v4686_v26 = vmul.f32 %v4669_v24, %v4255_v49 }
 0x159   : > { %7059 = vst [vmem:[#allocation165_spill] sm:$0xff] %v4682_v57  ;;  %v4690_v54 = vmul.f32 %v4672_v52, %v4271_v18  ;;  %v551_v33 = vmul.f32 %v4168_v37, %v4652_v48  ;;  %v4695_v6 = vld [vmem:[%s4179_s3 + $0x72] sm:$0xff]  ;;  %v644_v32 = vadd.f32 %v640_v7, %v635_v12  ;;  %v751_v28 = vadd.f32 %v747_v9, %v743_v5 }
 0x15a   : > { %7060 = vst [vmem:[#allocation166_spill] sm:$0xff] %v4695_v6  ;;  %v763_v22 = vmul.f32 %v4656_v10, %v4210_v27  ;;  %v560_v11 = vmul.f32 %v4171_v0, %v4666_v40  ;;  %v706_v4 = vadd.f32 %v4549_v36, %v697_v31  ;;  %v838_v19 = vadd.f32 %v834_v51, %v830_v25  ;;  %v4715_v36 = vld [vmem:[%s4179_s3 + $0x38] sm:$0xf] }
 0x15b   : > { %v555_v30 = vadd.f32 %v551_v33, %v7001_v20  ;;  %v569_v48 = vmul.f32 %v4174_v2, %v4679_v21  ;;  %v653_v43 = vadd.f32 %v649_v61, %v644_v32  ;;  %v4710_v12 = vmul.f32 %v4703_v63, %v4279_v16  ;;  %7062 = vst [vmem:[#allocation168_spill] sm:$0xff] %v4715_v36  ;;  %v4738_v21 = vld [vmem:[%s4179_s3 + $0x3a] sm:$0xf] }
 0x15c   : > { %v759_v7 = vadd.f32 %v755_v60, %v751_v28  ;;  %v771_v9 = vmul.f32 %v4682_v57, %v4213_v29  ;;  %v846_v25 = vadd.f32 %v842_v45, %v838_v19  ;;  %v779_v51 = vmul.f32 %v4695_v6, %v4216_v59  ;;  %v4726_v19 = vld [vmem:[%s4179_s3 + $0x39] sm:$0xf]  ;;  %v4731_v6 = vld [vmem:[%s4179_s3 + $0x430] sm:$0xff]  ;;  %7065 = vst [vmem:[#allocation171_spill] sm:$0xff] %v4738_v21 }
 0x15d   : > { %v564_v31 = vadd.f32 %v560_v11, %v555_v30  ;;  %v578_v61 = vmul.f32 %v4715_v36, %v4177_v50  ;;  %v662_v5 = vadd.f32 %v658_v58, %v653_v43  ;;  %v787_v28 = vmul.f32 %v4642_v56, %v4227_v8  ;;  %7063 = vst [vmem:[#allocation169_spill] sm:$0xff] %v4726_v19  ;;  %v4758_v10 = vld [vmem:[%s4179_s3 + $0x3d8] sm:$0xf] }
 0x15e   : > { %v767_v33 = vadd.f32 %v763_v22, %v759_v7  ;;  %v795_v60 = vmul.f32 %v4645_v3, %v4230_v39  ;;  %v710_v45 = vmax.f32 %v706_v4, 0.0  ;;  %v854_v32 = vadd.f32 %v850_v53, %v846_v25  ;;  %7064 = vst [vmem:[#allocation170_spill] sm:$0xff] %v4731_v6  ;;  %v4741_v53 = vld [vmem:[%s4179_s3 + $0x431] sm:$0xff]  ;;  %7069 = vst [vmem:[#allocation175_spill] sm:$0xff] %v4758_v10 }
 0x15f   : > { %v573_v30 = vadd.f32 %v569_v48, %v564_v31  ;;  %v587_v11 = vmul.f32 %v4726_v19, %v4191_v13  ;;  %v671_v43 = vadd.f32 %v667_v47, %v662_v5  ;;  %v803_v22 = vmul.f32 %v4659_v35, %v4233_v41  ;;  %7066 = vst [vmem:[#allocation172_spill] sm:$0xff] %v4741_v53  ;;  %v4744_v48 = vld [vmem:[%s4179_s3 + $0x432] sm:$0xff] }
 0x160   : > { %v775_v58 = vadd.f32 %v771_v9, %v767_v33  ;;  %v811_v7 = vmul.f32 %v4669_v24, %v4246_v15  ;;  %v858_v4 = vmax.f32 %v854_v32, 0.0  ;;  %7067 = vst [vmem:[#allocation173_spill] sm:$0xff] %v4744_v48  ;;  %v819_v25 = vmul.f32 %v4672_v52, %v4249_v55  ;;  %v4749_v47 = vld [vmem:[%s4179_s3 + $0x58] sm:$0xf] }
 0x161   : > { %7068 = vst [vmem:[#allocation174_spill] sm:$0xff] %v4749_v47  ;;  %v582_v9 = vadd.f32 %v578_v61, %v573_v30  ;;  %v596_v31 = vmul.f32 %v4738_v21, %v4207_v23  ;;  %v680_v5 = vadd.f32 %v676_v44, %v671_v43  ;;  %v827_v32 = vmul.f32 %v4703_v63, %v4252_v17  ;;  %v4761_v52 = vld [vmem:[%s4179_s3 + $0x3d9] sm:$0xf] }
 0x162   : > { %v783_v33 = vadd.f32 %v779_v51, %v775_v58  ;;  %v605_v57 = vmul.f32 %v4749_v47, %v4210_v27  ;;  %v862_v40 = vmax.f32 %v710_v45, %v858_v4  ;;  %7070 = vst [vmem:[#allocation176_spill] sm:$0xff] %v4761_v52  ;;  %v716_v30 = vmul.f32 %v4715_v36, %v4168_v37  ;;  %v4782_v37 = vld [vmem:[%s4179_s3 + $0x5a] sm:$0xf] }
 0x163   : > { %v591_v61 = vadd.f32 %v587_v11, %v582_v9  ;;  %v724_v44 = vmul.f32 %v4726_v19, %v4171_v0  ;;  %v835_v43 = vmul.f32 %v4731_v6, %v4255_v49  ;;  %v4771_v58 = vmul.f32 %v4741_v53, %v4271_v18  ;;  %v4778_v11 = vld [vmem:[%s4179_s3 + $0x59] sm:$0xf]  ;;  %7072 = vst [vmem:[#allocation178_spill] sm:$0xff] %v4782_v37 }
 0x164   : > { %v791_v51 = vadd.f32 %v787_v28, %v783_v33  ;;  %v4775_v45 = vmul.f32 %v4744_v48, %v4279_v16  ;;  %7071 = vst [vmem:[#allocation177_spill] sm:$0xff] %v4778_v11  ;;  %868 = vst [vmem:[%s4629_s28 + $0x8] sm:$0xff] %v862_v40  ;;  %v4785_v0 = vld [vmem:[%s4179_s3 + $0x3da] sm:$0xf]  ;;  %v614_v4 = vmul.f32 %v4778_v11, %v4213_v29  ;;  %v4852_v36 = vstv %s7081_s30  ;;  %s7203_s30 = sld [smem:[#allocation59_spill]] }
 0x165   : > { %7073 = vst [vmem:[#allocation179_spill] sm:$0xff] %v4785_v0  ;;  %v600_v28 = vadd.f32 %v596_v31, %v591_v61  ;;  %v720_v9 = vadd.f32 %v716_v30, %v7001_v20  ;;  %v732_v33 = vmul.f32 %v4738_v21, %v4174_v2  ;;  %v623_v40 = vmul.f32 %v4782_v37, %v4216_v59  ;;  %v4800_v6 = vld [vmem:[%s4179_s3 + $0x3f8] sm:$0xf] }
 0x166   : > { %v799_v48 = vadd.f32 %v795_v60, %v791_v51  ;;  %v632_v53 = vmul.f32 %v4758_v10, %v4227_v8  ;;  %v641_v31 = vmul.f32 %v4761_v52, %v4230_v39  ;;  %v689_v61 = vadd.f32 %v4686_v26, %v680_v5  ;;  %7074 = vst [vmem:[#allocation180_spill] sm:$0xff] %v4800_v6  ;;  %v4803_v30 = vld [vmem:[%s4179_s3 + $0x3f9] sm:$0xf] }
 0x167   : > { %7075 = vst [vmem:[#allocation181_spill] sm:$0xff] %v4803_v30  ;;  %v609_v20 = vadd.f32 %v605_v57, %v600_v28  ;;  %v728_v2 = vadd.f32 %v724_v44, %v720_v9  ;;  %v740_v60 = vmul.f32 %v4749_v47, %v4177_v50  ;;  %v4808_v21 = vld [vmem:[%s4179_s3 + $0x78] sm:$0xf]  ;;  %v650_v52 = vmul.f32 %v4785_v0, %v4233_v41 }
 0x168   : > { %v807_v51 = vadd.f32 %v803_v22, %v799_v48  ;;  %7076 = vst [vmem:[#allocation182_spill] sm:$0xff] %v4808_v21  ;;  %v4811_v19 = vld [vmem:[%s4179_s3 + $0x3fa] sm:$0xf]  ;;  %v659_v26 = vmul.f32 %v4800_v6, %v4246_v15  ;;  %v668_v57 = vmul.f32 %v4803_v30, %v4249_v55  ;;  %v748_v28 = vmul.f32 %v4778_v11, %v4191_v13 }
 0x169   : > { %7077 = vst [vmem:[#allocation183_spill] sm:$0xff] %v4811_v19  ;;  %v4820_v5 = vld [vmem:[%s4179_s3 + $0x418] sm:$0xf]  ;;  %v618_v50 = vadd.f32 %v614_v4, %v609_v20  ;;  %v677_v22 = vmul.f32 %v4811_v19, %v4252_v17  ;;  %v736_v48 = vadd.f32 %v732_v33, %v728_v2  ;;  %v756_v20 = vmul.f32 %v4782_v37, %v4207_v23 }
 0x16a   : > { %7078 = vst [vmem:[#allocation184_spill] sm:$0xff] %v4820_v5  ;;  %v4823_v44 = vld [vmem:[%s4179_s3 + $0x419] sm:$0xf]  ;;  %v815_v9 = vadd.f32 %v811_v7, %v807_v51  ;;  %v4831_v0 = vmul.f32 %v4820_v5, %v4255_v49  ;;  %v698_v4 = vadd.f32 %v4690_v54, %v689_v61  ;;  %v764_v2 = vmul.f32 %v4808_v21, %v4210_v27 }
 0x16b   : > { %7079 = vst [vmem:[#allocation185_spill] sm:$0xff] %v4823_v44  ;;  %v4835_v10 = vmul.f32 %v4823_v44, %v4271_v18  ;;  %v4841_v47 = vld [vmem:[%s4179_s3 + $0x79] sm:$0xf]  ;;  %v627_v13 = vadd.f32 %v623_v40, %v618_v50  ;;  %v744_v7 = vadd.f32 %v740_v60, %v736_v48  ;;  %v4849_v11 = vstv %s7080_s29  ;;  %s7201_s29 = sld [smem:[#allocation58_spill]] }
 0x16c   : > { %7083 = vst [vmem:[#allocation186_spill] sm:$0xff] %v4841_v47  ;;  %v4844_v33 = vld [vmem:[%s4179_s3 + $0x7a] sm:$0xf]  ;;  %v823_v51 = vadd.f32 %v819_v25, %v815_v9  ;;  %v4855_v63 = vstv %s7082_s8  ;;  %v889_v61 = vmul.f32 %v4849_v11, %v4182_v62  ;;  %v898_v40 = vmul.f32 %v4852_v36, %v4185_v1  ;;  %v7088_v9 = vld [vmem:[#allocation86_spill] sm:$0xff]  ;;  %s7204_s8 = sld [smem:[#allocation60_spill]] }
 0x16d   : > { %7085 = vst [vmem:[#allocation187_spill] sm:$0xff] %v4844_v33  ;;  %v636_v23 = vadd.f32 %v632_v53, %v627_v13  ;;  %v752_v54 = vadd.f32 %v748_v28, %v744_v7  ;;  %v772_v27 = vmul.f32 %v4841_v47, %v4213_v29  ;;  %v780_v25 = vmul.f32 %v4844_v33, %v4216_v59  ;;  %v7089_v13 = vld [vmem:[#allocation105_spill] sm:$0xff]  ;;  %v4878_v29 = vld [vmem:[%s4179_s3 + $0x41a] sm:$0xf] }
 0x16e   : > { %v831_v60 = vadd.f32 %v827_v32, %v823_v51  ;;  %v4866_v50 = vstv %s7084_s9  ;;  %v893_v28 = vadd.f32 %v889_v61, %v7088_v9  ;;  %v907_v62 = vmul.f32 %v4855_v63, %v7089_v13  ;;  %v7090_v32 = vld [vmem:[#allocation106_spill] sm:$0xff]  ;;  %7091 = vst [vmem:[#allocation105_spill] sm:$0xff] %v4878_v29  ;;  %v7094_v61 = vld [vmem:[#allocation107_spill] sm:$0xff]  ;;  %s7206_s9 = sld [smem:[#allocation61_spill]] }
 0x16f   : > { %v645_v48 = vadd.f32 %v641_v31, %v636_v23  ;;  %v760_v53 = vadd.f32 %v756_v20, %v752_v54  ;;  %v707_v7 = vadd.f32 %v4710_v12, %v698_v4  ;;  %v916_v51 = vmul.f32 %v7090_v32, %v4866_v50 }
 0x170   : > { %v839_v1 = vadd.f32 %v835_v43, %v831_v60  ;;  %v4875_v21 = vstv %s7086_s1  ;;  %v902_v31 = vadd.f32 %v898_v40, %v893_v28  ;;  %v4881_v20 = vstv %s7087_s12  ;;  %s7209_s1 = sld [smem:[#allocation62_spill]] }
 0x171   : > { %v654_v59 = vadd.f32 %v650_v52, %v645_v48  ;;  %v768_v33 = vadd.f32 %v764_v2, %v760_v53  ;;  %v4886_v12 = vmul.f32 %v4878_v29, %v4279_v16  ;;  %v788_v43 = vmul.f32 %v4800_v6, %v4227_v8  ;;  %v7095_v48 = vld [vmem:[#allocation108_spill] sm:$0xff]  ;;  %s7211_s12 = sld [smem:[#allocation63_spill]] }
 0x172   : > { %v847_v23 = vadd.f32 %v4771_v58, %v839_v1  ;;  %v796_v4 = vmul.f32 %v4803_v30, %v4230_v39  ;;  %v911_v2 = vadd.f32 %v907_v62, %v902_v31  ;;  %v925_v40 = vmul.f32 %v7094_v61, %v4875_v21 }
 0x173   : > { %v663_v54 = vadd.f32 %v659_v26, %v654_v59  ;;  %v776_v52 = vadd.f32 %v772_v27, %v768_v33  ;;  %v711_v58 = vmax.f32 %v707_v7, 0.0  ;;  %v934_v53 = vmul.f32 %v7095_v48, %v4881_v20  ;;  %v4910_v7 = vld [vmem:[%s4179_s3 + $0x438] sm:$0xf] }
 0x174   : > { %v855_v60 = vadd.f32 %v4775_v45, %v847_v23  ;;  %v4898_v28 = vstv %s7092_s13  ;;  %v920_v39 = vadd.f32 %v916_v51, %v911_v2  ;;  %v4901_v26 = vstv %s7093_s15  ;;  %7098 = vst [vmem:[#allocation106_spill] sm:$0xff] %v4910_v7  ;;  %s7216_s13 = sld [smem:[#allocation64_spill]] }
 0x175   : > { %v672_v8 = vadd.f32 %v668_v57, %v663_v54  ;;  %v784_v13 = vadd.f32 %v780_v25, %v776_v52  ;;  %v804_v27 = vmul.f32 %v4811_v19, %v4233_v41  ;;  %v812_v62 = vmul.f32 %v4820_v5, %v4246_v15  ;;  %v4913_v57 = vld [vmem:[%s4179_s3 + $0x439] sm:$0xf]  ;;  %v7102_v41 = vld [vmem:[#allocation109_spill] sm:$0xff]  ;;  %s7217_s15 = sld [smem:[#allocation65_spill]] }
 0x176   : > { %v859_v33 = vmax.f32 %v855_v60, 0.0  ;;  %v820_v45 = vmul.f32 %v4823_v44, %v4249_v55  ;;  %7099 = vst [vmem:[#allocation107_spill] sm:$0xff] %v4913_v57  ;;  %v4916_v25 = vld [vmem:[%s4179_s3 + $0x43a] sm:$0xf]  ;;  %v929_v59 = vadd.f32 %v925_v40, %v920_v39  ;;  %v943_v31 = vmul.f32 %v7102_v41, %v4898_v28  ;;  %v7104_v55 = vld [vmem:[#allocation110_spill] sm:$0xff] }
 0x177   : > { %7100 = vst [vmem:[#allocation108_spill] sm:$0xff] %v4916_v25  ;;  %v681_v1 = vadd.f32 %v677_v22, %v672_v8  ;;  %v792_v51 = vadd.f32 %v788_v43, %v784_v13  ;;  %v828_v15 = vmul.f32 %v4878_v29, %v4252_v17  ;;  %v952_v54 = vmul.f32 %v7104_v55, %v4901_v26  ;;  %v7121_v5 = vld [vmem:[#allocation119_spill] sm:$0xff] }
 0x178   : > { %v863_v23 = vmax.f32 %v711_v58, %v859_v33  ;;  %v4925_v52 = vstv %s7096_s0  ;;  %v938_v60 = vadd.f32 %v934_v53, %v929_v59  ;;  %v4929_v43 = vstv %s7097_s10  ;;  %v7108_v33 = vld [vmem:[#allocation112_spill] sm:$0xff]  ;;  %v7123_v19 = vld [vmem:[#allocation115_spill] sm:$0xff]  ;;  %s7218_s0 = sld [smem:[#allocation66_spill]] }
 0x179   : > { %v690_v2 = vadd.f32 %v4831_v0, %v681_v1  ;;  %v800_v22 = vadd.f32 %v796_v4, %v792_v51  ;;  %v836_v40 = vmul.f32 %v4910_v7, %v4255_v49  ;;  %v844_v58 = vmul.f32 %v4913_v57, %v4271_v18  ;;  %v7107_v0 = vld [vmem:[#allocation111_spill] sm:$0xff]  ;;  %s7220_s10 = sld [smem:[#allocation67_spill]] }
 0x17a   : > { %869 = vst [vmem:[%s4629_s28 + $0x10] sm:$0xff] %v863_v23  ;;  %v852_v17 = vmul.f32 %v4916_v25, %v4279_v16  ;;  %v4939_v8 = vstv %s7101_s16  ;;  %v947_v39 = vadd.f32 %v943_v31, %v938_v60  ;;  %v961_v4 = vmul.f32 %v7107_v0, %v4925_v52  ;;  %v7112_v31 = vld [vmem:[#allocation113_spill] sm:$0xff]  ;;  %s7221_s16 = sld [smem:[#allocation68_spill]] }
 0x17b   : > { %v808_v13 = vadd.f32 %v804_v27, %v800_v22  ;;  %v4944_v53 = vstv %s7103_s2  ;;  %v970_v49 = vmul.f32 %v7108_v33, %v4929_v43  ;;  %v4949_v1 = vstv %s7105_s17  ;;  %v7113_v22 = vld [vmem:[#allocation114_spill] sm:$0xff]  ;;  %s7291_s2 = sld [smem:[#allocation69_spill]] }
 0x17c   : > { %v1054_v18 = vmul.f32 %v7090_v32, %v4849_v11  ;;  %v1062_v16 = vmul.f32 %v7094_v61, %v4852_v36  ;;  %v699_v27 = vadd.f32 %v4835_v10, %v690_v2  ;;  %v956_v59 = vadd.f32 %v952_v54, %v947_v39  ;;  %v7115_v10 = vld [vmem:[#allocation117_spill] sm:$0xff]  ;;  %s7292_s17 = sld [smem:[#allocation70_spill]] }
 0x17d   : > { %v816_v51 = vadd.f32 %v812_v62, %v808_v13  ;;  %v979_v23 = vmul.f32 %v7112_v31, %v4939_v8  ;;  %v988_v60 = vmul.f32 %v7113_v22, %v4944_v53  ;;  %v4961_v33 = vstv %s7106_s14  ;;  %s7293_s14 = sld [smem:[#allocation71_spill]] }
 0x17e   : > { %v1058_v25 = vadd.f32 %v1054_v18, %v7088_v9  ;;  %v1070_v32 = vmul.f32 %v7095_v48, %v4855_v63  ;;  %v965_v61 = vadd.f32 %v961_v4, %v956_v59  ;;  %v997_v62 = vmul.f32 %v7115_v10, %v4949_v1  ;;  %v7116_v48 = vld [vmem:[#allocation118_spill] sm:$0xff]  ;;  %v7117_v4 = vld [vmem:[#allocation121_spill] sm:$0xff] }
 0x17f   : > { %v824_v57 = vadd.f32 %v820_v45, %v816_v51  ;;  %v4969_v54 = vstv %s7109_s4  ;;  %v4972_v2 = vstv %s7110_s18  ;;  %v4975_v13 = vstv %s7111_s19  ;;  %s7297_s4 = sld [smem:[#allocation72_spill]] }
 0x180   : > { %v1066_v39 = vadd.f32 %v1062_v16, %v1058_v25  ;;  %v1078_v31 = vmul.f32 %v7102_v41, %v4866_v50  ;;  %v708_v18 = vadd.f32 %v4886_v12, %v699_v27  ;;  %v974_v7 = vadd.f32 %v970_v49, %v965_v61  ;;  %v7118_v41 = vld [vmem:[#allocation124_spill] sm:$0xff]  ;;  %v7119_v12 = vld [vmem:[#allocation125_spill] sm:$0xff]  ;;  %s7299_s18 = sld [smem:[#allocation73_spill]] }
 0x181   : > { %v832_v22 = vadd.f32 %v828_v15, %v824_v57  ;;  %v1006_v45 = vmul.f32 %v7116_v48, %v4961_v33  ;;  %v1015_v51 = vmul.f32 %v7117_v4, %v4969_v54  ;;  %v4985_v59 = vstv %s7114_s20  ;;  %v7120_v27 = vld [vmem:[#allocation116_spill] sm:$0xff]  ;;  %s7301_s19 = sld [smem:[#allocation74_spill]] }
 0x182   : > { %v1074_v29 = vadd.f32 %v1070_v32, %v1066_v39  ;;  %v1086_v44 = vmul.f32 %v7104_v55, %v4875_v21  ;;  %v983_v16 = vadd.f32 %v979_v23, %v974_v7  ;;  %v1024_v47 = vmul.f32 %v7118_v41, %v4972_v2  ;;  %v7122_v7 = vld [vmem:[#allocation126_spill] sm:$0xff]  ;;  %s7303_s20 = sld [smem:[#allocation75_spill]] }
 0x183   : > { %v840_v25 = vadd.f32 %v836_v40, %v832_v22  ;;  %v1033_v57 = vmul.f32 %v7119_v12, %v4975_v13  ;;  %v1094_v49 = vmul.f32 %v7107_v0, %v4881_v20  ;;  %v890_v61 = vmul.f32 %v4849_v11, %v7120_v27  ;;  %v7124_v0 = vld [vmem:[#allocation122_spill] sm:$0xff] }
 0x184   : > { %v1082_v15 = vadd.f32 %v1078_v31, %v1074_v29  ;;  %v899_v32 = vmul.f32 %v4852_v36, %v7121_v5  ;;  %v712_v39 = vmax.f32 %v708_v18, 0.0  ;;  %v992_v40 = vadd.f32 %v988_v60, %v983_v16  ;;  %v7125_v5 = vld [vmem:[#allocation120_spill] sm:$0xff] }
 0x185   : > { %v848_v55 = vadd.f32 %v844_v58, %v840_v25  ;;  %v5001_v23 = vmul.f32 %v7122_v7, %v4985_v59  ;;  %v1102_v29 = vmul.f32 %v7123_v19, %v4898_v28  ;;  %v894_v31 = vadd.f32 %v890_v61, %v7088_v9  ;;  %v7126_v58 = vld [vmem:[#allocation123_spill] sm:$0xff] }
 0x186   : > { %v1090_v22 = vadd.f32 %v1086_v44, %v1082_v15  ;;  %v908_v30 = vmul.f32 %v4855_v63, %v7124_v0  ;;  %v1001_v6 = vadd.f32 %v997_v62, %v992_v40  ;;  %v1110_v18 = vmul.f32 %v7125_v5, %v4901_v26  ;;  %v7127_v19 = vld [vmem:[#allocation127_spill] sm:$0xff] }
 0x187   : > { %v856_v27 = vadd.f32 %v852_v17, %v848_v55  ;;  %v1118_v60 = vmul.f32 %v7126_v58, %v4925_v52  ;;  %v1126_v44 = vmul.f32 %v7115_v10, %v4929_v43  ;;  %v903_v16 = vadd.f32 %v899_v32, %v894_v31  ;;  %v7128_v10 = vld [vmem:[#allocation130_spill] sm:$0xff]  ;;  %v7133_v58 = vld [vmem:[#allocation133_spill] sm:$0xff] }
 0x188   : > { %v1098_v25 = vadd.f32 %v1094_v49, %v1090_v22  ;;  %v917_v15 = vmul.f32 %v7127_v19, %v4866_v50  ;;  %v1010_v37 = vadd.f32 %v1006_v45, %v1001_v6  ;;  %v1134_v17 = vmul.f32 %v7116_v48, %v4939_v8  ;;  %v7129_v45 = vld [vmem:[#allocation128_spill] sm:$0xff] }
 0x189   : > { %v860_v61 = vmax.f32 %v856_v27, 0.0  ;;  %v1142_v62 = vmul.f32 %v7117_v4, %v4944_v53  ;;  %v1150_v49 = vmul.f32 %v7118_v41, %v4949_v1  ;;  %v912_v40 = vadd.f32 %v908_v30, %v903_v16  ;;  %v7130_v41 = vld [vmem:[#allocation132_spill] sm:$0xff]  ;;  %v7131_v27 = vld [vmem:[#allocation129_spill] sm:$0xff]  ;;  %v7134_v16 = vld [vmem:[#allocation134_spill] sm:$0xff] }
 0x18a   : > { %v1106_v55 = vadd.f32 %v1102_v29, %v1098_v25  ;;  %v926_v32 = vmul.f32 %v7128_v10, %v4875_v21  ;;  %v1019_v31 = vadd.f32 %v1015_v51, %v1010_v37  ;;  %v1158_v0 = vmul.f32 %v7119_v12, %v4961_v33  ;;  %v7132_v37 = vld [vmem:[#allocation131_spill] sm:$0xff] }
 0x18b   : > { %v864_v22 = vmax.f32 %v712_v39, %v860_v61  ;;  %v1166_v6 = vmul.f32 %v7122_v7, %v4969_v54  ;;  %v5030_v4 = vmul.f32 %v7129_v45, %v4972_v2  ;;  %v921_v29 = vadd.f32 %v917_v15, %v912_v40 }
 0x18c   : > { %v1114_v48 = vadd.f32 %v1110_v18, %v1106_v55  ;;  %v935_v30 = vmul.f32 %v7130_v41, %v4881_v20  ;;  %v5037_v39 = vmul.f32 %v7131_v27, %v4975_v13  ;;  %v5041_v51 = vmul.f32 %v7132_v37, %v4985_v59  ;;  %v7135_v55 = vld [vmem:[#allocation137_spill] sm:$0xff] }
 0x18d   : > { %870 = vst [vmem:[%s4629_s28 + $0x18] sm:$0xf] %v864_v22  ;;  %v1055_v12 = vmul.f32 %v7127_v19, %v4849_v11  ;;  %v1063_v7 = vmul.f32 %v7128_v10, %v4852_v36  ;;  %v930_v18 = vadd.f32 %v926_v32, %v921_v29  ;;  %v944_v25 = vmul.f32 %v7133_v58, %v4898_v28  ;;  %v7137_v32 = vld [vmem:[#allocation136_spill] sm:$0xff]  ;;  %v7138_v29 = vld [vmem:[#allocation138_spill] sm:$0xff] }
 0x18e   : > { %v1122_v5 = vadd.f32 %v1118_v60, %v1114_v48  ;;  %v953_v15 = vmul.f32 %v7134_v16, %v4901_v26  ;;  %v1028_v61 = vadd.f32 %v1024_v47, %v1019_v31  ;;  %v962_v40 = vmul.f32 %v7135_v55, %v4925_v52  ;;  %v7136_v60 = vld [vmem:[#allocation135_spill] sm:$0xff] }
 0x18f   : > { %v1059_v22 = vadd.f32 %v1055_v12, %v7088_v9  ;;  %v1071_v19 = vmul.f32 %v7130_v41, %v4855_v63  ;;  %v939_v27 = vadd.f32 %v935_v30, %v930_v18  ;;  %v971_v10 = vmul.f32 %v7136_v60, %v4929_v43 }
 0x190   : > { %v1130_v45 = vadd.f32 %v1126_v44, %v1122_v5  ;;  %v980_v48 = vmul.f32 %v7137_v32, %v4939_v8  ;;  %v989_v37 = vmul.f32 %v7138_v29, %v4944_v53  ;;  %v998_v47 = vmul.f32 %v4466_v38, %v4949_v1 }
 0x191   : > { %v1067_v31 = vadd.f32 %v1063_v7, %v1059_v22  ;;  %v1079_v12 = vmul.f32 %v7133_v58, %v4866_v50  ;;  %v948_v41 = vadd.f32 %v944_v25, %v939_v27  ;;  %v1007_v44 = vmul.f32 %v4469_v14, %v4961_v33  ;;  %v7140_v58 = vld [vmem:[#allocation146_spill] sm:$0xff]  ;;  %v7143_v27 = vld [vmem:[#allocation141_spill] sm:$0xff] }
 0x192   : > { %v1138_v24 = vadd.f32 %v1134_v17, %v1130_v45  ;;  %v1016_v30 = vmul.f32 %v4482_v42, %v4969_v54  ;;  %v1037_v5 = vadd.f32 %v1033_v57, %v1028_v61  ;;  %v5072_v18 = vmul.f32 %v4495_v34, %v4972_v2  ;;  %v7142_v61 = vld [vmem:[#allocation139_spill] sm:$0xff] }
 0x193   : > { %v1075_v60 = vadd.f32 %v1071_v19, %v1067_v31  ;;  %v1087_v7 = vmul.f32 %v7134_v16, %v4875_v21  ;;  %v957_v32 = vadd.f32 %v953_v15, %v948_v41  ;;  %v5078_v17 = vmul.f32 %v4525_v46, %v4975_v13  ;;  %v7144_v15 = vld [vmem:[#allocation140_spill] sm:$0xff]  ;;  %v7145_v31 = vld [vmem:[#allocation143_spill] sm:$0xff] }
 0x194   : > { %v1146_v22 = vadd.f32 %v1142_v62, %v1138_v24  ;;  %v5082_v25 = vmul.f32 %v7140_v58, %v4985_v59  ;;  %v1095_v57 = vmul.f32 %v7135_v55, %v4881_v20  ;;  %v891_v19 = vmul.f32 %v4849_v11, %v7142_v61  ;;  %v7146_v55 = vld [vmem:[#allocation142_spill] sm:$0xff] }
 0x195   : > { %7139 = vst [vmem:[#allocation109_spill] sm:$0xff] %v5078_v17  ;;  %v1083_v45 = vadd.f32 %v1079_v12, %v1075_v60  ;;  %v900_v16 = vmul.f32 %v4852_v36, %v7143_v27  ;;  %v966_v62 = vadd.f32 %v962_v40, %v957_v32  ;;  %v1103_v29 = vmul.f32 %v7144_v15, %v4898_v28  ;;  %v7147_v27 = vld [vmem:[#allocation144_spill] sm:$0xff] }
 0x196   : > { %7141 = vst [vmem:[#allocation110_spill] sm:$0xff] %v5082_v25  ;;  %v1154_v24 = vadd.f32 %v1150_v49, %v1146_v22  ;;  %v1111_v41 = vmul.f32 %v7145_v31, %v4901_v26  ;;  %v1046_v25 = vadd.f32 %v5001_v23, %v1037_v5  ;;  %v895_v60 = vadd.f32 %v891_v19, %v7088_v9  ;;  %v7148_v23 = vld [vmem:[#allocation145_spill] sm:$0xff] }
 0x197   : > { %v1091_v12 = vadd.f32 %v1087_v7, %v1083_v45  ;;  %v909_v17 = vmul.f32 %v4855_v63, %v7146_v55  ;;  %v975_v35 = vadd.f32 %v971_v10, %v966_v62  ;;  %v1119_v49 = vmul.f32 %v7147_v27, %v4925_v52  ;;  %v7153_v55 = vld [vmem:[#allocation149_spill] sm:$0xff] }
 0x198   : > { %v1162_v61 = vadd.f32 %v1158_v0, %v1154_v24  ;;  %v1127_v40 = vmul.f32 %v4466_v38, %v4929_v43  ;;  %v1135_v32 = vmul.f32 %v4469_v14, %v4939_v8  ;;  %v904_v15 = vadd.f32 %v900_v16, %v895_v60  ;;  %v7149_v38 = vld [vmem:[#allocation147_spill] sm:$0xff] }
 0x199   : > { %v1099_v22 = vadd.f32 %v1095_v57, %v1091_v12  ;;  %v918_v5 = vmul.f32 %v7148_v23, %v4866_v50  ;;  %v984_v45 = vadd.f32 %v980_v48, %v975_v35  ;;  %v1143_v0 = vmul.f32 %v4482_v42, %v4944_v53  ;;  %v7150_v42 = vld [vmem:[#allocation151_spill] sm:$0xff] }
 0x19a   : > { %v1170_v7 = vadd.f32 %v1166_v6, %v1162_v61  ;;  %v1151_v10 = vmul.f32 %v4495_v34, %v4949_v1  ;;  %v1050_v19 = vmax.f32 %v1046_v25, 0.0  ;;  %v913_v62 = vadd.f32 %v909_v17, %v904_v15  ;;  %v7151_v17 = vld [vmem:[#allocation148_spill] sm:$0xff] }
 0x19b   : > { %v1107_v24 = vadd.f32 %v1103_v29, %v1099_v22  ;;  %v927_v57 = vmul.f32 %v7149_v38, %v4875_v21  ;;  %v993_v16 = vadd.f32 %v989_v37, %v984_v45  ;;  %v1159_v31 = vmul.f32 %v4525_v46, %v4961_v33 }
 0x19c   : > { %v1178_v14 = vadd.f32 %v5030_v4, %v1170_v7  ;;  %v1167_v35 = vmul.f32 %v7140_v58, %v4969_v54  ;;  %v5119_v48 = vmul.f32 %v7150_v42, %v4972_v2  ;;  %v922_v34 = vadd.f32 %v918_v5, %v913_v62  ;;  %v7152_v58 = vld [vmem:[#allocation154_spill] sm:$0xff] }
 0x19d   : > { %v1115_v6 = vadd.f32 %v1111_v41, %v1107_v24  ;;  %v936_v25 = vmul.f32 %v7151_v17, %v4881_v20  ;;  %v1002_v12 = vadd.f32 %v998_v47, %v993_v16  ;;  %v1056_v4 = vmul.f32 %v7148_v23, %v4849_v11  ;;  %v7154_v23 = vld [vmem:[#allocation155_spill] sm:$0xff]  ;;  %v7155_v7 = vld [vmem:[#allocation150_spill] sm:$0xff]  ;;  %v7157_v16 = vld [vmem:[#allocation153_spill] sm:$0xff] }
 0x19e   : > { %v1186_v29 = vadd.f32 %v5037_v39, %v1178_v14  ;;  %v1064_v46 = vmul.f32 %v7149_v38, %v4852_v36  ;;  %v5130_v41 = vmul.f32 %v7152_v58, %v4975_v13  ;;  %v931_v60 = vadd.f32 %v927_v57, %v922_v34  ;;  %v7156_v14 = vld [vmem:[#allocation152_spill] sm:$0xff] }
 0x19f   : > { %v1123_v37 = vadd.f32 %v1119_v49, %v1115_v6  ;;  %v945_v61 = vmul.f32 %v7153_v55, %v4898_v28  ;;  %v1011_v22 = vadd.f32 %v1007_v44, %v1002_v12  ;;  %v1060_v39 = vadd.f32 %v1056_v4, %v7088_v9  ;;  %v7158_v34 = vld [vmem:[#allocation156_spill] sm:$0xff] }
 0x1a0   : > { %v1194_v27 = vadd.f32 %v5041_v51, %v1186_v29  ;;  %v1072_v47 = vmul.f32 %v7151_v17, %v4855_v63  ;;  %v5140_v49 = vmul.f32 %v7154_v23, %v4985_v59  ;;  %v940_v5 = vadd.f32 %v936_v25, %v931_v60  ;;  %v7163_v23 = vld [vmem:[#allocation159_spill] sm:$0xff] }
 0x1a1   : > { %v1131_v15 = vadd.f32 %v1127_v40, %v1123_v37  ;;  %v954_v45 = vmul.f32 %v7155_v7, %v4901_v26  ;;  %v1020_v62 = vadd.f32 %v1016_v30, %v1011_v22  ;;  %v1068_v38 = vadd.f32 %v1064_v46, %v1060_v39  ;;  %v7162_v39 = vld [vmem:[#allocation163_spill] sm:$0xff] }
 0x1a2   : > { %v1198_v24 = vmax.f32 %v1194_v27, 0.0  ;;  %v1080_v51 = vmul.f32 %v7153_v55, %v4866_v50  ;;  %v949_v57 = vadd.f32 %v945_v61, %v940_v5  ;;  %v963_v40 = vmul.f32 %v7156_v14, %v4925_v52  ;;  %v7161_v27 = vld [vmem:[#allocation162_spill] sm:$0xff] }
 0x1a3   : > { %v1139_v44 = vadd.f32 %v1135_v32, %v1131_v15  ;;  %v972_v6 = vmul.f32 %v7157_v16, %v4929_v43  ;;  %v981_v17 = vmul.f32 %v7158_v34, %v4939_v8  ;;  %v1076_v25 = vadd.f32 %v1072_v47, %v1068_v38  ;;  %v7159_v32 = vld [vmem:[#allocation157_spill] sm:$0xff] }
 0x1a4   : > { %v1202_v42 = vmax.f32 %v1050_v19, %v1198_v24  ;;  %v1088_v30 = vmul.f32 %v7155_v7, %v4875_v21  ;;  %v1029_v29 = vadd.f32 %v5072_v18, %v1020_v62  ;;  %v958_v4 = vadd.f32 %v954_v45, %v949_v57  ;;  %v7160_v18 = vld [vmem:[#allocation160_spill] sm:$0xff]  ;;  %v7164_v7 = vld [vmem:[#allocation158_spill] sm:$0xff]  ;;  %v7165_v24 = vld [vmem:[#allocation109_spill] sm:$0xff] }
 0x1a5   : > { %v1147_v12 = vadd.f32 %v1143_v0, %v1139_v44  ;;  %v990_v46 = vmul.f32 %v7159_v32, %v4944_v53  ;;  %v999_v37 = vmul.f32 %v4642_v56, %v4949_v1  ;;  %v1008_v19 = vmul.f32 %v4645_v3, %v4961_v33 }
 0x1a6   : > { %3011 = vst [vmem:[%s4629_s28 + $0x1c0] sm:$0xff] %v1202_v42  ;;  %v1084_v58 = vadd.f32 %v1080_v51, %v1076_v25  ;;  %v1096_v60 = vmul.f32 %v7156_v14, %v4881_v20  ;;  %v967_v61 = vadd.f32 %v963_v40, %v958_v4  ;;  %v1017_v0 = vmul.f32 %v7160_v18, %v4969_v54  ;;  %v7166_v51 = vld [vmem:[#allocation161_spill] sm:$0xff]  ;;  %v7168_v42 = vld [vmem:[#allocation164_spill] sm:$0xff] }
 0x1a7   : > { %v1155_v55 = vadd.f32 %v1151_v10, %v1147_v12  ;;  %v1026_v22 = vmul.f32 %v7161_v27, %v4972_v2  ;;  %v5170_v47 = vmul.f32 %v7162_v39, %v4975_v13  ;;  %v1104_v5 = vmul.f32 %v7163_v23, %v4898_v28  ;;  %v7167_v14 = vld [vmem:[#allocation165_spill] sm:$0xff]  ;;  %v7169_v12 = vld [vmem:[#allocation167_spill] sm:$0xff] }
 0x1a8   : > { %v1092_v15 = vadd.f32 %v1088_v30, %v1084_v58  ;;  %v892_v45 = vmul.f32 %v4849_v11, %v7164_v7  ;;  %v1038_v10 = vadd.f32 %v7165_v24, %v1029_v29  ;;  %v976_v38 = vadd.f32 %v972_v6, %v967_v61  ;;  %v7172_v61 = vld [vmem:[#allocation110_spill] sm:$0xff]  ;;  %v7173_v24 = vld [vmem:[#allocation169_spill] sm:$0xff] }
 0x1a9   : > { %v1163_v62 = vadd.f32 %v1159_v31, %v1155_v55  ;;  %v901_v44 = vmul.f32 %v4852_v36, %v7166_v51  ;;  %v1112_v40 = vmul.f32 %v7167_v14, %v4901_v26  ;;  %v910_v34 = vmul.f32 %v4855_v63, %v7168_v42  ;;  %v7170_v31 = vld [vmem:[#allocation166_spill] sm:$0xff] }
 0x1aa   : > { %v1100_v57 = vadd.f32 %v1096_v60, %v1092_v15  ;;  %v896_v16 = vadd.f32 %v892_v45, %v7088_v9  ;;  %v985_v30 = vadd.f32 %v981_v17, %v976_v38  ;;  %v5186_v4 = vmul.f32 %v7169_v12, %v4985_v59  ;;  %v7171_v60 = vld [vmem:[#allocation168_spill] sm:$0xff] }
 0x1ab   : > { %v1171_v25 = vadd.f32 %v1167_v35, %v1163_v62  ;;  %v1120_v6 = vmul.f32 %v7170_v31, %v4925_v52  ;;  %v1128_v32 = vmul.f32 %v4642_v56, %v4929_v43  ;;  %v919_v55 = vmul.f32 %v7171_v60, %v4866_v50 }
 0x1ac   : > { %v1108_v29 = vadd.f32 %v1104_v5, %v1100_v57  ;;  %v905_v58 = vadd.f32 %v901_v44, %v896_v16  ;;  %v1047_v15 = vadd.f32 %v7172_v61, %v1038_v10  ;;  %v994_v17 = vadd.f32 %v990_v46, %v985_v30  ;;  %v7176_v30 = vld [vmem:[#allocation170_spill] sm:$0xff] }
 0x1ad   : > { %v1179_v35 = vadd.f32 %v5119_v48, %v1171_v25  ;;  %v1136_v23 = vmul.f32 %v4645_v3, %v4939_v8  ;;  %v1144_v45 = vmul.f32 %v7160_v18, %v4944_v53  ;;  %v928_v56 = vmul.f32 %v7173_v24, %v4875_v21  ;;  %v7174_v18 = vld [vmem:[#allocation171_spill] sm:$0xff] }
 0x1ae   : > { %v1116_v7 = vadd.f32 %v1112_v40, %v1108_v29  ;;  %v914_v5 = vadd.f32 %v910_v34, %v905_v58  ;;  %v1003_v38 = vadd.f32 %v999_v37, %v994_v17  ;;  %v1152_v10 = vmul.f32 %v7161_v27, %v4949_v1 }
 0x1af   : > { %v1187_v62 = vadd.f32 %v5130_v41, %v1179_v35  ;;  %v1160_v48 = vmul.f32 %v7162_v39, %v4961_v33  ;;  %v1168_v3 = vmul.f32 %v7169_v12, %v4969_v54  ;;  %v937_v44 = vmul.f32 %v7174_v18, %v4881_v20  ;;  %v7175_v41 = vld [vmem:[#allocation174_spill] sm:$0xff] }
 0x1b0   : > { %v1124_v46 = vadd.f32 %v1120_v6, %v1116_v7  ;;  %v923_v51 = vadd.f32 %v919_v55, %v914_v5  ;;  %v1051_v57 = vmax.f32 %v1047_v15, 0.0  ;;  %v1012_v40 = vadd.f32 %v1008_v19, %v1003_v38 }
 0x1b1   : > { %v1195_v14 = vadd.f32 %v5140_v49, %v1187_v62  ;;  %v946_v37 = vmul.f32 %v7175_v41, %v4898_v28  ;;  %v1057_v39 = vmul.f32 %v7171_v60, %v4849_v11  ;;  %v1065_v42 = vmul.f32 %v7173_v24, %v4852_v36  ;;  %v7177_v49 = vld [vmem:[#allocation177_spill] sm:$0xff]  ;;  %v7178_v36 = vld [vmem:[#allocation172_spill] sm:$0xff] }
 0x1b2   : > { %v1132_v16 = vadd.f32 %v1128_v32, %v1124_v46  ;;  %v932_v27 = vadd.f32 %v928_v56, %v923_v51  ;;  %v1021_v25 = vadd.f32 %v1017_v0, %v1012_v40  ;;  %v1176_v12 = vmul.f32 %v7176_v30, %v4972_v2  ;;  %v7179_v0 = vld [vmem:[#allocation178_spill] sm:$0xff]  ;;  %v7183_v56 = vld [vmem:[#allocation179_spill] sm:$0xff] }
 0x1b3   : > { %v1199_v34 = vmax.f32 %v1195_v14, 0.0  ;;  %v955_v19 = vmul.f32 %v7177_v49, %v4901_v26  ;;  %v1061_v29 = vadd.f32 %v1057_v39, %v7088_v9  ;;  %v1073_v32 = vmul.f32 %v7174_v18, %v4855_v63  ;;  %v7181_v63 = vld [vmem:[#allocation175_spill] sm:$0xff]  ;;  %v7185_v18 = vld [vmem:[#allocation180_spill] sm:$0xff]  ;;  %v7192_v39 = vld [vmem:[#allocation182_spill] sm:$0xff] }
 0x1b4   : > { %v1140_v31 = vadd.f32 %v1136_v23, %v1132_v16  ;;  %v941_v6 = vadd.f32 %v937_v44, %v932_v27  ;;  %v1030_v58 = vadd.f32 %v1026_v22, %v1021_v25  ;;  %v1184_v60 = vmul.f32 %v7178_v36, %v4975_v13  ;;  %v7180_v23 = vld [vmem:[#allocation173_spill] sm:$0xff]  ;;  %v7182_v22 = vld [vmem:[#allocation176_spill] sm:$0xff]  ;;  %v7187_v40 = vld [vmem:[#allocation183_spill] sm:$0xff] }
 0x1b5   : > { %v1203_v11 = vmax.f32 %v1051_v57, %v1199_v34  ;;  %v964_v55 = vmul.f32 %v7179_v0, %v4925_v52  ;;  %v1069_v35 = vadd.f32 %v1065_v42, %v1061_v29  ;;  %v1081_v17 = vmul.f32 %v7175_v41, %v4866_v50  ;;  %v7186_v57 = vld [vmem:[#allocation181_spill] sm:$0xff]  ;;  %v7193_v34 = vld [vmem:[#allocation186_spill] sm:$0xff] }
 0x1b6   : > { %v1148_v61 = vadd.f32 %v1144_v45, %v1140_v31  ;;  %v950_v15 = vadd.f32 %v946_v37, %v941_v6  ;;  %v1192_v7 = vmul.f32 %v7180_v23, %v4985_v59  ;;  %v973_v5 = vmul.f32 %v7181_v63, %v4929_v43  ;;  %v5263_v31 = vld [vmem:[%s4179_s3] sm:$0xff] }
 0x1b7   : > { %3012 = vst [vmem:[%s4629_s28 + $0x1c8] sm:$0xff] %v1203_v11  ;;  %v982_v24 = vmul.f32 %v7182_v22, %v4939_v8  ;;  %v991_v62 = vmul.f32 %v7183_v56, %v4944_v53  ;;  %v1077_v46 = vadd.f32 %v1073_v32, %v1069_v35  ;;  %v1089_v50 = vmul.f32 %v7177_v49, %v4875_v21 }
 0x1b8   : > { %v1156_v45 = vadd.f32 %v1152_v10, %v1148_v61  ;;  %v959_v38 = vadd.f32 %v955_v19, %v950_v15  ;;  %v1039_v51 = vadd.f32 %v5170_v47, %v1030_v58  ;;  %v1000_v44 = vmul.f32 %v7185_v18, %v4949_v1  ;;  %v7191_v47 = vld [vmem:[#allocation184_spill] sm:$0xff]  ;;  %v7195_v58 = vld [vmem:[#allocation87_spill] sm:$0xff] }
 0x1b9   : > { %v1009_v14 = vmul.f32 %v7186_v57, %v4961_v33  ;;  %v1018_v41 = vmul.f32 %v7187_v40, %v4969_v54  ;;  %v1085_v16 = vadd.f32 %v1081_v17, %v1077_v46  ;;  %v1097_v21 = vmul.f32 %v7179_v0, %v4881_v20  ;;  %v7196_v0 = vld [vmem:[#allocation185_spill] sm:$0xff]  ;;  %v7197_v61 = vld [vmem:[#allocation187_spill] sm:$0xff] }
 0x1ba   : > { %v1164_v10 = vadd.f32 %v1160_v48, %v1156_v45  ;;  %v968_v37 = vadd.f32 %v964_v55, %v959_v38  ;;  %v5253_v27 = vmul.f32 %v7191_v47, %v4972_v2  ;;  %v1105_v42 = vmul.f32 %v7192_v39, %v4898_v28  ;;  %v5285_v15 = vld [vmem:[%s4179_s3 + $0x1] sm:$0xff] }
 0x1bb   : > { %v1113_v25 = vmul.f32 %v7193_v34, %v4901_v26  ;;  %v5260_v30 = vstv %s7184_s21  ;;  %v1093_v19 = vadd.f32 %v1089_v50, %v1085_v16  ;;  %v1048_v6 = vadd.f32 %v5186_v4, %v1039_v51  ;;  %v5290_v17 = vld [vmem:[%s4179_s3 + $0x2] sm:$0xff]  ;;  %s7305_s21 = sld [smem:[#allocation76_spill]] }
 0x1bc   : > { %v1172_v48 = vadd.f32 %v1168_v3, %v1164_v10  ;;  %v977_v49 = vadd.f32 %v973_v5, %v968_v37  ;;  %v1231_v20 = vmul.f32 %v5263_v31, %v5260_v30  ;;  %v5269_v29 = vstv %s7188_s22  ;;  %v5300_v45 = vld [vmem:[%s4179_s3 + $0x20] sm:$0xff]  ;;  %s7307_s22 = sld [smem:[#allocation77_spill]] }
 0x1bd   : > { %v5272_v28 = vstv %s7189_s23  ;;  %v5275_v26 = vstv %s7190_s24  ;;  %v1101_v3 = vadd.f32 %v1097_v21, %v1093_v19  ;;  %v5280_v55 = vmul.f32 %v7196_v0, %v4975_v13  ;;  %v5314_v37 = vld [vmem:[%s4179_s3 + $0x21] sm:$0xff]  ;;  %s7309_s23 = sld [smem:[#allocation78_spill]] }
 0x1be   : > { %v1180_v32 = vadd.f32 %v1176_v12, %v1172_v48  ;;  %v986_v11 = vadd.f32 %v982_v24, %v977_v49  ;;  %v1235_v36 = vadd.f32 %v1231_v20, %v7195_v58  ;;  %v1121_v4 = vmul.f32 %v7197_v61, %v4925_v52  ;;  %7202 = vst [vmem:[#allocation111_spill] sm:$0xff] %v5314_v37  ;;  %v5326_v34 = vld [vmem:[%s4179_s3 + $0x22] sm:$0xff]  ;;  %s7313_s24 = sld [smem:[#allocation79_spill]] }
 0x1bf   : > { %v1240_v35 = vmul.f32 %v5285_v15, %v5269_v29  ;;  %v1249_v12 = vmul.f32 %v5290_v17, %v5272_v28  ;;  %v1109_v5 = vadd.f32 %v1105_v42, %v1101_v3  ;;  %v5295_v22 = vstv %s7194_s25  ;;  %7205 = vst [vmem:[#allocation112_spill] sm:$0xff] %v5326_v34  ;;  %v5336_v20 = vld [vmem:[%s4179_s3 + $0x40] sm:$0xff]  ;;  %s7320_s25 = sld [smem:[#allocation80_spill]] }
 0x1c0   : > { %v1188_v23 = vadd.f32 %v1184_v60, %v1180_v32  ;;  %v995_v63 = vadd.f32 %v991_v62, %v986_v11  ;;  %v1052_v24 = vmax.f32 %v1048_v6, 0.0  ;;  %v1129_v52 = vmul.f32 %v7185_v18, %v4929_v43  ;;  %v7200_v62 = vld [vmem:[#allocation105_spill] sm:$0xff]  ;;  %7207 = vst [vmem:[#allocation113_spill] sm:$0xff] %v5336_v20  ;;  %v7208_v32 = vld [vmem:[#allocation106_spill] sm:$0xff] }
 0x1c1   : > { %v1244_v56 = vadd.f32 %v1240_v35, %v1235_v36  ;;  %v1258_v38 = vmul.f32 %v5300_v45, %v5275_v26  ;;  %v1117_v60 = vadd.f32 %v1113_v25, %v1109_v5  ;;  %v5305_v51 = vstv %s7198_s26  ;;  %s7321_s26 = sld [smem:[#allocation81_spill]] }
 0x1c2   : > { %v1196_v46 = vadd.f32 %v1192_v7, %v1188_v23  ;;  %v1004_v50 = vadd.f32 %v1000_v44, %v995_v63  ;;  %v5309_v10 = vmul.f32 %v7200_v62, %v4985_v59  ;;  %v1137_v43 = vmul.f32 %v7186_v57, %v4939_v8  ;;  %v5365_v63 = vld [vmem:[%s4179_s3 + $0x42] sm:$0xff] }
 0x1c3   : > { %v1253_v18 = vadd.f32 %v1249_v12, %v1244_v56  ;;  %v1267_v16 = vmul.f32 %v5314_v37, %v5295_v22  ;;  %v1125_v21 = vadd.f32 %v1121_v4, %v1117_v60  ;;  %v5319_v39 = vstv %s7199_s27  ;;  %7214 = vst [vmem:[#allocation117_spill] sm:$0xff] %v5365_v63  ;;  %s7322_s27 = sld [smem:[#allocation82_spill]] }
 0x1c4   : > { %v1200_v7 = vmax.f32 %v1196_v46, 0.0  ;;  %v1013_v44 = vadd.f32 %v1009_v14, %v1004_v50  ;;  %v1145_v42 = vmul.f32 %v7187_v40, %v4944_v53  ;;  %v1153_v8 = vmul.f32 %v7191_v47, %v4949_v1 }
 0x1c5   : > { %v1262_v57 = vadd.f32 %v1258_v38, %v1253_v18  ;;  %v1276_v25 = vmul.f32 %v5326_v34, %v5305_v51  ;;  %v1133_v49 = vadd.f32 %v1129_v52, %v1125_v21  ;;  %v5331_v19 = vstv %s7201_s29  ;;  %v5380_v38 = vld [vmem:[%s4179_s3 + $0x3c1] sm:$0xff] }
 0x1c6   : > { %v1204_v48 = vmax.f32 %v1052_v24, %v1200_v7  ;;  %v1022_v14 = vadd.f32 %v1018_v41, %v1013_v44  ;;  %v1161_v53 = vmul.f32 %v7196_v0, %v4961_v33  ;;  %v1285_v1 = vmul.f32 %v5336_v20, %v5319_v39  ;;  %v5353_v0 = vld [vmem:[%s4179_s3 + $0x41] sm:$0xff]  ;;  %7219 = vst [vmem:[#allocation121_spill] sm:$0xff] %v5380_v38 }
 0x1c7   : > { %v1271_v40 = vadd.f32 %v1267_v16, %v1262_v57  ;;  %v5341_v47 = vstv %s7203_s30  ;;  %v1141_v6 = vadd.f32 %v1137_v43, %v1133_v49  ;;  %v1169_v41 = vmul.f32 %v7200_v62, %v4969_v54  ;;  %7210 = vst [vmem:[#allocation114_spill] sm:$0xff] %v5353_v0  ;;  %v7212_v54 = vld [vmem:[#allocation107_spill] sm:$0xff]  ;;  %v5370_v24 = vld [vmem:[%s4179_s3 + $0x3c0] sm:$0xff] }
 0x1c8   : > { %3013 = vst [vmem:[%s4629_s28 + $0x1d0] sm:$0xff] %v1204_v48  ;;  %v1177_v11 = vmul.f32 %v7208_v32, %v4972_v2  ;;  %v5349_v33 = vstv %s7204_s8  ;;  %v1031_v3 = vadd.f32 %v5253_v27, %v1022_v14  ;;  %v1294_v61 = vmul.f32 %v5353_v0, %v5331_v19  ;;  %v7213_v2 = vld [vmem:[#allocation108_spill] sm:$0xff]  ;;  %7215 = vst [vmem:[#allocation118_spill] sm:$0xff] %v5370_v24 }
 0x1c9   : > { %v1280_v36 = vadd.f32 %v1276_v25, %v1271_v40  ;;  %v5358_v4 = vstv %s7206_s9  ;;  %v1149_v35 = vadd.f32 %v1145_v42, %v1141_v6  ;;  %v1185_v12 = vmul.f32 %v7212_v54, %v4975_v13  ;;  %v5394_v44 = vld [vmem:[%s4179_s3 + $0x3c2] sm:$0xff] }
 0x1ca   : > { %v1193_v23 = vmul.f32 %v7213_v2, %v4985_v59  ;;  %v1303_v27 = vmul.f32 %v5365_v63, %v5341_v47  ;;  %v1312_v52 = vmul.f32 %v5370_v24, %v5349_v33  ;;  %v5375_v56 = vstv %s7209_s1  ;;  %7222 = vst [vmem:[#allocation124_spill] sm:$0xff] %v5394_v44  ;;  %v5410_v49 = vld [vmem:[%s4179_s3 + $0x3e0] sm:$0xff]  ;;  %v5631_v24 = vld [vmem:[%s4179_s3 + $0x68] sm:$0xff] }
 0x1cb   : > { %v1289_v5 = vadd.f32 %v1285_v1, %v1280_v36  ;;  %v1396_v13 = vmul.f32 %v5300_v45, %v5260_v30  ;;  %v1157_v59 = vadd.f32 %v1153_v8, %v1149_v35  ;;  %v1321_v46 = vmul.f32 %v5380_v38, %v5358_v4  ;;  %7223 = vst [vmem:[#allocation125_spill] sm:$0xff] %v5410_v49  ;;  %v5429_v54 = vld [vmem:[%s4179_s3 + $0x3e2] sm:$0xff] }
 0x1cc   : > { %v5385_v50 = vstv %s7211_s12  ;;  %v1404_v60 = vmul.f32 %v5314_v37, %v5269_v29  ;;  %v1040_v62 = vadd.f32 %v5280_v55, %v1031_v3  ;;  %v1412_v16 = vmul.f32 %v5326_v34, %v5272_v28  ;;  %7225 = vst [vmem:[#allocation119_spill] sm:$0xff] %v5429_v54  ;;  %v5607_v38 = vld [vmem:[%s4179_s3 + $0x408] sm:$0xff]  ;;  %7249 = vst [vmem:[#allocation144_spill] sm:$0xff] %v5631_v24 }
 0x1cd   : > { %v1298_v43 = vadd.f32 %v1294_v61, %v1289_v5  ;;  %v1400_v18 = vadd.f32 %v1396_v13, %v7195_v58  ;;  %v1165_v7 = vadd.f32 %v1161_v53, %v1157_v59  ;;  %v1330_v21 = vmul.f32 %v5394_v44, %v5375_v56  ;;  %v5424_v61 = vld [vmem:[%s4179_s3 + $0x3e1] sm:$0xff] }
 0x1ce   : > { %v5399_v42 = vstv %s7216_s13  ;;  %v5402_v8 = vstv %s7217_s15  ;;  %v5405_v57 = vstv %s7218_s0  ;;  %v1420_v48 = vmul.f32 %v5336_v20, %v5275_v26  ;;  %7224 = vst [vmem:[#allocation116_spill] sm:$0xff] %v5424_v61  ;;  %v5583_v44 = vld [vmem:[%s4179_s3 + $0x3e8] sm:$0xff] }
 0x1cf   : > { %v1307_v55 = vadd.f32 %v1303_v27, %v1298_v43  ;;  %v1408_v25 = vadd.f32 %v1404_v60, %v1400_v18  ;;  %v1173_v14 = vadd.f32 %v1169_v41, %v1165_v7  ;;  %v1339_v53 = vmul.f32 %v5410_v49, %v5385_v50  ;;  %v5646_v20 = vld [vmem:[%s4179_s3 + $0x69] sm:$0xff] }
 0x1d0   : > { %v5415_v40 = vstv %s7220_s10  ;;  %v5418_v1 = vstv %s7221_s16  ;;  %v1049_v6 = vadd.f32 %v5309_v10, %v1040_v62  ;;  %v1428_v36 = vmul.f32 %v5353_v0, %v5295_v22  ;;  %v5434_v10 = vld [vmem:[%s4179_s3 + $0x400] sm:$0xff]  ;;  %v5641_v0 = vld [vmem:[%s4179_s3 + $0x11] sm:$0xff]  ;;  %7252 = vst [vmem:[#allocation151_spill] sm:$0xff] %v5646_v20 }
 0x1d1   : > { %v1316_v32 = vadd.f32 %v1312_v52, %v1307_v55  ;;  %v1416_v3 = vadd.f32 %v1412_v16, %v1408_v25  ;;  %v1181_v41 = vadd.f32 %v1177_v11, %v1173_v14  ;;  %v1348_v35 = vmul.f32 %v5424_v61, %v5399_v42  ;;  %7226 = vst [vmem:[#allocation126_spill] sm:$0xff] %v5434_v10  ;;  %v5441_v11 = vld [vmem:[%s4179_s3 + $0x401] sm:$0xff]  ;;  %v5462_v16 = vld [vmem:[%s4179_s3 + $0x9] sm:$0xff] }
 0x1d2   : > { %v1357_v2 = vmul.f32 %v5429_v54, %v5402_v8  ;;  %v5438_v27 = vmul.f32 %v5434_v10, %v5405_v57  ;;  %7227 = vst [vmem:[#allocation115_spill] sm:$0xff] %v5441_v11  ;;  %v5445_v52 = vmul.f32 %v5441_v11, %v5415_v40  ;;  %v1436_v59 = vmul.f32 %v5365_v63, %v5305_v51  ;;  %v5450_v62 = vld [vmem:[%s4179_s3 + $0x402] sm:$0xff] }
 0x1d3   : > { %v1325_v5 = vadd.f32 %v1321_v46, %v1316_v32  ;;  %v1424_v13 = vadd.f32 %v1420_v48, %v1416_v3  ;;  %v1189_v60 = vadd.f32 %v1185_v12, %v1181_v41  ;;  %7228 = vst [vmem:[#allocation122_spill] sm:$0xff] %v5450_v62  ;;  %v5454_v43 = vmul.f32 %v5450_v62, %v5418_v1  ;;  %v5457_v46 = vld [vmem:[%s4179_s3 + $0x8] sm:$0xff]  ;;  %v5467_v48 = vld [vmem:[%s4179_s3 + $0x60] sm:$0xff] }
 0x1d4   : > { %7229 = vst [vmem:[#allocation120_spill] sm:$0xff] %v5457_v46  ;;  %v1232_v18 = vmul.f32 %v5457_v46, %v5260_v30  ;;  %7230 = vst [vmem:[#allocation123_spill] sm:$0xff] %v5462_v16  ;;  %v1241_v7 = vmul.f32 %v5462_v16, %v5269_v29  ;;  %v1053_v55 = vmax.f32 %v1049_v6, 0.0  ;;  %v1444_v14 = vmul.f32 %v5467_v48, %v5319_v39  ;;  %v5472_v3 = vld [vmem:[%s4179_s3 + $0x61] sm:$0xff]  ;;  %v5478_v46 = vld [vmem:[%s4179_s3 + $0xa] sm:$0xff] }
 0x1d5   : > { %v1334_v12 = vadd.f32 %v1330_v21, %v1325_v5  ;;  %v1432_v25 = vadd.f32 %v1428_v36, %v1424_v13  ;;  %7231 = vst [vmem:[#allocation127_spill] sm:$0xff] %v5467_v48  ;;  %v1197_v32 = vadd.f32 %v1193_v23, %v1189_v60  ;;  %7232 = vst [vmem:[#allocation130_spill] sm:$0xff] %v5472_v3  ;;  %v5483_v5 = vld [vmem:[%s4179_s3 + $0x62] sm:$0xff] }
 0x1d6   : > { %v1452_v41 = vmul.f32 %v5472_v3, %v5331_v19  ;;  %v1236_v9 = vadd.f32 %v1232_v18, %v7195_v58  ;;  %7233 = vst [vmem:[#allocation128_spill] sm:$0xff] %v5478_v46  ;;  %v1250_v21 = vmul.f32 %v5478_v46, %v5272_v28  ;;  %7234 = vst [vmem:[#allocation132_spill] sm:$0xff] %v5483_v5  ;;  %v5492_v16 = vld [vmem:[%s4179_s3 + $0x28] sm:$0xff] }
 0x1d7   : > { %v1343_v6 = vadd.f32 %v1339_v53, %v1334_v12  ;;  %v1440_v36 = vadd.f32 %v1436_v59, %v1432_v25  ;;  %v1460_v23 = vmul.f32 %v5483_v5, %v5341_v47  ;;  %v1468_v13 = vmul.f32 %v5410_v49, %v5349_v33  ;;  %7235 = vst [vmem:[#allocation129_spill] sm:$0xff] %v5492_v16  ;;  %v5507_v46 = vld [vmem:[%s4179_s3 + $0x29] sm:$0xff] }
 0x1d8   : > { %v1201_v60 = vmax.f32 %v1197_v32, 0.0  ;;  %v1476_v18 = vmul.f32 %v5424_v61, %v5358_v4  ;;  %v1245_v3 = vadd.f32 %v1241_v7, %v1236_v9  ;;  %v1259_v53 = vmul.f32 %v5492_v16, %v5275_v26  ;;  %7236 = vst [vmem:[#allocation131_spill] sm:$0xff] %v5507_v46  ;;  %v5571_v61 = vld [vmem:[%s4179_s3 + $0x3c9] sm:$0xff]  ;;  %7251 = vst [vmem:[#allocation147_spill] sm:$0xff] %v5641_v0 }
 0x1d9   : > { %v1352_v59 = vadd.f32 %v1348_v35, %v1343_v6  ;;  %v1448_v12 = vadd.f32 %v1444_v14, %v1440_v36  ;;  %v1484_v25 = vmul.f32 %v5429_v54, %v5375_v56  ;;  %v5500_v32 = vmul.f32 %v5434_v10, %v5385_v50  ;;  %v5561_v10 = vld [vmem:[%s4179_s3 + $0x4a] sm:$0xff]  ;;  %7245 = vst [vmem:[#allocation141_spill] sm:$0xff] %v5571_v61 }
 0x1da   : > { %v1205_v5 = vmax.f32 %v1053_v55, %v1201_v60  ;;  %v5504_v9 = vmul.f32 %v5441_v11, %v5399_v42  ;;  %v1254_v7 = vadd.f32 %v1250_v21, %v1245_v3  ;;  %v1268_v35 = vmul.f32 %v5507_v46, %v5295_v22  ;;  %v5516_v55 = vld [vmem:[%s4179_s3 + $0x420] sm:$0xff]  ;;  %v5524_v21 = vld [vmem:[%s4179_s3 + $0x2a] sm:$0xff]  ;;  %7243 = vst [vmem:[#allocation146_spill] sm:$0xff] %v5561_v10 }
 0x1db   : > { %v1361_v14 = vadd.f32 %v1357_v2, %v1352_v59  ;;  %v1456_v6 = vadd.f32 %v1452_v41, %v1448_v12  ;;  %v5513_v36 = vmul.f32 %v5450_v62, %v5402_v8  ;;  %7237 = vst [vmem:[#allocation133_spill] sm:$0xff] %v5516_v55  ;;  %v5520_v60 = vmul.f32 %v5516_v55, %v5405_v57  ;;  %v5533_v62 = vld [vmem:[%s4179_s3 + $0x421] sm:$0xff] }
 0x1dc   : > { %3014 = vst [vmem:[%s4629_s28 + $0x1d8] sm:$0xf] %v1205_v5  ;;  %v1263_v3 = vadd.f32 %v1259_v53, %v1254_v7  ;;  %7238 = vst [vmem:[#allocation134_spill] sm:$0xff] %v5524_v21  ;;  %v1277_v2 = vmul.f32 %v5524_v21, %v5305_v51  ;;  %v1397_v41 = vmul.f32 %v5492_v16, %v5260_v30  ;;  %v5540_v53 = vld [vmem:[%s4179_s3 + $0x422] sm:$0xff] }
 0x1dd   : > { %v1405_v59 = vmul.f32 %v5507_v46, %v5269_v29  ;;  %v1464_v12 = vadd.f32 %v1460_v23, %v1456_v6  ;;  %7239 = vst [vmem:[#allocation137_spill] sm:$0xff] %v5533_v62  ;;  %v5537_v5 = vmul.f32 %v5533_v62, %v5415_v40  ;;  %7240 = vst [vmem:[#allocation135_spill] sm:$0xff] %v5540_v53  ;;  %v5547_v55 = vld [vmem:[%s4179_s3 + $0x48] sm:$0xff] }
 0x1de   : > { %v5544_v7 = vmul.f32 %v5540_v53, %v5418_v1  ;;  %7241 = vst [vmem:[#allocation136_spill] sm:$0xff] %v5547_v55  ;;  %v1286_v46 = vmul.f32 %v5547_v55, %v5319_v39  ;;  %v1272_v23 = vadd.f32 %v1268_v35, %v1263_v3  ;;  %v5552_v6 = vld [vmem:[%s4179_s3 + $0x49] sm:$0xff]  ;;  %v1401_v16 = vadd.f32 %v1397_v41, %v7195_v58 }
 0x1df   : > { %7242 = vst [vmem:[#allocation138_spill] sm:$0xff] %v5552_v6  ;;  %v1295_v62 = vmul.f32 %v5552_v6, %v5331_v19  ;;  %v1413_v48 = vmul.f32 %v5524_v21, %v5272_v28  ;;  %v1370_v53 = vadd.f32 %v5438_v27, %v1361_v14  ;;  %v1472_v11 = vadd.f32 %v1468_v13, %v1464_v12  ;;  %v5566_v3 = vld [vmem:[%s4179_s3 + $0x3c8] sm:$0xff] }
 0x1e0   : > { %v1304_v35 = vmul.f32 %v5561_v10, %v5341_v47  ;;  %7244 = vst [vmem:[#allocation139_spill] sm:$0xff] %v5566_v3  ;;  %v1313_v54 = vmul.f32 %v5566_v3, %v5349_v33  ;;  %v1281_v41 = vadd.f32 %v1277_v2, %v1272_v23  ;;  %v1322_v21 = vmul.f32 %v5571_v61, %v5358_v4  ;;  %v5578_v12 = vld [vmem:[%s4179_s3 + $0x3ca] sm:$0xff] }
 0x1e1   : > { %v1409_v27 = vadd.f32 %v1405_v59, %v1401_v16  ;;  %v1421_v13 = vmul.f32 %v5547_v55, %v5275_v26  ;;  %v1480_v14 = vadd.f32 %v1476_v18, %v1472_v11  ;;  %7246 = vst [vmem:[#allocation140_spill] sm:$0xff] %v5578_v12  ;;  %v1331_v49 = vmul.f32 %v5578_v12, %v5375_v56  ;;  %v5590_v23 = vld [vmem:[%s4179_s3 + $0x3e9] sm:$0xff] }
 0x1e2   : > { %v5587_v2 = vmul.f32 %v5583_v44, %v5385_v50  ;;  %v5594_v16 = vmul.f32 %v5590_v23, %v5399_v42  ;;  %v1290_v11 = vadd.f32 %v1286_v46, %v1281_v41  ;;  %v5597_v18 = vld [vmem:[%s4179_s3 + $0x3ea] sm:$0xff]  ;;  %v1429_v61 = vmul.f32 %v5552_v6, %v5295_v22 }
 0x1e3   : > { %v5601_v59 = vmul.f32 %v5597_v18, %v5402_v8  ;;  %v1417_v12 = vadd.f32 %v1413_v48, %v1409_v27  ;;  %v1379_v3 = vadd.f32 %v5445_v52, %v1370_v53  ;;  %v1488_v55 = vadd.f32 %v1484_v25, %v1480_v14  ;;  %v5614_v41 = vld [vmem:[%s4179_s3 + $0x409] sm:$0xff] }
 0x1e4   : > { %v5611_v46 = vmul.f32 %v5607_v38, %v5405_v57  ;;  %7247 = vst [vmem:[#allocation143_spill] sm:$0xff] %v5614_v41  ;;  %v5618_v48 = vmul.f32 %v5614_v41, %v5415_v40  ;;  %v1299_v27 = vadd.f32 %v1295_v62, %v1290_v11  ;;  %v5621_v6 = vld [vmem:[%s4179_s3 + $0x40a] sm:$0xff]  ;;  %v1437_v53 = vmul.f32 %v5561_v10, %v5305_v51 }
 0x1e5   : > { %7248 = vst [vmem:[#allocation142_spill] sm:$0xff] %v5621_v6  ;;  %v5625_v52 = vmul.f32 %v5621_v6, %v5418_v1  ;;  %v1425_v25 = vadd.f32 %v1421_v13, %v1417_v12  ;;  %v1496_v14 = vadd.f32 %v5500_v32, %v1488_v55  ;;  %v1445_v63 = vmul.f32 %v5631_v24, %v5319_v39  ;;  %v5636_v62 = vld [vmem:[%s4179_s3 + $0x10] sm:$0xff] }
 0x1e6   : > { %7250 = vst [vmem:[#allocation145_spill] sm:$0xff] %v5636_v62  ;;  %v1233_v11 = vmul.f32 %v5636_v62, %v5260_v30  ;;  %v1242_v13 = vmul.f32 %v5641_v0, %v5269_v29  ;;  %v1308_v12 = vadd.f32 %v1304_v35, %v1299_v27  ;;  %v1453_v32 = vmul.f32 %v5646_v20, %v5331_v19  ;;  %v5651_v55 = vld [vmem:[%s4179_s3 + $0x6a] sm:$0xff]  ;;  %v5659_v0 = vld [vmem:[%s4179_s3 + $0x12] sm:$0xff] }
 0x1e7   : > { %v1433_v10 = vadd.f32 %v1429_v61, %v1425_v25  ;;  %7253 = vst [vmem:[#allocation148_spill] sm:$0xff] %v5651_v55  ;;  %v1461_v24 = vmul.f32 %v5651_v55, %v5341_v47  ;;  %v1388_v62 = vadd.f32 %v5454_v43, %v1379_v3  ;;  %v1504_v34 = vadd.f32 %v5504_v9, %v1496_v14  ;;  %v5671_v14 = vld [vmem:[%s4179_s3 + $0x30] sm:$0xff] }
 0x1e8   : > { %v1237_v37 = vadd.f32 %v1233_v11, %v7195_v58  ;;  %7254 = vst [vmem:[#allocation154_spill] sm:$0xff] %v5659_v0  ;;  %v1251_v61 = vmul.f32 %v5659_v0, %v5272_v28  ;;  %v1317_v35 = vadd.f32 %v1313_v54, %v1308_v12  ;;  %v1469_v25 = vmul.f32 %v5583_v44, %v5349_v33  ;;  %v5835_v20 = vld [vmem:[%s4179_s3 + $0x72] sm:$0xff] }
 0x1e9   : > { %v1441_v27 = vadd.f32 %v1437_v53, %v1433_v10  ;;  %v1477_v55 = vmul.f32 %v5590_v23, %v5358_v4  ;;  %v1512_v43 = vadd.f32 %v5513_v36, %v1504_v34  ;;  %v1485_v9 = vmul.f32 %v5597_v18, %v5375_v56  ;;  %7255 = vst [vmem:[#allocation149_spill] sm:$0xff] %v5671_v14 }
 0x1ea   : > { %v1246_v3 = vadd.f32 %v1242_v13, %v1237_v37  ;;  %v1260_v54 = vmul.f32 %v5671_v14, %v5275_v26  ;;  %v1326_v11 = vadd.f32 %v1322_v21, %v1317_v35  ;;  %v1493_v53 = vmul.f32 %v5607_v38, %v5385_v50  ;;  %v5683_v13 = vld [vmem:[%s4179_s3 + $0x31] sm:$0xff]  ;;  %7276 = vst [vmem:[#allocation171_spill] sm:$0xff] %v5835_v20 }
 0x1eb   : > { %v1449_v10 = vadd.f32 %v1445_v63, %v1441_v27  ;;  %v5679_v12 = vmul.f32 %v5614_v41, %v5399_v42  ;;  %v1392_v34 = vmax.f32 %v1388_v62, 0.0  ;;  %v1520_v36 = vadd.f32 %v5520_v60, %v1512_v43  ;;  %7256 = vst [vmem:[#allocation155_spill] sm:$0xff] %v5683_v13  ;;  %v5692_v27 = vld [vmem:[%s4179_s3 + $0x428] sm:$0xff]  ;;  %v5700_v43 = vld [vmem:[%s4179_s3 + $0x32] sm:$0xff] }
 0x1ec   : > { %v1255_v37 = vadd.f32 %v1251_v61, %v1246_v3  ;;  %v1269_v0 = vmul.f32 %v5683_v13, %v5295_v22  ;;  %v1335_v21 = vadd.f32 %v1331_v49, %v1326_v11  ;;  %v5689_v63 = vmul.f32 %v5621_v6, %v5402_v8  ;;  %7257 = vst [vmem:[#allocation150_spill] sm:$0xff] %v5692_v27  ;;  %v5844_v41 = vld [vmem:[%s4179_s3 + $0x38] sm:$0xf] }
 0x1ed   : > { %v1457_v35 = vadd.f32 %v1453_v32, %v1449_v10  ;;  %v5696_v62 = vmul.f32 %v5692_v27, %v5405_v57  ;;  %v1528_v60 = vadd.f32 %v5537_v5, %v1520_v36  ;;  %7258 = vst [vmem:[#allocation152_spill] sm:$0xff] %v5700_v43  ;;  %v1278_v49 = vmul.f32 %v5700_v43, %v5305_v51  ;;  %v5708_v10 = vld [vmem:[%s4179_s3 + $0x50] sm:$0xff] }
 0x1ee   : > { %v1264_v61 = vadd.f32 %v1260_v54, %v1255_v37  ;;  %v1398_v32 = vmul.f32 %v5671_v14, %v5260_v30  ;;  %v1344_v3 = vadd.f32 %v5587_v2, %v1335_v21  ;;  %7259 = vst [vmem:[#allocation153_spill] sm:$0xff] %v5708_v10  ;;  %v1287_v27 = vmul.f32 %v5708_v10, %v5319_v39  ;;  %v5720_v21 = vld [vmem:[%s4179_s3 + $0x429] sm:$0xff] }
 0x1ef   : > { %v1465_v11 = vadd.f32 %v1461_v24, %v1457_v35  ;;  %v1406_v5 = vmul.f32 %v5683_v13, %v5269_v29  ;;  %v1536_v54 = vadd.f32 %v5544_v7, %v1528_v60  ;;  %v1414_v14 = vmul.f32 %v5700_v43, %v5272_v28  ;;  %7260 = vst [vmem:[#allocation156_spill] sm:$0xff] %v5720_v21  ;;  %v5727_v13 = vld [vmem:[%s4179_s3 + $0x51] sm:$0xff] }
 0x1f0   : > { %v1273_v36 = vadd.f32 %v1269_v0, %v1264_v61  ;;  %v1402_v37 = vadd.f32 %v1398_v32, %v7195_v58  ;;  %v1353_v24 = vadd.f32 %v5594_v16, %v1344_v3  ;;  %v5724_v35 = vmul.f32 %v5720_v21, %v5415_v40  ;;  %7261 = vst [vmem:[#allocation157_spill] sm:$0xff] %v5727_v13  ;;  %v5735_v3 = vld [vmem:[%s4179_s3 + $0x42a] sm:$0xff]  ;;  %v5742_v21 = vld [vmem:[%s4179_s3 + $0x52] sm:$0xff] }
 0x1f1   : > { %v1473_v2 = vadd.f32 %v1469_v25, %v1465_v11  ;;  %v1296_v0 = vmul.f32 %v5727_v13, %v5331_v19  ;;  %v1540_v7 = vmax.f32 %v1536_v54, 0.0  ;;  %v1422_v16 = vmul.f32 %v5708_v10, %v5275_v26  ;;  %7262 = vst [vmem:[#allocation160_spill] sm:$0xff] %v5735_v3  ;;  %7263 = vst [vmem:[#allocation162_spill] sm:$0xff] %v5742_v21  ;;  %v5809_v10 = vld [vmem:[%s4179_s3 + $0x411] sm:$0xff] }
 0x1f2   : > { %v1282_v60 = vadd.f32 %v1278_v49, %v1273_v36  ;;  %v1410_v61 = vadd.f32 %v1406_v5, %v1402_v37  ;;  %v1362_v25 = vadd.f32 %v5601_v59, %v1353_v24  ;;  %v5739_v11 = vmul.f32 %v5735_v3, %v5418_v1  ;;  %v5750_v24 = vld [vmem:[%s4179_s3 + $0x3d0] sm:$0xff]  ;;  %7272 = vst [vmem:[#allocation166_spill] sm:$0xff] %v5809_v10 }
 0x1f3   : > { %v1481_v32 = vadd.f32 %v1477_v55, %v1473_v2  ;;  %v1305_v49 = vmul.f32 %v5742_v21, %v5341_v47  ;;  %v1544_v5 = vmax.f32 %v1392_v34, %v1540_v7  ;;  %v1430_v59 = vmul.f32 %v5727_v13, %v5295_v22  ;;  %7264 = vst [vmem:[#allocation163_spill] sm:$0xff] %v5750_v24  ;;  %v5755_v3 = vld [vmem:[%s4179_s3 + $0x3d1] sm:$0xff]  ;;  %v5804_v13 = vld [vmem:[%s4179_s3 + $0x19] sm:$0xf] }
 0x1f4   : > { %v1291_v54 = vadd.f32 %v1287_v27, %v1282_v60  ;;  %v1418_v36 = vadd.f32 %v1414_v14, %v1410_v61  ;;  %v1371_v55 = vadd.f32 %v5611_v46, %v1362_v25  ;;  %v1314_v2 = vmul.f32 %v5750_v24, %v5349_v33  ;;  %7265 = vst [vmem:[#allocation159_spill] sm:$0xff] %v5755_v3  ;;  %v5761_v27 = vld [vmem:[%s4179_s3 + $0x3d2] sm:$0xff] }
 0x1f5   : > { %v1489_v37 = vadd.f32 %v1485_v9, %v1481_v32  ;;  %v1323_v34 = vmul.f32 %v5755_v3, %v5358_v4  ;;  %3029 = vst [vmem:[%s4629_s28 + $0x380] sm:$0xff] %v1544_v5  ;;  %7266 = vst [vmem:[#allocation158_spill] sm:$0xff] %v5761_v27  ;;  %v1332_v46 = vmul.f32 %v5761_v27, %v5375_v56  ;;  %v5768_v61 = vld [vmem:[%s4179_s3 + $0x3f0] sm:$0xff] }
 0x1f6   : > { %v1300_v14 = vadd.f32 %v1296_v0, %v1291_v54  ;;  %v1426_v9 = vadd.f32 %v1422_v16, %v1418_v36  ;;  %v1438_v7 = vmul.f32 %v5742_v21, %v5305_v51  ;;  %v1341_v25 = vmul.f32 %v5768_v61, %v5385_v50  ;;  %v5773_v32 = vld [vmem:[%s4179_s3 + $0x3f1] sm:$0xff]  ;;  %7271 = vst [vmem:[#allocation167_spill] sm:$0xff] %v5804_v13 }
 0x1f7   : > { %v1497_v60 = vadd.f32 %v1493_v53, %v1489_v37  ;;  %v1350_v0 = vmul.f32 %v5773_v32, %v5399_v42  ;;  %v5778_v5 = vld [vmem:[%s4179_s3 + $0x3f2] sm:$0xff]  ;;  %v1380_v24 = vadd.f32 %v5618_v48, %v1371_v55  ;;  %v5813_v48 = vmul.f32 %v5809_v10, %v5415_v40  ;;  %7277 = vst [vmem:[#allocation174_spill] sm:$0xff] %v5844_v41 }
 0x1f8   : > { %7267 = vst [vmem:[#allocation109_spill] sm:$0xff] %v5778_v5  ;;  %v5782_v16 = vmul.f32 %v5778_v5, %v5402_v8  ;;  %v1309_v54 = vadd.f32 %v1305_v49, %v1300_v14  ;;  %v5785_v53 = vld [vmem:[%s4179_s3 + $0x410] sm:$0xff]  ;;  %v1434_v37 = vadd.f32 %v1430_v59, %v1426_v9  ;;  %v5799_v49 = vld [vmem:[%s4179_s3 + $0x18] sm:$0xf]  ;;  %v1243_v59 = vmul.f32 %v5804_v13, %v5269_v29 }
 0x1f9   : > { %7268 = vst [vmem:[#allocation161_spill] sm:$0xff] %v5785_v53  ;;  %v5789_v36 = vmul.f32 %v5785_v53, %v5405_v57  ;;  %v5792_v27 = vld [vmem:[%s4179_s3 + $0x70] sm:$0xff]  ;;  %v1505_v21 = vadd.f32 %v5679_v12, %v1497_v60  ;;  %7270 = vst [vmem:[#allocation164_spill] sm:$0xff] %v5799_v49  ;;  %v1234_v14 = vmul.f32 %v5799_v49, %v5260_v30  ;;  %v5830_v13 = vld [vmem:[%s4179_s3 + $0x1a] sm:$0xf] }
 0x1fa   : > { %7269 = vst [vmem:[#allocation165_spill] sm:$0xff] %v5792_v27  ;;  %v1446_v3 = vmul.f32 %v5792_v27, %v5319_v39  ;;  %v1318_v9 = vadd.f32 %v1314_v2, %v1309_v54  ;;  %v1442_v55 = vadd.f32 %v1438_v7, %v1434_v37  ;;  %v5816_v12 = vld [vmem:[%s4179_s3 + $0x71] sm:$0xff]  ;;  %7275 = vst [vmem:[#allocation169_spill] sm:$0xff] %v5830_v13 }
 0x1fb   : > { %7273 = vst [vmem:[#allocation168_spill] sm:$0xff] %v5816_v12  ;;  %v1454_v60 = vmul.f32 %v5816_v12, %v5331_v19  ;;  %v1513_v49 = vadd.f32 %v5689_v63, %v1505_v21  ;;  %v5822_v27 = vld [vmem:[%s4179_s3 + $0x412] sm:$0xff]  ;;  %v1238_v54 = vadd.f32 %v1234_v14, %v7195_v58  ;;  %v1252_v7 = vmul.f32 %v5830_v13, %v5272_v28 }
 0x1fc   : > { %7274 = vst [vmem:[#allocation110_spill] sm:$0xff] %v5822_v27  ;;  %v5826_v2 = vmul.f32 %v5822_v27, %v5418_v1  ;;  %v1327_v37 = vadd.f32 %v1323_v34, %v1318_v9  ;;  %v1450_v43 = vadd.f32 %v1446_v3, %v1442_v55  ;;  %v1462_v63 = vmul.f32 %v5835_v20, %v5341_v47 }
 0x1fd   : > { %v1470_v21 = vmul.f32 %v5768_v61, %v5349_v33  ;;  %v1389_v12 = vadd.f32 %v5625_v52, %v1380_v24  ;;  %v1521_v14 = vadd.f32 %v5696_v62, %v1513_v49  ;;  %v1247_v6 = vadd.f32 %v1243_v59, %v1238_v54  ;;  %v5856_v24 = vld [vmem:[%s4179_s3 + $0x39] sm:$0xf] }
 0x1fe   : > { %v1261_v34 = vmul.f32 %v5844_v41, %v5275_v26  ;;  %v1336_v3 = vadd.f32 %v1332_v46, %v1327_v37  ;;  %v1458_v9 = vadd.f32 %v1454_v60, %v1450_v43  ;;  %v1478_v55 = vmul.f32 %v5773_v32, %v5358_v4  ;;  %7278 = vst [vmem:[#allocation170_spill] sm:$0xff] %v5856_v24 }
 0x1ff   : > { %v1486_v20 = vmul.f32 %v5778_v5, %v5375_v56  ;;  %v1529_v13 = vadd.f32 %v5724_v35, %v1521_v14  ;;  %v1494_v52 = vmul.f32 %v5785_v53, %v5385_v50  ;;  %v1256_v62 = vadd.f32 %v1252_v7, %v1247_v6  ;;  %v5866_v14 = vld [vmem:[%s4179_s3 + $0x3a] sm:$0xf] }
 0x200   : > { %v1270_v46 = vmul.f32 %v5856_v24, %v5295_v22  ;;  %v1345_v49 = vadd.f32 %v1341_v25, %v1336_v3  ;;  %v1466_v43 = vadd.f32 %v1462_v63, %v1458_v9  ;;  %v1502_v59 = vmul.f32 %v5809_v10, %v5399_v42  ;;  %7279 = vst [vmem:[#allocation177_spill] sm:$0xff] %v5866_v14  ;;  %v5871_v3 = vld [vmem:[%s4179_s3 + $0x430] sm:$0xff] }
 0x201   : > { %v1510_v60 = vmul.f32 %v5822_v27, %v5402_v8  ;;  %v1393_v35 = vmax.f32 %v1389_v12, 0.0  ;;  %v1537_v54 = vadd.f32 %v5739_v11, %v1529_v13  ;;  %v1265_v37 = vadd.f32 %v1261_v34, %v1256_v62  ;;  %7280 = vst [vmem:[#allocation172_spill] sm:$0xff] %v5871_v3  ;;  %v5878_v11 = vld [vmem:[%s4179_s3 + $0x58] sm:$0xf] }
 0x202   : > { %v1279_v6 = vmul.f32 %v5866_v14, %v5305_v51  ;;  %v1354_v7 = vadd.f32 %v1350_v0, %v1345_v49  ;;  %v1474_v25 = vadd.f32 %v1470_v21, %v1466_v43  ;;  %v1518_v63 = vmul.f32 %v5871_v3, %v5405_v57  ;;  %7281 = vst [vmem:[#allocation178_spill] sm:$0xff] %v5878_v11  ;;  %v5889_v43 = vld [vmem:[%s4179_s3 + $0x431] sm:$0xff]  ;;  %v5983_v3 = vld [vmem:[%s4179_s3 + $0x7a] sm:$0xf] }
 0x203   : > { %v1399_v12 = vmul.f32 %v5844_v41, %v5260_v30  ;;  %v1541_v9 = vmax.f32 %v1537_v54, 0.0  ;;  %v1274_v13 = vadd.f32 %v1270_v46, %v1265_v37  ;;  %v1288_v34 = vmul.f32 %v5878_v11, %v5319_v39  ;;  %7282 = vst [vmem:[#allocation173_spill] sm:$0xff] %v5889_v43  ;;  %7302 = vst [vmem:[#allocation106_spill] sm:$0xff] %v5983_v3 }
 0x204   : > { %v1407_v0 = vmul.f32 %v5856_v24, %v5269_v29  ;;  %v1363_v21 = vadd.f32 %v5782_v16, %v1354_v7  ;;  %v1482_v62 = vadd.f32 %v1478_v55, %v1474_v25  ;;  %v1415_v30 = vmul.f32 %v5866_v14, %v5272_v28  ;;  %v5894_v29 = vld [vmem:[%s4179_s3 + $0x59] sm:$0xf] }
 0x205   : > { %v1403_v49 = vadd.f32 %v1399_v12, %v7195_v58  ;;  %v1545_v46 = vmax.f32 %v1393_v35, %v1541_v9  ;;  %v1526_v54 = vmul.f32 %v5889_v43, %v5415_v40  ;;  %v1283_v37 = vadd.f32 %v1279_v6, %v1274_v13  ;;  %7283 = vst [vmem:[#allocation175_spill] sm:$0xff] %v5894_v29  ;;  %v5903_v35 = vld [vmem:[%s4179_s3 + $0x432] sm:$0xff]  ;;  %v5908_v9 = vld [vmem:[%s4179_s3 + $0x5a] sm:$0xf] }
 0x206   : > { %v1297_v16 = vmul.f32 %v5894_v29, %v5331_v19  ;;  %v1372_v55 = vadd.f32 %v5789_v36, %v1363_v21  ;;  %v1490_v7 = vadd.f32 %v1486_v20, %v1482_v62  ;;  %v1423_v28 = vmul.f32 %v5878_v11, %v5275_v26  ;;  %7284 = vst [vmem:[#allocation176_spill] sm:$0xff] %v5903_v35  ;;  %v5913_v20 = vld [vmem:[%s4179_s3 + $0x3d8] sm:$0xf] }
 0x207   : > { %v1411_v25 = vadd.f32 %v1407_v0, %v1403_v49  ;;  %3030 = vst [vmem:[%s4629_s28 + $0x388] sm:$0xff] %v1545_v46  ;;  %v1534_v6 = vmul.f32 %v5903_v35, %v5418_v1  ;;  %v1292_v12 = vadd.f32 %v1288_v34, %v1283_v37  ;;  %7285 = vst [vmem:[#allocation179_spill] sm:$0xff] %v5908_v9  ;;  %v5918_v0 = vld [vmem:[%s4179_s3 + $0x3d9] sm:$0xf] }
 0x208   : > { %v1306_v36 = vmul.f32 %v5908_v9, %v5341_v47  ;;  %7286 = vst [vmem:[#allocation180_spill] sm:$0xff] %v5913_v20  ;;  %v1315_v13 = vmul.f32 %v5913_v20, %v5349_v33  ;;  %v1498_v26 = vadd.f32 %v1494_v52, %v1490_v7  ;;  %7287 = vst [vmem:[#allocation181_spill] sm:$0xff] %v5918_v0  ;;  %v5925_v46 = vld [vmem:[%s4179_s3 + $0x3da] sm:$0xf] }
 0x209   : > { %v1324_v21 = vmul.f32 %v5918_v0, %v5358_v4  ;;  %v1419_v62 = vadd.f32 %v1415_v30, %v1411_v25  ;;  %v1431_v34 = vmul.f32 %v5894_v29, %v5295_v22  ;;  %v1301_v49 = vadd.f32 %v1297_v16, %v1292_v12  ;;  %7288 = vst [vmem:[#allocation183_spill] sm:$0xff] %v5925_v46  ;;  %v5930_v58 = vld [vmem:[%s4179_s3 + $0x3f8] sm:$0xf] }
 0x20a   : > { %v1333_v37 = vmul.f32 %v5925_v46, %v5375_v56  ;;  %7289 = vst [vmem:[#allocation184_spill] sm:$0xff] %v5930_v58  ;;  %v1342_v52 = vmul.f32 %v5930_v58, %v5385_v50  ;;  %v5935_v7 = vld [vmem:[%s4179_s3 + $0x3f9] sm:$0xf]  ;;  %v1381_v22 = vadd.f32 %v5813_v48, %v1372_v55  ;;  %v1506_v16 = vadd.f32 %v1502_v59, %v1498_v26 }
 0x20b   : > { %7290 = vst [vmem:[#allocation182_spill] sm:$0xff] %v5935_v7  ;;  %v1351_v30 = vmul.f32 %v5935_v7, %v5399_v42  ;;  %v1427_v25 = vadd.f32 %v1423_v28, %v1419_v62  ;;  %v1439_v12 = vmul.f32 %v5908_v9, %v5305_v51  ;;  %v1310_v46 = vadd.f32 %v1306_v36, %v1301_v49  ;;  %v5943_v0 = vld [vmem:[%s4179_s3 + $0x3fa] sm:$0xf] }
 0x20c   : > { %7294 = vst [vmem:[#allocation186_spill] sm:$0xff] %v5943_v0  ;;  %v1360_v20 = vmul.f32 %v5943_v0, %v5402_v8  ;;  %v5948_v35 = vld [vmem:[%s4179_s3 + $0x418] sm:$0xf]  ;;  %v1514_v59 = vadd.f32 %v1510_v60, %v1506_v16  ;;  %v5963_v36 = vstv %s7291_s2  ;;  %v5968_v49 = vstv %s7292_s17 }
 0x20d   : > { %7295 = vst [vmem:[#allocation185_spill] sm:$0xff] %v5948_v35  ;;  %v1369_v43 = vmul.f32 %v5948_v35, %v5405_v57  ;;  %v5953_v29 = vld [vmem:[%s4179_s3 + $0x78] sm:$0xf]  ;;  %v1435_v51 = vadd.f32 %v1431_v34, %v1427_v25  ;;  %v1319_v26 = vadd.f32 %v1315_v13, %v1310_v46  ;;  %v1573_v62 = vmul.f32 %v5263_v31, %v5963_v36  ;;  %v7300_v25 = vld [vmem:[#allocation88_spill] sm:$0xff] }
 0x20e   : > { %7296 = vst [vmem:[#allocation187_spill] sm:$0xff] %v5953_v29  ;;  %v1447_v48 = vmul.f32 %v5953_v29, %v5319_v39  ;;  %v5958_v55 = vld [vmem:[%s4179_s3 + $0x79] sm:$0xf]  ;;  %v5971_v9 = vstv %s7293_s14  ;;  %v1390_v39 = vadd.f32 %v5826_v2, %v1381_v22  ;;  %v1522_v60 = vadd.f32 %v1518_v63, %v1514_v59 }
 0x20f   : > { %7298 = vst [vmem:[#allocation105_spill] sm:$0xff] %v5958_v55  ;;  %v1455_v28 = vmul.f32 %v5958_v55, %v5331_v19  ;;  %v1443_v34 = vadd.f32 %v1439_v12, %v1435_v51  ;;  %v1582_v16 = vmul.f32 %v5285_v15, %v5968_v49  ;;  %v1328_v19 = vadd.f32 %v1324_v21, %v1319_v26  ;;  %v5998_v26 = vld [vmem:[%s4179_s3 + $0x419] sm:$0xf] }
 0x210   : > { %v1577_v55 = vadd.f32 %v1573_v62, %v7300_v25  ;;  %v1591_v13 = vmul.f32 %v5290_v17, %v5971_v9  ;;  %v5980_v31 = vstv %s7297_s4  ;;  %v1530_v46 = vadd.f32 %v1526_v54, %v1522_v60  ;;  %7304 = vst [vmem:[#allocation107_spill] sm:$0xff] %v5998_v26 }
 0x211   : > { %v1451_v29 = vadd.f32 %v1447_v48, %v1443_v34  ;;  %v1463_v2 = vmul.f32 %v5983_v3, %v5341_v47  ;;  %v5988_v63 = vstv %s7299_s18  ;;  %v1337_v15 = vadd.f32 %v1333_v37, %v1328_v19 }
 0x212   : > { %v1471_v21 = vmul.f32 %v5930_v58, %v5349_v33  ;;  %v1586_v22 = vadd.f32 %v1582_v16, %v1577_v55  ;;  %v1600_v17 = vmul.f32 %v5300_v45, %v5980_v31  ;;  %v1394_v12 = vmax.f32 %v1390_v39, 0.0  ;;  %v7306_v33 = vld [vmem:[#allocation111_spill] sm:$0xff]  ;;  %v7310_v16 = vld [vmem:[#allocation112_spill] sm:$0xff] }
 0x213   : > { %v1538_v54 = vadd.f32 %v1534_v6, %v1530_v46  ;;  %v1459_v48 = vadd.f32 %v1455_v28, %v1451_v29  ;;  %v5995_v59 = vstv %s7301_s19  ;;  %v1346_v51 = vadd.f32 %v1342_v52, %v1337_v15  ;;  %v6010_v52 = vld [vmem:[%s4179_s3 + $0x41a] sm:$0xf]  ;;  %s7410_s19 = sld [smem:[#allocation189_spill]] (%p431_p7) }
 0x214   : > { %v1378_v47 = vmul.f32 %v5998_v26, %v5415_v40  ;;  %v1595_v37 = vadd.f32 %v1591_v13, %v1586_v22  ;;  %v1609_v55 = vmul.f32 %v7306_v33, %v5988_v63  ;;  %v1479_v6 = vmul.f32 %v5935_v7, %v5358_v4  ;;  %7308 = vst [vmem:[#allocation108_spill] sm:$0xff] %v6010_v52  ;;  %v7333_v7 = vld [vmem:[#allocation123_spill] sm:$0xff] }
 0x215   : > { %v1542_v62 = vmax.f32 %v1538_v54, 0.0  ;;  %v1467_v60 = vadd.f32 %v1463_v2, %v1459_v48  ;;  %v6007_v29 = vstv %s7303_s20  ;;  %v1355_v28 = vadd.f32 %v1351_v30, %v1346_v51 }
 0x216   : > { %v1387_v39 = vmul.f32 %v6010_v52, %v5418_v1  ;;  %v1604_v34 = vadd.f32 %v1600_v17, %v1595_v37  ;;  %v1618_v19 = vmul.f32 %v7310_v16, %v5995_v59  ;;  %v1487_v4 = vmul.f32 %v5943_v0, %v5375_v56  ;;  %v7312_v17 = vld [vmem:[#allocation113_spill] sm:$0xff]  ;;  %v7314_v37 = vld [vmem:[#allocation114_spill] sm:$0xff]  ;;  %v7328_v0 = vld [vmem:[#allocation119_spill] sm:$0xff] }
 0x217   : > { %v6016_v13 = vmax.f32 %v1394_v12, %v1542_v62  ;;  %v1475_v46 = vadd.f32 %v1471_v21, %v1467_v60  ;;  %v6021_v2 = vstv %s7305_s21  ;;  %v1364_v30 = vadd.f32 %v1360_v20, %v1355_v28  ;;  %v6042_v60 = vld [vmem:[%s4179_s3 + $0x438] sm:$0xf] }
 0x218   : > { %v1495_v15 = vmul.f32 %v5948_v35, %v5385_v50  ;;  %v1613_v22 = vadd.f32 %v1609_v55, %v1604_v34  ;;  %v1627_v54 = vmul.f32 %v7312_v17, %v6007_v29  ;;  %v1503_v56 = vmul.f32 %v5998_v26, %v5399_v42  ;;  %7315 = vst [vmem:[#allocation112_spill] sm:$0xff] %v6042_v60  ;;  %v6047_v42 = vld [vmem:[%s4179_s3 + $0x439] sm:$0xf] }
 0x219   : > { %7311 = vst [vmem:[#allocation111_spill] sm:$0xff] %v6016_v13  ;;  %3031 = vst [vmem:[%s4629_s28 + $0x390] sm:$0xff] %v6016_v13  ;;  %v1483_v21 = vadd.f32 %v1479_v6, %v1475_v46  ;;  %v6032_v12 = vstv %s7307_s22  ;;  %v6035_v48 = vstv %s7309_s23  ;;  %v1373_v20 = vadd.f32 %v1369_v43, %v1364_v30  ;;  %v7318_v46 = vld [vmem:[#allocation117_spill] sm:$0xff] }
 0x21a   : > { %v1511_v50 = vmul.f32 %v6010_v52, %v5402_v8  ;;  %v1622_v51 = vadd.f32 %v1618_v19, %v1613_v22  ;;  %v1636_v55 = vmul.f32 %v7314_v37, %v6021_v2  ;;  %v1519_v6 = vmul.f32 %v6042_v60, %v5405_v57  ;;  %7316 = vst [vmem:[#allocation113_spill] sm:$0xff] %v6047_v42  ;;  %v6055_v8 = vld [vmem:[%s4179_s3 + $0x43a] sm:$0xf]  ;;  %v7319_v57 = vld [vmem:[#allocation118_spill] sm:$0xff]  ;;  %s7325_s3 = sld [smem:[#allocation83_spill]] }
 0x21b   : > { %v1491_v62 = vadd.f32 %v1487_v4, %v1483_v21  ;;  %v1527_v43 = vmul.f32 %v6047_v42, %v5415_v40  ;;  %v6052_v28 = vstv %s7313_s24  ;;  %7317 = vst [vmem:[#allocation114_spill] sm:$0xff] %v6055_v8  ;;  %v1535_v34 = vmul.f32 %v6055_v8, %v5418_v1 }
 0x21c   : > { %v1631_v19 = vadd.f32 %v1627_v54, %v1622_v51  ;;  %v1645_v4 = vmul.f32 %v7318_v46, %v6032_v12  ;;  %v1654_v30 = vmul.f32 %v7319_v57, %v6035_v48  ;;  %v6064_v21 = vstv %s3786_s6  ;;  %v7323_v51 = vld [vmem:[#allocation121_spill] sm:$0xff] }
 0x21d   : > { %v1499_v22 = vadd.f32 %v1495_v15, %v1491_v62  ;;  %v1738_v40 = vmul.f32 %v5300_v45, %v5963_v36  ;;  %v1746_v42 = vmul.f32 %v7306_v33, %v5968_v49  ;;  %v1382_v1 = vadd.f32 %v1378_v47, %v1373_v20  ;;  %v7324_v45 = vld [vmem:[#allocation124_spill] sm:$0xff] }
 0x21e   : > { %v1640_v54 = vadd.f32 %v1636_v55, %v1631_v19  ;;  %v1663_v8 = vmul.f32 %v7323_v51, %v6052_v28  ;;  %v6073_v60 = vstv %s3788_s5  ;;  %v6076_v57 = vstv %s3790_s11  ;;  %s7409_s11 = sld [smem:[#allocation188_spill]] (%p431_p7) }
 0x21f   : > { %v1507_v52 = vadd.f32 %v1503_v56, %v1499_v22  ;;  %v1742_v15 = vadd.f32 %v1738_v40, %v7300_v25  ;;  %v1754_v62 = vmul.f32 %v7310_v16, %v5971_v9  ;;  %v1672_v35 = vmul.f32 %v7324_v45, %v6064_v21  ;;  %v7326_v16 = vld [vmem:[#allocation125_spill] sm:$0xff] }
 0x220   : > { %v1649_v26 = vadd.f32 %v1645_v4, %v1640_v54  ;;  %v6084_v33 = vstv %s7320_s25  ;;  %v6087_v47 = vstv %s7321_s26  ;;  %v6090_v55 = vstv %s7322_s27  ;;  %v7327_v54 = vld [vmem:[#allocation116_spill] sm:$0xff] }
 0x221   : > { %v1515_v20 = vadd.f32 %v1511_v50, %v1507_v52  ;;  %v1750_v56 = vadd.f32 %v1746_v42, %v1742_v15  ;;  %v1762_v19 = vmul.f32 %v7312_v17, %v5980_v31  ;;  %v1391_v22 = vadd.f32 %v1387_v39, %v1382_v1  ;;  %v7329_v42 = vld [vmem:[#allocation126_spill] sm:$0xff] }
 0x222   : > { %v1658_v40 = vadd.f32 %v1654_v30, %v1649_v26  ;;  %v1681_v4 = vmul.f32 %v7326_v16, %v6073_v60  ;;  %v1690_v51 = vmul.f32 %v7327_v54, %v6076_v57  ;;  %v1699_v13 = vmul.f32 %v7328_v0, %v6084_v33  ;;  %v7330_v26 = vld [vmem:[#allocation115_spill] sm:$0xff] }
 0x223   : > { %v1523_v45 = vadd.f32 %v1519_v6, %v1515_v20  ;;  %v1758_v3 = vadd.f32 %v1754_v62, %v1750_v56  ;;  %v1770_v52 = vmul.f32 %v7314_v37, %v5988_v63  ;;  %v1708_v17 = vmul.f32 %v7329_v42, %v6087_v47  ;;  %v7331_v62 = vld [vmem:[#allocation120_spill] sm:$0xff] }
 0x224   : > { %v1667_v50 = vadd.f32 %v1663_v8, %v1658_v40  ;;  %v6106_v39 = vmul.f32 %v7330_v26, %v6090_v55  ;;  %v6109_v30 = vstv %s7325_s3  ;;  %v1778_v6 = vmul.f32 %v7318_v46, %v5995_v59  ;;  %v7332_v8 = vld [vmem:[#allocation127_spill] sm:$0xff]  ;;  %v7335_v46 = vld [vmem:[#allocation122_spill] sm:$0xff] }
 0x225   : > { %v1531_v1 = vadd.f32 %v1527_v43, %v1523_v45  ;;  %v1766_v15 = vadd.f32 %v1762_v19, %v1758_v3  ;;  %v1574_v20 = vmul.f32 %v7331_v62, %v5963_v36  ;;  %v1395_v56 = vmax.f32 %v1391_v22, 0.0  ;;  %v7334_v3 = vld [vmem:[#allocation128_spill] sm:$0xff] }
 0x226   : > { %v1676_v37 = vadd.f32 %v1672_v35, %v1667_v50  ;;  %v1786_v40 = vmul.f32 %v7332_v8, %v6007_v29  ;;  %v1583_v58 = vmul.f32 %v7333_v7, %v5968_v49  ;;  %v1592_v43 = vmul.f32 %v7334_v3, %v5971_v9  ;;  %v7336_v35 = vld [vmem:[#allocation130_spill] sm:$0xff]  ;;  %v7337_v50 = vld [vmem:[#allocation132_spill] sm:$0xff] }
 0x227   : > { %v1539_v11 = vadd.f32 %v1535_v34, %v1531_v1  ;;  %v1774_v14 = vadd.f32 %v1770_v52, %v1766_v15  ;;  %v1578_v24 = vadd.f32 %v1574_v20, %v7300_v25  ;;  %v6124_v45 = vmul.f32 %v7335_v46, %v6109_v30  ;;  %v7338_v52 = vld [vmem:[#allocation129_spill] sm:$0xff] }
 0x228   : > { %v1685_v19 = vadd.f32 %v1681_v4, %v1676_v37  ;;  %v1794_v22 = vmul.f32 %v7336_v35, %v6021_v2  ;;  %v1802_v62 = vmul.f32 %v7337_v50, %v6032_v12  ;;  %v1601_v1 = vmul.f32 %v7338_v52, %v5980_v31 }
 0x229   : > { %v1543_v8 = vmax.f32 %v1539_v11, 0.0  ;;  %v1782_v7 = vadd.f32 %v1778_v6, %v1774_v14  ;;  %v1587_v34 = vadd.f32 %v1583_v58, %v1578_v24  ;;  %v1810_v4 = vmul.f32 %v7326_v16, %v6035_v48  ;;  %v7339_v11 = vld [vmem:[#allocation131_spill] sm:$0xff] }
 0x22a   : > { %v1694_v15 = vadd.f32 %v1690_v51, %v1685_v19  ;;  %v1818_v20 = vmul.f32 %v7327_v54, %v6052_v28  ;;  %v1826_v37 = vmul.f32 %v7328_v0, %v6064_v21  ;;  %v1610_v14 = vmul.f32 %v7339_v11, %v5988_v63  ;;  %v7340_v0 = vld [vmem:[#allocation133_spill] sm:$0xff] }
 0x22b   : > { %v1547_v3 = vmax.f32 %v1395_v56, %v1543_v8  ;;  %v1790_v35 = vadd.f32 %v1786_v40, %v1782_v7  ;;  %v1596_v50 = vadd.f32 %v1592_v43, %v1587_v34  ;;  %v1834_v24 = vmul.f32 %v7329_v42, %v6073_v60  ;;  %v7341_v40 = vld [vmem:[#allocation134_spill] sm:$0xff]  ;;  %v7343_v42 = vld [vmem:[#allocation135_spill] sm:$0xff]  ;;  %v7344_v34 = vld [vmem:[#allocation136_spill] sm:$0xff] }
 0x22c   : > { %v1703_v58 = vadd.f32 %v1699_v13, %v1694_v15  ;;  %v1842_v51 = vmul.f32 %v7330_v26, %v6076_v57  ;;  %v1850_v16 = vmul.f32 %v7335_v46, %v6084_v33  ;;  %v6149_v6 = vmul.f32 %v7340_v0, %v6087_v47  ;;  %v7342_v13 = vld [vmem:[#allocation137_spill] sm:$0xff]  ;;  %v7345_v15 = vld [vmem:[#allocation138_spill] sm:$0xff] }
 0x22d   : > { %3032 = vst [vmem:[%s4629_s28 + $0x398] sm:$0xf] %v1547_v3  ;;  %v1798_v54 = vadd.f32 %v1794_v22, %v1790_v35  ;;  %v1605_v56 = vadd.f32 %v1601_v1, %v1596_v50  ;;  %v1619_v43 = vmul.f32 %v7341_v40, %v5995_v59  ;;  %v6155_v19 = vmul.f32 %v7342_v13, %v6090_v55  ;;  %v7346_v50 = vld [vmem:[#allocation146_spill] sm:$0xff] }
 0x22e   : > { %v6159_v26 = vmul.f32 %v7343_v42, %v6109_v30  ;;  %v1739_v46 = vmul.f32 %v7338_v52, %v5963_v36  ;;  %v1747_v22 = vmul.f32 %v7339_v11, %v5968_v49  ;;  %v1628_v1 = vmul.f32 %v7344_v34, %v6007_v29 }
 0x22f   : > { %v1806_v8 = vadd.f32 %v1802_v62, %v1798_v54  ;;  %v1614_v7 = vadd.f32 %v1610_v14, %v1605_v56  ;;  %v1637_v3 = vmul.f32 %v7345_v15, %v6021_v2  ;;  %v1712_v35 = vadd.f32 %v1708_v17, %v1703_v58  ;;  %v7347_v62 = vld [vmem:[#allocation139_spill] sm:$0xff]  ;;  %v7348_v14 = vld [vmem:[#allocation141_spill] sm:$0xff]  ;;  %v7349_v56 = vld [vmem:[#allocation140_spill] sm:$0xff] }
 0x230   : > { %v1646_v0 = vmul.f32 %v7346_v50, %v6032_v12  ;;  %v1743_v13 = vadd.f32 %v1739_v46, %v7300_v25  ;;  %v1755_v52 = vmul.f32 %v7341_v40, %v5971_v9  ;;  %v1655_v11 = vmul.f32 %v7347_v62, %v6035_v48 }
 0x231   : > { %v1814_v42 = vadd.f32 %v1810_v4, %v1806_v8  ;;  %v1623_v41 = vadd.f32 %v1619_v43, %v1614_v7  ;;  %v1664_v54 = vmul.f32 %v7348_v14, %v6052_v28  ;;  %v1673_v27 = vmul.f32 %v7349_v56, %v6064_v21  ;;  %v7355_v56 = vld [vmem:[#allocation147_spill] sm:$0xff] }
 0x232   : > { %v1682_v17 = vmul.f32 %v5583_v44, %v6073_v60  ;;  %v1751_v58 = vadd.f32 %v1747_v22, %v1743_v13  ;;  %v1763_v46 = vmul.f32 %v7344_v34, %v5980_v31  ;;  %v1691_v4 = vmul.f32 %v5590_v23, %v6076_v57 }
 0x233   : > { %v1822_v10 = vadd.f32 %v1818_v20, %v1814_v42  ;;  %v1632_v40 = vadd.f32 %v1628_v1, %v1623_v41  ;;  %v1700_v43 = vmul.f32 %v5597_v18, %v6084_v33  ;;  %v1721_v8 = vadd.f32 %v6106_v39, %v1712_v35  ;;  %v7350_v41 = vld [vmem:[#allocation143_spill] sm:$0xff]  ;;  %v7352_v1 = vld [vmem:[#allocation142_spill] sm:$0xff]  ;;  %v7354_v35 = vld [vmem:[#allocation145_spill] sm:$0xff] }
 0x234   : > { %v6191_v7 = vmul.f32 %v5607_v38, %v6087_v47  ;;  %v1759_v62 = vadd.f32 %v1755_v52, %v1751_v58  ;;  %v1771_v22 = vmul.f32 %v7345_v15, %v5988_v63  ;;  %v6197_v20 = vmul.f32 %v7350_v41, %v6090_v55 }
 0x235   : > { %v1830_v13 = vadd.f32 %v1826_v37, %v1822_v10  ;;  %v1641_v34 = vadd.f32 %v1637_v3, %v1632_v40  ;;  %v6201_v42 = vmul.f32 %v7352_v1, %v6109_v30  ;;  %v1779_v39 = vmul.f32 %v7346_v50, %v5995_v59  ;;  %v7356_v3 = vld [vmem:[#allocation144_spill] sm:$0xff]  ;;  %v7357_v40 = vld [vmem:[#allocation151_spill] sm:$0xff]  ;;  %v7358_v50 = vld [vmem:[#allocation154_spill] sm:$0xff] }
 0x236   : > { %7351 = vst [vmem:[#allocation117_spill] sm:$0xff] %v6197_v20  ;;  %v1767_v14 = vadd.f32 %v1763_v46, %v1759_v62  ;;  %v1575_v52 = vmul.f32 %v7354_v35, %v5963_v36  ;;  %v1584_v15 = vmul.f32 %v7355_v56, %v5968_v49  ;;  %v1787_v58 = vmul.f32 %v7356_v3, %v6007_v29  ;;  %v7359_v56 = vld [vmem:[#allocation148_spill] sm:$0xff] }
 0x237   : > { %7353 = vst [vmem:[#allocation118_spill] sm:$0xff] %v6201_v42  ;;  %v1838_v10 = vadd.f32 %v1834_v24, %v1830_v13  ;;  %v1650_v37 = vadd.f32 %v1646_v0, %v1641_v34  ;;  %v1795_v20 = vmul.f32 %v7357_v40, %v6021_v2  ;;  %v1730_v42 = vadd.f32 %v6124_v45, %v1721_v8  ;;  %v7360_v45 = vld [vmem:[#allocation149_spill] sm:$0xff] }
 0x238   : > { %v1775_v46 = vadd.f32 %v1771_v22, %v1767_v14  ;;  %v1579_v62 = vadd.f32 %v1575_v52, %v7300_v25  ;;  %v1593_v53 = vmul.f32 %v7358_v50, %v5971_v9  ;;  %v1803_v24 = vmul.f32 %v7359_v56, %v6032_v12  ;;  %v7365_v50 = vld [vmem:[#allocation153_spill] sm:$0xff] }
 0x239   : > { %v1846_v35 = vadd.f32 %v1842_v51, %v1838_v10  ;;  %v1659_v5 = vadd.f32 %v1655_v11, %v1650_v37  ;;  %v1811_v0 = vmul.f32 %v5583_v44, %v6035_v48  ;;  %v1819_v34 = vmul.f32 %v5590_v23, %v6052_v28  ;;  %v7361_v44 = vld [vmem:[#allocation155_spill] sm:$0xff] }
 0x23a   : > { %v1783_v13 = vadd.f32 %v1779_v39, %v1775_v46  ;;  %v1588_v3 = vadd.f32 %v1584_v15, %v1579_v62  ;;  %v1602_v8 = vmul.f32 %v7360_v45, %v5980_v31  ;;  %v1827_v51 = vmul.f32 %v5597_v18, %v6064_v21  ;;  %v7362_v18 = vld [vmem:[#allocation150_spill] sm:$0xff] }
 0x23b   : > { %v1854_v22 = vadd.f32 %v1850_v16, %v1846_v35  ;;  %v1668_v14 = vadd.f32 %v1664_v54, %v1659_v5  ;;  %v1835_v11 = vmul.f32 %v5607_v38, %v6073_v60  ;;  %v1734_v52 = vmax.f32 %v1730_v42, 0.0 }
 0x23c   : > { %v1791_v10 = vadd.f32 %v1787_v58, %v1783_v13  ;;  %v1597_v37 = vadd.f32 %v1593_v53, %v1588_v3  ;;  %v1611_v39 = vmul.f32 %v7361_v44, %v5988_v63  ;;  %v1843_v40 = vmul.f32 %v7350_v41, %v6076_v57  ;;  %v7363_v53 = vld [vmem:[#allocation152_spill] sm:$0xff] }
 0x23d   : > { %v1862_v23 = vadd.f32 %v6149_v6, %v1854_v22  ;;  %v1677_v15 = vadd.f32 %v1673_v27, %v1668_v14  ;;  %v1851_v5 = vmul.f32 %v7352_v1, %v6084_v33  ;;  %v6238_v54 = vmul.f32 %v7362_v18, %v6087_v47  ;;  %v7367_v22 = vld [vmem:[#allocation157_spill] sm:$0xff] }
 0x23e   : > { %v1799_v16 = vadd.f32 %v1795_v20, %v1791_v10  ;;  %v1606_v38 = vadd.f32 %v1602_v8, %v1597_v37  ;;  %v1620_v42 = vmul.f32 %v7363_v53, %v5995_v59  ;;  %v1740_v27 = vmul.f32 %v7360_v45, %v5963_v36  ;;  %v7364_v20 = vld [vmem:[#allocation156_spill] sm:$0xff] }
 0x23f   : > { %v1870_v58 = vadd.f32 %v6155_v19, %v1862_v23  ;;  %v1686_v46 = vadd.f32 %v1682_v17, %v1677_v15  ;;  %v1748_v6 = vmul.f32 %v7361_v44, %v5968_v49  ;;  %v6249_v1 = vmul.f32 %v7364_v20, %v6090_v55  ;;  %v7366_v45 = vld [vmem:[#allocation160_spill] sm:$0xff]  ;;  %v7368_v23 = vld [vmem:[#allocation162_spill] sm:$0xff]  ;;  %v7369_v15 = vld [vmem:[#allocation163_spill] sm:$0xff] }
 0x240   : > { %v1807_v41 = vadd.f32 %v1803_v24, %v1799_v16  ;;  %v1615_v62 = vadd.f32 %v1611_v39, %v1606_v38  ;;  %v1629_v35 = vmul.f32 %v7365_v50, %v6007_v29  ;;  %v1744_v19 = vadd.f32 %v1740_v27, %v7300_v25  ;;  %v7370_v38 = vld [vmem:[#allocation159_spill] sm:$0xff]  ;;  %v7371_v27 = vld [vmem:[#allocation158_spill] sm:$0xff] }
 0x241   : > { %v1878_v56 = vadd.f32 %v6159_v26, %v1870_v58  ;;  %v1695_v13 = vadd.f32 %v1691_v4, %v1686_v46  ;;  %v1756_v17 = vmul.f32 %v7363_v53, %v5971_v9  ;;  %v6259_v24 = vmul.f32 %v7366_v45, %v6109_v30  ;;  %v7375_v45 = vld [vmem:[#allocation165_spill] sm:$0xff] }
 0x242   : > { %v1815_v3 = vadd.f32 %v1811_v0, %v1807_v41  ;;  %v1624_v8 = vadd.f32 %v1620_v42, %v1615_v62  ;;  %v1638_v14 = vmul.f32 %v7367_v22, %v6021_v2  ;;  %v1752_v44 = vadd.f32 %v1748_v6, %v1744_v19  ;;  %v7374_v19 = vld [vmem:[#allocation166_spill] sm:$0xff] }
 0x243   : > { %v1882_v10 = vmax.f32 %v1878_v56, 0.0  ;;  %v1704_v37 = vadd.f32 %v1700_v43, %v1695_v13  ;;  %v1764_v26 = vmul.f32 %v7365_v50, %v5980_v31  ;;  %v1647_v0 = vmul.f32 %v7368_v23, %v6032_v12  ;;  %v7373_v56 = vld [vmem:[#allocation161_spill] sm:$0xff] }
 0x244   : > { %v1823_v4 = vadd.f32 %v1819_v34, %v1815_v3  ;;  %v1633_v39 = vadd.f32 %v1629_v35, %v1624_v8  ;;  %v1656_v16 = vmul.f32 %v7369_v15, %v6035_v48  ;;  %v1665_v53 = vmul.f32 %v7370_v38, %v6052_v28  ;;  %v7380_v38 = vld [vmem:[#allocation169_spill] sm:$0xff] }
 0x245   : > { %v6269_v18 = vmax.f32 %v1734_v52, %v1882_v10  ;;  %v1760_v42 = vadd.f32 %v1756_v17, %v1752_v44  ;;  %v1772_v43 = vmul.f32 %v7367_v22, %v5988_v63  ;;  %v1713_v58 = vadd.f32 %v6191_v7, %v1704_v37  ;;  %v7372_v7 = vld [vmem:[#allocation109_spill] sm:$0xff]  ;;  %v7376_v22 = vld [vmem:[#allocation164_spill] sm:$0xff] }
 0x246   : > { %v1831_v46 = vadd.f32 %v1827_v51, %v1823_v4  ;;  %v1642_v34 = vadd.f32 %v1638_v14, %v1633_v39  ;;  %v1674_v6 = vmul.f32 %v7371_v27, %v6064_v21  ;;  %v1683_v52 = vmul.f32 %v5768_v61, %v6073_v60  ;;  %v7377_v10 = vld [vmem:[#allocation117_spill] sm:$0xff] }
 0x247   : > { %3047 = vst [vmem:[%s4629_s28 + $0x540] sm:$0xff] %v6269_v18  ;;  %v1692_v41 = vmul.f32 %v5773_v32, %v6076_v57  ;;  %v1768_v20 = vadd.f32 %v1764_v26, %v1760_v42  ;;  %v1780_v62 = vmul.f32 %v7368_v23, %v5995_v59  ;;  %v1701_v51 = vmul.f32 %v7372_v7, %v6084_v33  ;;  %v7378_v26 = vld [vmem:[#allocation167_spill] sm:$0xff]  ;;  %v7379_v23 = vld [vmem:[#allocation168_spill] sm:$0xff] }
 0x248   : > { %v1839_v50 = vadd.f32 %v1835_v11, %v1831_v46  ;;  %v1651_v35 = vadd.f32 %v1647_v0, %v1642_v34  ;;  %v1710_v13 = vmul.f32 %v7373_v56, %v6087_v47  ;;  %v1719_v17 = vmul.f32 %v7374_v19, %v6090_v55  ;;  %v7381_v34 = vld [vmem:[#allocation110_spill] sm:$0xff] }
 0x249   : > { %v1776_v3 = vadd.f32 %v1772_v43, %v1768_v20  ;;  %v1788_v8 = vmul.f32 %v7375_v45, %v6007_v29  ;;  %v1576_v14 = vmul.f32 %v7376_v22, %v5963_v36  ;;  %v1722_v37 = vadd.f32 %v7377_v10, %v1713_v58 }
 0x24a   : > { %v1847_v11 = vadd.f32 %v1843_v40, %v1839_v50  ;;  %v1660_v44 = vadd.f32 %v1656_v16, %v1651_v35  ;;  %v1585_v4 = vmul.f32 %v7378_v26, %v5968_v49  ;;  %v1796_v0 = vmul.f32 %v7379_v23, %v6021_v2  ;;  %v7382_v40 = vld [vmem:[#allocation171_spill] sm:$0xff]  ;;  %v7383_v50 = vld [vmem:[#allocation174_spill] sm:$0xff] }
 0x24b   : > { %v1784_v39 = vadd.f32 %v1780_v62, %v1776_v3  ;;  %v1580_v15 = vadd.f32 %v1576_v14, %v7300_v25  ;;  %v1594_v42 = vmul.f32 %v7380_v38, %v5971_v9  ;;  %v6306_v27 = vmul.f32 %v7381_v34, %v6109_v30  ;;  %v7384_v3 = vld [vmem:[#allocation118_spill] sm:$0xff] }
 0x24c   : > { %v1855_v43 = vadd.f32 %v1851_v5, %v1847_v11  ;;  %v1669_v46 = vadd.f32 %v1665_v53, %v1660_v44  ;;  %v1804_v16 = vmul.f32 %v7382_v40, %v6032_v12  ;;  %v1812_v20 = vmul.f32 %v5768_v61, %v6035_v48  ;;  %v7385_v11 = vld [vmem:[#allocation170_spill] sm:$0xff] }
 0x24d   : > { %v1792_v58 = vadd.f32 %v1788_v8, %v1784_v39  ;;  %v1589_v62 = vadd.f32 %v1585_v4, %v1580_v15  ;;  %v1603_v35 = vmul.f32 %v7383_v50, %v5980_v31  ;;  %v1731_v45 = vadd.f32 %v7384_v3, %v1722_v37 }
 0x24e   : > { %v1863_v5 = vadd.f32 %v6238_v54, %v1855_v43  ;;  %v1678_v53 = vadd.f32 %v1674_v6, %v1669_v46  ;;  %v1820_v22 = vmul.f32 %v5773_v32, %v6052_v28  ;;  %v1828_v10 = vmul.f32 %v7372_v7, %v6064_v21  ;;  %v7386_v7 = vld [vmem:[#allocation177_spill] sm:$0xff] }
 0x24f   : > { %v1800_v14 = vadd.f32 %v1796_v0, %v1792_v58  ;;  %v1598_v8 = vadd.f32 %v1594_v42, %v1589_v62  ;;  %v1612_v61 = vmul.f32 %v7385_v11, %v5988_v63  ;;  %v1836_v37 = vmul.f32 %v7373_v56, %v6073_v60 }
 0x250   : > { %v1871_v44 = vadd.f32 %v6249_v1, %v1863_v5  ;;  %v1687_v26 = vadd.f32 %v1683_v52, %v1678_v53  ;;  %v1844_v54 = vmul.f32 %v7374_v19, %v6076_v57  ;;  %v6329_v32 = vmul.f32 %v7381_v34, %v6084_v33  ;;  %v7387_v52 = vld [vmem:[#allocation178_spill] sm:$0xff]  ;;  %v7388_v34 = vld [vmem:[#allocation172_spill] sm:$0xff] }
 0x251   : > { %v1808_v6 = vadd.f32 %v1804_v16, %v1800_v14  ;;  %v1607_v4 = vadd.f32 %v1603_v35, %v1598_v8  ;;  %v1621_v39 = vmul.f32 %v7386_v7, %v5995_v59  ;;  %v1735_v23 = vmax.f32 %v1731_v45, 0.0  ;;  %v7391_v35 = vld [vmem:[#allocation179_spill] sm:$0xff]  ;;  %v7393_v8 = vld [vmem:[#allocation180_spill] sm:$0xff] }
 0x252   : > { %v1879_v0 = vadd.f32 %v6259_v24, %v1871_v44  ;;  %v1696_v1 = vadd.f32 %v1692_v41, %v1687_v26  ;;  %v1630_v15 = vmul.f32 %v7387_v52, %v6007_v29  ;;  %v1741_v19 = vmul.f32 %v7383_v50, %v5963_v36  ;;  %v7389_v24 = vld [vmem:[#allocation175_spill] sm:$0xff]  ;;  %v872_v44 = vld [vmem:[%s4629_s28] sm:$0xff] }
 0x253   : > { %v1816_v56 = vadd.f32 %v1812_v20, %v1808_v6  ;;  %v1616_v38 = vadd.f32 %v1612_v61, %v1607_v4  ;;  %v1749_v42 = vmul.f32 %v7385_v11, %v5968_v49  ;;  %v6342_v40 = vmul.f32 %v7388_v34, %v6087_v47  ;;  %v7394_v11 = vld [vmem:[#allocation181_spill] sm:$0xff] }
 0x254   : > { %v1883_v43 = vmax.f32 %v1879_v0, 0.0  ;;  %v1705_v46 = vadd.f32 %v1701_v51, %v1696_v1  ;;  %v1639_v41 = vmul.f32 %v7389_v24, %v6021_v2  ;;  %v1745_v20 = vadd.f32 %v1741_v19, %v7300_v25  ;;  %v7390_v51 = vld [vmem:[#allocation173_spill] sm:$0xff]  ;;  %v878_v0 = vld [vmem:[%s4629_s28 + $0x11] sm:$0xff] }
 0x255   : > { %v1824_v16 = vadd.f32 %v1820_v22, %v1816_v56  ;;  %v1625_v58 = vadd.f32 %v1621_v39, %v1616_v38  ;;  %v1757_v36 = vmul.f32 %v7386_v7, %v5971_v9  ;;  %v6353_v50 = vmul.f32 %v7390_v51, %v6090_v55  ;;  %v7392_v22 = vld [vmem:[#allocation176_spill] sm:$0xff]  ;;  %v873_v7 = vld [vmem:[%s4629_s28 + $0x8] sm:$0xff]  ;;  %v875_v1 = vld [vmem:[%s4629_s28 + $0x18] sm:$0x7] }
 0x256   : > { %v6349_v49 = vmax.f32 %v1735_v23, %v1883_v43  ;;  %v1714_v62 = vadd.f32 %v1710_v13, %v1705_v46  ;;  %v1648_v3 = vmul.f32 %v7391_v35, %v6032_v12  ;;  %v1753_v53 = vadd.f32 %v1749_v42, %v1745_v20  ;;  %v876_v26 = vld [vmem:[%s4629_s28 + $0x1] sm:$0xff]  ;;  %v877_v39 = vld [vmem:[%s4629_s28 + $0x9] sm:$0xff]  ;;  %v3022_v51 = vld [vmem:[%s4629_s28 + $0x1d1] sm:$0xff] }
 0x257   : > { %v1832_v45 = vadd.f32 %v1828_v10, %v1824_v16  ;;  %v1634_v5 = vadd.f32 %v1630_v15, %v1625_v58  ;;  %v1765_v9 = vmul.f32 %v7387_v52, %v5980_v31  ;;  %v6363_v14 = vmul.f32 %v7392_v22, %v6109_v30  ;;  %v874_v23 = vld [vmem:[%s4629_s28 + $0x10] sm:$0xff]  ;;  %v879_v52 = vld [vmem:[%s4629_s28 + $0x19] sm:$0x7]  ;;  %v3016_v43 = vld [vmem:[%s4629_s28 + $0x1c0] sm:$0xff] }
 0x258   : > { %3048 = vst [vmem:[%s4629_s28 + $0x548] sm:$0xff] %v6349_v49  ;;  %v1723_v13 = vadd.f32 %v1719_v17, %v1714_v62  ;;  %v1657_v10 = vmul.f32 %v7393_v8, %v6035_v48  ;;  %v1666_v61 = vmul.f32 %v7394_v11, %v6052_v28  ;;  %v1761_v4 = vadd.f32 %v1757_v36, %v1753_v53  ;;  %v7395_v15 = vld [vmem:[#allocation183_spill] sm:$0xff]  ;;  %v7397_v19 = vld [vmem:[#allocation182_spill] sm:$0xff]  ;;  %v3020_v46 = vld [vmem:[%s4629_s28 + $0x1c1] sm:$0xff] }
 0x259   : > { %v1840_v31 = vadd.f32 %v1836_v37, %v1832_v45  ;;  %v1643_v6 = vadd.f32 %v1639_v41, %v1634_v5  ;;  %v1773_v17 = vmul.f32 %v7389_v24, %v5988_v63  ;;  %v1675_v56 = vmul.f32 %v7395_v15, %v6064_v21  ;;  %v7396_v37 = vld [vmem:[#allocation184_spill] sm:$0xff]  ;;  %v3017_v34 = vld [vmem:[%s4629_s28 + $0x1c8] sm:$0xff]  ;;  %v7398_v58 = vld [vmem:[#allocation187_spill] sm:$0xff] }
 0x25a   : > { %v6383_v38 = vmul.f32 %v7396_v37, %v6073_v60  ;;  %v6387_v63 = vmul.f32 %v7397_v19, %v6076_v57  ;;  %v1781_v42 = vmul.f32 %v7391_v35, %v5995_v59  ;;  %v1769_v16 = vadd.f32 %v1765_v9, %v1761_v4  ;;  %v3021_v36 = vld [vmem:[%s4629_s28 + $0x1c9] sm:$0xff]  ;;  %v3019_v5 = vld [vmem:[%s4629_s28 + $0x1d8] sm:$0x7] }
 0x25b   : > { %v1848_v24 = vadd.f32 %v1844_v54, %v1840_v31  ;;  %v1652_v41 = vadd.f32 %v1648_v3, %v1643_v6  ;;  %v1789_v20 = vmul.f32 %v7398_v58, %v6007_v29  ;;  %v3018_v62 = vld [vmem:[%s4629_s28 + $0x1d0] sm:$0xff]  ;;  %v6400_v59 = vadd.f32 %v6306_v27, %v1723_v13  ;;  %v7399_v35 = vld [vmem:[#allocation105_spill] sm:$0xff]  ;;  %v3023_v53 = vld [vmem:[%s4629_s28 + $0x1d9] sm:$0x7] }
 0x25c   : > { %v1797_v54 = vmul.f32 %v7399_v35, %v6021_v2  ;;  %v7400_v3 = vld [vmem:[#allocation106_spill] sm:$0xff]  ;;  %v3034_v29 = vld [vmem:[%s4629_s28 + $0x380] sm:$0xff]  ;;  %v1777_v8 = vadd.f32 %v1773_v17, %v1769_v16  ;;  %v3566_v11 = vmov 0.0   ;;  %v880_v2 = vmax.f32 %v872_v44, %v876_v26  ;;  %v3037_v26 = vld [vmem:[%s4629_s28 + $0x398] sm:$0x7] }
 0x25d   : > { %v1805_v45 = vmul.f32 %v7400_v3, %v6032_v12  ;;  %v1856_v9 = vadd.f32 %v6329_v32, %v1848_v24  ;;  %v1661_v22 = vadd.f32 %v1657_v10, %v1652_v41  ;;  %871 = vst [vmem:[%s4629_s28 + $0x1c] sm:$0xf] %v3566_v11  ;;  %3015 = vst [vmem:[%s4629_s28 + $0x1dc] sm:$0xf] %v3566_v11  ;;  %v3038_v27 = vld [vmem:[%s4629_s28 + $0x381] sm:$0xff]  ;;  %v3039_v13 = vld [vmem:[%s4629_s28 + $0x389] sm:$0xff] }
 0x25e   : > { %3033 = vst [vmem:[%s4629_s28 + $0x39c] sm:$0xf] %v3566_v11  ;;  %3051 = vst [vmem:[%s4629_s28 + $0x55c] sm:$0xf] %v3566_v11  ;;  %v3035_v12 = vld [vmem:[%s4629_s28 + $0x388] sm:$0xff]  ;;  %v881_v32 = vmax.f32 %v873_v7, %v877_v39  ;;  %v882_v10 = vmax.f32 %v874_v23, %v878_v0  ;;  %v883_v31 = vmax.f32 %v875_v1, %v879_v52  ;;  %v3040_v4 = vld [vmem:[%s4629_s28 + $0x391] sm:$0xff] }
 0x25f   : > { %v1222_v6 = vmax.f32 %v3016_v43, %v3020_v46  ;;  %v1864_v17 = vadd.f32 %v6342_v40, %v1856_v9  ;;  %v1670_v15 = vadd.f32 %v1666_v61, %v1661_v22  ;;  %v1785_v24 = vadd.f32 %v1781_v42, %v1777_v8  ;;  %884 = vst [vmem:[%s4629_s28] sm:$0xff] %v880_v2  ;;  %v3041_v41 = vld [vmem:[%s4629_s28 + $0x399] sm:$0x7]  ;;  %v3056_v16 = vld [vmem:[%s4629_s28 + $0x541] sm:$0xff]  ;;  %v7402_v43 = vld [vmem:[#allocation186_spill] sm:$0xff] }
 0x260   : > { %v1223_v44 = vmax.f32 %v3017_v34, %v3021_v36  ;;  %885 = vst [vmem:[%s4629_s28 + $0x8] sm:$0xff] %v881_v32  ;;  %886 = vst [vmem:[%s4629_s28 + $0x10] sm:$0xff] %v882_v10  ;;  %v1224_v7 = vmax.f32 %v3018_v62, %v3022_v51  ;;  %v1225_v39 = vmax.f32 %v3019_v5, %v3023_v53  ;;  %v7401_v52 = vld [vmem:[#allocation111_spill] sm:$0xff]  ;;  %v7405_v22 = vld [vmem:[#allocation108_spill] sm:$0xff] }
 0x261   : > { %887 = vst [vmem:[%s4629_s28 + $0x18] sm:$0x7] %v883_v31  ;;  %3024 = vst [vmem:[%s4629_s28 + $0x1c0] sm:$0xff] %v1222_v6  ;;  %v1564_v23 = vmax.f32 %v3034_v29, %v3038_v27  ;;  %v1565_v40 = vmax.f32 %v3035_v12, %v3039_v13  ;;  %v1872_v61 = vadd.f32 %v6353_v50, %v1864_v17  ;;  %v7408_v6 = vld [vmem:[#allocation114_spill] sm:$0xff] }
 0x262   : > { %v1679_v0 = vadd.f32 %v1675_v56, %v1670_v15  ;;  %v1793_v1 = vadd.f32 %v1789_v20, %v1785_v24  ;;  %3025 = vst [vmem:[%s4629_s28 + $0x1c8] sm:$0xff] %v1223_v44  ;;  %v1566_v42 = vmax.f32 %v7401_v52, %v3040_v4  ;;  %v1702_v46 = vmul.f32 %v7402_v43, %v6084_v33 }
 0x263   : > { %v1813_v34 = vmul.f32 %v7396_v37, %v6035_v48  ;;  %3026 = vst [vmem:[%s4629_s28 + $0x1d0] sm:$0xff] %v1224_v7  ;;  %3027 = vst [vmem:[%s4629_s28 + $0x1d8] sm:$0x7] %v1225_v39  ;;  %v1567_v58 = vmax.f32 %v3037_v26, %v3041_v41  ;;  %v1906_v50 = vmax.f32 %v6269_v18, %v3056_v16  ;;  %v1736_v56 = vmax.f32 %v6400_v59, 0.0  ;;  %v7403_v18 = vld [vmem:[#allocation185_spill] sm:$0xff] }
 0x264   : > { %3042 = vst [vmem:[%s4629_s28 + $0x380] sm:$0xff] %v1564_v23  ;;  %3043 = vst [vmem:[%s4629_s28 + $0x388] sm:$0xff] %v1565_v40  ;;  %v1880_v20 = vadd.f32 %v6363_v14, %v1872_v61  ;;  %v1688_v36 = vadd.f32 %v6383_v38, %v1679_v0  ;;  %v1801_v62 = vadd.f32 %v1797_v54, %v1793_v1 }
 0x265   : > { %3044 = vst [vmem:[%s4629_s28 + $0x390] sm:$0xff] %v1566_v42  ;;  %3045 = vst [vmem:[%s4629_s28 + $0x398] sm:$0x7] %v1567_v58  ;;  %v1821_v35 = vmul.f32 %v7397_v19, %v6052_v28  ;;  %v1711_v3 = vmul.f32 %v7403_v18, %v6087_v47  ;;  %v1829_v38 = vmul.f32 %v7402_v43, %v6064_v21 }
 0x266   : > { %3060 = vst [vmem:[%s4629_s28 + $0x540] sm:$0xff] %v1906_v50  ;;  %v1884_v51 = vmax.f32 %v1880_v20, 0.0  ;;  %v1697_v48 = vadd.f32 %v6387_v63, %v1688_v36  ;;  %v1809_v37 = vadd.f32 %v1805_v45, %v1801_v62  ;;  %v1837_v53 = vmul.f32 %v7403_v18, %v6073_v60  ;;  %v7404_v45 = vld [vmem:[#allocation107_spill] sm:$0xff]  ;;  %v7406_v60 = vld [vmem:[#allocation112_spill] sm:$0xff] }
 0x267   : > { %v1720_v29 = vmul.f32 %v7404_v45, %v6090_v55  ;;  %v1845_v19 = vmul.f32 %v7404_v45, %v6076_v57  ;;  %v1853_v8 = vmul.f32 %v7405_v22, %v6084_v33  ;;  %v1729_v21 = vmul.f32 %v7405_v22, %v6109_v30  ;;  %v7407_v57 = vld [vmem:[#allocation113_spill] sm:$0xff] }
 0x268   : > { %v1888_v59 = vmax.f32 %v1736_v56, %v1884_v51  ;;  %v1706_v5 = vadd.f32 %v1702_v46, %v1697_v48  ;;  %v1817_v14 = vadd.f32 %v1813_v34, %v1809_v37  ;;  %v1861_v27 = vmul.f32 %v7406_v60, %v6087_v47 }
 0x269   : > { %v1869_v32 = vmul.f32 %v7407_v57, %v6090_v55  ;;  %v1877_v4 = vmul.f32 %v7408_v6, %v6109_v30 }
 0x26a   : > { %3049 = vst [vmem:[%s4629_s28 + $0x550] sm:$0xff] %v1888_v59  ;;  %v1825_v54 = vadd.f32 %v1821_v35, %v1817_v14  ;;  %v1715_v63 = vadd.f32 %v1711_v3, %v1706_v5 }
 0x26c   : > { %v1833_v28 = vadd.f32 %v1829_v38, %v1825_v54  ;;  %v1724_v11 = vadd.f32 %v1720_v29, %v1715_v63 }
 0x26e   : > { %v1841_v9 = vadd.f32 %v1837_v53, %v1833_v28  ;;  %v1733_v33 = vadd.f32 %v1729_v21, %v1724_v11 }
 0x270   : > { %v1849_v2 = vadd.f32 %v1845_v19, %v1841_v9  ;;  %v1737_v15 = vmax.f32 %v1733_v33, 0.0 }
 0x271   : > { %v3057_v12 = vld [vmem:[%s4629_s28 + $0x549] sm:$0xff] }
 0x272   : > { %v1857_v13 = vadd.f32 %v1853_v8, %v1849_v2  ;;  %v1907_v10 = vmax.f32 %v6349_v49, %v3057_v12 }
 0x274   : > { %v1865_v31 = vadd.f32 %v1861_v27, %v1857_v13  ;;  %3061 = vst [vmem:[%s4629_s28 + $0x548] sm:$0xff] %v1907_v10 }
 0x276   : > { %v1873_v17 = vadd.f32 %v1869_v32, %v1865_v31 }
 0x278   : > { %v1881_v47 = vadd.f32 %v1877_v4, %v1873_v17 }
 0x27a   : > { %v1885_v24 = vmax.f32 %v1881_v47, 0.0 }
 0x27c   : > { %v1889_v44 = vmax.f32 %v1737_v15, %v1885_v24 }
 0x27e   : > { %3050 = vst [vmem:[%s4629_s28 + $0x558] sm:$0xf] %v1889_v44 }
 0x285   : > { %v3058_v26 = vld [vmem:[%s4629_s28 + $0x551] sm:$0xff]  ;;  %v3059_v16 = vld [vmem:[%s4629_s28 + $0x559] sm:$0x7]  ;;  %433 = sbr.rel (!%p431_p7) target bundleno = 285 (0x11d), region = 109 }
 0x286   : > { %v3055_v41 = vld [vmem:[%s4629_s28 + $0x558] sm:$0x7]  ;;  %v1908_v55 = vmax.f32 %v1888_v59, %v3058_v26 }
 0x287   : > { %v1909_v7 = vmax.f32 %v3055_v41, %v3059_v16 }
 0x288   : > { %3062 = vst [vmem:[%s4629_s28 + $0x550] sm:$0xff] %v1908_v55 }
 0x289   : > { %3063 = vst [vmem:[%s4629_s28 + $0x558] sm:$0x7] %v1909_v7  ;;  %v2139_v7 = vld [vmem:[%s7409_s11 + $0x8] sm:$0xff] (%p431_p7) }
 0x28a   :  { %2242 = vmatprep.mubr.f32.mxu0 %v2139_v7 }
 0x290   :  { %v1945_v30 = vld [vmem:[#allocation3 + $0xf8] sm:$0xff]  ;;  %v1944_v40 = vld [vmem:[#allocation3 + $0xf0] sm:$0xff]  ;;  %v1943_v52 = vld [vmem:[#allocation3 + $0xe8] sm:$0xff] }
 0x291   :  { %v1977_v49 = vld [vmem:[#allocation3 + $0x1f8] sm:$0xff]  ;;  %3071 = vmatprep.subr.mxu0 %v1945_v30  ;;  %v1976_v61 = vld [vmem:[#allocation3 + $0x1f0] sm:$0xff]  ;;  %v1975_v42 = vld [vmem:[#allocation3 + $0x1e8] sm:$0xff] }
 0x292   :  { %v1929_v39 = vld [vmem:[#allocation3 + $0x78] sm:$0xff]  ;;  %3109 = vmatprep.subr.mxu1 %v1977_v49  ;;  %v1928_v0 = vld [vmem:[#allocation3 + $0x70] sm:$0xff]  ;;  %v1927_v43 = vld [vmem:[#allocation3 + $0x68] sm:$0xff] }
 0x293   :  { %v1961_v23 = vld [vmem:[#allocation3 + $0x178] sm:$0xff]  ;;  %3072 = vmatpush3.msra.mxu0 %v1929_v39  ;;  %v1960_v1 = vld [vmem:[#allocation3 + $0x170] sm:$0xff]  ;;  %v1959_v46 = vld [vmem:[#allocation3 + $0x168] sm:$0xff] }
 0x294   :  { %3110 = vmatpush3.msra.mxu1 %v1961_v23  ;;  %3073 = vmatprep.subr.mxu0 %v1944_v40  ;;  %v1942_v25 = vld [vmem:[#allocation3 + $0xe0] sm:$0xff]  ;;  %v1941_v56 = vld [vmem:[#allocation3 + $0xd8] sm:$0xff]  ;;  %v1940_v51 = vld [vmem:[#allocation3 + $0xd0] sm:$0xff] }
 0x295   :  { %3111 = vmatprep.subr.mxu1 %v1976_v61  ;;  %3074 = vmatpush3.msra.mxu0 %v1928_v0  ;;  %v1974_v34 = vld [vmem:[#allocation3 + $0x1e0] sm:$0xff]  ;;  %v1973_v20 = vld [vmem:[#allocation3 + $0x1d8] sm:$0xff]  ;;  %v1972_v48 = vld [vmem:[#allocation3 + $0x1d0] sm:$0xff] }
 0x296   :  { %3112 = vmatpush3.msra.mxu1 %v1960_v1  ;;  %3075 = vmatprep.subr.mxu0 %v1943_v52  ;;  %v1926_v58 = vld [vmem:[#allocation3 + $0x60] sm:$0xff]  ;;  %v1925_v36 = vld [vmem:[#allocation3 + $0x58] sm:$0xff]  ;;  %v1924_v37 = vld [vmem:[#allocation3 + $0x50] sm:$0xff] }
 0x297   :  { %3113 = vmatprep.subr.mxu1 %v1975_v42  ;;  %v1958_v50 = vld [vmem:[#allocation3 + $0x160] sm:$0xff]  ;;  %3076 = vmatpush3.msra.mxu0 %v1927_v43  ;;  %v1957_v62 = vld [vmem:[#allocation3 + $0x158] sm:$0xff]  ;;  %v1956_v35 = vld [vmem:[#allocation3 + $0x150] sm:$0xff] }
 0x298   :  { %3114 = vmatpush3.msra.mxu1 %v1959_v46  ;;  %3077 = vmatprep.subr.mxu0 %v1942_v25  ;;  %v1939_v18 = vld [vmem:[#allocation3 + $0xc8] sm:$0xff]  ;;  %v1938_v14 = vld [vmem:[#allocation3 + $0xc0] sm:$0xff]  ;;  %v1937_v63 = vld [vmem:[#allocation3 + $0xb8] sm:$0xff] }
 0x299   :  { %3115 = vmatprep.subr.mxu1 %v1974_v34  ;;  %3078 = vmatpush3.msra.mxu0 %v1926_v58  ;;  %v1971_v3 = vld [vmem:[#allocation3 + $0x1c8] sm:$0xff]  ;;  %v1970_v38 = vld [vmem:[#allocation3 + $0x1c0] sm:$0xff]  ;;  %v1969_v45 = vld [vmem:[#allocation3 + $0x1b8] sm:$0xff] }
 0x29a   :  { %3116 = vmatpush3.msra.mxu1 %v1958_v50  ;;  %3079 = vmatprep.subr.mxu0 %v1941_v56  ;;  %v1923_v59 = vld [vmem:[#allocation3 + $0x48] sm:$0xff]  ;;  %v1922_v54 = vld [vmem:[#allocation3 + $0x40] sm:$0xff]  ;;  %v1921_v29 = vld [vmem:[#allocation3 + $0x38] sm:$0xff] }
 0x29b   :  { %3117 = vmatprep.subr.mxu1 %v1973_v20  ;;  %3080 = vmatpush3.msra.mxu0 %v1925_v36  ;;  %v1955_v5 = vld [vmem:[#allocation3 + $0x148] sm:$0xff]  ;;  %v1954_v53 = vld [vmem:[#allocation3 + $0x140] sm:$0xff]  ;;  %v1953_v28 = vld [vmem:[#allocation3 + $0x138] sm:$0xff] }
 0x29c   :  { %3118 = vmatpush3.msra.mxu1 %v1957_v62  ;;  %3081 = vmatprep.subr.mxu0 %v1940_v51  ;;  %v1936_v19 = vld [vmem:[#allocation3 + $0xb0] sm:$0xff]  ;;  %v1935_v11 = vld [vmem:[#allocation3 + $0xa8] sm:$0xff]  ;;  %v1934_v27 = vld [vmem:[#allocation3 + $0xa0] sm:$0xff] }
 0x29d   :  { %3119 = vmatprep.subr.mxu1 %v1972_v48  ;;  %3082 = vmatpush3.msra.mxu0 %v1924_v37  ;;  %v1968_v9 = vld [vmem:[#allocation3 + $0x1b0] sm:$0xff]  ;;  %v1967_v21 = vld [vmem:[#allocation3 + $0x1a8] sm:$0xff]  ;;  %v1966_v12 = vld [vmem:[#allocation3 + $0x1a0] sm:$0xff] }
 0x29e   :  { %3120 = vmatpush3.msra.mxu1 %v1956_v35  ;;  %3083 = vmatprep.subr.mxu0 %v1939_v18  ;;  %v1920_v22 = vld [vmem:[#allocation3 + $0x30] sm:$0xff]  ;;  %v1919_v2 = vld [vmem:[#allocation3 + $0x28] sm:$0xff]  ;;  %v1918_v13 = vld [vmem:[#allocation3 + $0x20] sm:$0xff] }
 0x29f   :  { %3121 = vmatprep.subr.mxu1 %v1971_v3  ;;  %3084 = vmatpush3.msra.mxu0 %v1923_v59  ;;  %v1952_v8 = vld [vmem:[#allocation3 + $0x130] sm:$0xff]  ;;  %v1951_v60 = vld [vmem:[#allocation3 + $0x128] sm:$0xff]  ;;  %v1950_v57 = vld [vmem:[#allocation3 + $0x120] sm:$0xff] }
 0x2a0   :  { %3122 = vmatpush3.msra.mxu1 %v1955_v5  ;;  %3085 = vmatprep.subr.mxu0 %v1938_v14  ;;  %v1933_v32 = vld [vmem:[#allocation3 + $0x98] sm:$0xff]  ;;  %v1932_v6 = vld [vmem:[#allocation3 + $0x90] sm:$0xff]  ;;  %v1931_v47 = vld [vmem:[#allocation3 + $0x88] sm:$0xff] }
 0x2a1   :  { %3123 = vmatprep.subr.mxu1 %v1970_v38  ;;  %3086 = vmatpush3.msra.mxu0 %v1922_v54  ;;  %v1965_v10 = vld [vmem:[#allocation3 + $0x198] sm:$0xff]  ;;  %v1964_v4 = vld [vmem:[#allocation3 + $0x190] sm:$0xff]  ;;  %v1963_v24 = vld [vmem:[#allocation3 + $0x188] sm:$0xff] }
 0x2a2   :  { %3124 = vmatpush3.msra.mxu1 %v1954_v53  ;;  %3087 = vmatprep.subr.mxu0 %v1937_v63  ;;  %v1917_v33 = vld [vmem:[#allocation3 + $0x18] sm:$0xff]  ;;  %v1916_v17 = vld [vmem:[#allocation3 + $0x10] sm:$0xff]  ;;  %v1915_v44 = vld [vmem:[#allocation3 + $0x8] sm:$0xff] }
 0x2a3   :  { %3125 = vmatprep.subr.mxu1 %v1969_v45  ;;  %3088 = vmatpush3.msra.mxu0 %v1921_v29  ;;  %v1949_v31 = vld [vmem:[#allocation3 + $0x118] sm:$0xff]  ;;  %v1948_v15 = vld [vmem:[#allocation3 + $0x110] sm:$0xff]  ;;  %v1947_v26 = vld [vmem:[#allocation3 + $0x108] sm:$0xff] }
 0x2a4   :  { %3126 = vmatpush3.msra.mxu1 %v1953_v28  ;;  %3089 = vmatprep.subr.mxu0 %v1936_v19  ;;  %v1930_v41 = vld [vmem:[#allocation3 + $0x80] sm:$0xff]  ;;  %v2141_v49 = vld [vmem:[%s7409_s11 + $0x18] sm:$0xff]  ;;  %v2140_v23 = vld [vmem:[%s7409_s11 + $0x10] sm:$0xff] }
 0x2a5   :  { %3127 = vmatprep.subr.mxu1 %v1968_v9  ;;  %3090 = vmatpush3.msra.mxu0 %v1920_v22  ;;  %v1962_v16 = vld [vmem:[#allocation3 + $0x180] sm:$0xff]  ;;  %v2009_v40 = vld [vmem:[#allocation3 + $0x2f8] sm:$0xff]  ;;  %v2008_v52 = vld [vmem:[#allocation3 + $0x2f0] sm:$0xff] }
 0x2a6   :  { %3128 = vmatpush3.msra.mxu1 %v1952_v8  ;;  %3091 = vmatprep.subr.mxu0 %v1935_v11  ;;  %v1914_v55 = vld [vmem:[#allocation3] sm:$0xff]  ;;  %v2041_v61 = vld [vmem:[#allocation3 + $0x3f8] sm:$0xff]  ;;  %v2040_v42 = vld [vmem:[#allocation3 + $0x3f0] sm:$0xff] }
 0x2a7   :  { %3129 = vmatprep.subr.mxu1 %v1967_v21  ;;  %3092 = vmatpush3.msra.mxu0 %v1919_v2  ;;  %v1946_v30 = vld [vmem:[#allocation3 + $0x100] sm:$0xff]  ;;  %v1993_v0 = vld [vmem:[#allocation3 + $0x278] sm:$0xff]  ;;  %v1992_v43 = vld [vmem:[#allocation3 + $0x270] sm:$0xff] }
 0x2a8   :  { %3130 = vmatpush3.msra.mxu1 %v1951_v60  ;;  %3093 = vmatprep.subr.mxu0 %v1934_v27  ;;  %v2138_v39 = vld [vmem:[%s7409_s11] sm:$0xff]  ;;  %v2025_v1 = vld [vmem:[#allocation3 + $0x378] sm:$0xff]  ;;  %v2024_v46 = vld [vmem:[#allocation3 + $0x370] sm:$0xff] }
 0x2a9   :  { %3131 = vmatprep.subr.mxu1 %v1966_v12  ;;  %3094 = vmatpush3.msra.mxu0 %v1918_v13  ;;  %v2007_v25 = vld [vmem:[#allocation3 + $0x2e8] sm:$0xff]  ;;  %v2006_v56 = vld [vmem:[#allocation3 + $0x2e0] sm:$0xff]  ;;  %v2005_v51 = vld [vmem:[#allocation3 + $0x2d8] sm:$0xff] }
 0x2aa   :  { %3132 = vmatpush3.msra.mxu1 %v1950_v57  ;;  %3095 = vmatprep.subr.mxu0 %v1933_v32  ;;  %v2039_v34 = vld [vmem:[#allocation3 + $0x3e8] sm:$0xff]  ;;  %v2038_v20 = vld [vmem:[#allocation3 + $0x3e0] sm:$0xff]  ;;  %v2037_v48 = vld [vmem:[#allocation3 + $0x3d8] sm:$0xff] }
 0x2ab   :  { %3133 = vmatprep.subr.mxu1 %v1965_v10  ;;  %3096 = vmatpush3.msra.mxu0 %v1917_v33  ;;  %v1991_v58 = vld [vmem:[#allocation3 + $0x268] sm:$0xff]  ;;  %v1990_v36 = vld [vmem:[#allocation3 + $0x260] sm:$0xff]  ;;  %v1989_v37 = vld [vmem:[#allocation3 + $0x258] sm:$0xff] }
 0x2ac   :  { %3134 = vmatpush3.msra.mxu1 %v1949_v31  ;;  %3097 = vmatprep.subr.mxu0 %v1932_v6  ;;  %v2023_v50 = vld [vmem:[#allocation3 + $0x368] sm:$0xff]  ;;  %v2022_v62 = vld [vmem:[#allocation3 + $0x360] sm:$0xff]  ;;  %v2021_v35 = vld [vmem:[#allocation3 + $0x358] sm:$0xff] }
 0x2ad   :  { %3135 = vmatprep.subr.mxu1 %v1964_v4  ;;  %3098 = vmatpush3.msra.mxu0 %v1916_v17  ;;  %v2004_v18 = vld [vmem:[#allocation3 + $0x2d0] sm:$0xff]  ;;  %v2003_v14 = vld [vmem:[#allocation3 + $0x2c8] sm:$0xff]  ;;  %v2002_v63 = vld [vmem:[#allocation3 + $0x2c0] sm:$0xff] }
 0x2ae   :  { %3136 = vmatpush3.msra.mxu1 %v1948_v15  ;;  %3099 = vmatprep.subr.mxu0 %v1931_v47  ;;  %v2036_v3 = vld [vmem:[#allocation3 + $0x3d0] sm:$0xff]  ;;  %v2035_v38 = vld [vmem:[#allocation3 + $0x3c8] sm:$0xff]  ;;  %v2034_v45 = vld [vmem:[#allocation3 + $0x3c0] sm:$0xff] }
 0x2af   :  { %3137 = vmatprep.subr.mxu1 %v1963_v24  ;;  %3100 = vmatpush3.msra.mxu0 %v1915_v44  ;;  %v1988_v59 = vld [vmem:[#allocation3 + $0x250] sm:$0xff]  ;;  %v1987_v54 = vld [vmem:[#allocation3 + $0x248] sm:$0xff]  ;;  %v1986_v29 = vld [vmem:[#allocation3 + $0x240] sm:$0xff] }
 0x2b0   :  { %3138 = vmatpush3.msra.mxu1 %v1947_v26  ;;  %3101 = vmatprep.subr.mxu0 %v1930_v41  ;;  %v2020_v5 = vld [vmem:[#allocation3 + $0x350] sm:$0xff]  ;;  %v2019_v53 = vld [vmem:[#allocation3 + $0x348] sm:$0xff]  ;;  %v2018_v28 = vld [vmem:[#allocation3 + $0x340] sm:$0xff] }
 0x2b1   :  { %3139 = vmatprep.subr.mxu1 %v1962_v16  ;;  %3102 = vmatpush3.msra.mxu0 %v1914_v55  ;;  %v2001_v19 = vld [vmem:[#allocation3 + $0x2b8] sm:$0xff]  ;;  %v2000_v11 = vld [vmem:[#allocation3 + $0x2b0] sm:$0xff]  ;;  %v1999_v27 = vld [vmem:[#allocation3 + $0x2a8] sm:$0xff] }
 0x2b2   :  { %3140 = vmatpush3.msra.mxu1 %v1946_v30  ;;  %2317 = vmatprep.mubr.f32.mxu1 %v2141_v49  ;;  %v2033_v9 = vld [vmem:[#allocation3 + $0x3b8] sm:$0xff]  ;;  %v2032_v21 = vld [vmem:[#allocation3 + $0x3b0] sm:$0xff]  ;;  %v2031_v12 = vld [vmem:[#allocation3 + $0x3a8] sm:$0xff] }
 0x2b3   :  { %2243 = vmatmul.mubr.f32.vlgmr.msra.gmra.mxu0 %v2138_v39  ;;  %2318 = vmatmul.mubr.f32.vlgmr.msra.gmra.mxu1 %v2140_v23  ;;  %v1985_v22 = vld [vmem:[#allocation3 + $0x238] sm:$0xff]  ;;  %v1984_v2 = vld [vmem:[#allocation3 + $0x230] sm:$0xff]  ;;  %v1983_v13 = vld [vmem:[#allocation3 + $0x228] sm:$0xff] }
 0x2b4   :  { %3147 = vmatprep.subr.mxu0 %v2009_v40  ;;  %3185 = vmatprep.subr.mxu1 %v2041_v61  ;;  %v2017_v8 = vld [vmem:[#allocation3 + $0x338] sm:$0xff]  ;;  %v2016_v60 = vld [vmem:[#allocation3 + $0x330] sm:$0xff]  ;;  %v2015_v57 = vld [vmem:[#allocation3 + $0x328] sm:$0xff] }
 0x2b5   :  { %3148 = vmatpush3.msra.mxu0 %v1993_v0  ;;  %3186 = vmatpush3.msra.mxu1 %v2025_v1  ;;  %v1998_v32 = vld [vmem:[#allocation3 + $0x2a0] sm:$0xff]  ;;  %v2153_v6 = vld [vmem:[%s7409_s11 + $0x78] sm:$0x3]  ;;  %v2152_v15 = vld [vmem:[%s7409_s11 + $0x70] sm:$0x3] }
 0x2b6   :  { %3149 = vmatprep.subr.mxu0 %v2008_v52  ;;  %3187 = vmatprep.subr.mxu1 %v2040_v42  ;;  %v2030_v10 = vld [vmem:[#allocation3 + $0x3a0] sm:$0xff]  ;;  %v1997_v4 = vld [vmem:[#allocation3 + $0x298] sm:$0xff]  ;;  %v2155_v44 = vld [vmem:[%s7409_s11 + $0x88] sm:$0x3] }
 0x2b7   :  { %3150 = vmatpush3.msra.mxu0 %v1992_v43  ;;  %3188 = vmatpush3.msra.mxu1 %v2024_v46  ;;  %v1982_v33 = vld [vmem:[#allocation3 + $0x220] sm:$0xff]  ;;  %v2029_v17 = vld [vmem:[#allocation3 + $0x398] sm:$0xff]  ;;  %v1996_v26 = vld [vmem:[#allocation3 + $0x290] sm:$0xff] }
 0x2b8   :  { %3151 = vmatprep.subr.mxu0 %v2007_v25  ;;  %3189 = vmatprep.subr.mxu1 %v2039_v34  ;;  %v2014_v31 = vld [vmem:[#allocation3 + $0x320] sm:$0xff]  ;;  %v1981_v47 = vld [vmem:[#allocation3 + $0x218] sm:$0xff]  ;;  %v2028_v41 = vld [vmem:[#allocation3 + $0x390] sm:$0xff] }
 0x2b9   :  { %3152 = vmatpush3.msra.mxu0 %v1991_v58  ;;  %3190 = vmatpush3.msra.mxu1 %v2023_v50  ;;  %v2013_v24 = vld [vmem:[#allocation3 + $0x318] sm:$0xff]  ;;  %v2154_v16 = vld [vmem:[%s7409_s11 + $0x80] sm:$0x3]  ;;  %v1980_v55 = vld [vmem:[#allocation3 + $0x210] sm:$0xff] }
 0x2ba   :  { %3153 = vmatprep.subr.mxu0 %v2006_v56  ;;  %3191 = vmatprep.subr.mxu1 %v2038_v20  ;;  %v2012_v7 = vld [vmem:[#allocation3 + $0x310] sm:$0xff]  ;;  %v1995_v30 = vld [vmem:[#allocation3 + $0x288] sm:$0xff]  ;;  %v1994_v40 = vld [vmem:[#allocation3 + $0x280] sm:$0xff] }
 0x2bb   :  { %3154 = vmatpush3.msra.mxu0 %v1990_v36  ;;  %3192 = vmatpush3.msra.mxu1 %v2022_v62  ;;  %v2027_v49 = vld [vmem:[#allocation3 + $0x388] sm:$0xff]  ;;  %v2026_v61 = vld [vmem:[#allocation3 + $0x380] sm:$0xff]  ;;  %v2145_v42 = vld [vmem:[%s7409_s11 + $0x38] sm:$0xff] }
 0x2bc   :  { %3155 = vmatprep.subr.mxu0 %v2005_v51  ;;  %3193 = vmatprep.subr.mxu1 %v2037_v48  ;;  %v1979_v39 = vld [vmem:[#allocation3 + $0x208] sm:$0xff]  ;;  %v1978_v0 = vld [vmem:[#allocation3 + $0x200] sm:$0xff]  ;;  %v2144_v46 = vld [vmem:[%s7409_s11 + $0x30] sm:$0xff] }
 0x2bd   :  { %3156 = vmatpush3.msra.mxu0 %v1989_v37  ;;  %3194 = vmatpush3.msra.mxu1 %v2021_v35  ;;  %v2011_v23 = vld [vmem:[#allocation3 + $0x308] sm:$0xff]  ;;  %v2010_v52 = vld [vmem:[#allocation3 + $0x300] sm:$0xff]  ;;  %v2073_v25 = vld [vmem:[#allocation3 + $0x4f8] sm:$0xff] }
 0x2be   :  { %3157 = vmatprep.subr.mxu0 %v2004_v18  ;;  %3195 = vmatprep.subr.mxu1 %v2036_v3  ;;  %v2143_v1 = vld [vmem:[%s7409_s11 + $0x28] sm:$0xff]  ;;  %v2142_v43 = vld [vmem:[%s7409_s11 + $0x20] sm:$0xff]  ;;  %v2105_v34 = vld [vmem:[#allocation3 + $0x5f8] sm:$0xff] }
 0x2bf   :  { %3158 = vmatpush3.msra.mxu0 %v1988_v59  ;;  %3196 = vmatpush3.msra.mxu1 %v2020_v5  ;;  %v2057_v58 = vld [vmem:[#allocation3 + $0x478] sm:$0xff]  ;;  %v2072_v56 = vld [vmem:[#allocation3 + $0x4f0] sm:$0xff]  ;;  %v2071_v37 = vld [vmem:[#allocation3 + $0x4e8] sm:$0xff] }
 0x2c0   :  { %3159 = vmatprep.subr.mxu0 %v2003_v14  ;;  %3197 = vmatprep.subr.mxu1 %v2035_v38  ;;  %v2089_v50 = vld [vmem:[#allocation3 + $0x578] sm:$0xff]  ;;  %v2104_v20 = vld [vmem:[#allocation3 + $0x5f0] sm:$0xff]  ;;  %v2103_v35 = vld [vmem:[#allocation3 + $0x5e8] sm:$0xff] }
 0x2c1   :  { %3160 = vmatpush3.msra.mxu0 %v1987_v54  ;;  %3198 = vmatpush3.msra.mxu1 %v2019_v53  ;;  %v2157_v36 = vld [vmem:[%s7409_s11 + $0x98] sm:$0x3]  ;;  %v2056_v62 = vld [vmem:[#allocation3 + $0x470] sm:$0xff]  ;;  %v2159_v18 = vld [vmem:[%s7409_s11 + $0xa8] sm:$0x3] }
 0x2c2   :  { %3161 = vmatprep.subr.mxu0 %v2002_v63  ;;  %3199 = vmatprep.subr.mxu1 %v2034_v45  ;;  %v2088_v51 = vld [vmem:[#allocation3 + $0x570] sm:$0xff]  ;;  %v2055_v3 = vld [vmem:[#allocation3 + $0x468] sm:$0xff]  ;;  %v2070_v5 = vld [vmem:[#allocation3 + $0x4e0] sm:$0xff] }
 0x2c3   :  { %3162 = vmatpush3.msra.mxu0 %v1986_v29  ;;  %3200 = vmatpush3.msra.mxu1 %v2018_v28  ;;  %v2156_v48 = vld [vmem:[%s7409_s11 + $0x90] sm:$0x3]  ;;  %v2087_v59 = vld [vmem:[#allocation3 + $0x568] sm:$0xff]  ;;  %v2158_v14 = vld [vmem:[%s7409_s11 + $0xa0] sm:$0x3] }
 0x2c4   :  { %3163 = vmatprep.subr.mxu0 %v2001_v19  ;;  %3201 = vmatprep.subr.mxu1 %v2033_v9  ;;  %v2102_v38 = vld [vmem:[#allocation3 + $0x5e0] sm:$0xff]  ;;  %v2069_v63 = vld [vmem:[#allocation3 + $0x4d8] sm:$0xff]  ;;  %v2068_v19 = vld [vmem:[#allocation3 + $0x4d0] sm:$0xff] }
 0x2c5   :  { %3164 = vmatpush3.msra.mxu0 %v1985_v22  ;;  %3202 = vmatpush3.msra.mxu1 %v2017_v8  ;;  %v2054_v54 = vld [vmem:[#allocation3 + $0x460] sm:$0xff]  ;;  %v2101_v45 = vld [vmem:[#allocation3 + $0x5d8] sm:$0xff]  ;;  %v2100_v9 = vld [vmem:[#allocation3 + $0x5d0] sm:$0xff] }
 0x2c6   :  { %3165 = vmatprep.subr.mxu0 %v2000_v11  ;;  %3203 = vmatprep.subr.mxu1 %v2032_v21  ;;  %v2086_v53 = vld [vmem:[#allocation3 + $0x560] sm:$0xff]  ;;  %v2053_v29 = vld [vmem:[#allocation3 + $0x458] sm:$0xff]  ;;  %v2052_v22 = vld [vmem:[#allocation3 + $0x450] sm:$0xff] }
 0x2c7   :  { %3166 = vmatpush3.msra.mxu0 %v1984_v2  ;;  %3204 = vmatpush3.msra.mxu1 %v2016_v60  ;;  %v2085_v28 = vld [vmem:[#allocation3 + $0x558] sm:$0xff]  ;;  %v2084_v8 = vld [vmem:[#allocation3 + $0x550] sm:$0xff]  ;;  %v2067_v11 = vld [vmem:[#allocation3 + $0x4c8] sm:$0xff] }
 0x2c8   :  { %3167 = vmatprep.subr.mxu0 %v1999_v27  ;;  %3205 = vmatprep.subr.mxu1 %v2031_v12  ;;  %v2099_v21 = vld [vmem:[#allocation3 + $0x5c8] sm:$0xff]  ;;  %v2066_v27 = vld [vmem:[#allocation3 + $0x4c0] sm:$0xff] }
 0x2c9   :  { %3168 = vmatpush3.msra.mxu0 %v1983_v13  ;;  %3206 = vmatpush3.msra.mxu1 %v2015_v57  ;;  %v2051_v2 = vld [vmem:[#allocation3 + $0x448] sm:$0xff]  ;;  %v2098_v12 = vld [vmem:[#allocation3 + $0x5c0] sm:$0xff] }
 0x2ca   :  { %3169 = vmatprep.subr.mxu0 %v1998_v32  ;;  %3207 = vmatprep.subr.mxu1 %v2030_v10  ;;  %v2083_v60 = vld [vmem:[#allocation3 + $0x548] sm:$0xff]  ;;  %v2050_v13 = vld [vmem:[#allocation3 + $0x440] sm:$0xff]  ;;  %v2065_v32 = vld [vmem:[#allocation3 + $0x4b8] sm:$0xff] }
 0x2cb   :  { %3170 = vmatpush3.msra.mxu0 %v1982_v33  ;;  %3208 = vmatpush3.msra.mxu1 %v2014_v31  ;;  %v2082_v57 = vld [vmem:[#allocation3 + $0x540] sm:$0xff]  ;;  %v2097_v10 = vld [vmem:[#allocation3 + $0x5b8] sm:$0xff] }
 0x2cc   :  { %2247 = vmatprep.mubr.f32.mxu0 %v2153_v6  ;;  %3171 = vmatprep.subr.mxu0 %v1997_v4  ;;  %v2049_v33 = vld [vmem:[#allocation3 + $0x438] sm:$0xff]  ;;  %v2064_v6 = vld [vmem:[#allocation3 + $0x4b0] sm:$0xff] }
 0x2cd   :  { %3209 = vmatprep.subr.mxu1 %v2029_v17  ;;  %2248 = vmatmul.mubr.f32.gmra.mxu0 %v2152_v15  ;;  %v2081_v31 = vld [vmem:[#allocation3 + $0x538] sm:$0xff]  ;;  %v2096_v4 = vld [vmem:[#allocation3 + $0x5b0] sm:$0xff] }
 0x2ce   :  { %3172 = vmatpush3.msra.mxu0 %v1981_v47  ;;  %3210 = vmatpush3.msra.mxu1 %v2013_v24  ;;  %v2048_v17 = vld [vmem:[#allocation3 + $0x430] sm:$0xff]  ;;  %v2063_v47 = vld [vmem:[#allocation3 + $0x4a8] sm:$0xff] }
 0x2cf   :  { %2322 = vmatprep.mubr.f32.mxu1 %v2155_v44  ;;  %3173 = vmatprep.subr.mxu0 %v1996_v26  ;;  %v2080_v15 = vld [vmem:[#allocation3 + $0x530] sm:$0xff]  ;;  %v2095_v24 = vld [vmem:[#allocation3 + $0x5a8] sm:$0xff] }
 0x2d0   :  { %3211 = vmatprep.subr.mxu1 %v2028_v41  ;;  %2323 = vmatmul.mubr.f32.gmra.mxu1 %v2154_v16  ;;  %v2047_v44 = vld [vmem:[#allocation3 + $0x428] sm:$0xff]  ;;  %v2062_v41 = vld [vmem:[#allocation3 + $0x4a0] sm:$0xff] }
 0x2d1   :  { %3174 = vmatpush3.msra.mxu0 %v1980_v55  ;;  %3212 = vmatpush3.msra.mxu1 %v2012_v7  ;;  %v2079_v26 = vld [vmem:[#allocation3 + $0x528] sm:$0xff]  ;;  %v2094_v16 = vld [vmem:[#allocation3 + $0x5a0] sm:$0xff] }
 0x2d2   :  { %3175 = vmatprep.subr.mxu0 %v1995_v30  ;;  %3213 = vmatprep.subr.mxu1 %v2027_v49  ;;  %v2046_v55 = vld [vmem:[#allocation3 + $0x420] sm:$0xff]  ;;  %v2061_v30 = vld [vmem:[#allocation3 + $0x498] sm:$0xff] }
 0x2d3   :  { %3176 = vmatpush3.msra.mxu0 %v1979_v39  ;;  %3214 = vmatpush3.msra.mxu1 %v2011_v23  ;;  %v2078_v7 = vld [vmem:[#allocation3 + $0x520] sm:$0xff]  ;;  %v2093_v49 = vld [vmem:[#allocation3 + $0x598] sm:$0xff] }
 0x2d4   :  { %3177 = vmatprep.subr.mxu0 %v1994_v40  ;;  %3215 = vmatprep.subr.mxu1 %v2026_v61  ;;  %v2045_v39 = vld [vmem:[#allocation3 + $0x418] sm:$0xff]  ;;  %v2060_v40 = vld [vmem:[#allocation3 + $0x490] sm:$0xff] }
 0x2d5   :  { %3178 = vmatpush3.msra.mxu0 %v1978_v0  ;;  %2392 = vmatprep.mubr.f32.mxu0 %v2143_v1  ;;  %v2077_v23 = vld [vmem:[#allocation3 + $0x518] sm:$0xff]  ;;  %v2092_v61 = vld [vmem:[#allocation3 + $0x590] sm:$0xff] }
 0x2d6   :  { %3216 = vmatpush3.msra.mxu1 %v2010_v52  ;;  %2467 = vmatprep.mubr.f32.mxu1 %v2145_v42  ;;  %v2044_v0 = vld [vmem:[#allocation3 + $0x410] sm:$0xff]  ;;  %v2059_v52 = vld [vmem:[#allocation3 + $0x488] sm:$0xff] }
 0x2d7   :  { %2393 = vmatmul.mubr.f32.vlgmr.msra.gmra.mxu0 %v2142_v43  ;;  %2468 = vmatmul.mubr.f32.vlgmr.msra.gmra.mxu1 %v2144_v46  ;;  %v2076_v1 = vld [vmem:[#allocation3 + $0x510] sm:$0xff]  ;;  %v2091_v42 = vld [vmem:[#allocation3 + $0x588] sm:$0xff] }
 0x2d8   :  { %3223 = vmatprep.subr.mxu0 %v2073_v25  ;;  %3261 = vmatprep.subr.mxu1 %v2105_v34  ;;  %v2043_v43 = vld [vmem:[#allocation3 + $0x408] sm:$0xff]  ;;  %v2058_v25 = vld [vmem:[#allocation3 + $0x480] sm:$0xff] }
 0x2d9   :  { %3224 = vmatpush3.msra.mxu0 %v2057_v58  ;;  %3262 = vmatpush3.msra.mxu1 %v2089_v50  ;;  %v2075_v46 = vld [vmem:[#allocation3 + $0x508] sm:$0xff]  ;;  %v2090_v34 = vld [vmem:[#allocation3 + $0x580] sm:$0xff] }
 0x2da   :  { %3225 = vmatprep.subr.mxu0 %v2072_v56  ;;  %3263 = vmatprep.subr.mxu1 %v2104_v20  ;;  %v2042_v58 = vld [vmem:[#allocation3 + $0x400] sm:$0xff]  ;;  %v2147_v50 = vld [vmem:[%s7409_s11 + $0x48] sm:$0xff]  ;;  %v2149_v20 = vld [vmem:[%s7409_s11 + $0x58] sm:$0xff] }
 0x2db   :  { %2397 = vmatprep.mubr.f32.mxu0 %v2157_v36  ;;  %3226 = vmatpush3.msra.mxu0 %v2056_v62  ;;  %v2074_v56 = vld [vmem:[#allocation3 + $0x500] sm:$0xff]  ;;  %v2148_v62 = vld [vmem:[%s7409_s11 + $0x50] sm:$0xff] }
 0x2dc   :  { %3264 = vmatpush3.msra.mxu1 %v2088_v51  ;;  %2398 = vmatmul.mubr.f32.gmra.mxu0 %v2156_v48  ;;  %v2146_v36 = vld [vmem:[%s7409_s11 + $0x40] sm:$0xff]  ;;  %v2137_v51 = vld [vmem:[#allocation3 + $0x6f8] sm:$0xff] }
 0x2dd   :  { %3227 = vmatprep.subr.mxu0 %v2071_v37  ;;  %3265 = vmatprep.subr.mxu1 %v2103_v35  ;;  %v2121_v48 = vld [vmem:[#allocation3 + $0x678] sm:$0xff]  ;;  %v2136_v37 = vld [vmem:[#allocation3 + $0x6f0] sm:$0xff] }
 0x2de   :  { %2472 = vmatprep.mubr.f32.mxu1 %v2159_v18  ;;  %3228 = vmatpush3.msra.mxu0 %v2055_v3  ;;  %v2161_v35 = vld [vmem:[%s7409_s11 + $0xb8] sm:$0x3]  ;;  %v2120_v18 = vld [vmem:[#allocation3 + $0x670] sm:$0xff] }
 0x2df   :  { %3266 = vmatpush3.msra.mxu1 %v2087_v59  ;;  %3229 = vmatprep.subr.mxu0 %v2070_v5  ;;  %v2160_v3 = vld [vmem:[%s7409_s11 + $0xb0] sm:$0x3]  ;;  %v2135_v59 = vld [vmem:[#allocation3 + $0x6e8] sm:$0xff] }
 0x2e0   :  { %2473 = vmatmul.mubr.f32.gmra.mxu1 %v2158_v14  ;;  %3267 = vmatprep.subr.mxu1 %v2102_v38  ;;  %v2163_v5 = vld [vmem:[%s7409_s11 + $0xc8] sm:$0x3]  ;;  %v2134_v38 = vld [vmem:[#allocation3 + $0x6e0] sm:$0xff] }
 0x2e1   :  { %3230 = vmatpush3.msra.mxu0 %v2054_v54  ;;  %3268 = vmatpush3.msra.mxu1 %v2086_v53  ;;  %v2119_v14 = vld [vmem:[#allocation3 + $0x668] sm:$0xff]  ;;  %v2162_v54 = vld [vmem:[%s7409_s11 + $0xc0] sm:$0x3] }
 0x2e2   :  { %3231 = vmatprep.subr.mxu0 %v2069_v63  ;;  %3269 = vmatprep.subr.mxu1 %v2101_v45  ;;  %v2118_v53 = vld [vmem:[#allocation3 + $0x660] sm:$0xff]  ;;  %v2133_v63 = vld [vmem:[#allocation3 + $0x6d8] sm:$0xff] }
 0x2e3   :  { %3232 = vmatpush3.msra.mxu0 %v2053_v29  ;;  %3270 = vmatpush3.msra.mxu1 %v2085_v28  ;;  %v2166_v45 = vld [vmem:[%s7410_s19] sm:$0xff]  ;;  %v2117_v29 = vld [vmem:[#allocation3 + $0x658] sm:$0xff]  ;;  %v3567_v28 = vmov 0  }
 0x2e4   :  { %3233 = vmatprep.subr.mxu0 %v2068_v19  ;;  %3271 = vmatprep.subr.mxu1 %v2100_v9  ;;  %v2132_v19 = vld [vmem:[#allocation3 + $0x6d0] sm:$0xff] }
 0x2e5   :  { %3234 = vmatpush3.msra.mxu0 %v2052_v22  ;;  %3272 = vmatpush3.msra.mxu1 %v2084_v8  ;;  %v2116_v9 = vld [vmem:[#allocation3 + $0x650] sm:$0xff]  ;;  %v2131_v22 = vld [vmem:[#allocation3 + $0x6c8] sm:$0xff] }
 0x2e6   :  { %3235 = vmatprep.subr.mxu0 %v2067_v11  ;;  %3273 = vmatprep.subr.mxu1 %v2099_v21  ;;  %v2115_v8 = vld [vmem:[#allocation3 + $0x648] sm:$0xff]  ;;  %v2130_v11 = vld [vmem:[#allocation3 + $0x6c0] sm:$0xff] }
 0x2e7   :  { %3236 = vmatpush3.msra.mxu0 %v2051_v2  ;;  %3274 = vmatpush3.msra.mxu1 %v2083_v60  ;;  %v2114_v21 = vld [vmem:[#allocation3 + $0x640] sm:$0xff]  ;;  %v2129_v2 = vld [vmem:[#allocation3 + $0x6b8] sm:$0xff] }
 0x2e8   :  { %3237 = vmatprep.subr.mxu0 %v2066_v27  ;;  %3275 = vmatprep.subr.mxu1 %v2098_v12  ;;  %v2113_v60 = vld [vmem:[#allocation3 + $0x638] sm:$0xff]  ;;  %v2128_v27 = vld [vmem:[#allocation3 + $0x6b0] sm:$0xff] }
 0x2e9   :  { %3238 = vmatpush3.msra.mxu0 %v2050_v13  ;;  %3276 = vmatpush3.msra.mxu1 %v2082_v57  ;;  %v2112_v12 = vld [vmem:[#allocation3 + $0x630] sm:$0xff]  ;;  %v2127_v13 = vld [vmem:[#allocation3 + $0x6a8] sm:$0xff] }
 0x2ea   :  { %3239 = vmatprep.subr.mxu0 %v2065_v32  ;;  %3277 = vmatprep.subr.mxu1 %v2097_v10  ;;  %v2111_v57 = vld [vmem:[#allocation3 + $0x628] sm:$0xff]  ;;  %v2126_v32 = vld [vmem:[#allocation3 + $0x6a0] sm:$0xff] }
 0x2eb   :  { %3240 = vmatpush3.msra.mxu0 %v2049_v33  ;;  %3278 = vmatpush3.msra.mxu1 %v2081_v31  ;;  %v2110_v10 = vld [vmem:[#allocation3 + $0x620] sm:$0xff]  ;;  %v2125_v33 = vld [vmem:[#allocation3 + $0x698] sm:$0xff] }
 0x2ec   :  { %3241 = vmatprep.subr.mxu0 %v2064_v6  ;;  %3279 = vmatprep.subr.mxu1 %v2096_v4  ;;  %v2109_v31 = vld [vmem:[#allocation3 + $0x618] sm:$0xff]  ;;  %v2124_v6 = vld [vmem:[#allocation3 + $0x690] sm:$0xff] }
 0x2ed   :  { %3242 = vmatpush3.msra.mxu0 %v2048_v17  ;;  %3280 = vmatpush3.msra.mxu1 %v2080_v15  ;;  %v2108_v4 = vld [vmem:[#allocation3 + $0x610] sm:$0xff]  ;;  %v2123_v17 = vld [vmem:[#allocation3 + $0x688] sm:$0xff] }
 0x2ee   :  { %3243 = vmatprep.subr.mxu0 %v2063_v47  ;;  %3281 = vmatprep.subr.mxu1 %v2095_v24  ;;  %v2107_v15 = vld [vmem:[#allocation3 + $0x608] sm:$0xff]  ;;  %v2122_v47 = vld [vmem:[#allocation3 + $0x680] sm:$0xff] }
 0x2ef   :  { %3244 = vmatpush3.msra.mxu0 %v2047_v44  ;;  %3282 = vmatpush3.msra.mxu1 %v2079_v26  ;;  %v2106_v24 = vld [vmem:[#allocation3 + $0x600] sm:$0xff]  ;;  %v2151_v44 = vld [vmem:[%s7409_s11 + $0x68] sm:$0xff]  ;;  %v2165_v26 = vld [vmem:[%s7409_s11 + $0xd8] sm:$0x3] }
 0x2f0   :  { %3245 = vmatprep.subr.mxu0 %v2062_v41  ;;  %3283 = vmatprep.subr.mxu1 %v2094_v16  ;;  %v2150_v41 = vld [vmem:[%s7409_s11 + $0x60] sm:$0xff]  ;;  %v2164_v16 = vld [vmem:[%s7409_s11 + $0xd0] sm:$0x3] }
 0x2f1   :  { %3246 = vmatpush3.msra.mxu0 %v2046_v55  ;;  %3284 = vmatpush3.msra.mxu1 %v2078_v7  ;;  %v2167_v55 = vld [vmem:[%s7410_s19 + $0x8] sm:$0x3] }
 0x2f2   :  { %3247 = vmatprep.subr.mxu0 %v2061_v30  ;;  %3285 = vmatprep.subr.mxu1 %v2093_v49 }
 0x2f3   :  { %3248 = vmatpush3.msra.mxu0 %v2045_v39  ;;  %3286 = vmatpush3.msra.mxu1 %v2077_v23 }
 0x2f4   :  { %3249 = vmatprep.subr.mxu0 %v2060_v40  ;;  %3287 = vmatprep.subr.mxu1 %v2092_v61 }
 0x2f5   :  { %3250 = vmatpush3.msra.mxu0 %v2044_v0  ;;  %3288 = vmatpush3.msra.mxu1 %v2076_v1 }
 0x2f6   :  { %3251 = vmatprep.subr.mxu0 %v2059_v52  ;;  %3289 = vmatprep.subr.mxu1 %v2091_v42 }
 0x2f7   :  { %3252 = vmatpush3.msra.mxu0 %v2043_v43  ;;  %3290 = vmatpush3.msra.mxu1 %v2075_v46 }
 0x2f8   :  { %3253 = vmatprep.subr.mxu0 %v2058_v25  ;;  %3291 = vmatprep.subr.mxu1 %v2090_v34 }
 0x2f9   :  { %3254 = vmatpush3.msra.mxu0 %v2042_v58  ;;  %2542 = vmatprep.mubr.f32.mxu0 %v2147_v50 }
 0x2fa   :  { %3292 = vmatpush3.msra.mxu1 %v2074_v56  ;;  %2617 = vmatprep.mubr.f32.mxu1 %v2149_v20 }
 0x2fb   :  { %2543 = vmatmul.mubr.f32.vlgmr.msra.gmra.mxu0 %v2146_v36  ;;  %2618 = vmatmul.mubr.f32.vlgmr.msra.gmra.mxu1 %v2148_v62 }
 0x2fc   :  { %3299 = vmatprep.subr.mxu0 %v2137_v51  ;;  %3337 = vmatprep.subr.mxu1 %v2137_v51 }
 0x2fd   :  { %3300 = vmatpush3.msra.mxu0 %v2121_v48  ;;  %3353 = vmatpush3.msra.mxu1 %v2121_v48 }
 0x2fe   :  { %3301 = vmatprep.subr.mxu0 %v2136_v37  ;;  %3338 = vmatprep.subr.mxu1 %v2136_v37 }
 0x2ff   :  { %2547 = vmatprep.mubr.f32.mxu0 %v2161_v35  ;;  %3302 = vmatpush3.msra.mxu0 %v2120_v18 }
 0x300   :  { %3354 = vmatpush3.msra.mxu1 %v2120_v18  ;;  %2548 = vmatmul.mubr.f32.gmra.mxu0 %v2160_v3 }
 0x301   :  { %3303 = vmatprep.subr.mxu0 %v2135_v59  ;;  %3339 = vmatprep.subr.mxu1 %v2135_v59 }
 0x302   :  { %2622 = vmatprep.mubr.f32.mxu1 %v2163_v5  ;;  %3304 = vmatpush3.msra.mxu0 %v2119_v14 }
 0x303   :  { %3355 = vmatpush3.msra.mxu1 %v2119_v14  ;;  %3305 = vmatprep.subr.mxu0 %v2134_v38 }
 0x304   :  { %2623 = vmatmul.mubr.f32.gmra.mxu1 %v2162_v54  ;;  %3340 = vmatprep.subr.mxu1 %v2134_v38 }
 0x305   :  { %3306 = vmatpush3.msra.mxu0 %v2118_v53  ;;  %3356 = vmatpush3.msra.mxu1 %v2118_v53 }
 0x306   :  { %3489 = vset.pattern.permute.xlu0 %v3567_v28  ;;  %3307 = vmatprep.subr.mxu0 %v2133_v63 }
 0x307   :  { %3341 = vmatprep.subr.mxu1 %v2133_v63  ;;  %2170 = vperm.xlu0 %3489, %v2166_v45  }
 0x308   :  { %3308 = vmatpush3.msra.mxu0 %v2117_v29  ;;  %3357 = vmatpush3.msra.mxu1 %v2117_v29 }
 0x309   :  { %3309 = vmatprep.subr.mxu0 %v2132_v19  ;;  %3342 = vmatprep.subr.mxu1 %v2132_v19 }
 0x30a   :  { %3310 = vmatpush3.msra.mxu0 %v2116_v9  ;;  %3358 = vmatpush3.msra.mxu1 %v2116_v9 }
 0x30b   :  { %3311 = vmatprep.subr.mxu0 %v2131_v22  ;;  %3343 = vmatprep.subr.mxu1 %v2131_v22 }
 0x30c   :  { %3312 = vmatpush3.msra.mxu0 %v2115_v8  ;;  %3359 = vmatpush3.msra.mxu1 %v2115_v8 }
 0x30d   :  { %3313 = vmatprep.subr.mxu0 %v2130_v11  ;;  %3344 = vmatprep.subr.mxu1 %v2130_v11 }
 0x30e   :  { %3314 = vmatpush3.msra.mxu0 %v2114_v21  ;;  %3360 = vmatpush3.msra.mxu1 %v2114_v21 }
 0x30f   :  { %3315 = vmatprep.subr.mxu0 %v2129_v2  ;;  %3345 = vmatprep.subr.mxu1 %v2129_v2 }
 0x310   :  { %3316 = vmatpush3.msra.mxu0 %v2113_v60  ;;  %3361 = vmatpush3.msra.mxu1 %v2113_v60 }
 0x311   :  { %3317 = vmatprep.subr.mxu0 %v2128_v27  ;;  %3346 = vmatprep.subr.mxu1 %v2128_v27 }
 0x312   :  { %3318 = vmatpush3.msra.mxu0 %v2112_v12  ;;  %3362 = vmatpush3.msra.mxu1 %v2112_v12 }
 0x313   :  { %3319 = vmatprep.subr.mxu0 %v2127_v13  ;;  %3347 = vmatprep.subr.mxu1 %v2127_v13 }
 0x314   :  { %3320 = vmatpush3.msra.mxu0 %v2111_v57  ;;  %3363 = vmatpush3.msra.mxu1 %v2111_v57 }
 0x315   :  { %3321 = vmatprep.subr.mxu0 %v2126_v32  ;;  %3348 = vmatprep.subr.mxu1 %v2126_v32 }
 0x316   :  { %3322 = vmatpush3.msra.mxu0 %v2110_v10  ;;  %3364 = vmatpush3.msra.mxu1 %v2110_v10 }
 0x317   :  { %3323 = vmatprep.subr.mxu0 %v2125_v33  ;;  %3349 = vmatprep.subr.mxu1 %v2125_v33 }
 0x318   :  { %3324 = vmatpush3.msra.mxu0 %v2109_v31  ;;  %3365 = vmatpush3.msra.mxu1 %v2109_v31 }
 0x319   :  { %3325 = vmatprep.subr.mxu0 %v2124_v6  ;;  %3350 = vmatprep.subr.mxu1 %v2124_v6 }
 0x31a   :  { %3326 = vmatpush3.msra.mxu0 %v2108_v4  ;;  %3366 = vmatpush3.msra.mxu1 %v2108_v4 }
 0x31b   :  { %3327 = vmatprep.subr.mxu0 %v2123_v17  ;;  %3351 = vmatprep.subr.mxu1 %v2123_v17 }
 0x31c   :  { %3328 = vmatpush3.msra.mxu0 %v2107_v15  ;;  %3367 = vmatpush3.msra.mxu1 %v2107_v15 }
 0x31d   :  { %3329 = vmatprep.subr.mxu0 %v2122_v47  ;;  %3352 = vmatprep.subr.mxu1 %v2122_v47 }
 0x31e   :  { %3330 = vmatpush3.msra.mxu0 %v2106_v24  ;;  %3368 = vmatpush3.msra.mxu1 %v2106_v24 }
 0x31f   :  { %2692 = vmatprep.mubr.f32.mxu0 %v2151_v44  ;;  %2697 = vmatprep.mubr.f32.mxu1 %v2165_v26 }
 0x320   :  { %2693 = vmatmul.mubr.f32.vlgmr.msra.gmra.mxu0 %v2150_v41  ;;  %2698 = vmatmul.mubr.f32.vlgmr.msra.gmra.mxu1 %v2164_v16 }
 0x321   :  { %2175 = vperm.xlu0 %3489, %v2167_v55  }
 0x373   :  { %v3103_v7 = vpop.f32.mrf.mxu0  ;;  %v3141_v49 = vpop.f32.mrf.mxu1 }
 0x375   :  { %v3104_v30 = vpop.f32.mrf.mxu0  ;;  %v3142_v23 = vpop.f32.mrf.mxu1 }
 0x376   :  { %v3105_v56 = vadd.f32 %v3104_v30, %v3103_v7  ;;  %v3143_v59 = vadd.f32 %v3142_v23, %v3141_v49 }
 0x382   :  { %v2171_v34 = vpop.permute.xlu0 %2170 }
 0x383   :  { %v2245_v37 = vadd.f32 %v3105_v56, %v2171_v34 }
 0x385   :  { %v2320_v54 = vadd.f32 %v3143_v59, %v2245_v37 }
 0x38d   :  { %v3106_v39 = vpop.f32.mrf.mxu0 }
 0x38f   :  { %v3107_v40 = vpop.f32.mrf.mxu0 }
 0x390   :  { %v3144_v61 = vpop.f32.mrf.mxu1  ;;  %v3108_v20 = vadd.f32 %v3107_v40, %v3106_v39 }
 0x392   :  { %v3145_v1 = vpop.f32.mrf.mxu1 }
 0x393   :  { %v3146_v18 = vadd.f32 %v3145_v1, %v3144_v61 }
 0x397   :  { %v3179_v0 = vpop.f32.mrf.mxu0  ;;  %v3217_v42 = vpop.f32.mrf.mxu1 }
 0x399   :  { %v3180_v52 = vpop.f32.mrf.mxu0  ;;  %v3218_v46 = vpop.f32.mrf.mxu1 }
 0x39a   :  { %v3181_v5 = vadd.f32 %v3180_v52, %v3179_v0  ;;  %v3219_v9 = vadd.f32 %v3218_v46, %v3217_v42 }
 0x39c   :  { %v3182_v43 = vpop.f32.mrf.mxu0  ;;  %v2176_v36 = vpop.permute.xlu0 %2175  ;;  %v2395_v29 = vadd.f32 %v3181_v5, %v2320_v54 }
 0x39d   :  { %v2250_v35 = vadd.f32 %v3108_v20, %v2176_v36 }
 0x39e   :  { %v3183_v25 = vpop.f32.mrf.mxu0  ;;  %v2470_v21 = vadd.f32 %v3219_v9, %v2395_v29 }
 0x39f   :  { %v3184_v14 = vadd.f32 %v3183_v25, %v3182_v43  ;;  %v2325_v53 = vadd.f32 %v3146_v18, %v2250_v35 }
 0x3a0   :  { %v3220_v58 = vpop.f32.mrf.mxu1 }
 0x3a1   :  { %v2400_v28 = vadd.f32 %v3184_v14, %v2325_v53 }
 0x3a2   :  { %v3221_v62 = vpop.f32.mrf.mxu1 }
 0x3a3   :  { %v3222_v19 = vadd.f32 %v3221_v62, %v3220_v58 }
 0x3a5   :  { %v2475_v2 = vadd.f32 %v3222_v19, %v2400_v28 }
 0x3bb   :  { %v3255_v50 = vpop.f32.mrf.mxu0  ;;  %v3293_v48 = vpop.f32.mrf.mxu1 }
 0x3bd   :  { %v3256_v51 = vpop.f32.mrf.mxu0  ;;  %v3294_v38 = vpop.f32.mrf.mxu1 }
 0x3be   :  { %v3257_v22 = vadd.f32 %v3256_v51, %v3255_v50  ;;  %v3295_v32 = vadd.f32 %v3294_v38, %v3293_v48 }
 0x3c0   :  { %v3258_v3 = vpop.f32.mrf.mxu0  ;;  %v2545_v60 = vadd.f32 %v3257_v22, %v2470_v21 }
 0x3c2   :  { %v3259_v63 = vpop.f32.mrf.mxu0  ;;  %v2620_v31 = vadd.f32 %v3295_v32, %v2545_v60 }
 0x3c3   :  { %v3260_v8 = vadd.f32 %v3259_v63, %v3258_v3 }
 0x3c4   :  { %v3296_v45 = vpop.f32.mrf.mxu1 }
 0x3c5   :  { %v2550_v27 = vadd.f32 %v3260_v8, %v2475_v2 }
 0x3c6   :  { %v3297_v11 = vpop.f32.mrf.mxu1 }
 0x3c7   :  { %v3298_v12 = vadd.f32 %v3297_v11, %v3296_v45 }
 0x3c9   :  { %v2625_v6 = vadd.f32 %v3298_v12, %v2550_v27 }
 0x3e0   :  { %v3331_v13 = vpop.f32.mrf.mxu0  ;;  %v3334_v57 = vpop.f32.mrf.mxu1 }
 0x3e2   :  { %v3332_v10 = vpop.f32.mrf.mxu0  ;;  %v3335_v33 = vpop.f32.mrf.mxu1 }
 0x3e3   :  { %v3333_v4 = vadd.f32 %v3332_v10, %v3331_v13  ;;  %v3336_v17 = vadd.f32 %v3335_v33, %v3334_v57 }
 0x3e5   :  { %v2695_v15 = vadd.f32 %v3333_v4, %v2620_v31  ;;  %v2700_v47 = vadd.f32 %v3336_v17, %v2625_v6 }
 0x3e7   :  { %2703 = vst [vmem:[%s7411_s7] sm:$0xff] %v2695_v15  ;;  %2704 = vst [vmem:[%s7411_s7 + $0x8] sm:$0x3] %v2700_v47 }
 0x3e8   :  { %2709 = vsyncpa [#allocation5], 1 }
 0x3e9   :  { %2710 = vsyncpa [#allocation7], 1 }
 0x3ea   :  { %2711 = vsyncpa [#allocation10], 1 }

</bundles_post_ra>
